<compile_context>
chip_gen: v5e
topology: v5e:2x2
jax: 0.10.0
libtpu: 0.0.40
codegen_flags: <defaults>
</compile_context>

<pallas_src>
import functools

import jax
import jax.numpy as jnp
from jax import lax
from jax.experimental import pallas as pl
from jax.experimental.pallas import tpu as pltpu

LANE = 128
K = 3  # 3x3 conv, SAME padding (fixed by the assumed backbone)


def _round_up(v, m):
    return ((v + m - 1) // m) * m


# ------------------------- fused Pallas kernel -------------------------

def fused_seq_kernel(x_ref, wconv_ref, bconv_ref, w1_ref, b1_ref, wc_ref, bc_ref,
                     feat_ref, out_ref):
    """One grid step == one batch sample (all S frames of one sequence).

    x_ref    : (S, H+2, W+2, C_in)  bf16  zero-padded NHWC frames of this sample
    wconv_ref: (K*K, C_in, C_out)   bf16  conv taps (tap-major repack of torch OIHW)
    bconv_ref: (1, C_out)           f32
    w1_ref   : (C_out, F_pad)       bf16  all task feature heads, lane-dense slab
    b1_ref   : (1, F_pad)           f32
    wc_ref   : (F_pad, O_pad)       bf16  block-diagonal classifier weights
    bc_ref   : (1, O_pad)           f32
    feat_ref : (1, S, F_pad)        f32   per-frame per-task features (output)
    out_ref  : (1, 1, O_pad)        f32   per-sample per-task logits  (output)
    """
    S, Hp, Wp, C_in = x_ref.shape
    H, W = Hp - 2, Wp - 2
    C_out = wconv_ref.shape[-1]
    rows = S * H * W

    # Load once; keep layout ops (slice/reshape) on f32 (8,128) tiles.
    x_t = x_ref[...].astype(jnp.float32)                 # (S, Hp, Wp, C_in)

    # ---- in-kernel im2col: conv3x3(SAME) as 9 shifted bf16 MXU matmuls,
    #      accumulated in f32. No HBM patch slab. ----
    acc = jnp.zeros((rows, C_out), jnp.float32)
    for ky in range(K):
        for kx in range(K):
            tap = x_t[:, ky:ky + H, kx:kx + W, :].reshape(rows, C_in)
            acc = acc + jnp.dot(tap.astype(jnp.bfloat16), wconv_ref[ky * K + kx],
                                preferred_element_type=jnp.float32)
    conv = jnp.maximum(acc + bconv_ref[...], 0.0)        # bias + ReLU, (rows, C_out)

    # ---- spatial global-avg-pool per frame: sublane reduce (XLU slack). ----
    f = jnp.mean(conv.reshape(S, H * W, C_out), axis=1)  # (S, C_out) f32

    # ---- all task feature heads fused in one lane-dense matmul. ----
    feat = jnp.dot(f.astype(jnp.bfloat16), w1_ref[...],
                   preferred_element_type=jnp.float32) + b1_ref[...]
    feat = jnp.maximum(feat, 0.0)                        # (S, F_pad)
    feat_ref[0] = feat                                   # full-width, unmasked store

    # ---- seq classifiers: temporal mean over S, then block-diag linear. ----
    pooled = jnp.mean(feat, axis=0, keepdims=True)       # (1, F_pad)
    out_ref[0] = jnp.dot(pooled.astype(jnp.bfloat16), wc_ref[...],
                         preferred_element_type=jnp.float32) + bc_ref[...]


# ------------------------- per-model (not per-call) weight packing -------------------------

def pack_params(params, num_tasks):
    """Hoisted out of the forward path: pack all per-task heads once."""
    w_conv = params["w_conv"]                            # (C_out, C_in, K, K) torch layout
    C_out, C_in, k, _ = w_conv.shape
    assert k == K
    # tap-major: wconv_taps[ky*K+kx][ci, co] == w_conv[co, ci, ky, kx]
    wconv_taps = jnp.transpose(w_conv, (2, 3, 1, 0)).reshape(K * K, C_in, C_out)

    hidden = int(params["feat_heads"][0]["w"].shape[1])
    o_sizes = tuple(int(params["classifiers"][t]["w"].shape[1]) for t in range(num_tasks))
    F_pad = _round_up(num_tasks * hidden, LANE)
    O_pad = _round_up(sum(o_sizes), LANE)

    w1 = jnp.concatenate([params["feat_heads"][t]["w"] for t in range(num_tasks)], axis=1)
    b1 = jnp.concatenate([params["feat_heads"][t]["b"] for t in range(num_tasks)], axis=0)
    wc = jax.scipy.linalg.block_diag(*[params["classifiers"][t]["w"] for t in range(num_tasks)])
    bc = jnp.concatenate([params["classifiers"][t]["b"] for t in range(num_tasks)], axis=0)

    packed = {
        "wconv": wconv_taps.astype(jnp.bfloat16),
        "bconv": params["b_conv"].reshape(1, C_out).astype(jnp.float32),
        "w1": jnp.pad(w1, ((0, 0), (0, F_pad - w1.shape[1]))).astype(jnp.bfloat16),
        "b1": jnp.pad(b1, (0, F_pad - b1.shape[0])).reshape(1, F_pad).astype(jnp.float32),
        "wc": jnp.pad(wc, ((0, F_pad - wc.shape[0]),
                           (0, O_pad - wc.shape[1]))).astype(jnp.bfloat16),
        "bc": jnp.pad(bc, (0, O_pad - bc.shape[0])).reshape(1, O_pad).astype(jnp.float32),
    }
    meta = {"hidden": hidden, "o_sizes": o_sizes}
    return packed, meta


# ------------------------- forward wrapper -------------------------

@functools.partial(jax.jit, static_argnames=("sofar_task", "hidden", "o_sizes"))
def seq_model_forward(x, packed, *, sofar_task, hidden, o_sizes):
    """Mirrors Seq_Model.forward. x: (B, S, C_in, H, W), NCHW per frame."""
    B, S, C_in, H, W = x.shape
    C_out = packed["wconv"].shape[-1]
    F_pad = packed["w1"].shape[1]
    O_pad = packed["wc"].shape[1]

    # NCHW -> zero-padded NHWC frames; bf16 halves the HBM traffic of the input.
    x_nhwc = jnp.transpose(x.reshape(B * S, C_in, H, W), (0, 2, 3, 1))
    x_pad = jnp.pad(x_nhwc, ((0, 0), (1, 1), (1, 1), (0, 0))).astype(jnp.bfloat16)

    feat_slab, out_slab = pl.pallas_call(
        fused_seq_kernel,
        out_shape=(jax.ShapeDtypeStruct((B, S, F_pad), jnp.float32),
                   jax.ShapeDtypeStruct((B, 1, O_pad), jnp.float32)),
        grid=(B,),
        in_specs=[
            pl.BlockSpec((S, H + 2, W + 2, C_in), lambda b: (b, 0, 0, 0)),
            pl.BlockSpec((K * K, C_in, C_out), lambda b: (0, 0, 0)),
            pl.BlockSpec((1, C_out), lambda b: (0, 0)),
            pl.BlockSpec((C_out, F_pad), lambda b: (0, 0)),
            pl.BlockSpec((1, F_pad), lambda b: (0, 0)),
            pl.BlockSpec((F_pad, O_pad), lambda b: (0, 0)),
            pl.BlockSpec((1, O_pad), lambda b: (0, 0)),
        ],
        out_specs=(pl.BlockSpec((1, S, F_pad), lambda b: (b, 0, 0)),
                   pl.BlockSpec((1, 1, O_pad), lambda b: (b, 0, 0))),
        compiler_params=pltpu.CompilerParams(
            dimension_semantics=("parallel",),        # independent samples -> v7x dual-TC
            vmem_limit_bytes=32 * 1024 * 1024),       # explicit: v5e default is only 16 MiB
    )(x_pad, packed["wconv"], packed["bconv"], packed["w1"], packed["b1"],
      packed["wc"], packed["bc"])

    outputs, features = {}, {}
    off = 0
    for t, task in enumerate(sofar_task):
        c0 = t * hidden
        features[task] = feat_slab[:, :, c0:c0 + hidden]        # (B, S, hidden)
        outputs[task] = out_slab[:, 0, off:off + o_sizes[t]]    # (B, num_classes_t)
        off += o_sizes[t]
    return {"output": outputs, "feature": features}


# ------------------------- reference (independent plain JAX, f32) -------------------------

def _ref_forward(x, params, sofar_task):
    B, S, C_in, H, W = x.shape
    x_flat = x.reshape(B * S, C_in, H, W)
    conv = lax.conv_general_dilated(
        x_flat, params["w_conv"], (1, 1), "SAME",
        dimension_numbers=("NCHW", "OIHW", "NCHW"),
        precision=jax.lax.Precision.HIGHEST)                     # (BS, C_out, H, W)
    conv = jnp.maximum(conv + params["b_conv"][None, :, None, None], 0.0)
    f = conv.mean(axis=(2, 3))                                   # GAP == AdaptiveAvgPool2d(1)
    outputs, features = {}, {}
    for t, task in enumerate(sofar_task):
        fh, cl = params["feat_heads"][t], params["classifiers"][t]
        feat = jnp.maximum(f @ fh["w"] + fh["b"], 0.0)           # backbone per-task feature
        feat_seq = feat.reshape(B, S, -1)                        # feature.view(B, N, -1)
        outputs[task] = feat_seq.mean(axis=1) @ cl["w"] + cl["b"]
        features[task] = feat_seq
    return {"output": outputs, "feature": features}


# ------------------------- main -------------------------

if __name__ == "__main__":
    key = jax.random.PRNGKey(0)
    B, S, C_in, H, W = 2, 4, 4, 16, 16
    C_out = 32
    hidden = 32
    sofar_task = ("task_a", "task_b")
    num_classes = (5, 7)

    keys = jax.random.split(key, 3 + 4 * len(sofar_task))
    x = jax.random.normal(keys[0], (B, S, C_in, H, W), dtype=jnp.float32)

    params = {
        "w_conv": 0.1 * jax.random.normal(keys[1], (C_out, C_in, K, K), dtype=jnp.float32),
        "b_conv": 0.01 * jax.random.normal(keys[2], (C_out,), dtype=jnp.float32),
        "feat_heads": [],
        "classifiers": [],
    }
    for i, nc in enumerate(num_classes):
        kw = keys[3 + 4 * i: 3 + 4 * (i + 1)]
        params["feat_heads"].append({
            "w": 0.1 * jax.random.normal(kw[0], (C_out, hidden), dtype=jnp.float32),
            "b": 0.01 * jax.random.normal(kw[1], (hidden,), dtype=jnp.float32),
        })
        params["classifiers"].append({
            "w": 0.1 * jax.random.normal(kw[2], (hidden, nc), dtype=jnp.float32),
            "b": 0.01 * jax.random.normal(kw[3], (nc,), dtype=jnp.float32),
        })

    # Weight packing hoisted out of the forward path (done once per model).
    packed, meta = pack_params(params, len(sofar_task))

    result = seq_model_forward(x, packed, sofar_task=sofar_task,
                               hidden=meta["hidden"], o_sizes=meta["o_sizes"])
    result = jax.block_until_ready(result)

    ref = _ref_forward(x, params, sofar_task)

    # bf16 MXU operands (f32 accumulation) -> tolerance loosened vs. the all-f32 version.
    for task in sofar_task:
        assert jnp.allclose(result["output"][task], ref["output"][task],
                            atol=1e-2, rtol=1e-2), f"output mismatch: {task}"
        assert jnp.allclose(result["feature"][task], ref["feature"][task],
                            atol=1e-2, rtol=1e-2), f"feature mismatch: {task}"

    print("KERNEL_OK")
</pallas_src>

<mosaic_0001>
module attributes {stable_mosaic.version = 11 : i64} {
  func.func @fused_seq_kernel(%arg0: i32, %arg1: memref<4x18x18x4xbf16, #tpu.memory_space<vmem>>, %arg2: memref<9x4x32xbf16, #tpu.memory_space<vmem>>, %arg3: memref<1x32xf32, #tpu.memory_space<vmem>>, %arg4: memref<32x128xbf16, #tpu.memory_space<vmem>>, %arg5: memref<1x128xf32, #tpu.memory_space<vmem>>, %arg6: memref<128x128xbf16, #tpu.memory_space<vmem>>, %arg7: memref<1x128xf32, #tpu.memory_space<vmem>>, %arg8: memref<1x4x128xf32, #tpu.memory_space<vmem>>, %arg9: memref<1x1x128xf32, #tpu.memory_space<vmem>>) attributes {dimension_semantics = [#tpu.dimension_semantics<parallel>], iteration_bounds = array<i64: 2>, scalar_prefetch = 0 : i64, scratch_operands = 0 : i64, tpu.core_type = #tpu.core_type<tc>, window_params = [{transform_indices = @transform_0, window_bounds = array<i64: 4, 18, 18, 4>}, {pipeline_mode = #tpu.pipeline_mode<synchronous>, transform_indices = @transform_1, window_bounds = array<i64: 9, 4, 32>}, {pipeline_mode = #tpu.pipeline_mode<synchronous>, transform_indices = @transform_2, window_bounds = array<i64: 1, 32>}, {pipeline_mode = #tpu.pipeline_mode<synchronous>, transform_indices = @transform_3, window_bounds = array<i64: 32, 128>}, {pipeline_mode = #tpu.pipeline_mode<synchronous>, transform_indices = @transform_4, window_bounds = array<i64: 1, 128>}, {pipeline_mode = #tpu.pipeline_mode<synchronous>, transform_indices = @transform_5, window_bounds = array<i64: 128, 128>}, {pipeline_mode = #tpu.pipeline_mode<synchronous>, transform_indices = @transform_6, window_bounds = array<i64: 1, 128>}, {transform_indices = @transform_7, window_bounds = array<i64: 1, 4, 128>}, {transform_indices = @transform_8, window_bounds = array<i64: 1, 1, 128>}]} {
    %c0 = arith.constant 0 : index
    %c0_0 = arith.constant 0 : index
    %c0_1 = arith.constant 0 : index
    %c0_2 = arith.constant 0 : index
    %0 = vector.load %arg1[%c0, %c0_0, %c0_1, %c0_2] : memref<4x18x18x4xbf16, #tpu.memory_space<vmem>>, vector<4x18x18x4xbf16>
    %1 = arith.extf %0 : vector<4x18x18x4xbf16> to vector<4x18x18x4xf32>
    %cst = arith.constant 0.000000e+00 : f32
    %2 = vector.broadcast %cst : f32 to vector<1024x32xf32>
    %3 = vector.extract_strided_slice %1 {offsets = [0, 0, 0, 0], sizes = [4, 16, 16, 4], strides = [1, 1, 1, 1]} : vector<4x18x18x4xf32> to vector<4x16x16x4xf32>
    %4 = vector.shape_cast %3 : vector<4x16x16x4xf32> to vector<1024x4xf32>
    %5 = arith.truncf %4 : vector<1024x4xf32> to vector<1024x4xbf16>
    %c0_3 = arith.constant 0 : index
    %c0_4 = arith.constant 0 : index
    %c0_5 = arith.constant 0 : index
    %6 = vector.load %arg2[%c0_3, %c0_4, %c0_5] : memref<9x4x32xbf16, #tpu.memory_space<vmem>>, vector<1x4x32xbf16>
    %7 = vector.shape_cast %6 : vector<1x4x32xbf16> to vector<4x32xbf16>
    %cst_6 = arith.constant dense<0.000000e+00> : vector<1024x32xf32>
    %8 = tpu.matmul %5, %7, %cst_6 {dimension_numbers = #tpu.dot_dimension_numbers<[1], [0], [0], [1], [0, 0, 1, 1], [], []>} : vector<1024x4xbf16>, vector<4x32xbf16>, vector<1024x32xf32> -> vector<1024x32xf32>
    %9 = arith.addf %2, %8 : vector<1024x32xf32>
    %10 = vector.extract_strided_slice %1 {offsets = [0, 0, 1, 0], sizes = [4, 16, 16, 4], strides = [1, 1, 1, 1]} : vector<4x18x18x4xf32> to vector<4x16x16x4xf32>
    %11 = vector.shape_cast %10 : vector<4x16x16x4xf32> to vector<1024x4xf32>
    %12 = arith.truncf %11 : vector<1024x4xf32> to vector<1024x4xbf16>
    %c1 = arith.constant 1 : index
    %c0_7 = arith.constant 0 : index
    %c0_8 = arith.constant 0 : index
    %13 = vector.load %arg2[%c1, %c0_7, %c0_8] : memref<9x4x32xbf16, #tpu.memory_space<vmem>>, vector<1x4x32xbf16>
    %14 = vector.shape_cast %13 : vector<1x4x32xbf16> to vector<4x32xbf16>
    %cst_9 = arith.constant dense<0.000000e+00> : vector<1024x32xf32>
    %15 = tpu.matmul %12, %14, %cst_9 {dimension_numbers = #tpu.dot_dimension_numbers<[1], [0], [0], [1], [0, 0, 1, 1], [], []>} : vector<1024x4xbf16>, vector<4x32xbf16>, vector<1024x32xf32> -> vector<1024x32xf32>
    %16 = arith.addf %9, %15 : vector<1024x32xf32>
    %17 = vector.extract_strided_slice %1 {offsets = [0, 0, 2, 0], sizes = [4, 16, 16, 4], strides = [1, 1, 1, 1]} : vector<4x18x18x4xf32> to vector<4x16x16x4xf32>
    %18 = vector.shape_cast %17 : vector<4x16x16x4xf32> to vector<1024x4xf32>
    %19 = arith.truncf %18 : vector<1024x4xf32> to vector<1024x4xbf16>
    %c2 = arith.constant 2 : index
    %c0_10 = arith.constant 0 : index
    %c0_11 = arith.constant 0 : index
    %20 = vector.load %arg2[%c2, %c0_10, %c0_11] : memref<9x4x32xbf16, #tpu.memory_space<vmem>>, vector<1x4x32xbf16>
    %21 = vector.shape_cast %20 : vector<1x4x32xbf16> to vector<4x32xbf16>
    %cst_12 = arith.constant dense<0.000000e+00> : vector<1024x32xf32>
    %22 = tpu.matmul %19, %21, %cst_12 {dimension_numbers = #tpu.dot_dimension_numbers<[1], [0], [0], [1], [0, 0, 1, 1], [], []>} : vector<1024x4xbf16>, vector<4x32xbf16>, vector<1024x32xf32> -> vector<1024x32xf32>
    %23 = arith.addf %16, %22 : vector<1024x32xf32>
    %24 = vector.extract_strided_slice %1 {offsets = [0, 1, 0, 0], sizes = [4, 16, 16, 4], strides = [1, 1, 1, 1]} : vector<4x18x18x4xf32> to vector<4x16x16x4xf32>
    %25 = vector.shape_cast %24 : vector<4x16x16x4xf32> to vector<1024x4xf32>
    %26 = arith.truncf %25 : vector<1024x4xf32> to vector<1024x4xbf16>
    %c3 = arith.constant 3 : index
    %c0_13 = arith.constant 0 : index
    %c0_14 = arith.constant 0 : index
    %27 = vector.load %arg2[%c3, %c0_13, %c0_14] : memref<9x4x32xbf16, #tpu.memory_space<vmem>>, vector<1x4x32xbf16>
    %28 = vector.shape_cast %27 : vector<1x4x32xbf16> to vector<4x32xbf16>
    %cst_15 = arith.constant dense<0.000000e+00> : vector<1024x32xf32>
    %29 = tpu.matmul %26, %28, %cst_15 {dimension_numbers = #tpu.dot_dimension_numbers<[1], [0], [0], [1], [0, 0, 1, 1], [], []>} : vector<1024x4xbf16>, vector<4x32xbf16>, vector<1024x32xf32> -> vector<1024x32xf32>
    %30 = arith.addf %23, %29 : vector<1024x32xf32>
    %31 = vector.extract_strided_slice %1 {offsets = [0, 1, 1, 0], sizes = [4, 16, 16, 4], strides = [1, 1, 1, 1]} : vector<4x18x18x4xf32> to vector<4x16x16x4xf32>
    %32 = vector.shape_cast %31 : vector<4x16x16x4xf32> to vector<1024x4xf32>
    %33 = arith.truncf %32 : vector<1024x4xf32> to vector<1024x4xbf16>
    %c4 = arith.constant 4 : index
    %c0_16 = arith.constant 0 : index
    %c0_17 = arith.constant 0 : index
    %34 = vector.load %arg2[%c4, %c0_16, %c0_17] : memref<9x4x32xbf16, #tpu.memory_space<vmem>>, vector<1x4x32xbf16>
    %35 = vector.shape_cast %34 : vector<1x4x32xbf16> to vector<4x32xbf16>
    %cst_18 = arith.constant dense<0.000000e+00> : vector<1024x32xf32>
    %36 = tpu.matmul %33, %35, %cst_18 {dimension_numbers = #tpu.dot_dimension_numbers<[1], [0], [0], [1], [0, 0, 1, 1], [], []>} : vector<1024x4xbf16>, vector<4x32xbf16>, vector<1024x32xf32> -> vector<1024x32xf32>
    %37 = arith.addf %30, %36 : vector<1024x32xf32>
    %38 = vector.extract_strided_slice %1 {offsets = [0, 1, 2, 0], sizes = [4, 16, 16, 4], strides = [1, 1, 1, 1]} : vector<4x18x18x4xf32> to vector<4x16x16x4xf32>
    %39 = vector.shape_cast %38 : vector<4x16x16x4xf32> to vector<1024x4xf32>
    %40 = arith.truncf %39 : vector<1024x4xf32> to vector<1024x4xbf16>
    %c5 = arith.constant 5 : index
    %c0_19 = arith.constant 0 : index
    %c0_20 = arith.constant 0 : index
    %41 = vector.load %arg2[%c5, %c0_19, %c0_20] : memref<9x4x32xbf16, #tpu.memory_space<vmem>>, vector<1x4x32xbf16>
    %42 = vector.shape_cast %41 : vector<1x4x32xbf16> to vector<4x32xbf16>
    %cst_21 = arith.constant dense<0.000000e+00> : vector<1024x32xf32>
    %43 = tpu.matmul %40, %42, %cst_21 {dimension_numbers = #tpu.dot_dimension_numbers<[1], [0], [0], [1], [0, 0, 1, 1], [], []>} : vector<1024x4xbf16>, vector<4x32xbf16>, vector<1024x32xf32> -> vector<1024x32xf32>
    %44 = arith.addf %37, %43 : vector<1024x32xf32>
    %45 = vector.extract_strided_slice %1 {offsets = [0, 2, 0, 0], sizes = [4, 16, 16, 4], strides = [1, 1, 1, 1]} : vector<4x18x18x4xf32> to vector<4x16x16x4xf32>
    %46 = vector.shape_cast %45 : vector<4x16x16x4xf32> to vector<1024x4xf32>
    %47 = arith.truncf %46 : vector<1024x4xf32> to vector<1024x4xbf16>
    %c6 = arith.constant 6 : index
    %c0_22 = arith.constant 0 : index
    %c0_23 = arith.constant 0 : index
    %48 = vector.load %arg2[%c6, %c0_22, %c0_23] : memref<9x4x32xbf16, #tpu.memory_space<vmem>>, vector<1x4x32xbf16>
    %49 = vector.shape_cast %48 : vector<1x4x32xbf16> to vector<4x32xbf16>
    %cst_24 = arith.constant dense<0.000000e+00> : vector<1024x32xf32>
    %50 = tpu.matmul %47, %49, %cst_24 {dimension_numbers = #tpu.dot_dimension_numbers<[1], [0], [0], [1], [0, 0, 1, 1], [], []>} : vector<1024x4xbf16>, vector<4x32xbf16>, vector<1024x32xf32> -> vector<1024x32xf32>
    %51 = arith.addf %44, %50 : vector<1024x32xf32>
    %52 = vector.extract_strided_slice %1 {offsets = [0, 2, 1, 0], sizes = [4, 16, 16, 4], strides = [1, 1, 1, 1]} : vector<4x18x18x4xf32> to vector<4x16x16x4xf32>
    %53 = vector.shape_cast %52 : vector<4x16x16x4xf32> to vector<1024x4xf32>
    %54 = arith.truncf %53 : vector<1024x4xf32> to vector<1024x4xbf16>
    %c7 = arith.constant 7 : index
    %c0_25 = arith.constant 0 : index
    %c0_26 = arith.constant 0 : index
    %55 = vector.load %arg2[%c7, %c0_25, %c0_26] : memref<9x4x32xbf16, #tpu.memory_space<vmem>>, vector<1x4x32xbf16>
    %56 = vector.shape_cast %55 : vector<1x4x32xbf16> to vector<4x32xbf16>
    %cst_27 = arith.constant dense<0.000000e+00> : vector<1024x32xf32>
    %57 = tpu.matmul %54, %56, %cst_27 {dimension_numbers = #tpu.dot_dimension_numbers<[1], [0], [0], [1], [0, 0, 1, 1], [], []>} : vector<1024x4xbf16>, vector<4x32xbf16>, vector<1024x32xf32> -> vector<1024x32xf32>
    %58 = arith.addf %51, %57 : vector<1024x32xf32>
    %59 = vector.extract_strided_slice %1 {offsets = [0, 2, 2, 0], sizes = [4, 16, 16, 4], strides = [1, 1, 1, 1]} : vector<4x18x18x4xf32> to vector<4x16x16x4xf32>
    %60 = vector.shape_cast %59 : vector<4x16x16x4xf32> to vector<1024x4xf32>
    %61 = arith.truncf %60 : vector<1024x4xf32> to vector<1024x4xbf16>
    %c8 = arith.constant 8 : index
    %c0_28 = arith.constant 0 : index
    %c0_29 = arith.constant 0 : index
    %62 = vector.load %arg2[%c8, %c0_28, %c0_29] : memref<9x4x32xbf16, #tpu.memory_space<vmem>>, vector<1x4x32xbf16>
    %63 = vector.shape_cast %62 : vector<1x4x32xbf16> to vector<4x32xbf16>
    %cst_30 = arith.constant dense<0.000000e+00> : vector<1024x32xf32>
    %64 = tpu.matmul %61, %63, %cst_30 {dimension_numbers = #tpu.dot_dimension_numbers<[1], [0], [0], [1], [0, 0, 1, 1], [], []>} : vector<1024x4xbf16>, vector<4x32xbf16>, vector<1024x32xf32> -> vector<1024x32xf32>
    %65 = arith.addf %58, %64 : vector<1024x32xf32>
    %c0_31 = arith.constant 0 : index
    %c0_32 = arith.constant 0 : index
    %66 = vector.load %arg3[%c0_31, %c0_32] : memref<1x32xf32, #tpu.memory_space<vmem>>, vector<1x32xf32>
    %67 = vector.broadcast %66 : vector<1x32xf32> to vector<1024x32xf32>
    %68 = arith.addf %65, %67 : vector<1024x32xf32>
    %cst_33 = arith.constant 0.000000e+00 : f32
    %69 = vector.broadcast %cst_33 : f32 to vector<1024x32xf32>
    %70 = arith.maximumf %68, %69 : vector<1024x32xf32>
    %71 = vector.shape_cast %70 : vector<1024x32xf32> to vector<4x256x32xf32>
    %cst_34 = arith.constant dense<0.000000e+00> : vector<4x32xf32>
    %72 = vector.multi_reduction <add>, %71, %cst_34 [1] : vector<4x256x32xf32> to vector<4x32xf32>
    %cst_35 = arith.constant 2.560000e+02 : f32
    %73 = vector.broadcast %cst_35 : f32 to vector<4x32xf32>
    %74 = arith.divf %72, %73 : vector<4x32xf32>
    %75 = arith.truncf %74 : vector<4x32xf32> to vector<4x32xbf16>
    %c0_36 = arith.constant 0 : index
    %c0_37 = arith.constant 0 : index
    %76 = vector.load %arg4[%c0_36, %c0_37] : memref<32x128xbf16, #tpu.memory_space<vmem>>, vector<32x128xbf16>
    %cst_38 = arith.constant dense<0.000000e+00> : vector<4x128xf32>
    %77 = tpu.matmul %75, %76, %cst_38 {dimension_numbers = #tpu.dot_dimension_numbers<[1], [0], [0], [1], [0, 0, 1, 1], [], []>} : vector<4x32xbf16>, vector<32x128xbf16>, vector<4x128xf32> -> vector<4x128xf32>
    %c0_39 = arith.constant 0 : index
    %c0_40 = arith.constant 0 : index
    %78 = vector.load %arg5[%c0_39, %c0_40] : memref<1x128xf32, #tpu.memory_space<vmem>>, vector<1x128xf32>
    %79 = vector.broadcast %78 : vector<1x128xf32> to vector<4x128xf32>
    %80 = arith.addf %77, %79 : vector<4x128xf32>
    %cst_41 = arith.constant 0.000000e+00 : f32
    %81 = vector.broadcast %cst_41 : f32 to vector<4x128xf32>
    %82 = arith.maximumf %80, %81 : vector<4x128xf32>
    %c0_42 = arith.constant 0 : index
    %c0_43 = arith.constant 0 : index
    %c0_44 = arith.constant 0 : index
    %83 = vector.load %arg8[%c0_42, %c0_43, %c0_44] : memref<1x4x128xf32, #tpu.memory_space<vmem>>, vector<1x4x128xf32>
    %84 = vector.shape_cast %83 : vector<1x4x128xf32> to vector<4x128xf32>
    %85 = vector.shape_cast %82 : vector<4x128xf32> to vector<1x4x128xf32>
    tpu.vector_store %arg8[%c0_42, %c0_43, %c0_44], %85 {strides = array<i32>} : memref<1x4x128xf32, #tpu.memory_space<vmem>>, vector<1x4x128xf32>,
    %cst_45 = arith.constant dense<0.000000e+00> : vector<128xf32>
    %86 = vector.multi_reduction <add>, %82, %cst_45 [0] : vector<4x128xf32> to vector<128xf32>
    %87 = vector.shape_cast %86 : vector<128xf32> to vector<1x128xf32>
    %cst_46 = arith.constant 4.000000e+00 : f32
    %88 = vector.broadcast %cst_46 : f32 to vector<1x128xf32>
    %89 = arith.divf %87, %88 : vector<1x128xf32>
    %90 = arith.truncf %89 : vector<1x128xf32> to vector<1x128xbf16>
    %c0_47 = arith.constant 0 : index
    %c0_48 = arith.constant 0 : index
    %91 = vector.load %arg6[%c0_47, %c0_48] : memref<128x128xbf16, #tpu.memory_space<vmem>>, vector<128x128xbf16>
    %cst_49 = arith.constant dense<0.000000e+00> : vector<1x128xf32>
    %92 = tpu.matmul %90, %91, %cst_49 {dimension_numbers = #tpu.dot_dimension_numbers<[1], [0], [0], [1], [0, 0, 1, 1], [], []>} : vector<1x128xbf16>, vector<128x128xbf16>, vector<1x128xf32> -> vector<1x128xf32>
    %c0_50 = arith.constant 0 : index
    %c0_51 = arith.constant 0 : index
    %93 = vector.load %arg7[%c0_50, %c0_51] : memref<1x128xf32, #tpu.memory_space<vmem>>, vector<1x128xf32>
    %94 = arith.addf %92, %93 : vector<1x128xf32>
    %c0_52 = arith.constant 0 : index
    %c0_53 = arith.constant 0 : index
    %c0_54 = arith.constant 0 : index
    %95 = vector.load %arg9[%c0_52, %c0_53, %c0_54] : memref<1x1x128xf32, #tpu.memory_space<vmem>>, vector<1x1x128xf32>
    %96 = vector.shape_cast %95 : vector<1x1x128xf32> to vector<1x128xf32>
    %97 = vector.shape_cast %94 : vector<1x128xf32> to vector<1x1x128xf32>
    tpu.vector_store %arg9[%c0_52, %c0_53, %c0_54], %97 {strides = array<i32>} : memref<1x1x128xf32, #tpu.memory_space<vmem>>, vector<1x1x128xf32>,
    return
  }
  func.func @transform_0(%arg0: i32) -> (i32, i32, i32, i32) {
    %c0_i32 = arith.constant 0 : i32
    %c0_i32_0 = arith.constant 0 : i32
    %c0_i32_1 = arith.constant 0 : i32
    %c0_i32_2 = arith.constant 0 : i32
    return %arg0, %c0_i32, %c0_i32_0, %c0_i32_1 : i32, i32, i32, i32
  }
  func.func @transform_1(%arg0: i32) -> (i32, i32, i32) {
    %c0_i32 = arith.constant 0 : i32
    %c0_i32_0 = arith.constant 0 : i32
    %c0_i32_1 = arith.constant 0 : i32
    %c0_i32_2 = arith.constant 0 : i32
    return %c0_i32, %c0_i32_0, %c0_i32_1 : i32, i32, i32
  }
  func.func @transform_2(%arg0: i32) -> (i32, i32) {
    %c0_i32 = arith.constant 0 : i32
    %c0_i32_0 = arith.constant 0 : i32
    %c0_i32_1 = arith.constant 0 : i32
    return %c0_i32, %c0_i32_0 : i32, i32
  }
  func.func @transform_3(%arg0: i32) -> (i32, i32) {
    %c0_i32 = arith.constant 0 : i32
    %c0_i32_0 = arith.constant 0 : i32
    %c0_i32_1 = arith.constant 0 : i32
    return %c0_i32, %c0_i32_0 : i32, i32
  }
  func.func @transform_4(%arg0: i32) -> (i32, i32) {
    %c0_i32 = arith.constant 0 : i32
    %c0_i32_0 = arith.constant 0 : i32
    %c0_i32_1 = arith.constant 0 : i32
    return %c0_i32, %c0_i32_0 : i32, i32
  }
  func.func @transform_5(%arg0: i32) -> (i32, i32) {
    %c0_i32 = arith.constant 0 : i32
    %c0_i32_0 = arith.constant 0 : i32
    %c0_i32_1 = arith.constant 0 : i32
    return %c0_i32, %c0_i32_0 : i32, i32
  }
  func.func @transform_6(%arg0: i32) -> (i32, i32) {
    %c0_i32 = arith.constant 0 : i32
    %c0_i32_0 = arith.constant 0 : i32
    %c0_i32_1 = arith.constant 0 : i32
    return %c0_i32, %c0_i32_0 : i32, i32
  }
  func.func @transform_7(%arg0: i32) -> (i32, i32, i32) {
    %c0_i32 = arith.constant 0 : i32
    %c0_i32_0 = arith.constant 0 : i32
    %c0_i32_1 = arith.constant 0 : i32
    return %arg0, %c0_i32, %c0_i32_0 : i32, i32, i32
  }
  func.func @transform_8(%arg0: i32) -> (i32, i32, i32) {
    %c0_i32 = arith.constant 0 : i32
    %c0_i32_0 = arith.constant 0 : i32
    %c0_i32_1 = arith.constant 0 : i32
    return %arg0, %c0_i32, %c0_i32_0 : i32, i32, i32
  }
}

</mosaic_0001>

<bundles_post_ra>
// kernel: seq_model_forward.1
= control target key start
LH: loop header
LB: loop body
LE: loop exit
PB: predicated region body
PF: predicated region fallthrough
CT: control target
= control target key end

     0   :  { %s8487_s27 = smov 0   ;;  %s12775_s0 = inlined_call_operand.vmem [shape: bf16[8,18,18,4], index: 0, kind: input, shape index: {}]   ;;  %s12776_s1 = inlined_call_operand.vmem [shape: bf16[9,4,32], index: 1, kind: input, shape index: {}]   ;;  %s12777_s2 = inlined_call_operand.vmem [shape: f32[1,32], index: 2, kind: input, shape index: {}]   ;;  %s12778_s3 = inlined_call_operand.vmem [shape: bf16[32,128], index: 3, kind: input, shape index: {}]   ;;  %s12779_s4 = inlined_call_operand.vmem [shape: f32[1,128], index: 4, kind: input, shape index: {}]   ;;  %s12780_s5 = inlined_call_operand.vmem [shape: bf16[128,128], index: 5, kind: input, shape index: {}]   ;;  %s12781_s6 = inlined_call_operand.vmem [shape: f32[1,128], index: 6, kind: input, shape index: {}]   ;;  %s12782_s7 = inlined_call_operand.vmem [shape: f32[2,4,128], index: 7, kind: output, shape index: {0}]   ;;  %s12783_s8 = inlined_call_operand.vmem [shape: f32[2,1,128], index: 8, kind: output, shape index: {1}]  }
   0x1 LB: > { %s8493_s28 = sadd.s32 4294967295, %s8438_s27   ;;  %p7527_p0 = scmp.ge.s32.totalorder %s8438_s27, 1  ;;  %s8438_s27 = sphi %s8487_s27, %s19_s27  }
   0x2   : > { %p267_p1 = scmp.lt.s32.totalorder %s8438_s27, 3 }
   0x4   : > { %p268_p2 = pnand %p7527_p0, %p267_p1 }
   0x6   : > { %271 = sbr.rel (%p268_p2) target bundleno = 2796 (0xaec), region = 48 }
   0xb   : > { %v7531_v0 = vld [vmem:[%s12776_s1 + $0x2] sm:$0x3]  ;;  %vm1716_vm0 = vcmask 1041408   ;;  %s7528_s9 = sshll.u32 %s8493_s28, 2  ;;  %v7725_v2 = vld [vmem:[%s12776_s1 + $0x6] sm:$0x3] }
   0xc   : > { %v1718_v1 = vsel %vm1716_vm0, %v7531_v0, 0  ;;  %p305_p3 = scmp.lt.s32.totalorder %s7528_s9, 7  ;;  %v7790_v3 = vld [vmem:[%s12776_s1 + $0x8] sm:$0x3]  ;;  %v3759_v4 = vsel %vm1716_vm0, %v7725_v2, 0  ;;  %vm1008_vm1 = vcmask 1046528  }
   0xd   : > { %1727 = vmatpush.bf16.msra.mxu0 %v1718_v1  ;;  %8347 = vmatpush.bf16.msra.mxu1 %v1718_v1  ;;  %v4277_v5 = vsel %vm1716_vm0, %v7790_v3, 0  ;;  %v815_v6 = vld [vmem:[%s12776_s1] sm:$0x3]  ;;  %vm1523_vm2 = vcmask 31744   ;;  %vm2573_vm3 = vcmask 1045504   ;;  %vm7004_vm4 = vcmask 261120  }
   0xe   : > { %8349 = vmatpush.bf16.msra.mxu3 %v1718_v1  ;;  %s14496_s9 = smov (!%p305_p3, %s7528_s9), 7  ;;  %8348 = vmatpush.bf16.msra.mxu2 %v1718_v1  ;;  %v2242_v7 = vsel %vm1716_vm0, %v815_v6, 0  ;;  %vm7312_vm6 = vcmask 1041409   ;;  %vm7314_vm7 = vcmask 1042434   ;;  %vm7316_vm8 = vcmask 1043459   ;;  %p311_p4 = scmp.lt.s32.totalorder %s8493_s28, 1 }
   0xf   : > { %s8350_s16 = smul.u32 216, %s14496_s9  ;;  %vm7349_vm9 = vcmask 1043456  }
  0x10   : > { %s14498_s28 = smov (!%p311_p4, %s8493_s28), 1 }
  0x11   : > { %4286 = vmatpush.bf16.msrb.mxu0 %v4277_v5  ;;  %2251 = vmatpush.bf16.msrb.mxu1 %v2242_v7  ;;  %s8517_s19 = scalar_lea.vmem %s12775_s0, %s8350_s16  ;;  %s7530_s21 = sshll.u32 %s14498_s28, 2 }
  0x12   : > { %3768 = vmatpush.bf16.msrb.mxu3 %v3759_v4  ;;  %v8520_v8 = vld [vmem:[%s8517_s19] sm:$0xff]   ;;  %v8523_v9 = vld [vmem:[%s8517_s19 + $0x8] sm:$0x1]  ;;  %v8532_v14 = vld [vmem:[%s8517_s19 + $0xec] sm:$0x1]  ;;  %s314_s24 = scalar_lea.vmem %s12782_s7, %s7530_s21  ;;  %s317_s9 = scalar_lea.vmem %s12783_s8, %s14498_s28 }
  0x13   : > { %v8526_v10 = vld [vmem:[%s8517_s19 + $0xe4] sm:$0xff]   ;;  %v12828_v11 = vunpack.c.l.bf16 %v8520_v8  ;;  %v12827_v12 = vunpack.c.h.bf16 %v8520_v8  ;;  %v12826_v13 = vunpack.c.l.bf16 %v8523_v9  ;;  %13251 = vst [vmem:[#allocation3_spill] sm:$0xff] %v8532_v14  ;;  %v12808_v18 = vunpack.c.l.bf16 %v8532_v14  ;;  %v8541_v19 = vld [vmem:[%s8517_s19 + $0x26c] sm:$0x1]  ;;  %v8569_v36 = vld [vmem:[%s8517_s19 + $0x14] sm:$0x1] }
  0x14   : > { %13250 = vst [vmem:[#allocation2_spill] sm:$0xff] %v8526_v10  ;;  %v12810_v15 = vunpack.c.l.bf16 %v8526_v10  ;;  %v8536_v16 = vld [vmem:[%s8517_s19 + $0x264] sm:$0xff]   ;;  %v12809_v17 = vunpack.c.h.bf16 %v8526_v10  ;;  %v12787_v30 = vunpack.c.l.bf16 %v8541_v19  ;;  %v8561_v31 = vld [vmem:[%s8517_s19 + $0xc] sm:$0xff]   ;;  %v8584_v44 = vld [vmem:[%s8517_s19 + $0xf8] sm:$0x1]  ;;  %v12820_v46 = vunpack.c.l.bf16 %v8569_v36 }
  0x15   : > { %13252 = vst [vmem:[#allocation4_spill] sm:$0xff] %v8536_v16  ;;  %v12789_v20 = vunpack.c.l.bf16 %v8536_v16  ;;  %v12788_v21 = vunpack.c.h.bf16 %v8536_v16  ;;  %v1009_v22 = vrot.slane %v12828_v11, 1  ;;  %v1010_v23 = vrot.slane %v12827_v12, 1  ;;  %v8581_v43 = vld [vmem:[%s8517_s19 + $0xf0] sm:$0xff]   ;;  %v8589_v47 = vld [vmem:[%s8517_s19 + $0x1bc] sm:$0xff]   ;;  %v8596_v49 = vld [vmem:[%s8517_s19 + $0x288] sm:$0xff]  }
  0x16   : > { %13253 = vst [vmem:[#allocation5_spill] sm:$0xff] %v8541_v19  ;;  %v1012_v24 = vrot.slane %v12826_v13, 1  ;;  %v1094_v25 = vrot.slane %v12810_v15, 1  ;;  %v1095_v26 = vrot.slane %v12809_v17, 1  ;;  %v1097_v29 = vrot.slane %v12808_v18, 1 }
  0x17   : > { %v1011_v27 = vsel %vm1008_vm1, %v1009_v22, %v1010_v23  ;;  %v1244_v34 = vrot.slane %v12789_v20, 1  ;;  %v1245_v35 = vrot.slane %v12788_v21, 1  ;;  %v1247_v38 = vrot.slane %v12787_v30, 1  ;;  %13255 = vst [vmem:[#allocation7_spill] sm:$0xff] %v8581_v43  ;;  %v8599_v50 = vld [vmem:[%s8517_s19 + $0x290] sm:$0x1] }
  0x18   : > { %v1013_v28 = vsel %vm1008_vm1, %v1010_v23, %v1012_v24  ;;  %v1096_v33 = vsel %vm1008_vm1, %v1094_v25, %v1095_v26  ;;  %v1098_v37 = vsel %vm1008_vm1, %v1095_v26, %v1097_v29  ;;  %v12825_v41 = vunpack.c.l.bf16 %v8561_v31  ;;  %13256 = vst [vmem:[#allocation8_spill] sm:$0xff] %v8584_v44  ;;  %v8605_v54 = vld [vmem:[%s8517_s19 + $0x1c4] sm:$0x1] }
  0x19   : > { %v1457_v32 = vpack.c.bf16 %v1013_v28, %v1011_v27  ;;  %v8575_v39 = vpack.c.bf16 %v1098_v37, %v1096_v33  ;;  %v1246_v40 = vsel %vm1008_vm1, %v1244_v34, %v1245_v35  ;;  %v12824_v42 = vunpack.c.h.bf16 %v8561_v31  ;;  %13257 = vst [vmem:[#allocation9_spill] sm:$0xff] %v8589_v47  ;;  %v8653_v34 = vld [vmem:[%s8517_s19 + $0x18] sm:$0xff]  }
  0x1a   : > { %v1248_v45 = vsel %vm1008_vm1, %v1245_v35, %v1247_v38  ;;  %13259 = vst [vmem:[#allocation11_spill] sm:$0xff] %v8596_v49  ;;  %v12804_v51 = vunpack.c.l.bf16 %v8581_v43  ;;  %v12803_v52 = vunpack.c.h.bf16 %v8581_v43  ;;  %v12802_v53 = vunpack.c.l.bf16 %v8584_v44  ;;  %v8656_v35 = vld [vmem:[%s8517_s19 + $0x1d0] sm:$0x1] }
  0x1b   : > { %7532 = vmatmul.msk.bf16.vlgmr.msra.gmra.mxu0 %vm1523_vm2, %v1457_v32  ;;  %13254 = vst [vmem:[#allocation6_spill] sm:$0xff] %v8575_v39  ;;  %7549 = vmatmul.msk.bf16.vlgmr.msra.gmra.mxu1 %vm1523_vm2, %v8575_v39  ;;  %v8593_v48 = vpack.c.bf16 %v1248_v45, %v1246_v40  ;;  %v1014_v55 = vrot.slane %v12825_v41, 1  ;;  %v1015_v56 = vrot.slane %v12824_v42, 1  ;;  %v12795_v57 = vunpack.c.l.bf16 %v8589_v47  ;;  %v8648_v32 = vld [vmem:[%s8517_s19 + $0x1c8] sm:$0xff]   ;;  %v8663_v40 = vld [vmem:[%s8517_s19 + $0x20] sm:$0x1] }
  0x1c   : > { %13260 = vst [vmem:[#allocation12_spill] sm:$0xff] %v8599_v50  ;;  %v1017_v58 = vrot.slane %v12820_v46, 1  ;;  %v12786_v59 = vunpack.c.l.bf16 %v8596_v49  ;;  %v12785_v60 = vunpack.c.h.bf16 %v8596_v49  ;;  %v12784_v61 = vunpack.c.l.bf16 %v8599_v50  ;;  %v7660_v45 = vld [vmem:[%s12776_s1 + $0x4] sm:$0x3] }
  0x1d   : > { %13258 = vst [vmem:[#allocation10_spill] sm:$0xff] %v8593_v48  ;;  %7579 = vmatmul.msk.bf16.vlgmr.msra.gmra.mxu3 %vm1523_vm2, %v8593_v48  ;;  %v12794_v62 = vunpack.c.h.bf16 %v8589_v47  ;;  %v12793_v63 = vunpack.c.l.bf16 %v8605_v54  ;;  %v1099_v0 = vrot.slane %v12804_v51, 1  ;;  %v1100_v1 = vrot.slane %v12803_v52, 1  ;;  %v8817_v46 = vld [vmem:[%s8517_s19 + $0x1e0] sm:$0xff]   ;;  %v8901_v48 = vld [vmem:[%s8517_s19 + $0x1ec] sm:$0xff]  }
  0x1e   : > { %13261 = vst [vmem:[#allocation13_spill] sm:$0xff] %v8605_v54  ;;  %v1102_v2 = vrot.slane %v12802_v53, 1  ;;  %v1174_v3 = vrot.slane %v12795_v57, 1  ;;  %v1016_v4 = vsel %vm1008_vm1, %v1014_v55, %v1015_v56  ;;  %v1018_v7 = vsel %vm1008_vm1, %v1015_v56, %v1017_v58 }
  0x1f   : > { %v1175_v5 = vrot.slane %v12794_v62, 1  ;;  %v1177_v6 = vrot.slane %v12793_v63, 1  ;;  %v1249_v22 = vrot.slane %v12786_v59, 1  ;;  %v1250_v23 = vrot.slane %v12785_v60, 1  ;;  %13263 = vst [vmem:[#allocation15_spill] sm:$0xff] %v8648_v32 }
  0x20   : > { %v1252_v24 = vrot.slane %v12784_v61, 1  ;;  %v1101_v27 = vsel %vm1008_vm1, %v1099_v0, %v1100_v1  ;;  %v1103_v28 = vsel %vm1008_vm1, %v1100_v1, %v1102_v2  ;;  %v8650_v33 = vpack.c.bf16 %v1018_v7, %v1016_v4  ;;  %13264 = vst [vmem:[#allocation16_spill] sm:$0xff] %v8656_v35 }
  0x21   : > { %v1176_v25 = vsel %vm1008_vm1, %v1174_v3, %v1175_v5  ;;  %v1178_v26 = vsel %vm1008_vm1, %v1175_v5, %v1177_v6  ;;  %v1251_v37 = vsel %vm1008_vm1, %v1249_v22, %v1250_v23  ;;  %v8668_v55 = vpack.c.bf16 %v1103_v28, %v1101_v27  ;;  %v8679_v5 = vld [vmem:[%s8517_s19 + $0xfc] sm:$0xff]   ;;  %v8682_v6 = vld [vmem:[%s8517_s19 + $0x104] sm:$0x1]  ;;  %v8688_v22 = vld [vmem:[%s8517_s19 + $0x294] sm:$0xff]   ;;  %13282 = vst [vmem:[#allocation34_spill] sm:$0xff] %v8817_v46 }
  0x22   : > { %v8645_v29 = vpack.c.bf16 %v1178_v26, %v1176_v25  ;;  %v1253_v38 = vsel %vm1008_vm1, %v1250_v23, %v1252_v24  ;;  %v12792_v56 = vunpack.c.l.bf16 %v8648_v32  ;;  %v12816_v58 = vunpack.c.l.bf16 %v8653_v34  ;;  %13266 = vst [vmem:[#allocation18_spill] sm:$0xff] %v8679_v5  ;;  %v8691_v23 = vld [vmem:[%s8517_s19 + $0x29c] sm:$0x1] }
  0x23   : > { %13265 = vst [vmem:[#allocation17_spill] sm:$0xff] %v8668_v55  ;;  %v12791_v0 = vunpack.c.h.bf16 %v8648_v32  ;;  %v12790_v1 = vunpack.c.l.bf16 %v8656_v35  ;;  %v1505_v2 = vpack.c.bf16 %v1253_v38, %v1251_v37  ;;  %v12815_v3 = vunpack.c.h.bf16 %v8653_v34  ;;  %v9069_v35 = vld [vmem:[%s8517_s19 + $0x204] sm:$0xff]  }
  0x24   : > { %13262 = vst [vmem:[#allocation14_spill] sm:$0xff] %v8645_v29  ;;  %7565 = vmatmul.msk.bf16.vlgmr.msra.gmra.mxu2 %vm1523_vm2, %v8645_v29  ;;  %v12811_v4 = vunpack.c.l.bf16 %v8663_v40  ;;  %v3281_v7 = vsel %vm1716_vm0, %v7660_v45, 0  ;;  %v1179_v24 = vrot.slane %v12792_v56, 1  ;;  %v12801_v27 = vunpack.c.l.bf16 %v8679_v5 }
  0x25   : > { %13267 = vst [vmem:[#allocation19_spill] sm:$0xff] %v8682_v6  ;;  %3290 = vmatpush.bf16.msrb.mxu2 %v3281_v7  ;;  %v1180_v25 = vrot.slane %v12791_v0, 1  ;;  %v1182_v26 = vrot.slane %v12790_v1, 1  ;;  %v12800_v28 = vunpack.c.h.bf16 %v8679_v5  ;;  %v12796_v37 = vunpack.c.l.bf16 %v8682_v6 }
  0x26   : > { %13268 = vst [vmem:[#allocation20_spill] sm:$0xff] %v8688_v22  ;;  %v1019_v38 = vrot.slane %v12816_v58, 1  ;;  %v1020_v45 = vrot.slane %v12815_v3, 1  ;;  %v1022_v7 = vrot.slane %v12811_v4, 1  ;;  %v12799_v61 = vunpack.c.l.bf16 %v8688_v22 }
  0x27   : > { %13269 = vst [vmem:[#allocation21_spill] sm:$0xff] %v8691_v23  ;;  %v12797_v60 = vunpack.c.h.bf16 %v8688_v22  ;;  %v12798_v59 = vunpack.c.l.bf16 %v8691_v23  ;;  %v1181_v30 = vsel %vm1008_vm1, %v1179_v24, %v1180_v25  ;;  %v1104_v21 = vrot.slane %v12801_v27, 1 }
  0x28   : > { %v1105_v20 = vrot.slane %v12800_v28, 1  ;;  %v1107_v1 = vrot.slane %v12796_v37, 1  ;;  %v1021_v0 = vsel %vm1008_vm1, %v1019_v38, %v1020_v45  ;;  %v1023_v56 = vsel %vm1008_vm1, %v1020_v45, %v1022_v7  ;;  %v8733_v37 = vld [vmem:[%s8517_s19 + $0x1d4] sm:$0xff]   ;;  %v8736_v38 = vld [vmem:[%s8517_s19 + $0x1dc] sm:$0x1]  ;;  %13298 = vst [vmem:[#allocation44_spill] sm:$0xff] %v8901_v48 }
  0x29   : > { %v1254_v24 = vrot.slane %v12799_v61, 1  ;;  %13271 = vst [vmem:[#allocation23_spill] sm:$0xff] %v8733_v37  ;;  %v8738_v45 = vpack.c.bf16 %v1023_v56, %v1021_v0  ;;  %v12806_v56 = vunpack.c.h.bf16 %v8733_v37  ;;  %v12807_v0 = vunpack.c.l.bf16 %v8736_v38  ;;  %v8774_v61 = vld [vmem:[%s8517_s19 + $0x2a8] sm:$0x1] }
  0x2a   : > { %v1106_v62 = vsel %vm1008_vm1, %v1104_v21, %v1105_v20  ;;  %v1108_v57 = vsel %vm1008_vm1, %v1105_v20, %v1107_v1  ;;  %13272 = vst [vmem:[#allocation24_spill] sm:$0xff] %v8736_v38  ;;  %v8745_v21 = vld [vmem:[%s8517_s19 + $0x24] sm:$0xff]   ;;  %v8748_v20 = vld [vmem:[%s8517_s19 + $0x2c] sm:$0x1]  ;;  %v12805_v1 = vunpack.c.l.bf16 %v8733_v37  ;;  %v12822_v17 = vunpack.c.l.bf16 %v8774_v61 }
  0x2b   : > { %7533 = vmatmul.msk.bf16.gmra.mxu0 %vm1523_vm2, %v8650_v33  ;;  %7550 = vmatmul.msk.bf16.gmra.mxu1 %vm1523_vm2, %v8668_v55  ;;  %13273 = vst [vmem:[#allocation25_spill] sm:$0xff] %v8738_v45  ;;  %v1187_v28 = vrot.slane %v12807_v0, 1 }
  0x2c   : > { %13274 = vst [vmem:[#allocation26_spill] sm:$0xff] %v8745_v21 }
  0x2d   : > { %7580 = vmatmul.msk.bf16.gmra.mxu3 %vm1523_vm2, %v1505_v2  ;;  %v1183_v2 = vsel %vm1008_vm1, %v1180_v25, %v1182_v26  ;;  %v1255_v25 = vrot.slane %v12797_v60, 1  ;;  %v1257_v26 = vrot.slane %v12798_v59, 1  ;;  %v8763_v59 = vld [vmem:[%s8517_s19 + $0x108] sm:$0xff]   ;;  %13280 = vst [vmem:[#allocation32_spill] sm:$0xff] %v8774_v61 }
  0x2e   : > { %v8728_v63 = vpack.c.bf16 %v1183_v2, %v1181_v30  ;;  %v8750_v30 = vpack.c.bf16 %v1108_v57, %v1106_v62  ;;  %13277 = vst [vmem:[#allocation29_spill] sm:$0xff] %v8763_v59  ;;  %v8766_v57 = vld [vmem:[%s8517_s19 + $0x110] sm:$0x1]  ;;  %v8771_v62 = vld [vmem:[%s8517_s19 + $0x2a0] sm:$0xff]   ;;  %v12817_v27 = vunpack.c.l.bf16 %v8763_v59  ;;  %v12818_v53 = vunpack.c.h.bf16 %v8763_v59 }
  0x2f   : > { %v1256_v7 = vsel %vm1008_vm1, %v1254_v24, %v1255_v25  ;;  %v1258_v60 = vsel %vm1008_vm1, %v1255_v25, %v1257_v26  ;;  %v12812_v24 = vunpack.c.l.bf16 %v8745_v21  ;;  %v12813_v25 = vunpack.c.h.bf16 %v8745_v21  ;;  %13278 = vst [vmem:[#allocation30_spill] sm:$0xff] %v8766_v57 }
  0x30   : > { %13270 = vst [vmem:[#allocation22_spill] sm:$0xff] %v8728_v63  ;;  %v8757_v2 = vpack.c.bf16 %v1258_v60, %v1256_v7  ;;  %v12814_v26 = vunpack.c.l.bf16 %v8748_v20  ;;  %v1184_v60 = vrot.slane %v12805_v1, 1  ;;  %v1185_v7 = vrot.slane %v12806_v56, 1 }
  0x31   : > { %13275 = vst [vmem:[#allocation27_spill] sm:$0xff] %v8750_v30  ;;  %v12819_v52 = vunpack.c.l.bf16 %v8766_v57  ;;  %v1024_v51 = vrot.slane %v12812_v24, 1  ;;  %v1025_v1 = vrot.slane %v12813_v25, 1  ;;  %v12823_v0 = vunpack.c.l.bf16 %v8771_v62 }
  0x32   : > { %13276 = vst [vmem:[#allocation28_spill] sm:$0xff] %v8757_v2  ;;  %v1027_v56 = vrot.slane %v12814_v26, 1  ;;  %v12821_v18 = vunpack.c.h.bf16 %v8771_v62  ;;  %v1186_v15 = vsel %vm1008_vm1, %v1184_v60, %v1185_v7  ;;  %v1188_v4 = vsel %vm1008_vm1, %v1185_v7, %v1187_v28 }
  0x33   : > { %13279 = vst [vmem:[#allocation31_spill] sm:$0xff] %v8771_v62  ;;  %v1109_v24 = vrot.slane %v12817_v27, 1  ;;  %v1110_v25 = vrot.slane %v12818_v53, 1  ;;  %v1112_v26 = vrot.slane %v12819_v52, 1  ;;  %v1026_v3 = vsel %vm1008_vm1, %v1024_v51, %v1025_v1  ;;  %v8820_v51 = vld [vmem:[%s8517_s19 + $0x1e8] sm:$0x1] }
  0x34   : > { %7566 = vmatmul.msk.bf16.gmra.mxu2 %vm1523_vm2, %v8728_v63  ;;  %v1028_v58 = vsel %vm1008_vm1, %v1025_v1, %v1027_v56  ;;  %v1259_v60 = vrot.slane %v12823_v0, 1  ;;  %v1260_v28 = vrot.slane %v12821_v18, 1  ;;  %v1262_v7 = vrot.slane %v12822_v17, 1  ;;  %13283 = vst [vmem:[#allocation35_spill] sm:$0xff] %v8820_v51  ;;  %v8847_v17 = vld [vmem:[%s8517_s19 + $0x114] sm:$0xff]  }
  0x35   : > { %v8812_v27 = vpack.c.bf16 %v1188_v4, %v1186_v15  ;;  %v1111_v53 = vsel %vm1008_vm1, %v1109_v24, %v1110_v25  ;;  %v1113_v52 = vsel %vm1008_vm1, %v1110_v25, %v1112_v26  ;;  %v8822_v1 = vpack.c.bf16 %v1028_v58, %v1026_v3  ;;  %v8829_v15 = vld [vmem:[%s8517_s19 + $0x30] sm:$0xff]   ;;  %v8832_v4 = vld [vmem:[%s8517_s19 + $0x38] sm:$0x1]  ;;  %13287 = vst [vmem:[#allocation39_spill] sm:$0xff] %v8847_v17 }
  0x36   : > { %v1261_v56 = vsel %vm1008_vm1, %v1259_v60, %v1260_v28  ;;  %v1263_v18 = vsel %vm1008_vm1, %v1260_v28, %v1262_v7  ;;  %v8834_v24 = vpack.c.bf16 %v1113_v52, %v1111_v53  ;;  %v12829_v25 = vunpack.c.l.bf16 %v8817_v46  ;;  %v8850_v52 = vld [vmem:[%s8517_s19 + $0x11c] sm:$0x1]  ;;  %v8855_v53 = vld [vmem:[%s8517_s19 + $0x2ac] sm:$0xff]   ;;  %v8858_v0 = vld [vmem:[%s8517_s19 + $0x2b4] sm:$0x1]  ;;  %13337 = vst [vmem:[#allocation65_spill] sm:$0xff] %v9069_v35 }
  0x37   : > { %13281 = vst [vmem:[#allocation33_spill] sm:$0xff] %v8812_v27  ;;  %v12830_v58 = vunpack.c.h.bf16 %v8817_v46  ;;  %v12831_v3 = vunpack.c.l.bf16 %v8820_v51  ;;  %v8841_v26 = vpack.c.bf16 %v1263_v18, %v1261_v56  ;;  %v12834_v60 = vunpack.c.l.bf16 %v8829_v15  ;;  %v8985_v51 = vld [vmem:[%s8517_s19 + $0x1f8] sm:$0xff]  }
  0x38   : > { %13284 = vst [vmem:[#allocation36_spill] sm:$0xff] %v8822_v1  ;;  %v12836_v28 = vunpack.c.h.bf16 %v8829_v15  ;;  %v12838_v7 = vunpack.c.l.bf16 %v8832_v4  ;;  %v1189_v18 = vrot.slane %v12829_v25, 1  ;;  %v13294_v12 = vunpack.c.l.bf16 %v8855_v53 }
  0x39   : > { %13285 = vst [vmem:[#allocation37_spill] sm:$0xff] %v8834_v24  ;;  %v1190_v56 = vrot.slane %v12830_v58, 1  ;;  %v1192_v42 = vrot.slane %v12831_v3, 1  ;;  %v1029_v11 = vrot.slane %v12834_v60, 1  ;;  %v13291_v60 = vunpack.c.l.bf16 %v8847_v17 }
  0x3a   : > { %13286 = vst [vmem:[#allocation38_spill] sm:$0xff] %v8841_v26  ;;  %v1030_v25 = vrot.slane %v12836_v28, 1  ;;  %v1032_v58 = vrot.slane %v12838_v7, 1  ;;  %v13292_v28 = vunpack.c.h.bf16 %v8847_v17  ;;  %v13293_v7 = vunpack.c.l.bf16 %v8850_v52 }
  0x3b   : > { %7534 = vmatmul.msk.bf16.gmra.mxu0 %vm1523_vm2, %v8738_v45  ;;  %7551 = vmatmul.msk.bf16.gmra.mxu1 %vm1523_vm2, %v8750_v30  ;;  %13288 = vst [vmem:[#allocation40_spill] sm:$0xff] %v8850_v52  ;;  %v1191_v13 = vsel %vm1008_vm1, %v1189_v18, %v1190_v56  ;;  %v1264_v18 = vrot.slane %v13294_v12, 1 }
  0x3c   : > { %13289 = vst [vmem:[#allocation41_spill] sm:$0xff] %v8855_v53  ;;  %v1115_v61 = vrot.slane %v13292_v28, 1  ;;  %v1117_v3 = vrot.slane %v13293_v7, 1  ;;  %v1031_v41 = vsel %vm1008_vm1, %v1029_v11, %v1030_v25  ;;  %v1033_v62 = vsel %vm1008_vm1, %v1030_v25, %v1032_v58  ;;  %v8904_v11 = vld [vmem:[%s8517_s19 + $0x1f4] sm:$0x1] }
  0x3d   : > { %7581 = vmatmul.msk.bf16.gmra.mxu3 %vm1523_vm2, %v8757_v2  ;;  %13290 = vst [vmem:[#allocation42_spill] sm:$0xff] %v8858_v0  ;;  %v1114_v2 = vrot.slane %v13291_v60, 1  ;;  %v13296_v60 = vunpack.c.l.bf16 %v8858_v0  ;;  %v8906_v25 = vpack.c.bf16 %v1033_v62, %v1031_v41  ;;  %v12853_v41 = vunpack.c.h.bf16 %v8901_v48 }
  0x3e   : > { %v1118_v7 = vsel %vm1008_vm1, %v1115_v61, %v1117_v3  ;;  %13299 = vst [vmem:[#allocation45_spill] sm:$0xff] %v8904_v11  ;;  %v12850_v3 = vunpack.c.l.bf16 %v8901_v48  ;;  %v12855_v62 = vunpack.c.l.bf16 %v8904_v11 }
  0x3f   : > { %v1267_v23 = vrot.slane %v13296_v60, 1  ;;  %v1116_v28 = vsel %vm1008_vm1, %v1114_v2, %v1115_v61  ;;  %13300 = vst [vmem:[#allocation46_spill] sm:$0xff] %v8906_v25  ;;  %v8916_v61 = vld [vmem:[%s8517_s19 + $0x44] sm:$0x1]  ;;  %v8934_v60 = vld [vmem:[%s8517_s19 + $0x128] sm:$0x1] }
  0x40   : > { %v8918_v2 = vpack.c.bf16 %v1118_v7, %v1116_v28  ;;  %13305 = vst [vmem:[#allocation51_spill] sm:$0xff] %v8934_v60  ;;  %v8939_v28 = vld [vmem:[%s8517_s19 + $0x2b8] sm:$0xff]   ;;  %v8942_v7 = vld [vmem:[%s8517_s19 + $0x2c0] sm:$0x1] }
  0x41   : > { %13306 = vst [vmem:[#allocation52_spill] sm:$0xff] %v8939_v28  ;;  %v13314_v0 = vunpack.c.l.bf16 %v8939_v28 }
  0x42   : > { %13302 = vst [vmem:[#allocation48_spill] sm:$0xff] %v8918_v2 }
  0x43   : > { %13307 = vst [vmem:[#allocation53_spill] sm:$0xff] %v8942_v7 }
  0x44   : > { %7567 = vmatmul.msk.bf16.gmra.mxu2 %vm1523_vm2, %v8812_v27  ;;  %13318 = vst [vmem:[#allocation55_spill] sm:$0xff] %v8985_v51 }
  0x4b   : > { %7535 = vmatmul.msk.bf16.gmra.mxu0 %vm1523_vm2, %v8822_v1  ;;  %7552 = vmatmul.msk.bf16.gmra.mxu1 %vm1523_vm2, %v8834_v24 }
  0x4d   : > { %7582 = vmatmul.msk.bf16.gmra.mxu3 %vm1523_vm2, %v8841_v26  ;;  %v1193_v26 = vsel %vm1008_vm1, %v1190_v56, %v1192_v42  ;;  %v13295_v42 = vunpack.c.h.bf16 %v8855_v53 }
  0x4e   : > { %v8896_v22 = vpack.c.bf16 %v1193_v26, %v1191_v13  ;;  %v8913_v13 = vld [vmem:[%s8517_s19 + $0x3c] sm:$0xff]  }
  0x4f   : > { %v1265_v56 = vrot.slane %v13295_v42, 1  ;;  %13301 = vst [vmem:[#allocation47_spill] sm:$0xff] %v8913_v13  ;;  %v1197_v42 = vrot.slane %v12855_v62, 1  ;;  %v13308_v53 = vunpack.c.l.bf16 %v8913_v13 }
  0x50   : > { %13297 = vst [vmem:[#allocation43_spill] sm:$0xff] %v8896_v22 }
  0x51   : > { %v1266_v12 = vsel %vm1008_vm1, %v1264_v18, %v1265_v56  ;;  %v1268_v58 = vsel %vm1008_vm1, %v1265_v56, %v1267_v23  ;;  %v8931_v56 = vld [vmem:[%s8517_s19 + $0x120] sm:$0xff]   ;;  %v1034_v50 = vrot.slane %v13308_v53, 1 }
  0x52   : > { %v8925_v23 = vpack.c.bf16 %v1268_v58, %v1266_v12  ;;  %13304 = vst [vmem:[#allocation50_spill] sm:$0xff] %v8931_v56  ;;  %v1194_v12 = vrot.slane %v12850_v3, 1  ;;  %v1195_v58 = vrot.slane %v12853_v41, 1  ;;  %v13309_v3 = vunpack.c.h.bf16 %v8913_v13 }
  0x53   : > { %v13310_v41 = vunpack.c.l.bf16 %v8916_v61  ;;  %v13311_v53 = vunpack.c.l.bf16 %v8931_v56 }
  0x54   : > { %7568 = vmatmul.msk.bf16.gmra.mxu2 %vm1523_vm2, %v8896_v22  ;;  %13303 = vst [vmem:[#allocation49_spill] sm:$0xff] %v8925_v23  ;;  %v1035_v49 = vrot.slane %v13309_v3, 1  ;;  %v1196_v26 = vsel %vm1008_vm1, %v1194_v12, %v1195_v58  ;;  %v13312_v3 = vunpack.c.h.bf16 %v8931_v56  ;;  %v1269_v12 = vrot.slane %v13314_v0, 1 }
  0x55   : > { %v1037_v19 = vrot.slane %v13310_v41, 1  ;;  %v1119_v16 = vrot.slane %v13311_v53, 1  ;;  %v13313_v41 = vunpack.c.l.bf16 %v8934_v60  ;;  %v13316_v53 = vunpack.c.l.bf16 %v8942_v7 }
  0x56   : > { %v1120_v22 = vrot.slane %v13312_v3, 1  ;;  %v1036_v18 = vsel %vm1008_vm1, %v1034_v50, %v1035_v49  ;;  %v8988_v50 = vld [vmem:[%s8517_s19 + $0x200] sm:$0x1] }
  0x57   : > { %v1122_v62 = vrot.slane %v13313_v41, 1  ;;  %v1038_v11 = vsel %vm1008_vm1, %v1035_v49, %v1037_v19  ;;  %v1272_v48 = vrot.slane %v13316_v53, 1  ;;  %13319 = vst [vmem:[#allocation56_spill] sm:$0xff] %v8988_v50  ;;  %v9018_v53 = vld [vmem:[%s8517_s19 + $0x134] sm:$0x1] }
  0x58   : > { %v1121_v3 = vsel %vm1008_vm1, %v1119_v16, %v1120_v22  ;;  %v8990_v19 = vpack.c.bf16 %v1038_v11, %v1036_v18  ;;  %v8997_v16 = vld [vmem:[%s8517_s19 + $0x48] sm:$0xff]   ;;  %v12876_v11 = vunpack.c.h.bf16 %v8985_v51  ;;  %13324 = vst [vmem:[#allocation61_spill] sm:$0xff] %v9018_v53 }
  0x59   : > { %v1123_v41 = vsel %vm1008_vm1, %v1120_v22, %v1122_v62  ;;  %v9000_v22 = vld [vmem:[%s8517_s19 + $0x50] sm:$0x1] }
  0x5a   : > { %13320 = vst [vmem:[#allocation57_spill] sm:$0xff] %v8990_v19  ;;  %v9002_v62 = vpack.c.bf16 %v1123_v41, %v1121_v3  ;;  %v9023_v3 = vld [vmem:[%s8517_s19 + $0x2c4] sm:$0xff]   ;;  %v9026_v41 = vld [vmem:[%s8517_s19 + $0x2cc] sm:$0x1] }
  0x5b   : > { %7536 = vmatmul.msk.bf16.gmra.mxu0 %vm1523_vm2, %v8906_v25  ;;  %7553 = vmatmul.msk.bf16.gmra.mxu1 %vm1523_vm2, %v8918_v2  ;;  %13325 = vst [vmem:[#allocation62_spill] sm:$0xff] %v9023_v3  ;;  %v13333_v7 = vunpack.c.l.bf16 %v9023_v3 }
  0x5c   : > { %13321 = vst [vmem:[#allocation58_spill] sm:$0xff] %v9002_v62 }
  0x5d   : > { %7583 = vmatmul.msk.bf16.gmra.mxu3 %vm1523_vm2, %v8925_v23  ;;  %v1198_v23 = vsel %vm1008_vm1, %v1195_v58, %v1197_v42  ;;  %v13315_v42 = vunpack.c.h.bf16 %v8939_v28  ;;  %13326 = vst [vmem:[#allocation63_spill] sm:$0xff] %v9026_v41  ;;  %v13327_v28 = vunpack.c.l.bf16 %v8997_v16 }
  0x5e   : > { %v8980_v27 = vpack.c.bf16 %v1198_v23, %v1196_v26  ;;  %v12873_v23 = vunpack.c.l.bf16 %v8985_v51  ;;  %v12879_v26 = vunpack.c.l.bf16 %v8988_v50 }
  0x5f   : > { %v1270_v58 = vrot.slane %v13315_v42, 1 }
  0x60   : > { %13317 = vst [vmem:[#allocation54_spill] sm:$0xff] %v8980_v27  ;;  %v1202_v42 = vrot.slane %v12879_v26, 1 }
  0x61   : > { %v1271_v49 = vsel %vm1008_vm1, %v1269_v12, %v1270_v58  ;;  %v1273_v0 = vsel %vm1008_vm1, %v1270_v58, %v1272_v48  ;;  %v9015_v58 = vld [vmem:[%s8517_s19 + $0x12c] sm:$0xff]  }
  0x62   : > { %v9009_v48 = vpack.c.bf16 %v1273_v0, %v1271_v49  ;;  %13323 = vst [vmem:[#allocation60_spill] sm:$0xff] %v9015_v58  ;;  %v1199_v49 = vrot.slane %v12873_v23, 1  ;;  %v1200_v0 = vrot.slane %v12876_v11, 1  ;;  %v13328_v23 = vunpack.c.h.bf16 %v8997_v16 }
  0x63   : > { %v13329_v11 = vunpack.c.l.bf16 %v9000_v22 }
  0x64   : > { %7569 = vmatmul.msk.bf16.gmra.mxu2 %vm1523_vm2, %v8980_v27  ;;  %13322 = vst [vmem:[#allocation59_spill] sm:$0xff] %v9009_v48  ;;  %v1039_v27 = vrot.slane %v13327_v28, 1  ;;  %v1040_v46 = vrot.slane %v13328_v23, 1  ;;  %v1201_v18 = vsel %vm1008_vm1, %v1199_v49, %v1200_v0  ;;  %v13330_v28 = vunpack.c.l.bf16 %v9015_v58 }
  0x65   : > { %v1042_v51 = vrot.slane %v13329_v11, 1  ;;  %v13331_v23 = vunpack.c.h.bf16 %v9015_v58  ;;  %v13332_v11 = vunpack.c.l.bf16 %v9018_v53  ;;  %v1274_v49 = vrot.slane %v13333_v7, 1 }
  0x66   : > { %v1124_v50 = vrot.slane %v13330_v28, 1  ;;  %v1041_v12 = vsel %vm1008_vm1, %v1039_v27, %v1040_v46  ;;  %v13335_v28 = vunpack.c.l.bf16 %v9026_v41  ;;  %v9072_v27 = vld [vmem:[%s8517_s19 + $0x20c] sm:$0x1] }
  0x67   : > { %v1125_v63 = vrot.slane %v13331_v23, 1  ;;  %v1127_v26 = vrot.slane %v13332_v11, 1  ;;  %v1043_v38 = vsel %vm1008_vm1, %v1040_v46, %v1042_v51  ;;  %13338 = vst [vmem:[#allocation66_spill] sm:$0xff] %v9072_v27 }
  0x68   : > { %v1277_v37 = vrot.slane %v13335_v28, 1  ;;  %v9074_v46 = vpack.c.bf16 %v1043_v38, %v1041_v12  ;;  %v12898_v38 = vunpack.c.h.bf16 %v9069_v35  ;;  %v9102_v28 = vld [vmem:[%s8517_s19 + $0x140] sm:$0x1] }
  0x69   : > { %v1126_v23 = vsel %vm1008_vm1, %v1124_v50, %v1125_v63  ;;  %v1128_v11 = vsel %vm1008_vm1, %v1125_v63, %v1127_v26  ;;  %v9081_v50 = vld [vmem:[%s8517_s19 + $0x54] sm:$0xff]   ;;  %v9084_v63 = vld [vmem:[%s8517_s19 + $0x5c] sm:$0x1]  ;;  %13344 = vst [vmem:[#allocation72_spill] sm:$0xff] %v9102_v28 }
  0x6a   : > { %13339 = vst [vmem:[#allocation67_spill] sm:$0xff] %v9074_v46  ;;  %v9086_v26 = vpack.c.bf16 %v1128_v11, %v1126_v23  ;;  %v9107_v23 = vld [vmem:[%s8517_s19 + $0x2d0] sm:$0xff]   ;;  %v9110_v11 = vld [vmem:[%s8517_s19 + $0x2d8] sm:$0x1] }
  0x6b   : > { %7537 = vmatmul.msk.bf16.gmra.mxu0 %vm1523_vm2, %v8990_v19  ;;  %7554 = vmatmul.msk.bf16.gmra.mxu1 %vm1523_vm2, %v9002_v62  ;;  %13340 = vst [vmem:[#allocation68_spill] sm:$0xff] %v9081_v50  ;;  %v13353_v41 = vunpack.c.l.bf16 %v9107_v23 }
  0x6c   : > { %13341 = vst [vmem:[#allocation69_spill] sm:$0xff] %v9086_v26 }
  0x6d   : > { %7584 = vmatmul.msk.bf16.gmra.mxu3 %vm1523_vm2, %v9009_v48  ;;  %v1203_v48 = vsel %vm1008_vm1, %v1200_v0, %v1202_v42  ;;  %v13334_v42 = vunpack.c.h.bf16 %v9023_v3  ;;  %13345 = vst [vmem:[#allocation73_spill] sm:$0xff] %v9107_v23  ;;  %v13347_v3 = vunpack.c.l.bf16 %v9081_v50 }
  0x6e   : > { %v9064_v29 = vpack.c.bf16 %v1203_v48, %v1201_v18  ;;  %v12895_v48 = vunpack.c.l.bf16 %v9069_v35  ;;  %v12901_v18 = vunpack.c.l.bf16 %v9072_v27  ;;  %13346 = vst [vmem:[#allocation74_spill] sm:$0xff] %v9110_v11 }
  0x6f   : > { %v1275_v0 = vrot.slane %v13334_v42, 1 }
  0x70   : > { %13336 = vst [vmem:[#allocation64_spill] sm:$0xff] %v9064_v29  ;;  %v1207_v42 = vrot.slane %v12901_v18, 1 }
  0x71   : > { %v1276_v51 = vsel %vm1008_vm1, %v1274_v49, %v1275_v0  ;;  %v1278_v7 = vsel %vm1008_vm1, %v1275_v0, %v1277_v37  ;;  %v9099_v0 = vld [vmem:[%s8517_s19 + $0x138] sm:$0xff]  }
  0x72   : > { %v9093_v37 = vpack.c.bf16 %v1278_v7, %v1276_v51  ;;  %13343 = vst [vmem:[#allocation71_spill] sm:$0xff] %v9099_v0  ;;  %v1204_v51 = vrot.slane %v12895_v48, 1  ;;  %v1205_v7 = vrot.slane %v12898_v38, 1  ;;  %v13348_v48 = vunpack.c.h.bf16 %v9081_v50 }
  0x73   : > { %v13349_v38 = vunpack.c.l.bf16 %v9084_v63 }
  0x74   : > { %7570 = vmatmul.msk.bf16.gmra.mxu2 %vm1523_vm2, %v9064_v29  ;;  %13342 = vst [vmem:[#allocation70_spill] sm:$0xff] %v9093_v37  ;;  %v1044_v29 = vrot.slane %v13347_v3, 1  ;;  %v1045_v32 = vrot.slane %v13348_v48, 1  ;;  %v1206_v12 = vsel %vm1008_vm1, %v1204_v51, %v1205_v7  ;;  %v13350_v3 = vunpack.c.l.bf16 %v9099_v0 }
  0x75   : > { %v1047_v35 = vrot.slane %v13349_v38, 1  ;;  %v13351_v48 = vunpack.c.h.bf16 %v9099_v0  ;;  %v13352_v38 = vunpack.c.l.bf16 %v9102_v28  ;;  %v1279_v51 = vrot.slane %v13353_v41, 1  ;;  %v9153_v28 = vld [vmem:[%s8517_s19 + $0x210] sm:$0xff]  }
  0x76   : > { %v1129_v27 = vrot.slane %v13350_v3, 1  ;;  %v1046_v47 = vsel %vm1008_vm1, %v1044_v29, %v1045_v32  ;;  %v13355_v3 = vunpack.c.l.bf16 %v9110_v11  ;;  %13357 = vst [vmem:[#allocation76_spill] sm:$0xff] %v9153_v28  ;;  %v9156_v29 = vld [vmem:[%s8517_s19 + $0x218] sm:$0x1] }
  0x77   : > { %v1130_v54 = vrot.slane %v13351_v48, 1  ;;  %v1132_v18 = vrot.slane %v13352_v38, 1  ;;  %v1048_v49 = vsel %vm1008_vm1, %v1045_v32, %v1047_v35  ;;  %13358 = vst [vmem:[#allocation77_spill] sm:$0xff] %v9156_v29 }
  0x78   : > { %v9158_v32 = vpack.c.bf16 %v1048_v49, %v1046_v47  ;;  %v12921_v47 = vunpack.c.h.bf16 %v9153_v28 }
  0x79   : > { %v1131_v48 = vsel %vm1008_vm1, %v1129_v27, %v1130_v54  ;;  %v1133_v38 = vsel %vm1008_vm1, %v1130_v54, %v1132_v18  ;;  %v9165_v27 = vld [vmem:[%s8517_s19 + $0x60] sm:$0xff]   ;;  %v9170_v18 = vld [vmem:[%s8517_s19 + $0x68] sm:$0x1] }
  0x7a   : > { %13359 = vst [vmem:[#allocation78_spill] sm:$0xff] %v9158_v32  ;;  %v9167_v54 = vpack.c.bf16 %v1133_v38, %v1131_v48  ;;  %v9189_v48 = vld [vmem:[%s8517_s19 + $0x2dc] sm:$0xff]   ;;  %v9194_v38 = vld [vmem:[%s8517_s19 + $0x2e4] sm:$0x1] }
  0x7b   : > { %7538 = vmatmul.msk.bf16.gmra.mxu0 %vm1523_vm2, %v9074_v46  ;;  %7555 = vmatmul.msk.bf16.gmra.mxu1 %vm1523_vm2, %v9086_v26  ;;  %v1282_v26 = vrot.slane %v13355_v3, 1  ;;  %13364 = vst [vmem:[#allocation83_spill] sm:$0xff] %v9189_v48  ;;  %v12936_v11 = vunpack.c.l.bf16 %v9194_v38  ;;  %v13372_v49 = vunpack.c.l.bf16 %v9189_v48 }
  0x7c   : > { %13360 = vst [vmem:[#allocation79_spill] sm:$0xff] %v9167_v54 }
  0x7d   : > { %7585 = vmatmul.msk.bf16.gmra.mxu3 %vm1523_vm2, %v9093_v37  ;;  %v1208_v37 = vsel %vm1008_vm1, %v1205_v7, %v1207_v42  ;;  %v13354_v42 = vunpack.c.h.bf16 %v9107_v23  ;;  %13365 = vst [vmem:[#allocation84_spill] sm:$0xff] %v9194_v38  ;;  %v13366_v23 = vunpack.c.l.bf16 %v9165_v27  ;;  %v1284_v58 = vrot.slane %v13372_v49, 1 }
  0x7e   : > { %v9148_v0 = vpack.c.bf16 %v1208_v37, %v1206_v12  ;;  %v12918_v37 = vunpack.c.l.bf16 %v9153_v28  ;;  %v12923_v12 = vunpack.c.l.bf16 %v9156_v29  ;;  %v13368_v29 = vunpack.c.l.bf16 %v9170_v18 }
  0x7f   : > { %v1280_v7 = vrot.slane %v13354_v42, 1  ;;  %v9182_v42 = vld [vmem:[%s8517_s19 + $0x144] sm:$0xff]  }
  0x80   : > { %13356 = vst [vmem:[#allocation75_spill] sm:$0xff] %v9148_v0 }
  0x81   : > { %v1281_v35 = vsel %vm1008_vm1, %v1279_v51, %v1280_v7  ;;  %v1283_v41 = vsel %vm1008_vm1, %v1280_v7, %v1282_v26  ;;  %13362 = vst [vmem:[#allocation81_spill] sm:$0xff] %v9182_v42  ;;  %v9185_v7 = vld [vmem:[%s8517_s19 + $0x14c] sm:$0x1]  ;;  %v1212_v51 = vrot.slane %v12923_v12, 1  ;;  %v1052_v12 = vrot.slane %v13368_v29, 1 }
  0x82   : > { %v9177_v26 = vpack.c.bf16 %v1283_v41, %v1281_v35  ;;  %13363 = vst [vmem:[#allocation82_spill] sm:$0xff] %v9185_v7  ;;  %v1209_v35 = vrot.slane %v12918_v37, 1  ;;  %v1210_v41 = vrot.slane %v12921_v47, 1  ;;  %v13367_v37 = vunpack.c.h.bf16 %v9165_v27 }
  0x83   : > { %v13371_v47 = vunpack.c.l.bf16 %v9185_v7  ;;  %v9237_v7 = vld [vmem:[%s8517_s19 + $0x21c] sm:$0xff]  }
  0x84   : > { %7571 = vmatmul.msk.bf16.gmra.mxu2 %vm1523_vm2, %v9148_v0  ;;  %13361 = vst [vmem:[#allocation80_spill] sm:$0xff] %v9177_v26  ;;  %v1049_v0 = vrot.slane %v13366_v23, 1  ;;  %v1211_v3 = vsel %vm1008_vm1, %v1209_v35, %v1210_v41  ;;  %v13369_v23 = vunpack.c.l.bf16 %v9182_v42 }
  0x85   : > { %v1137_v53 = vrot.slane %v13371_v47, 1  ;;  %13375 = vst [vmem:[#allocation86_spill] sm:$0xff] %v9237_v7 }
  0x86   : > { %v1134_v28 = vrot.slane %v13369_v23, 1  ;;  %v1287_v23 = vrot.slane %v12936_v11, 1 }
  0x8b   : > { %7539 = vmatmul.msk.bf16.gmra.mxu0 %vm1523_vm2, %v9158_v32  ;;  %7556 = vmatmul.msk.bf16.gmra.mxu1 %vm1523_vm2, %v9167_v54  ;;  %v1050_v54 = vrot.slane %v13367_v37, 1  ;;  %v13370_v37 = vunpack.c.h.bf16 %v9182_v42 }
  0x8d   : > { %7586 = vmatmul.msk.bf16.gmra.mxu3 %vm1523_vm2, %v9177_v26  ;;  %v1213_v26 = vsel %vm1008_vm1, %v1210_v41, %v1212_v51  ;;  %v1135_v62 = vrot.slane %v13370_v37, 1  ;;  %v1051_v29 = vsel %vm1008_vm1, %v1049_v0, %v1050_v54  ;;  %v1053_v35 = vsel %vm1008_vm1, %v1050_v54, %v1052_v12  ;;  %v9240_v0 = vld [vmem:[%s8517_s19 + $0x224] sm:$0x1] }
  0x8e   : > { %v13373_v51 = vunpack.c.h.bf16 %v9189_v48  ;;  %v9232_v42 = vpack.c.bf16 %v1213_v26, %v1211_v3  ;;  %13376 = vst [vmem:[#allocation87_spill] sm:$0xff] %v9240_v0  ;;  %v9242_v49 = vpack.c.bf16 %v1053_v35, %v1051_v29  ;;  %v12944_v26 = vunpack.c.l.bf16 %v9237_v7  ;;  %v9277_v3 = vld [vmem:[%s8517_s19 + $0x2e8] sm:$0xff]   ;;  %v9282_v29 = vld [vmem:[%s8517_s19 + $0x2f0] sm:$0x1] }
  0x8f   : > { %v1136_v37 = vsel %vm1008_vm1, %v1134_v28, %v1135_v62  ;;  %v1138_v47 = vsel %vm1008_vm1, %v1135_v62, %v1137_v53  ;;  %v9251_v28 = vld [vmem:[%s8517_s19 + $0x6c] sm:$0xff]   ;;  %v9256_v53 = vld [vmem:[%s8517_s19 + $0x74] sm:$0x1]  ;;  %13384 = vst [vmem:[#allocation95_spill] sm:$0xff] %v9277_v3 }
  0x90   : > { %v1285_v41 = vrot.slane %v13373_v51, 1  ;;  %13374 = vst [vmem:[#allocation85_spill] sm:$0xff] %v9232_v42  ;;  %v9253_v62 = vpack.c.bf16 %v1138_v47, %v1136_v37  ;;  %v9270_v37 = vld [vmem:[%s8517_s19 + $0x150] sm:$0xff]   ;;  %v9273_v47 = vld [vmem:[%s8517_s19 + $0x158] sm:$0x1] }
  0x91   : > { %13377 = vst [vmem:[#allocation88_spill] sm:$0xff] %v9242_v49  ;;  %v13394_v56 = vunpack.c.h.bf16 %v9270_v37  ;;  %v13395_v11 = vunpack.c.l.bf16 %v9273_v47 }
  0x92   : > { %v1286_v12 = vsel %vm1008_vm1, %v1284_v58, %v1285_v41  ;;  %v1288_v51 = vsel %vm1008_vm1, %v1285_v41, %v1287_v23  ;;  %13378 = vst [vmem:[#allocation89_spill] sm:$0xff] %v9251_v28  ;;  %v13387_v23 = vunpack.c.l.bf16 %v9240_v0 }
  0x93   : > { %13379 = vst [vmem:[#allocation90_spill] sm:$0xff] %v9253_v62  ;;  %v9265_v35 = vpack.c.bf16 %v1288_v51, %v1286_v12  ;;  %v1214_v12 = vrot.slane %v12944_v26, 1  ;;  %v13386_v51 = vunpack.c.h.bf16 %v9237_v7  ;;  %v13389_v26 = vunpack.c.h.bf16 %v9251_v28 }
  0x94   : > { %7572 = vmatmul.msk.bf16.gmra.mxu2 %vm1523_vm2, %v9232_v42  ;;  %13382 = vst [vmem:[#allocation93_spill] sm:$0xff] %v9270_v37  ;;  %v1217_v38 = vrot.slane %v13387_v23, 1  ;;  %v13390_v23 = vunpack.c.l.bf16 %v9256_v53  ;;  %v1142_v24 = vrot.slane %v13395_v11, 1 }
  0x95   : > { %13381 = vst [vmem:[#allocation92_spill] sm:$0xff] %v9265_v35  ;;  %v1215_v41 = vrot.slane %v13386_v51, 1  ;;  %v1055_v2 = vrot.slane %v13389_v26, 1  ;;  %v13393_v51 = vunpack.c.l.bf16 %v9270_v37 }
  0x96   : > { %13383 = vst [vmem:[#allocation94_spill] sm:$0xff] %v9273_v47  ;;  %v1057_v48 = vrot.slane %v13390_v23, 1  ;;  %v1140_v23 = vrot.slane %v13394_v56, 1  ;;  %v9331_v47 = vld [vmem:[%s8517_s19 + $0x228] sm:$0xff]  }
  0x97   : > { %13385 = vst [vmem:[#allocation96_spill] sm:$0xff] %v9282_v29  ;;  %v1139_v60 = vrot.slane %v13393_v51, 1  ;;  %v13398_v51 = vunpack.c.l.bf16 %v9282_v29 }
  0x98   : > { %v9244_v54 = vpop.f32.mrf.mxu0  ;;  %v9261_v58 = vpop.f32.mrf.mxu1  ;;  %v1143_v11 = vsel %vm1008_vm1, %v1140_v23, %v1142_v24  ;;  %13400 = vst [vmem:[#allocation100_spill] sm:$0xff] %v9331_v47 }
  0x99   : > { %13380 = vst [vmem:[#allocation91_spill] sm:$0xff] %v9261_v58  ;;  %v1141_v56 = vsel %vm1008_vm1, %v1139_v60, %v1140_v23  ;;  %v9345_v60 = vld [vmem:[%s8517_s19 + $0x78] sm:$0xff]  }
  0x9a   : > { %v9347_v24 = vpack.c.bf16 %v1143_v11, %v1141_v56  ;;  %v9368_v56 = vld [vmem:[%s8517_s19 + $0x15c] sm:$0xff]   ;;  %v9371_v11 = vld [vmem:[%s8517_s19 + $0x164] sm:$0x1] }
  0x9b   : > { %7540 = vmatmul.msk.bf16.gmra.mxu0 %vm1523_vm2, %v9242_v49  ;;  %7557 = vmatmul.msk.bf16.gmra.mxu1 %vm1523_vm2, %v9253_v62  ;;  %v13388_v62 = vunpack.c.l.bf16 %v9251_v28  ;;  %13408 = vst [vmem:[#allocation108_spill] sm:$0xff] %v9368_v56  ;;  %v13421_v57 = vunpack.c.h.bf16 %v9368_v56 }
  0x9c   : > { %13403 = vst [vmem:[#allocation103_spill] sm:$0xff] %v9347_v24 }
  0x9d   : > { %7587 = vmatmul.msk.bf16.gmra.mxu3 %vm1523_vm2, %v9265_v35  ;;  %v1054_v58 = vrot.slane %v13388_v62, 1  ;;  %v1216_v35 = vsel %vm1008_vm1, %v1214_v12, %v1215_v41  ;;  %v1218_v62 = vsel %vm1008_vm1, %v1215_v41, %v1217_v38  ;;  %v13396_v12 = vunpack.c.l.bf16 %v9277_v3  ;;  %13409 = vst [vmem:[#allocation109_spill] sm:$0xff] %v9371_v11 }
  0x9e   : > { %v1058_v38 = vsel %vm1008_vm1, %v1055_v2, %v1057_v48  ;;  %v13397_v41 = vunpack.c.h.bf16 %v9277_v3  ;;  %v9326_v37 = vpack.c.bf16 %v1218_v62, %v1216_v35  ;;  %v9350_v35 = vld [vmem:[%s8517_s19 + $0x80] sm:$0x1]  ;;  %v9375_v62 = vld [vmem:[%s8517_s19 + $0x2f4] sm:$0xff]  }
  0x9f   : > { %v1056_v42 = vsel %vm1008_vm1, %v1054_v58, %v1055_v2  ;;  %v1289_v52 = vrot.slane %v13396_v12, 1  ;;  %v9334_v58 = vld [vmem:[%s8517_s19 + $0x230] sm:$0x1]  ;;  %13410 = vst [vmem:[#allocation110_spill] sm:$0xff] %v9375_v62 }
  0xa0   : > { %v9300_v7 = vpop.f32.mrf.mxu0  ;;  %v9308_v0 = vpop.f32.mrf.mxu3  ;;  %13399 = vst [vmem:[#allocation99_spill] sm:$0xff] %v9326_v37  ;;  %v9336_v12 = vpack.c.bf16 %v1058_v38, %v1056_v42  ;;  %v9380_v42 = vld [vmem:[%s8517_s19 + $0x2fc] sm:$0x1] }
  0xa1   : > { %13391 = vst [vmem:[#allocation97_spill] sm:$0xff] %v9308_v0  ;;  %v9310_v26 = vpop.f32.mrf.mxu1  ;;  %v1290_v0 = vrot.slane %v13397_v41, 1  ;;  %v13413_v41 = vunpack.c.h.bf16 %v9331_v47 }
  0xa2   : > { %13392 = vst [vmem:[#allocation98_spill] sm:$0xff] %v9310_v26  ;;  %v1292_v26 = vrot.slane %v13398_v51, 1  ;;  %v13414_v51 = vunpack.c.l.bf16 %v9334_v58 }
  0xa3   : > { %13401 = vst [vmem:[#allocation101_spill] sm:$0xff] %v9334_v58  ;;  %v1291_v2 = vsel %vm1008_vm1, %v1289_v52, %v1290_v0  ;;  %v13422_v52 = vunpack.c.l.bf16 %v9371_v11  ;;  %v9431_v11 = vld [vmem:[%s8517_s19 + $0x234] sm:$0xff]  }
  0xa4   : > { %13402 = vst [vmem:[#allocation102_spill] sm:$0xff] %v9336_v12  ;;  %v1293_v48 = vsel %vm1008_vm1, %v1290_v0, %v1292_v26  ;;  %7573 = vmatmul.msk.bf16.gmra.mxu2 %vm1523_vm2, %v9326_v37  ;;  %v1222_v29 = vrot.slane %v13414_v51, 1  ;;  %v13417_v51 = vunpack.c.l.bf16 %v9350_v35 }
  0xa5   : > { %v9361_v26 = vpack.c.bf16 %v1293_v48, %v1291_v2  ;;  %13411 = vst [vmem:[#allocation111_spill] sm:$0xff] %v9380_v42  ;;  %v13412_v2 = vunpack.c.l.bf16 %v9331_v47  ;;  %v1147_v59 = vrot.slane %v13422_v52, 1 }
  0xa6   : > { %v1062_v3 = vrot.slane %v13417_v51, 1  ;;  %v1145_v51 = vrot.slane %v13421_v57, 1  ;;  %13428 = vst [vmem:[#allocation116_spill] sm:$0xff] %v9431_v11 }
  0xa7   : > { %13406 = vst [vmem:[#allocation106_spill] sm:$0xff] %v9361_v26  ;;  %v9363_v38 = vpop.f32.mrf.mxu2  ;;  %v1219_v48 = vrot.slane %v13412_v2, 1  ;;  %v13416_v2 = vunpack.c.h.bf16 %v9345_v60 }
  0xa8   : > { %v9338_v17 = vpop.f32.mrf.mxu0  ;;  %v9355_v23 = vpop.f32.mrf.mxu3  ;;  %13407 = vst [vmem:[#allocation107_spill] sm:$0xff] %v9363_v38  ;;  %v13415_v38 = vunpack.c.l.bf16 %v9345_v60 }
  0xa9   : > { %13404 = vst [vmem:[#allocation104_spill] sm:$0xff] %v9355_v23  ;;  %v9357_v0 = vpop.f32.mrf.mxu1  ;;  %v1220_v23 = vrot.slane %v13413_v41, 1  ;;  %v13420_v41 = vunpack.c.l.bf16 %v9368_v56  ;;  %v13426_v56 = vunpack.c.l.bf16 %v9380_v42 }
  0xaa   : > { %13405 = vst [vmem:[#allocation105_spill] sm:$0xff] %v9357_v0  ;;  %v1060_v0 = vrot.slane %v13416_v2, 1 }
  0xab   : > { %7541 = vmatmul.msk.bf16.gmra.mxu0 %vm1523_vm2, %v9336_v12  ;;  %7558 = vmatmul.msk.bf16.gmra.mxu1 %vm1523_vm2, %v9347_v24  ;;  %v1059_v24 = vrot.slane %v13415_v38, 1  ;;  %v1221_v58 = vsel %vm1008_vm1, %v1219_v48, %v1220_v23  ;;  %v1144_v30 = vrot.slane %v13420_v41, 1  ;;  %v13423_v48 = vunpack.c.l.bf16 %v9375_v62 }
  0xac   : > { %v1297_v57 = vrot.slane %v13426_v56, 1 }
  0xad   : > { %7588 = vmatmul.msk.bf16.gmra.mxu3 %vm1523_vm2, %v9361_v26  ;;  %v1223_v26 = vsel %vm1008_vm1, %v1220_v23, %v1222_v29  ;;  %v1061_v37 = vsel %vm1008_vm1, %v1059_v24, %v1060_v0  ;;  %v1294_v29 = vrot.slane %v13423_v48, 1  ;;  %v1146_v52 = vsel %vm1008_vm1, %v1144_v30, %v1145_v51  ;;  %v9434_v48 = vld [vmem:[%s8517_s19 + $0x23c] sm:$0x1]  ;;  %v9445_v30 = vld [vmem:[%s8517_s19 + $0x84] sm:$0xff]  }
  0xae   : > { %v9426_v55 = vpack.c.bf16 %v1223_v26, %v1221_v58  ;;  %v1148_v24 = vsel %vm1008_vm1, %v1145_v51, %v1147_v59  ;;  %13429 = vst [vmem:[#allocation117_spill] sm:$0xff] %v9434_v48  ;;  %v9450_v58 = vld [vmem:[%s8517_s19 + $0x8c] sm:$0x1]  ;;  %v9475_v26 = vld [vmem:[%s8517_s19 + $0x300] sm:$0xff]  }
  0xaf   : > { %v9419_v23 = vpop.f32.mrf.mxu2  ;;  %13431 = vst [vmem:[#allocation119_spill] sm:$0xff] %v9445_v30  ;;  %v9447_v59 = vpack.c.bf16 %v1148_v24, %v1146_v52  ;;  %v9468_v52 = vld [vmem:[%s8517_s19 + $0x168] sm:$0xff]   ;;  %v9471_v24 = vld [vmem:[%s8517_s19 + $0x170] sm:$0x1] }
  0xb0   : > { %v9398_v47 = vpop.f32.mrf.mxu0  ;;  %v9406_v38 = vpop.f32.mrf.mxu3  ;;  %13424 = vst [vmem:[#allocation114_spill] sm:$0xff] %v9419_v23  ;;  %v13451_v39 = vunpack.c.h.bf16 %v9468_v52  ;;  %v13452_v56 = vunpack.c.l.bf16 %v9471_v24 }
  0xb1   : > { %13418 = vst [vmem:[#allocation112_spill] sm:$0xff] %v9406_v38  ;;  %v9408_v2 = vpop.f32.mrf.mxu1  ;;  %v1063_v38 = vsel %vm1008_vm1, %v1060_v0, %v1062_v3 }
  0xb2   : > { %13419 = vst [vmem:[#allocation113_spill] sm:$0xff] %v9408_v2  ;;  %v13425_v2 = vunpack.c.h.bf16 %v9375_v62  ;;  %v9436_v23 = vpack.c.bf16 %v1063_v38, %v1061_v37  ;;  %v9480_v37 = vld [vmem:[%s8517_s19 + $0x308] sm:$0x1]  ;;  %v1152_v44 = vrot.slane %v13452_v56, 1 }
  0xb3   : > { %13427 = vst [vmem:[#allocation115_spill] sm:$0xff] %v9426_v55 }
  0xb4   : > { %v1295_v41 = vrot.slane %v13425_v2, 1  ;;  %13430 = vst [vmem:[#allocation118_spill] sm:$0xff] %v9436_v23  ;;  %7574 = vmatmul.msk.bf16.gmra.mxu2 %vm1523_vm2, %v9426_v55 }
  0xb5   : > { %13432 = vst [vmem:[#allocation120_spill] sm:$0xff] %v9447_v59 }
  0xb6   : > { %v1296_v3 = vsel %vm1008_vm1, %v1294_v29, %v1295_v41  ;;  %v1298_v0 = vsel %vm1008_vm1, %v1295_v41, %v1297_v57  ;;  %13437 = vst [vmem:[#allocation125_spill] sm:$0xff] %v9468_v52  ;;  %v13442_v41 = vunpack.c.h.bf16 %v9431_v11  ;;  %v13443_v57 = vunpack.c.l.bf16 %v9434_v48 }
  0xb7   : > { %v9461_v51 = vpack.c.bf16 %v1298_v0, %v1296_v3  ;;  %v9463_v29 = vpop.f32.mrf.mxu2  ;;  %13438 = vst [vmem:[#allocation126_spill] sm:$0xff] %v9471_v24  ;;  %v13441_v3 = vunpack.c.l.bf16 %v9431_v11  ;;  %v9531_v24 = vld [vmem:[%s8517_s19 + $0x240] sm:$0xff]  }
  0xb8   : > { %v9438_v6 = vpop.f32.mrf.mxu0  ;;  %v9455_v38 = vpop.f32.mrf.mxu3  ;;  %13436 = vst [vmem:[#allocation124_spill] sm:$0xff] %v9463_v29  ;;  %v1227_v42 = vrot.slane %v13443_v57, 1  ;;  %v13444_v29 = vunpack.c.l.bf16 %v9445_v30  ;;  %v13447_v57 = vunpack.c.l.bf16 %v9450_v58 }
  0xb9   : > { %13433 = vst [vmem:[#allocation121_spill] sm:$0xff] %v9455_v38  ;;  %v9457_v2 = vpop.f32.mrf.mxu1  ;;  %v1224_v0 = vrot.slane %v13441_v3, 1  ;;  %v1225_v38 = vrot.slane %v13442_v41, 1  ;;  %v13445_v3 = vunpack.c.h.bf16 %v9445_v30  ;;  %v13450_v41 = vunpack.c.l.bf16 %v9468_v52 }
  0xba   : > { %13434 = vst [vmem:[#allocation122_spill] sm:$0xff] %v9457_v2  ;;  %v1067_v62 = vrot.slane %v13447_v57, 1  ;;  %v1150_v57 = vrot.slane %v13451_v39, 1  ;;  %v13456_v52 = vunpack.c.l.bf16 %v9480_v37 }
  0xbb   : > { %7542 = vmatmul.msk.bf16.gmra.mxu0 %vm1523_vm2, %v9436_v23  ;;  %13435 = vst [vmem:[#allocation123_spill] sm:$0xff] %v9461_v51  ;;  %7559 = vmatmul.msk.bf16.gmra.mxu1 %vm1523_vm2, %v9447_v59  ;;  %v1064_v59 = vrot.slane %v13444_v29, 1  ;;  %v1065_v2 = vrot.slane %v13445_v3, 1  ;;  %v1226_v48 = vsel %vm1008_vm1, %v1224_v0, %v1225_v38  ;;  %v1149_v5 = vrot.slane %v13450_v41, 1 }
  0xbc   : > { %13439 = vst [vmem:[#allocation127_spill] sm:$0xff] %v9475_v26  ;;  %v13453_v0 = vunpack.c.l.bf16 %v9475_v26  ;;  %v1302_v39 = vrot.slane %v13456_v52, 1 }
  0xbd   : > { %13440 = vst [vmem:[#allocation128_spill] sm:$0xff] %v9480_v37  ;;  %7589 = vmatmul.msk.bf16.gmra.mxu3 %vm1523_vm2, %v9461_v51  ;;  %v1228_v51 = vsel %vm1008_vm1, %v1225_v38, %v1227_v42  ;;  %v1066_v55 = vsel %vm1008_vm1, %v1064_v59, %v1065_v2  ;;  %v1151_v56 = vsel %vm1008_vm1, %v1149_v5, %v1150_v57  ;;  %v9545_v5 = vld [vmem:[%s8517_s19 + $0x90] sm:$0xff]  }
  0xbe   : > { %v1299_v42 = vrot.slane %v13453_v0, 1  ;;  %v9526_v43 = vpack.c.bf16 %v1228_v51, %v1226_v48  ;;  %v1153_v59 = vsel %vm1008_vm1, %v1150_v57, %v1152_v44  ;;  %13458 = vst [vmem:[#allocation134_spill] sm:$0xff] %v9531_v24  ;;  %v9534_v0 = vld [vmem:[%s8517_s19 + $0x248] sm:$0x1]  ;;  %v9550_v48 = vld [vmem:[%s8517_s19 + $0x98] sm:$0x1] }
  0xbf   : > { %v9519_v38 = vpop.f32.mrf.mxu2  ;;  %13459 = vst [vmem:[#allocation135_spill] sm:$0xff] %v9534_v0  ;;  %v9547_v44 = vpack.c.bf16 %v1153_v59, %v1151_v56  ;;  %v9568_v56 = vld [vmem:[%s8517_s19 + $0x174] sm:$0xff]   ;;  %v9571_v59 = vld [vmem:[%s8517_s19 + $0x17c] sm:$0x1]  ;;  %v9575_v51 = vld [vmem:[%s8517_s19 + $0x30c] sm:$0xff]  }
  0xc0   : > { %v9498_v11 = vpop.f32.mrf.mxu0  ;;  %v9506_v29 = vpop.f32.mrf.mxu3  ;;  %13454 = vst [vmem:[#allocation132_spill] sm:$0xff] %v9519_v38  ;;  %v13483_v52 = vunpack.c.l.bf16 %v9571_v59 }
  0xc1   : > { %13446 = vst [vmem:[#allocation129_spill] sm:$0xff] %v9498_v11  ;;  %v9508_v3 = vpop.f32.mrf.mxu1 }
  0xc2   : > { %13448 = vst [vmem:[#allocation130_spill] sm:$0xff] %v9506_v29  ;;  %v1068_v29 = vsel %vm1008_vm1, %v1065_v2, %v1067_v62 }
  0xc3   : > { %13449 = vst [vmem:[#allocation131_spill] sm:$0xff] %v9508_v3  ;;  %v13455_v3 = vunpack.c.h.bf16 %v9475_v26  ;;  %v9536_v38 = vpack.c.bf16 %v1068_v29, %v1066_v55  ;;  %v9580_v55 = vld [vmem:[%s8517_s19 + $0x314] sm:$0x1] }
  0xc4   : > { %13457 = vst [vmem:[#allocation133_spill] sm:$0xff] %v9526_v43  ;;  %7575 = vmatmul.msk.bf16.gmra.mxu2 %vm1523_vm2, %v9526_v43 }
  0xc5   : > { %v1300_v41 = vrot.slane %v13455_v3, 1  ;;  %13460 = vst [vmem:[#allocation136_spill] sm:$0xff] %v9536_v38 }
  0xc6   : > { %13462 = vst [vmem:[#allocation138_spill] sm:$0xff] %v9547_v44 }
  0xc7   : > { %v1301_v62 = vsel %vm1008_vm1, %v1299_v42, %v1300_v41  ;;  %v1303_v2 = vsel %vm1008_vm1, %v1300_v41, %v1302_v39  ;;  %13463 = vst [vmem:[#allocation139_spill] sm:$0xff] %v9550_v48  ;;  %v9563_v42 = vpop.f32.mrf.mxu2  ;;  %v13473_v41 = vunpack.c.h.bf16 %v9531_v24  ;;  %v13474_v39 = vunpack.c.l.bf16 %v9534_v0 }
  0xc8   : > { %v9538_v14 = vpop.f32.mrf.mxu0  ;;  %v9555_v29 = vpop.f32.mrf.mxu3  ;;  %v9561_v57 = vpack.c.bf16 %v1303_v2, %v1301_v62  ;;  %13467 = vst [vmem:[#allocation143_spill] sm:$0xff] %v9563_v42  ;;  %v13472_v62 = vunpack.c.l.bf16 %v9531_v24  ;;  %v13475_v42 = vunpack.c.l.bf16 %v9545_v5 }
  0xc9   : > { %13461 = vst [vmem:[#allocation137_spill] sm:$0xff] %v9538_v14  ;;  %v9557_v3 = vpop.f32.mrf.mxu1  ;;  %v1232_v37 = vrot.slane %v13474_v39, 1  ;;  %v13478_v39 = vunpack.c.l.bf16 %v9550_v48 }
  0xca   : > { %13464 = vst [vmem:[#allocation140_spill] sm:$0xff] %v9555_v29  ;;  %v1229_v2 = vrot.slane %v13472_v62, 1  ;;  %v1230_v29 = vrot.slane %v13473_v41, 1  ;;  %v13476_v62 = vunpack.c.h.bf16 %v9545_v5  ;;  %v13481_v41 = vunpack.c.l.bf16 %v9568_v56 }
  0xcb   : > { %13465 = vst [vmem:[#allocation141_spill] sm:$0xff] %v9557_v3  ;;  %7543 = vmatmul.msk.bf16.gmra.mxu0 %vm1523_vm2, %v9536_v38  ;;  %7560 = vmatmul.msk.bf16.gmra.mxu1 %vm1523_vm2, %v9547_v44  ;;  %v1069_v44 = vrot.slane %v13475_v42, 1  ;;  %v1072_v26 = vrot.slane %v13478_v39, 1  ;;  %v1157_v38 = vrot.slane %v13483_v52, 1 }
  0xcc   : > { %13466 = vst [vmem:[#allocation142_spill] sm:$0xff] %v9561_v57  ;;  %v1070_v3 = vrot.slane %v13476_v62, 1  ;;  %v1231_v0 = vsel %vm1008_vm1, %v1229_v2, %v1230_v29  ;;  %v1154_v10 = vrot.slane %v13481_v41, 1  ;;  %v13484_v2 = vunpack.c.l.bf16 %v9575_v51 }
  0xcd   : > { %13468 = vst [vmem:[#allocation144_spill] sm:$0xff] %v9568_v56  ;;  %7590 = vmatmul.msk.bf16.gmra.mxu3 %vm1523_vm2, %v9561_v57  ;;  %v1233_v57 = vsel %vm1008_vm1, %v1230_v29, %v1232_v37 }
  0xce   : > { %13469 = vst [vmem:[#allocation145_spill] sm:$0xff] %v9571_v59  ;;  %v1071_v43 = vsel %vm1008_vm1, %v1069_v44, %v1070_v3  ;;  %v1304_v37 = vrot.slane %v13484_v2, 1  ;;  %v9626_v14 = vpack.c.bf16 %v1233_v57, %v1231_v0  ;;  %v9631_v59 = vld [vmem:[%s8517_s19 + $0x24c] sm:$0xff]   ;;  %v9634_v2 = vld [vmem:[%s8517_s19 + $0x254] sm:$0x1]  ;;  %v9675_v57 = vld [vmem:[%s8517_s19 + $0x318] sm:$0xff]  }
  0xcf   : > { %13470 = vst [vmem:[#allocation146_spill] sm:$0xff] %v9575_v51  ;;  %v9619_v29 = vpop.f32.mrf.mxu2  ;;  %v9650_v0 = vld [vmem:[%s8517_s19 + $0xa4] sm:$0x1] }
  0xd0   : > { %13471 = vst [vmem:[#allocation147_spill] sm:$0xff] %v9580_v55  ;;  %v9598_v24 = vpop.f32.mrf.mxu0  ;;  %v9606_v42 = vpop.f32.mrf.mxu3 }
  0xd1   : > { %13477 = vst [vmem:[#allocation148_spill] sm:$0xff] %v9598_v24  ;;  %v9608_v62 = vpop.f32.mrf.mxu1  ;;  %v13482_v24 = vunpack.c.h.bf16 %v9568_v56  ;;  %v13487_v56 = vunpack.c.l.bf16 %v9580_v55 }
  0xd2   : > { %13479 = vst [vmem:[#allocation149_spill] sm:$0xff] %v9606_v42  ;;  %v1073_v42 = vsel %vm1008_vm1, %v1070_v3, %v1072_v26 }
  0xd3   : > { %13480 = vst [vmem:[#allocation150_spill] sm:$0xff] %v9608_v62  ;;  %v1155_v39 = vrot.slane %v13482_v24, 1  ;;  %v13486_v62 = vunpack.c.h.bf16 %v9575_v51  ;;  %v1307_v24 = vrot.slane %v13487_v56, 1 }
  0xd4   : > { %13485 = vst [vmem:[#allocation151_spill] sm:$0xff] %v9619_v29  ;;  %v9636_v29 = vpack.c.bf16 %v1073_v42, %v1071_v43  ;;  %7576 = vmatmul.msk.bf16.gmra.mxu2 %vm1523_vm2, %v9626_v14  ;;  %v9680_v43 = vld [vmem:[%s8517_s19 + $0x320] sm:$0x1] }
  0xd5   : > { %v1305_v41 = vrot.slane %v13486_v62, 1  ;;  %13488 = vst [vmem:[#allocation152_spill] sm:$0xff] %v9626_v14  ;;  %v1156_v52 = vsel %vm1008_vm1, %v1154_v10, %v1155_v39  ;;  %v1158_v44 = vsel %vm1008_vm1, %v1155_v39, %v1157_v38  ;;  %v9645_v10 = vld [vmem:[%s8517_s19 + $0x9c] sm:$0xff]  }
  0xd6   : > { %13489 = vst [vmem:[#allocation153_spill] sm:$0xff] %v9631_v59  ;;  %v9647_v38 = vpack.c.bf16 %v1158_v44, %v1156_v52  ;;  %v9668_v52 = vld [vmem:[%s8517_s19 + $0x180] sm:$0xff]   ;;  %v9671_v44 = vld [vmem:[%s8517_s19 + $0x188] sm:$0x1] }
  0xd7   : > { %13490 = vst [vmem:[#allocation154_spill] sm:$0xff] %v9634_v2  ;;  %v1306_v26 = vsel %vm1008_vm1, %v1304_v37, %v1305_v41  ;;  %v1308_v3 = vsel %vm1008_vm1, %v1305_v41, %v1307_v24  ;;  %v9663_v37 = vpop.f32.mrf.mxu2  ;;  %v13505_v41 = vunpack.c.h.bf16 %v9631_v59  ;;  %v13506_v24 = vunpack.c.l.bf16 %v9634_v2 }
  0xd8   : > { %13491 = vst [vmem:[#allocation155_spill] sm:$0xff] %v9636_v29  ;;  %v9638_v11 = vpop.f32.mrf.mxu0  ;;  %v9655_v42 = vpop.f32.mrf.mxu3  ;;  %v9661_v39 = vpack.c.bf16 %v1308_v3, %v1306_v26  ;;  %v13504_v26 = vunpack.c.l.bf16 %v9631_v59  ;;  %v13515_v56 = vunpack.c.l.bf16 %v9671_v44 }
  0xd9   : > { %13492 = vst [vmem:[#allocation156_spill] sm:$0xff] %v9638_v11  ;;  %v9657_v62 = vpop.f32.mrf.mxu1  ;;  %v1237_v55 = vrot.slane %v13506_v24, 1  ;;  %v13510_v24 = vunpack.c.l.bf16 %v9650_v0 }
  0xda   : > { %13493 = vst [vmem:[#allocation157_spill] sm:$0xff] %v9645_v10  ;;  %v1234_v3 = vrot.slane %v13504_v26, 1  ;;  %v13508_v26 = vunpack.c.h.bf16 %v9645_v10  ;;  %v1162_v11 = vrot.slane %v13515_v56, 1 }
  0xdb   : > { %13494 = vst [vmem:[#allocation158_spill] sm:$0xff] %v9647_v38  ;;  %7544 = vmatmul.msk.bf16.gmra.mxu0 %vm1523_vm2, %v9636_v29  ;;  %7561 = vmatmul.msk.bf16.gmra.mxu1 %vm1523_vm2, %v9647_v38  ;;  %v1077_v51 = vrot.slane %v13510_v24, 1  ;;  %v13514_v29 = vunpack.c.h.bf16 %v9668_v52 }
  0xdc   : > { %13495 = vst [vmem:[#allocation159_spill] sm:$0xff] %v9650_v0 }
  0xdd   : > { %13496 = vst [vmem:[#allocation160_spill] sm:$0xff] %v9655_v42  ;;  %v1235_v42 = vrot.slane %v13505_v41, 1  ;;  %7591 = vmatmul.msk.bf16.gmra.mxu3 %vm1523_vm2, %v9661_v39  ;;  %v13513_v41 = vunpack.c.l.bf16 %v9668_v52  ;;  %v1160_v24 = vrot.slane %v13514_v29, 1 }
  0xde   : > { %13497 = vst [vmem:[#allocation161_spill] sm:$0xff] %v9657_v62  ;;  %v1075_v62 = vrot.slane %v13508_v26, 1 }
  0xdf   : > { %13498 = vst [vmem:[#allocation162_spill] sm:$0xff] %v9661_v39  ;;  %v1236_v2 = vsel %vm1008_vm1, %v1234_v3, %v1235_v42  ;;  %v1238_v39 = vsel %vm1008_vm1, %v1235_v42, %v1237_v55  ;;  %v13516_v3 = vunpack.c.l.bf16 %v9675_v57  ;;  %v9719_v42 = vpop.f32.mrf.mxu2 }
  0xe0   : > { %13499 = vst [vmem:[#allocation163_spill] sm:$0xff] %v9663_v37  ;;  %v13507_v37 = vunpack.c.l.bf16 %v9645_v10  ;;  %v9698_v59 = vpop.f32.mrf.mxu0  ;;  %v9726_v0 = vpack.c.bf16 %v1238_v39, %v1236_v2  ;;  %v9750_v2 = vld [vmem:[%s8517_s19 + $0xb0] sm:$0x1]  ;;  %v9775_v39 = vld [vmem:[%s8517_s19 + $0x324] sm:$0xff]  }
  0xe1   : > { %13500 = vst [vmem:[#allocation164_spill] sm:$0xff] %v9668_v52  ;;  %v9708_v26 = vpop.f32.mrf.mxu1  ;;  %v1309_v55 = vrot.slane %v13516_v3, 1  ;;  %v13519_v52 = vunpack.c.l.bf16 %v9680_v43  ;;  %v9734_v3 = vld [vmem:[%s8517_s19 + $0x260] sm:$0x1] }
  0xe2   : > { %13501 = vst [vmem:[#allocation165_spill] sm:$0xff] %v9671_v44  ;;  %v1074_v38 = vrot.slane %v13507_v37, 1  ;;  %v9706_v37 = vpop.f32.mrf.mxu3  ;;  %v9731_v44 = vld [vmem:[%s8517_s19 + $0x258] sm:$0xff]  }
  0xe3   : > { %13502 = vst [vmem:[#allocation166_spill] sm:$0xff] %v9675_v57  ;;  %v1312_v29 = vrot.slane %v13519_v52, 1 }
  0xe4   : > { %13503 = vst [vmem:[#allocation167_spill] sm:$0xff] %v9680_v43  ;;  %v1076_v14 = vsel %vm1008_vm1, %v1074_v38, %v1075_v62  ;;  %v1163_v38 = vsel %vm1008_vm1, %v1160_v24, %v1162_v11  ;;  %7577 = vmatmul.msk.bf16.gmra.mxu2 %vm1523_vm2, %v9726_v0 }
  0xe5   : > { %13509 = vst [vmem:[#allocation168_spill] sm:$0xff] %v9698_v59  ;;  %v1159_v59 = vrot.slane %v13513_v41, 1 }
  0xe6   : > { %13511 = vst [vmem:[#allocation169_spill] sm:$0xff] %v9706_v37  ;;  %v1078_v37 = vsel %vm1008_vm1, %v1075_v62, %v1077_v51 }
  0xe7   : > { %13512 = vst [vmem:[#allocation170_spill] sm:$0xff] %v9708_v26  ;;  %v13518_v26 = vunpack.c.h.bf16 %v9675_v57  ;;  %v1161_v56 = vsel %vm1008_vm1, %v1159_v59, %v1160_v24  ;;  %v9745_v59 = vld [vmem:[%s8517_s19 + $0xa8] sm:$0xff]  }
  0xe8   : > { %13517 = vst [vmem:[#allocation171_spill] sm:$0xff] %v9719_v42  ;;  %v9736_v42 = vpack.c.bf16 %v1078_v37, %v1076_v14  ;;  %v9738_v10 = vpop.f32.mrf.mxu0  ;;  %v9747_v11 = vpack.c.bf16 %v1163_v38, %v1161_v56  ;;  %v9768_v56 = vld [vmem:[%s8517_s19 + $0x18c] sm:$0xff]   ;;  %v9771_v38 = vld [vmem:[%s8517_s19 + $0x194] sm:$0x1] }
  0xe9   : > { %v1310_v41 = vrot.slane %v13518_v26, 1  ;;  %13520 = vst [vmem:[#allocation172_spill] sm:$0xff] %v9726_v0  ;;  %v9757_v26 = vpop.f32.mrf.mxu1  ;;  %v9780_v14 = vld [vmem:[%s8517_s19 + $0x32c] sm:$0x1]  ;;  %v13548_v52 = vunpack.c.l.bf16 %v9771_v38 }
  0xea   : > { %13521 = vst [vmem:[#allocation173_spill] sm:$0xff] %v9731_v44  ;;  %v9755_v37 = vpop.f32.mrf.mxu3 }
  0xeb   : > { %13522 = vst [vmem:[#allocation174_spill] sm:$0xff] %v9734_v3  ;;  %v1311_v51 = vsel %vm1008_vm1, %v1309_v55, %v1310_v41  ;;  %v1313_v62 = vsel %vm1008_vm1, %v1310_v41, %v1312_v29  ;;  %7545 = vmatmul.msk.bf16.gmra.mxu0 %vm1523_vm2, %v9736_v42  ;;  %v9763_v55 = vpop.f32.mrf.mxu2  ;;  %7562 = vmatmul.msk.bf16.gmra.mxu1 %vm1523_vm2, %v9747_v11  ;;  %v13537_v41 = vunpack.c.h.bf16 %v9731_v44  ;;  %v13538_v29 = vunpack.c.l.bf16 %v9734_v3 }
  0xec   : > { %13523 = vst [vmem:[#allocation175_spill] sm:$0xff] %v9736_v42  ;;  %v9761_v24 = vpack.c.bf16 %v1313_v62, %v1311_v51  ;;  %v13536_v51 = vunpack.c.l.bf16 %v9731_v44  ;;  %v1167_v0 = vrot.slane %v13548_v52, 1 }
  0xed   : > { %13524 = vst [vmem:[#allocation176_spill] sm:$0xff] %v9738_v10  ;;  %v1242_v43 = vrot.slane %v13538_v29, 1  ;;  %v13542_v29 = vunpack.c.l.bf16 %v9750_v2 }
  0xee   : > { %13525 = vst [vmem:[#allocation177_spill] sm:$0xff] %v9745_v59  ;;  %v1239_v62 = vrot.slane %v13536_v51, 1  ;;  %7592 = vmatmul.msk.bf16.gmra.mxu3 %vm1523_vm2, %v9761_v24  ;;  %v13540_v51 = vunpack.c.h.bf16 %v9745_v59 }
  0xef   : > { %13526 = vst [vmem:[#allocation178_spill] sm:$0xff] %v9747_v11  ;;  %v1082_v57 = vrot.slane %v13542_v29, 1  ;;  %v13547_v29 = vunpack.c.h.bf16 %v9768_v56 }
  0xf0   : > { %13527 = vst [vmem:[#allocation179_spill] sm:$0xff] %v9750_v2  ;;  %v9798_v44 = vpop.f32.mrf.mxu0 }
  0xf1   : > { %13528 = vst [vmem:[#allocation180_spill] sm:$0xff] %v9755_v37  ;;  %v1240_v37 = vrot.slane %v13537_v41, 1  ;;  %v13546_v41 = vunpack.c.l.bf16 %v9768_v56  ;;  %v1165_v2 = vrot.slane %v13547_v29, 1  ;;  %v13553_v29 = vunpack.c.h.bf16 %v9775_v39 }
  0xf2   : > { %13529 = vst [vmem:[#allocation181_spill] sm:$0xff] %v9757_v26  ;;  %v1080_v26 = vrot.slane %v13540_v51, 1  ;;  %v9808_v10 = vpop.f32.mrf.mxu3  ;;  %v9810_v51 = vpop.f32.mrf.mxu1 }
  0xf3   : > { %13530 = vst [vmem:[#allocation182_spill] sm:$0xff] %v9761_v24  ;;  %v1241_v3 = vsel %vm1008_vm1, %v1239_v62, %v1240_v37  ;;  %v1243_v24 = vsel %vm1008_vm1, %v1240_v37, %v1242_v43  ;;  %v13549_v62 = vunpack.c.h.bf16 %v8520_v8  ;;  %v13550_v43 = vunpack.c.l.bf16 %v8523_v9  ;;  %v9825_v48 = vpop.f32.mrf.mxu2 }
  0xf4   : > { %13531 = vst [vmem:[#allocation183_spill] sm:$0xff] %v9763_v55  ;;  %v13539_v55 = vunpack.c.l.bf16 %v9745_v59  ;;  %v1315_v52 = vrot.slane %v13553_v29, 1 }
  0xf5   : > { %13532 = vst [vmem:[#allocation184_spill] sm:$0xff] %v9768_v56  ;;  %v2575_v59 = vrot.slane %v13549_v62, 2  ;;  %v2577_v37 = vrot.slane %v13550_v43, 2 }
  0xf6   : > { %13533 = vst [vmem:[#allocation185_spill] sm:$0xff] %v9771_v38  ;;  %v1079_v11 = vrot.slane %v13539_v55, 1  ;;  %v13543_v55 = vunpack.c.l.bf16 %v8520_v8  ;;  %v13554_v8 = vunpack.c.l.bf16 %v9780_v14  ;;  %v9832_v38 = vpack.c.bf16 %v1243_v24, %v1241_v3  ;;  %v9845_v3 = vld [vmem:[%s8517_s19 + $0xb4] sm:$0xff]   ;;  %v9852_v24 = vld [vmem:[%s8517_s19 + $0xbc] sm:$0x1] }
  0xf7   : > { %13534 = vst [vmem:[#allocation186_spill] sm:$0xff] %v9775_v39 }
  0xf8   : > { %13535 = vst [vmem:[#allocation187_spill] sm:$0xff] %v9780_v14  ;;  %v2574_v42 = vrot.slane %v13543_v55, 2  ;;  %v1081_v55 = vsel %vm1008_vm1, %v1079_v11, %v1080_v26  ;;  %v1317_v62 = vrot.slane %v13554_v8, 1  ;;  %v1168_v11 = vsel %vm1008_vm1, %v1165_v2, %v1167_v0  ;;  %7578 = vmatmul.msk.bf16.gmra.mxu2 %vm1523_vm2, %v9832_v38  ;;  %v9870_v8 = vld [vmem:[%s8517_s19 + $0x1b8] sm:$0x1] }
  0xf9   : > { %13541 = vst [vmem:[#allocation188_spill] sm:$0xff] %v9798_v44  ;;  %v1164_v44 = vrot.slane %v13546_v41, 1  ;;  %v1083_v41 = vsel %vm1008_vm1, %v1080_v26, %v1082_v57  ;;  %v2578_v0 = vsel %vm2573_vm3, %v2575_v59, %v2577_v37  ;;  %v9867_v37 = vld [vmem:[%s8517_s19 + $0x1b0] sm:$0xff]   ;;  %v13567_v14 = vunpack.c.l.bf16 %v9852_v24 }
  0xfa   : > { %13544 = vst [vmem:[#allocation189_spill] sm:$0xff] %v9808_v10  ;;  %v13551_v10 = vunpack.c.l.bf16 %v9775_v39  ;;  %v9836_v43 = vpack.c.bf16 %v1083_v41, %v1081_v55  ;;  %v1318_v26 = vsel %vm1008_vm1, %v1315_v52, %v1317_v62  ;;  %v9854_v55 = vpop.f32.mrf.mxu3  ;;  %v9856_v41 = vpop.f32.mrf.mxu1 }
  0xfb   : > { %13545 = vst [vmem:[#allocation190_spill] sm:$0xff] %v9810_v51  ;;  %v1166_v9 = vsel %vm1008_vm1, %v1164_v44, %v1165_v2  ;;  %v2576_v44 = vsel %vm2573_vm3, %v2574_v42, %v2575_v59  ;;  %v13073_v42 = vunpack.c.l.bf16 %v9845_v3  ;;  %v13074_v59 = vunpack.c.h.bf16 %v9845_v3 }
  0xfc   : > { %v1314_v51 = vrot.slane %v13551_v10, 1  ;;  %13552 = vst [vmem:[#allocation191_spill] sm:$0xff] %v9825_v48  ;;  %v9838_v10 = vpop.f32.mrf.mxu0  ;;  %v9849_v2 = vpack.c.bf16 %v1168_v11, %v1166_v9  ;;  %7546 = vmatmul.msk.bf16.gmra.mxu0 %vm1523_vm2, %v9836_v43  ;;  %v9876_v9 = vld [vmem:[%s8517_s19 + $0x330] sm:$0xff]   ;;  %v9879_v11 = vld [vmem:[%s8517_s19 + $0x338] sm:$0x1]  ;;  %v1087_v39 = vrot.slane %v13567_v14, 1 }
  0xfd   : > { %13555 = vst [vmem:[#allocation192_spill] sm:$0xff] %v9832_v38  ;;  %v1085_v62 = vrot.slane %v13074_v59, 1  ;;  %v13571_v59 = vunpack.c.h.bf16 %v9867_v37 }
  0xfe   : > { %13556 = vst [vmem:[#allocation193_spill] sm:$0xff] %v9836_v43  ;;  %v1316_v57 = vsel %vm1008_vm1, %v1314_v51, %v1315_v52  ;;  %v3022_v51 = vpack.c.bf16 %v2578_v0, %v2576_v44  ;;  %v9862_v52 = vpop.f32.mrf.mxu2  ;;  %7563 = vmatmul.msk.bf16.gmra.mxu1 %vm1523_vm2, %v9849_v2  ;;  %v1084_v0 = vrot.slane %v13073_v42, 1  ;;  %v13570_v42 = vunpack.c.l.bf16 %v9867_v37 }
  0xff   : > { %13557 = vst [vmem:[#allocation194_spill] sm:$0xff] %v9845_v3  ;;  %v9860_v29 = vpack.c.bf16 %v1318_v26, %v1316_v57  ;;  %v1170_v48 = vrot.slane %v13571_v59, 1  ;;  %v1088_v44 = vsel %vm1008_vm1, %v1085_v62, %v1087_v39 }
 0x100   : > { %13558 = vst [vmem:[#allocation195_spill] sm:$0xff] %v9849_v2  ;;  %v13572_v2 = vunpack.c.l.bf16 %v9870_v8  ;;  %v1086_v57 = vsel %vm1008_vm1, %v1084_v0, %v1085_v62  ;;  %v7920_v62 = vld [vmem:[%s12776_s1 + $0xc] sm:$0x3] }
 0x101   : > { %13559 = vst [vmem:[#allocation196_spill] sm:$0xff] %v9854_v55  ;;  %7593 = vmatmul.msk.bf16.gmra.mxu3 %vm1523_vm2, %v9860_v29 }
 0x102   : > { %13560 = vst [vmem:[#allocation197_spill] sm:$0xff] %v9856_v41  ;;  %v9897_v38 = vpop.f32.mrf.mxu3  ;;  %v1172_v14 = vrot.slane %v13572_v2, 1  ;;  %v13575_v41 = vunpack.c.h.bf16 %v9876_v9 }
 0x103   : > { %13561 = vst [vmem:[#allocation198_spill] sm:$0xff] %v9860_v29  ;;  %v9899_v29 = vpop.f32.mrf.mxu1 }
 0x104   : > { %13562 = vst [vmem:[#allocation199_spill] sm:$0xff] %v9862_v52  ;;  %v9890_v55 = vpop.f32.mrf.mxu0  ;;  %v1169_v52 = vrot.slane %v13570_v42, 1  ;;  %v1320_v42 = vrot.slane %v13575_v41, 1  ;;  %v1173_v2 = vsel %vm1008_vm1, %v1170_v48, %v1172_v14 }
 0x105   : > { %13563 = vst [vmem:[#allocation200_spill] sm:$0xff] %v9867_v37  ;;  %v13576_v37 = vunpack.c.l.bf16 %v9879_v11 }
 0x106   : > { %13564 = vst [vmem:[#allocation201_spill] sm:$0xff] %v9870_v8  ;;  %v9908_v26 = vpop.f32.mrf.mxu2  ;;  %v1171_v59 = vsel %vm1008_vm1, %v1169_v52, %v1170_v48  ;;  %v9919_v8 = vpack.c.bf16 %v1088_v44, %v1086_v57  ;;  %v5261_v44 = vsel %vm1716_vm0, %v7920_v62, 0 }
 0x107   : > { %13565 = vst [vmem:[#allocation202_spill] sm:$0xff] %v9876_v9  ;;  %v1322_v56 = vrot.slane %v13576_v37, 1  ;;  %v1489_v41 = vpack.c.bf16 %v1173_v2, %v1171_v59  ;;  %v9930_v37 = vld [vmem:[%s8517_s19 + $0xe0] sm:$0x1]  ;;  %5270 = vmatpush.bf16.msra.mxu2 %v5261_v44  ;;  %v9954_v59 = vld [vmem:[%s8517_s19 + $0x344] sm:$0x1] }
 0x108   : > { %13566 = vst [vmem:[#allocation203_spill] sm:$0xff] %v9879_v11  ;;  %7661 = vmatmul.msk.bf16.vlgmr.msrb.gmra.mxu2 %vm1523_vm2, %v3022_v51 }
 0x109   : > { %13568 = vst [vmem:[#allocation204_spill] sm:$0xff] %v9897_v38  ;;  %v13574_v38 = vunpack.c.l.bf16 %v9876_v9  ;;  %v1323_v39 = vsel %vm1008_vm1, %v1320_v42, %v1322_v56 }
 0x10a   : > { %13569 = vst [vmem:[#allocation205_spill] sm:$0xff] %v9899_v29  ;;  %v9932_v52 = vpop.f32.mrf.mxu3 }
 0x10b   : > { %13573 = vst [vmem:[#allocation206_spill] sm:$0xff] %v9908_v26  ;;  %v1319_v29 = vrot.slane %v13574_v38, 1  ;;  %v9927_v38 = vld [vmem:[%s8517_s19 + $0xd8] sm:$0xff]   ;;  %v9934_v48 = vpop.f32.mrf.mxu1 }
 0x10c   : > { %13577 = vst [vmem:[#allocation207_spill] sm:$0xff] %v9919_v8  ;;  %v9921_v0 = vpop.f32.mrf.mxu0  ;;  %7547 = vmatmul.msk.bf16.gmra.mxu0 %vm1523_vm2, %v9919_v8  ;;  %v13588_v62 = vunpack.c.l.bf16 %v9927_v38  ;;  %v13589_v44 = vunpack.c.h.bf16 %v9927_v38 }
 0x10d   : > { %13578 = vst [vmem:[#allocation208_spill] sm:$0xff] %v9921_v0  ;;  %v1321_v26 = vsel %vm1008_vm1, %v1319_v29, %v1320_v42  ;;  %v9950_v42 = vld [vmem:[%s8517_s19 + $0x33c] sm:$0xff]   ;;  %v13587_v29 = vunpack.c.l.bf16 %v8569_v36  ;;  %v7855_v36 = vld [vmem:[%s12776_s1 + $0xa] sm:$0x3] }
 0x10e   : > { %13579 = vst [vmem:[#allocation209_spill] sm:$0xff] %v9932_v52  ;;  %v9941_v56 = vpack.c.bf16 %v1323_v39, %v1321_v26  ;;  %v9943_v51 = vpop.f32.mrf.mxu2  ;;  %7564 = vmatmul.msk.bf16.gmra.mxu1 %vm1523_vm2, %v1489_v41  ;;  %v13585_v26 = vunpack.c.l.bf16 %v8561_v31  ;;  %v13586_v39 = vunpack.c.h.bf16 %v8561_v31  ;;  %v1089_v14 = vrot.slane %v13588_v62, 1 }
 0x10f   : > { %13580 = vst [vmem:[#allocation210_spill] sm:$0xff] %v9934_v48  ;;  %v2582_v57 = vrot.slane %v13587_v29, 2  ;;  %v1090_v41 = vrot.slane %v13589_v44, 1  ;;  %v4783_v11 = vsel %vm1716_vm0, %v7855_v36, 0 }
 0x110   : > { %13581 = vst [vmem:[#allocation211_spill] sm:$0xff] %v9941_v56  ;;  %v2579_v2 = vrot.slane %v13585_v26, 2  ;;  %v2580_v52 = vrot.slane %v13586_v39, 2  ;;  %v7985_v26 = vld [vmem:[%s12776_s1 + $0xe] sm:$0x3]  ;;  %v13591_v39 = vunpack.c.l.bf16 %v9930_v37  ;;  %4792 = vmatpush.bf16.msra.mxu1 %v4783_v11 }
 0x111   : > { %13582 = vst [vmem:[#allocation212_spill] sm:$0xff] %v9943_v51  ;;  %7594 = vmatmul.msk.bf16.gmra.mxu3 %vm1523_vm2, %v9941_v56  ;;  %v5779_v44 = vsel %vm1716_vm0, %v7985_v26, 0  ;;  %v13594_v56 = vunpack.c.l.bf16 %v9950_v42  ;;  %v13595_v26 = vunpack.c.h.bf16 %v9950_v42  ;;  %v1091_v11 = vsel %vm1008_vm1, %v1089_v14, %v1090_v41 }
 0x112   : > { %13583 = vst [vmem:[#allocation213_spill] sm:$0xff] %v9950_v42  ;;  %v1092_v62 = vrot.slane %v13591_v39, 1  ;;  %v2581_v9 = vsel %vm2573_vm3, %v2579_v2, %v2580_v52  ;;  %v2583_v51 = vsel %vm2573_vm3, %v2580_v52, %v2582_v57  ;;  %5788 = vmatpush.bf16.msra.mxu3 %v5779_v44  ;;  %v9985_v48 = vpop.f32.mrf.mxu3  ;;  %v8050_v39 = vld [vmem:[%s12776_s1 + $0x10] sm:$0x3]  ;;  %v13597_v2 = vunpack.c.l.bf16 %v9954_v59 }
 0x113   : > { %13584 = vst [vmem:[#allocation214_spill] sm:$0xff] %v9954_v59  ;;  %v9987_v8 = vpop.f32.mrf.mxu1  ;;  %v1325_v36 = vrot.slane %v13595_v26, 1  ;;  %v6285_v52 = vsel %vm1716_vm0, %v8050_v39, 0 }
 0x114   : > { %v9976_v29 = vpop.f32.mrf.mxu0  ;;  %13592 = vst [vmem:[#allocation216_spill] sm:$0xff] %v9985_v48  ;;  %v1093_v57 = vsel %vm1008_vm1, %v1090_v41, %v1092_v62  ;;  %v1327_v44 = vrot.slane %v13597_v2, 1  ;;  %v10003_v48 = vpack.c.bf16 %v2583_v51, %v2581_v9  ;;  %6294 = vmatpush.bf16.msra.mxu0 %v6285_v52  ;;  %v8367_v51 = vld [vmem:[%s8517_s19] sm:$0xff]  }
 0x115   : > { %13590 = vst [vmem:[#allocation215_spill] sm:$0xff] %v9976_v29  ;;  %v1324_v29 = vrot.slane %v13594_v56, 1 }
 0x116   : > { %13593 = vst [vmem:[#allocation217_spill] sm:$0xff] %v9987_v8  ;;  %v9996_v0 = vpop.f32.mrf.mxu2  ;;  %v1473_v8 = vpack.c.bf16 %v1093_v57, %v1091_v11  ;;  %v1328_v42 = vsel %vm1008_vm1, %v1325_v36, %v1327_v44  ;;  %v13604_v11 = vunpack.c.l.bf16 %v8663_v40 }
 0x117   : > { %13596 = vst [vmem:[#allocation218_spill] sm:$0xff] %v9996_v0  ;;  %v1326_v26 = vsel %vm1008_vm1, %v1324_v29, %v1325_v36  ;;  %v13602_v29 = vunpack.c.l.bf16 %v8653_v34  ;;  %v13603_v36 = vunpack.c.h.bf16 %v8653_v34 }
 0x118   : > { %13598 = vst [vmem:[#allocation219_spill] sm:$0xff] %v10003_v48  ;;  %7662 = vmatmul.msk.bf16.gmra.mxu2 %vm1523_vm2, %v10003_v48  ;;  %v10016_v41 = vpack.c.bf16 %v1328_v42, %v1326_v26  ;;  %v2587_v57 = vrot.slane %v13604_v11, 2 }
 0x119   : > { %v2584_v62 = vrot.slane %v13602_v29, 2  ;;  %v2585_v52 = vrot.slane %v13603_v36, 2 }
 0x11a   : > { %v10011_v39 = vpop.f32.mrf.mxu3  ;;  %13600 = vst [vmem:[#allocation221_spill] sm:$0xff] %v10016_v41 }
 0x11b   : > { %13599 = vst [vmem:[#allocation220_spill] sm:$0xff] %v10011_v39  ;;  %v10013_v14 = vpop.f32.mrf.mxu1  ;;  %v2586_v42 = vsel %vm2573_vm3, %v2584_v62, %v2585_v52  ;;  %v2588_v2 = vsel %vm2573_vm3, %v2585_v52, %v2587_v57  ;;  %v13610_v52 = vunpack.c.l.bf16 %v8745_v21  ;;  %v13611_v57 = vunpack.c.h.bf16 %v8745_v21 }
 0x11c   : > { %v10005_v56 = vpop.f32.mrf.mxu0  ;;  %7548 = vmatmul.msk.bf16.gmra.mxu0 %vm1523_vm2, %v1473_v8  ;;  %v10040_v34 = vpack.c.bf16 %v2588_v2, %v2586_v42  ;;  %v13612_v2 = vunpack.c.l.bf16 %v8748_v20 }
 0x11d   : > { %v2589_v11 = vrot.slane %v13610_v52, 2  ;;  %v2590_v42 = vrot.slane %v13611_v57, 2 }
 0x11e   : > { %v10018_v9 = vpop.f32.mrf.mxu2  ;;  %7596 = vmatmul.msk.bf16.vlgmr.msrb.gmra.mxu1 %vm1523_vm2, %v8367_v51  ;;  %13607 = vst [vmem:[#allocation225_spill] sm:$0xff] %v10040_v34 }
 0x11f   : > { %13601 = vst [vmem:[#allocation222_spill] sm:$0xff] %v10018_v9 }
 0x121   : > { %7595 = vmatmul.msk.bf16.gmra.mxu3 %vm1523_vm2, %v10016_v41 }
 0x122   : > { %v10034_v44 = vpop.f32.mrf.mxu3 }
 0x123   : > { %13605 = vst [vmem:[#allocation223_spill] sm:$0xff] %v10034_v44  ;;  %v10036_v26 = vpop.f32.mrf.mxu1 }
 0x124   : > { %v10030_v8 = vpop.f32.mrf.mxu0 }
 0x126   : > { %v10038_v51 = vpop.f32.mrf.mxu2 }
 0x127   : > { %13606 = vst [vmem:[#allocation224_spill] sm:$0xff] %v10038_v51 }
 0x128   : > { %7663 = vmatmul.msk.bf16.gmra.mxu2 %vm1523_vm2, %v10040_v34  ;;  %v2592_v34 = vrot.slane %v13612_v2, 2 }
 0x12a   : > { %v10046_v40 = vpop.f32.mrf.mxu3 }
 0x12b   : > { %13608 = vst [vmem:[#allocation226_spill] sm:$0xff] %v10046_v40  ;;  %v10048_v36 = vpop.f32.mrf.mxu1  ;;  %v2593_v40 = vsel %vm2573_vm3, %v2590_v42, %v2592_v34 }
 0x12c   : > { %v10042_v29 = vpop.f32.mrf.mxu0  ;;  %7791 = vmatmul.msk.bf16.vlgmr.msrb.gmra.mxu0 %vm1523_vm2, %v8650_v33  ;;  %v2591_v33 = vsel %vm2573_vm3, %v2589_v11, %v2590_v42  ;;  %v8368_v11 = vld [vmem:[%s8517_s19 + $0x18] sm:$0xff]  }
 0x12d   : > { %v10074_v57 = vpack.c.bf16 %v2593_v40, %v2591_v33  ;;  %v13618_v40 = vunpack.c.l.bf16 %v8829_v15  ;;  %v13619_v33 = vunpack.c.h.bf16 %v8829_v15 }
 0x12e   : > { %v10052_v62 = vpop.f32.mrf.mxu2  ;;  %7597 = vmatmul.msk.bf16.gmra.mxu1 %vm1523_vm2, %v8561_v31 }
 0x12f   : > { %13609 = vst [vmem:[#allocation227_spill] sm:$0xff] %v10052_v62  ;;  %v2594_v42 = vrot.slane %v13618_v40, 2 }
 0x130   : > { %13615 = vst [vmem:[#allocation230_spill] sm:$0xff] %v10074_v57 }
 0x131   : > { %7726 = vmatmul.msk.bf16.vlgmr.msrb.gmra.mxu3 %vm1523_vm2, %v8561_v31 }
 0x132   : > { %v10068_v41 = vpop.f32.mrf.mxu3 }
 0x133   : > { %13613 = vst [vmem:[#allocation228_spill] sm:$0xff] %v10068_v41  ;;  %v10070_v44 = vpop.f32.mrf.mxu1  ;;  %v2595_v41 = vrot.slane %v13619_v33, 2 }
 0x134   : > { %v10064_v48 = vpop.f32.mrf.mxu0 }
 0x136   : > { %v10072_v52 = vpop.f32.mrf.mxu2 }
 0x137   : > { %13614 = vst [vmem:[#allocation229_spill] sm:$0xff] %v10072_v52 }
 0x138   : > { %7664 = vmatmul.msk.bf16.gmra.mxu2 %vm1523_vm2, %v10074_v57  ;;  %v13620_v57 = vunpack.c.l.bf16 %v8832_v4 }
 0x13a   : > { %v10080_v31 = vpop.f32.mrf.mxu3  ;;  %v2597_v39 = vrot.slane %v13620_v57, 2 }
 0x13b   : > { %13616 = vst [vmem:[#allocation231_spill] sm:$0xff] %v10080_v31  ;;  %v10082_v2 = vpop.f32.mrf.mxu1 }
 0x13c   : > { %v10076_v20 = vpop.f32.mrf.mxu0  ;;  %7792 = vmatmul.msk.bf16.gmra.mxu0 %vm1523_vm2, %v8738_v45  ;;  %v2596_v45 = vsel %vm2573_vm3, %v2594_v42, %v2595_v41  ;;  %v2598_v59 = vsel %vm2573_vm3, %v2595_v41, %v2597_v39  ;;  %v13627_v41 = vunpack.c.h.bf16 %v8913_v13  ;;  %v13628_v42 = vunpack.c.l.bf16 %v8916_v61 }
 0x13d   : > { %v10107_v40 = vpack.c.bf16 %v2598_v59, %v2596_v45  ;;  %v13626_v45 = vunpack.c.l.bf16 %v8913_v13 }
 0x13e   : > { %v10086_v34 = vpop.f32.mrf.mxu2  ;;  %7598 = vmatmul.msk.bf16.gmra.mxu1 %vm1523_vm2, %v8368_v11  ;;  %v2602_v33 = vrot.slane %v13628_v42, 2 }
 0x13f   : > { %13617 = vst [vmem:[#allocation232_spill] sm:$0xff] %v10086_v34  ;;  %v2599_v59 = vrot.slane %v13626_v45, 2 }
 0x140   : > { %13623 = vst [vmem:[#allocation235_spill] sm:$0xff] %v10107_v40 }
 0x141   : > { %7727 = vmatmul.msk.bf16.gmra.mxu3 %vm1523_vm2, %v8368_v11  ;;  %v2600_v11 = vrot.slane %v13627_v41, 2 }
 0x142   : > { %v10101_v34 = vpop.f32.mrf.mxu3 }
 0x143   : > { %13621 = vst [vmem:[#allocation233_spill] sm:$0xff] %v10101_v34  ;;  %v10103_v52 = vpop.f32.mrf.mxu1 }
 0x144   : > { %v10097_v31 = vpop.f32.mrf.mxu0 }
 0x146   : > { %v10105_v62 = vpop.f32.mrf.mxu2 }
 0x147   : > { %13622 = vst [vmem:[#allocation234_spill] sm:$0xff] %v10105_v62 }
 0x148   : > { %7665 = vmatmul.msk.bf16.gmra.mxu2 %vm1523_vm2, %v10107_v40 }
 0x14a   : > { %v10113_v4 = vpop.f32.mrf.mxu3 }
 0x14b   : > { %13624 = vst [vmem:[#allocation236_spill] sm:$0xff] %v10113_v4  ;;  %v10115_v57 = vpop.f32.mrf.mxu1  ;;  %v2603_v4 = vsel %vm2573_vm3, %v2600_v11, %v2602_v33  ;;  %v13635_v33 = vunpack.c.h.bf16 %v8997_v16 }
 0x14c   : > { %v10109_v15 = vpop.f32.mrf.mxu0  ;;  %7793 = vmatmul.msk.bf16.gmra.mxu0 %vm1523_vm2, %v8822_v1  ;;  %v2601_v1 = vsel %vm2573_vm3, %v2599_v59, %v2600_v11  ;;  %v8369_v11 = vld [vmem:[%s8517_s19 + $0x30] sm:$0xff]  }
 0x14d   : > { %v10141_v41 = vpack.c.bf16 %v2603_v4, %v2601_v1  ;;  %v13634_v1 = vunpack.c.l.bf16 %v8997_v16 }
 0x14e   : > { %v10119_v39 = vpop.f32.mrf.mxu2  ;;  %7599 = vmatmul.msk.bf16.gmra.mxu1 %vm1523_vm2, %v8745_v21 }
 0x14f   : > { %13625 = vst [vmem:[#allocation237_spill] sm:$0xff] %v10119_v39  ;;  %v2604_v4 = vrot.slane %v13634_v1, 2 }
 0x150   : > { %13631 = vst [vmem:[#allocation240_spill] sm:$0xff] %v10141_v41 }
 0x151   : > { %7728 = vmatmul.msk.bf16.gmra.mxu3 %vm1523_vm2, %v8745_v21 }
 0x152   : > { %v10135_v34 = vpop.f32.mrf.mxu3 }
 0x153   : > { %13629 = vst [vmem:[#allocation238_spill] sm:$0xff] %v10135_v34  ;;  %v10137_v39 = vpop.f32.mrf.mxu1  ;;  %v2605_v34 = vrot.slane %v13635_v33, 2 }
 0x154   : > { %v10131_v40 = vpop.f32.mrf.mxu0 }
 0x156   : > { %v10139_v45 = vpop.f32.mrf.mxu2 }
 0x157   : > { %13630 = vst [vmem:[#allocation239_spill] sm:$0xff] %v10139_v45 }
 0x158   : > { %7666 = vmatmul.msk.bf16.gmra.mxu2 %vm1523_vm2, %v10141_v41  ;;  %v13636_v41 = vunpack.c.l.bf16 %v9000_v22 }
 0x15a   : > { %v10147_v42 = vpop.f32.mrf.mxu3  ;;  %v2607_v45 = vrot.slane %v13636_v41, 2 }
 0x15b   : > { %13632 = vst [vmem:[#allocation241_spill] sm:$0xff] %v10147_v42  ;;  %v10149_v21 = vpop.f32.mrf.mxu1 }
 0x15c   : > { %v10143_v61 = vpop.f32.mrf.mxu0  ;;  %7794 = vmatmul.msk.bf16.gmra.mxu0 %vm1523_vm2, %v8906_v25  ;;  %v2606_v25 = vsel %vm2573_vm3, %v2604_v4, %v2605_v34  ;;  %v13644_v4 = vunpack.c.l.bf16 %v9084_v63 }
 0x15e   : > { %v10153_v59 = vpop.f32.mrf.mxu2  ;;  %7600 = vmatmul.msk.bf16.gmra.mxu1 %vm1523_vm2, %v8369_v11  ;;  %v2612_v33 = vrot.slane %v13644_v4, 2 }
 0x15f   : > { %13633 = vst [vmem:[#allocation242_spill] sm:$0xff] %v10153_v59  ;;  %v2608_v59 = vsel %vm2573_vm3, %v2605_v34, %v2607_v45 }
 0x160   : > { %v10174_v1 = vpack.c.bf16 %v2608_v59, %v2606_v25  ;;  %v13642_v25 = vunpack.c.l.bf16 %v9081_v50  ;;  %v13643_v59 = vunpack.c.h.bf16 %v9081_v50 }
 0x161   : > { %7729 = vmatmul.msk.bf16.gmra.mxu3 %vm1523_vm2, %v8369_v11 }
 0x162   : > { %v10168_v62 = vpop.f32.mrf.mxu3  ;;  %13639 = vst [vmem:[#allocation245_spill] sm:$0xff] %v10174_v1  ;;  %v2609_v45 = vrot.slane %v13642_v25, 2  ;;  %v2610_v11 = vrot.slane %v13643_v59, 2 }
 0x163   : > { %13637 = vst [vmem:[#allocation243_spill] sm:$0xff] %v10168_v62  ;;  %v10170_v51 = vpop.f32.mrf.mxu1 }
 0x164   : > { %v10164_v42 = vpop.f32.mrf.mxu0 }
 0x166   : > { %v10172_v9 = vpop.f32.mrf.mxu2 }
 0x167   : > { %13638 = vst [vmem:[#allocation244_spill] sm:$0xff] %v10172_v9 }
 0x168   : > { %7667 = vmatmul.msk.bf16.gmra.mxu2 %vm1523_vm2, %v10174_v1 }
 0x16a   : > { %v10180_v22 = vpop.f32.mrf.mxu3 }
 0x16b   : > { %13640 = vst [vmem:[#allocation246_spill] sm:$0xff] %v10180_v22  ;;  %v10182_v41 = vpop.f32.mrf.mxu1  ;;  %v2613_v22 = vsel %vm2573_vm3, %v2610_v11, %v2612_v33  ;;  %v13653_v33 = vunpack.c.h.bf16 %v9165_v27 }
 0x16c   : > { %v10176_v16 = vpop.f32.mrf.mxu0  ;;  %7795 = vmatmul.msk.bf16.gmra.mxu0 %vm1523_vm2, %v8990_v19  ;;  %v2611_v19 = vsel %vm2573_vm3, %v2609_v45, %v2610_v11  ;;  %v8370_v11 = vld [vmem:[%s8517_s19 + $0x48] sm:$0xff]  }
 0x16d   : > { %v10208_v59 = vpack.c.bf16 %v2613_v22, %v2611_v19  ;;  %v13652_v19 = vunpack.c.l.bf16 %v9165_v27 }
 0x16e   : > { %v10186_v34 = vpop.f32.mrf.mxu2  ;;  %7601 = vmatmul.msk.bf16.gmra.mxu1 %vm1523_vm2, %v8913_v13 }
 0x16f   : > { %13641 = vst [vmem:[#allocation247_spill] sm:$0xff] %v10186_v34  ;;  %v2614_v22 = vrot.slane %v13652_v19, 2 }
 0x170   : > { %13648 = vst [vmem:[#allocation251_spill] sm:$0xff] %v10208_v59 }
 0x171   : > { %7730 = vmatmul.msk.bf16.gmra.mxu3 %vm1523_vm2, %v8913_v13 }
 0x172   : > { %v10202_v62 = vpop.f32.mrf.mxu3 }
 0x173   : > { %13645 = vst [vmem:[#allocation248_spill] sm:$0xff] %v10202_v62  ;;  %v10204_v34 = vpop.f32.mrf.mxu1  ;;  %v2615_v62 = vrot.slane %v13653_v33, 2 }
 0x174   : > { %v10198_v1 = vpop.f32.mrf.mxu0  ;;  %13646 = vst [vmem:[#allocation249_spill] sm:$0xff] %v10204_v34 }
 0x176   : > { %v10206_v25 = vpop.f32.mrf.mxu2 }
 0x177   : > { %13647 = vst [vmem:[#allocation250_spill] sm:$0xff] %v10206_v25 }
 0x178   : > { %7668 = vmatmul.msk.bf16.gmra.mxu2 %vm1523_vm2, %v10208_v59  ;;  %v13654_v59 = vunpack.c.l.bf16 %v9170_v18 }
 0x17a   : > { %v10214_v4 = vpop.f32.mrf.mxu3  ;;  %v2617_v25 = vrot.slane %v13654_v59, 2 }
 0x17b   : > { %13649 = vst [vmem:[#allocation252_spill] sm:$0xff] %v10214_v4  ;;  %v10216_v13 = vpop.f32.mrf.mxu1 }
 0x17c   : > { %v10210_v63 = vpop.f32.mrf.mxu0  ;;  %13650 = vst [vmem:[#allocation253_spill] sm:$0xff] %v10216_v13  ;;  %7796 = vmatmul.msk.bf16.gmra.mxu0 %vm1523_vm2, %v9074_v46  ;;  %v2616_v46 = vsel %vm2573_vm3, %v2614_v22, %v2615_v62  ;;  %v13663_v22 = vunpack.c.l.bf16 %v9256_v53 }
 0x17e   : > { %v10220_v45 = vpop.f32.mrf.mxu2  ;;  %7602 = vmatmul.msk.bf16.gmra.mxu1 %vm1523_vm2, %v8370_v11  ;;  %v2622_v33 = vrot.slane %v13663_v22, 2 }
 0x17f   : > { %13651 = vst [vmem:[#allocation254_spill] sm:$0xff] %v10220_v45  ;;  %v2618_v45 = vsel %vm2573_vm3, %v2615_v62, %v2617_v25  ;;  %v13661_v25 = vunpack.c.l.bf16 %v9251_v28 }
 0x180   : > { %v10241_v19 = vpack.c.bf16 %v2618_v45, %v2616_v46  ;;  %v13662_v45 = vunpack.c.h.bf16 %v9251_v28 }
 0x181   : > { %7731 = vmatmul.msk.bf16.gmra.mxu3 %vm1523_vm2, %v8370_v11  ;;  %v2619_v46 = vrot.slane %v13661_v25, 2 }
 0x182   : > { %13658 = vst [vmem:[#allocation258_spill] sm:$0xff] %v10241_v19  ;;  %v2620_v11 = vrot.slane %v13662_v45, 2 }
 0x183   : > { %v10237_v0 = vpop.f32.mrf.mxu1 }
 0x184   : > { %v10231_v4 = vpop.f32.mrf.mxu0  ;;  %v10235_v9 = vpop.f32.mrf.mxu3  ;;  %13656 = vst [vmem:[#allocation256_spill] sm:$0xff] %v10237_v0 }
 0x185   : > { %13655 = vst [vmem:[#allocation255_spill] sm:$0xff] %v10235_v9 }
 0x186   : > { %v10239_v13 = vpop.f32.mrf.mxu2 }
 0x187   : > { %13657 = vst [vmem:[#allocation257_spill] sm:$0xff] %v10239_v13 }
 0x188   : > { %7669 = vmatmul.msk.bf16.gmra.mxu2 %vm1523_vm2, %v10241_v19 }
 0x18b   : > { %v10249_v59 = vpop.f32.mrf.mxu1 }
 0x18c   : > { %v10243_v27 = vpop.f32.mrf.mxu0  ;;  %v10247_v18 = vpop.f32.mrf.mxu3  ;;  %13660 = vst [vmem:[#allocation260_spill] sm:$0xff] %v10249_v59  ;;  %7797 = vmatmul.msk.bf16.gmra.mxu0 %vm1523_vm2, %v9158_v32  ;;  %v2621_v32 = vsel %vm2573_vm3, %v2619_v46, %v2620_v11 }
 0x18d   : > { %13659 = vst [vmem:[#allocation259_spill] sm:$0xff] %v10247_v18  ;;  %v2623_v18 = vsel %vm2573_vm3, %v2620_v11, %v2622_v33  ;;  %v8371_v33 = vld [vmem:[%s8517_s19 + $0x60] sm:$0xff]  }
 0x18e   : > { %v3292_v62 = vpop.f32.mrf.mxu2  ;;  %7603 = vmatmul.msk.bf16.gmra.mxu1 %vm1523_vm2, %v9081_v50  ;;  %v10271_v59 = vpack.c.bf16 %v2623_v18, %v2621_v32  ;;  %v13668_v32 = vunpack.c.l.bf16 %v9345_v60 }
 0x190   : > { %13666 = vst [vmem:[#allocation263_spill] sm:$0xff] %v10271_v59  ;;  %v2624_v18 = vrot.slane %v13668_v32, 2 }
 0x191   : > { %7732 = vmatmul.msk.bf16.gmra.mxu3 %vm1523_vm2, %v9081_v50 }
 0x193   : > { %v10269_v13 = vpop.f32.mrf.mxu1 }
 0x194   : > { %v10263_v19 = vpop.f32.mrf.mxu0  ;;  %v10267_v9 = vpop.f32.mrf.mxu3  ;;  %13665 = vst [vmem:[#allocation262_spill] sm:$0xff] %v10269_v13 }
 0x195   : > { %13664 = vst [vmem:[#allocation261_spill] sm:$0xff] %v10267_v9  ;;  %v13669_v9 = vunpack.c.h.bf16 %v9345_v60 }
 0x196   : > { %v3294_v25 = vpop.f32.mrf.mxu2 }
 0x197   : > { %v2625_v13 = vrot.slane %v13669_v9, 2 }
 0x198   : > { %7670 = vmatmul.msk.bf16.gmra.mxu2 %vm1523_vm2, %v10271_v59  ;;  %v13670_v59 = vunpack.c.l.bf16 %v9350_v35 }
 0x19b   : > { %v2253_v22 = vpop.f32.mrf.mxu1 }
 0x19c   : > { %v10273_v45 = vpop.f32.mrf.mxu0  ;;  %v10277_v53 = vpop.f32.mrf.mxu3  ;;  %v2254_v50 = vadd.f32 %v2253_v22, %v9244_v54  ;;  %7798 = vmatmul.msk.bf16.gmra.mxu0 %vm1523_vm2, %v9242_v49  ;;  %v2626_v22 = vsel %vm2573_vm3, %v2624_v18, %v2625_v13  ;;  %v13676_v18 = vunpack.c.l.bf16 %v9450_v58 }
 0x19d   : > { %13667 = vst [vmem:[#allocation264_spill] sm:$0xff] %v10277_v53  ;;  %v2627_v53 = vrot.slane %v13670_v59, 2 }
 0x19e   : > { %v3297_v46 = vpop.f32.mrf.mxu2  ;;  %v3612_v11 = vadd.f32 %v3292_v62, %v2254_v50  ;;  %7604 = vmatmul.msk.bf16.gmra.mxu1 %vm1523_vm2, %v8371_v33 }
 0x19f   : > { %v2628_v50 = vsel %vm2573_vm3, %v2625_v13, %v2627_v53 }
 0x1a0   : > { %v10298_v34 = vpack.c.bf16 %v2628_v50, %v2626_v22  ;;  %v2632_v22 = vrot.slane %v13676_v18, 2 }
 0x1a1   : > { %7733 = vmatmul.msk.bf16.gmra.mxu3 %vm1523_vm2, %v8371_v33 }
 0x1a2   : > { %13672 = vst [vmem:[#allocation266_spill] sm:$0xff] %v10298_v34 }
 0x1a3   : > { %v2255_v49 = vpop.f32.mrf.mxu1 }
 0x1a4   : > { %v10291_v54 = vpop.f32.mrf.mxu0  ;;  %v10295_v62 = vpop.f32.mrf.mxu3  ;;  %v2256_v0 = vadd.f32 %v2255_v49, %v9300_v7  ;;  %v13674_v7 = vunpack.c.l.bf16 %v9445_v30 }
 0x1a5   : > { %13671 = vst [vmem:[#allocation265_spill] sm:$0xff] %v10295_v62 }
 0x1a6   : > { %v3299_v32 = vpop.f32.mrf.mxu2  ;;  %v3613_v60 = vadd.f32 %v3294_v25, %v2256_v0  ;;  %v2629_v49 = vrot.slane %v13674_v7, 2  ;;  %v13675_v0 = vunpack.c.h.bf16 %v9445_v30 }
 0x1a8   : > { %7671 = vmatmul.msk.bf16.gmra.mxu2 %vm1523_vm2, %v10298_v34  ;;  %v2630_v25 = vrot.slane %v13675_v0, 2 }
 0x1aa   : > { %v2631_v50 = vsel %vm2573_vm3, %v2629_v49, %v2630_v25 }
 0x1ab   : > { %v2258_v59 = vpop.f32.mrf.mxu1 }
 0x1ac   : > { %v4288_v9 = vpop.f32.mrf.mxu0  ;;  %v10302_v35 = vpop.f32.mrf.mxu3  ;;  %v2259_v33 = vadd.f32 %v2258_v59, %v9338_v17  ;;  %7799 = vmatmul.msk.bf16.gmra.mxu0 %vm1523_vm2, %v9336_v12 }
 0x1ad   : > { %13673 = vst [vmem:[#allocation267_spill] sm:$0xff] %v10302_v35 }
 0x1ae   : > { %v3302_v13 = vpop.f32.mrf.mxu2  ;;  %v3614_v53 = vadd.f32 %v3297_v46, %v2259_v33  ;;  %7605 = vmatmul.msk.bf16.gmra.mxu1 %vm1523_vm2, %v9251_v28  ;;  %v2633_v46 = vsel %vm2573_vm3, %v2630_v25, %v2632_v22 }
 0x1af   : > { %v10320_v35 = vpack.c.bf16 %v2633_v46, %v2631_v50  ;;  %v13681_v46 = vld [vmem:[#allocation139_spill] sm:$0xff] }
 0x1b1   : > { %7734 = vmatmul.msk.bf16.gmra.mxu3 %vm1523_vm2, %v9251_v28  ;;  %13677 = vst [vmem:[#allocation268_spill] sm:$0xff] %v10320_v35 }
 0x1b3   : > { %v2260_v33 = vpop.f32.mrf.mxu1 }
 0x1b4   : > { %v4290_v17 = vpop.f32.mrf.mxu0  ;;  %v3770_v59 = vpop.f32.mrf.mxu3  ;;  %v2261_v7 = vadd.f32 %v2260_v33, %v9398_v47  ;;  %v13679_v47 = vunpack.c.l.bf16 %v9545_v5 }
 0x1b5   : > { %v4090_v34 = vadd.f32 %v3770_v59, %v3612_v11  ;;  %v13682_v59 = vunpack.c.l.bf16 %v13681_v46 }
 0x1b6   : > { %v3304_v12 = vpop.f32.mrf.mxu2  ;;  %v3615_v0 = vadd.f32 %v3299_v32, %v2261_v7  ;;  %v2634_v22 = vrot.slane %v13679_v47, 2  ;;  %v8372_v32 = vld [vmem:[%s8517_s19 + $0x78] sm:$0xff]  }
 0x1b7   : > { %v10322_v58 = vadd.f32 %v4288_v9, %v4090_v34  ;;  %v13680_v34 = vunpack.c.h.bf16 %v9545_v5  ;;  %v2637_v33 = vrot.slane %v13682_v59, 2  ;;  %v13684_v47 = vld [vmem:[#allocation129_spill] sm:$0xff] }
 0x1b8   : > { %7672 = vmatmul.msk.bf16.gmra.mxu2 %vm1523_vm2, %v10320_v35  ;;  %v13687_v59 = vld [vmem:[#allocation137_spill] sm:$0xff] }
 0x1b9   : > { %13678 = vst [vmem:[#allocation269_spill] sm:$0xff] %v10322_v58  ;;  %v2635_v9 = vrot.slane %v13680_v34, 2 }
 0x1bb   : > { %v2263_v49 = vpop.f32.mrf.mxu1  ;;  %v2638_v7 = vsel %vm2573_vm3, %v2635_v9, %v2637_v33  ;;  %v13688_v33 = vld [vmem:[#allocation136_spill] sm:$0xff] }
 0x1bc   : > { %v4293_v18 = vpop.f32.mrf.mxu0  ;;  %v3772_v62 = vpop.f32.mrf.mxu3  ;;  %v2264_v25 = vadd.f32 %v2263_v49, %v9438_v6  ;;  %7800 = vmatmul.msk.bf16.gmra.mxu0 %vm1523_vm2, %v9436_v23 }
 0x1bd   : > { %v4091_v28 = vadd.f32 %v3772_v62, %v3613_v60  ;;  %v2636_v60 = vsel %vm2573_vm3, %v2634_v22, %v2635_v9 }
 0x1be   : > { %v3307_v11 = vpop.f32.mrf.mxu2  ;;  %v3616_v50 = vadd.f32 %v3302_v13, %v2264_v25  ;;  %7606 = vmatmul.msk.bf16.gmra.mxu1 %vm1523_vm2, %v8372_v32  ;;  %v10343_v5 = vpack.c.bf16 %v2638_v7, %v2636_v60 }
 0x1bf   : > { %v10337_v62 = vadd.f32 %v4290_v17, %v4091_v28 }
 0x1c0   : > { %13685 = vst [vmem:[#allocation129_spill] sm:$0xff] %v10343_v5 }
 0x1c1   : > { %13683 = vst [vmem:[#allocation139_spill] sm:$0xff] %v10337_v62  ;;  %7735 = vmatmul.msk.bf16.gmra.mxu3 %vm1523_vm2, %v8372_v32  ;;  %v13699_v62 = vld [vmem:[#allocation155_spill] sm:$0xff] }
 0x1c3   : > { %v2265_v13 = vpop.f32.mrf.mxu1 }
 0x1c4   : > { %v4295_v6 = vpop.f32.mrf.mxu0  ;;  %v3775_v49 = vpop.f32.mrf.mxu3  ;;  %v2266_v35 = vadd.f32 %v2265_v13, %v13684_v47 }
 0x1c5   : > { %v4092_v25 = vadd.f32 %v3775_v49, %v3614_v53  ;;  %v13689_v49 = vld [vmem:[#allocation157_spill] sm:$0xff] }
 0x1c6   : > { %v3309_v23 = vpop.f32.mrf.mxu2  ;;  %v3617_v34 = vadd.f32 %v3304_v12, %v2266_v35  ;;  %v13690_v13 = vunpack.c.l.bf16 %v13689_v49  ;;  %v13691_v12 = vunpack.c.h.bf16 %v13689_v49 }
 0x1c7   : > { %v10345_v46 = vadd.f32 %v4293_v18, %v4092_v25  ;;  %v13692_v18 = vld [vmem:[#allocation159_spill] sm:$0xff] }
 0x1c8   : > { %7673 = vmatmul.msk.bf16.gmra.mxu2 %vm1523_vm2, %v10343_v5  ;;  %v2639_v60 = vrot.slane %v13690_v13, 2  ;;  %v2640_v35 = vrot.slane %v13691_v12, 2  ;;  %v13693_v25 = vunpack.c.l.bf16 %v13692_v18  ;;  %v13695_v5 = vld [vmem:[#allocation148_spill] sm:$0xff] }
 0x1c9   : > { %13686 = vst [vmem:[#allocation270_spill] sm:$0xff] %v10345_v46 }
 0x1ca   : > { %v2642_v47 = vrot.slane %v13693_v25, 2 }
 0x1cb   : > { %v2268_v32 = vpop.f32.mrf.mxu1 }
 0x1cc   : > { %v4298_v28 = vpop.f32.mrf.mxu0  ;;  %v3777_v17 = vpop.f32.mrf.mxu3  ;;  %v2269_v9 = vadd.f32 %v2268_v32, %v13687_v59  ;;  %7801 = vmatmul.msk.bf16.gmra.mxu0 %vm1523_vm2, %v13688_v33  ;;  %v2641_v32 = vsel %vm2573_vm3, %v2639_v60, %v2640_v35  ;;  %v2643_v59 = vsel %vm2573_vm3, %v2640_v35, %v2642_v47  ;;  %v13698_v35 = vld [vmem:[#allocation156_spill] sm:$0xff] }
 0x1cd   : > { %v4093_v22 = vadd.f32 %v3777_v17, %v3615_v0  ;;  %v10367_v46 = vpack.c.bf16 %v2643_v59, %v2641_v32 }
 0x1ce   : > { %v3312_v53 = vpop.f32.mrf.mxu2  ;;  %v3618_v7 = vadd.f32 %v3307_v11, %v2269_v9  ;;  %7607 = vmatmul.msk.bf16.gmra.mxu1 %vm1523_vm2, %v9445_v30 }
 0x1cf   : > { %v10360_v0 = vadd.f32 %v4295_v6, %v4093_v22  ;;  %13696 = vst [vmem:[#allocation157_spill] sm:$0xff] %v10367_v46 }
 0x1d1   : > { %13694 = vst [vmem:[#allocation137_spill] sm:$0xff] %v10360_v0  ;;  %7736 = vmatmul.msk.bf16.gmra.mxu3 %vm1523_vm2, %v9445_v30 }
 0x1d3   : > { %v2270_v9 = vpop.f32.mrf.mxu1 }
 0x1d4   : > { %v4300_v17 = vpop.f32.mrf.mxu0  ;;  %v3780_v11 = vpop.f32.mrf.mxu3  ;;  %v2271_v33 = vadd.f32 %v2270_v9, %v13695_v5  ;;  %v13700_v5 = vld [vmem:[#allocation177_spill] sm:$0xff]  ;;  %v13703_v9 = vld [vmem:[#allocation179_spill] sm:$0xff] }
 0x1d5   : > { %v4094_v13 = vadd.f32 %v3780_v11, %v3616_v50  ;;  %v13701_v11 = vunpack.c.l.bf16 %v13700_v5 }
 0x1d6   : > { %v3314_v12 = vpop.f32.mrf.mxu2  ;;  %v3619_v18 = vadd.f32 %v3309_v23, %v2271_v33  ;;  %v8373_v23 = vld [vmem:[%s8517_s19 + $0x90] sm:$0xff]  }
 0x1d7   : > { %v10369_v6 = vadd.f32 %v4298_v28, %v4094_v13  ;;  %v2644_v32 = vrot.slane %v13701_v11, 2  ;;  %v13702_v28 = vunpack.c.h.bf16 %v13700_v5  ;;  %v13704_v13 = vunpack.c.l.bf16 %v13703_v9 }
 0x1d8   : > { %7674 = vmatmul.msk.bf16.gmra.mxu2 %vm1523_vm2, %v10367_v46 }
 0x1d9   : > { %13697 = vst [vmem:[#allocation159_spill] sm:$0xff] %v10369_v6  ;;  %v2645_v33 = vrot.slane %v13702_v28, 2  ;;  %v2647_v46 = vrot.slane %v13704_v13, 2  ;;  %v13707_v13 = vld [vmem:[#allocation176_spill] sm:$0xff] }
 0x1db   : > { %v2273_v60 = vpop.f32.mrf.mxu1 }
 0x1dc   : > { %v4303_v22 = vpop.f32.mrf.mxu0  ;;  %v3782_v25 = vpop.f32.mrf.mxu3  ;;  %v2274_v47 = vadd.f32 %v2273_v60, %v13698_v35  ;;  %7802 = vmatmul.msk.bf16.gmra.mxu0 %vm1523_vm2, %v13699_v62  ;;  %v2646_v60 = vsel %vm2573_vm3, %v2644_v32, %v2645_v33  ;;  %v2648_v35 = vsel %vm2573_vm3, %v2645_v33, %v2647_v46  ;;  %v13705_v62 = vld [vmem:[#allocation168_spill] sm:$0xff]  ;;  %v13708_v33 = vld [vmem:[#allocation175_spill] sm:$0xff] }
 0x1dd   : > { %v4095_v0 = vadd.f32 %v3782_v25, %v3617_v34  ;;  %v10390_v30 = vpack.c.bf16 %v2648_v35, %v2646_v60 }
 0x1de   : > { %v3317_v50 = vpop.f32.mrf.mxu2  ;;  %v3620_v59 = vadd.f32 %v3312_v53, %v2274_v47  ;;  %7608 = vmatmul.msk.bf16.gmra.mxu1 %vm1523_vm2, %v8373_v23 }
 0x1df   : > { %v10384_v34 = vadd.f32 %v4300_v17, %v4095_v0  ;;  %13706 = vst [vmem:[#allocation148_spill] sm:$0xff] %v10390_v30 }
 0x1e1   : > { %7737 = vmatmul.msk.bf16.gmra.mxu3 %vm1523_vm2, %v8373_v23 }
 0x1e3   : > { %v2275_v53 = vpop.f32.mrf.mxu1 }
 0x1e4   : > { %v4305_v25 = vpop.f32.mrf.mxu0  ;;  %v3785_v11 = vpop.f32.mrf.mxu3  ;;  %v2276_v6 = vadd.f32 %v2275_v53, %v13705_v62  ;;  %v13709_v62 = vunpack.c.l.bf16 %v9845_v3 }
 0x1e5   : > { %v4096_v47 = vadd.f32 %v3785_v11, %v3618_v7 }
 0x1e6   : > { %v3319_v58 = vpop.f32.mrf.mxu2  ;;  %v3621_v28 = vadd.f32 %v3314_v12, %v2276_v6  ;;  %v2649_v60 = vrot.slane %v13709_v62, 2  ;;  %v13710_v12 = vunpack.c.h.bf16 %v9845_v3 }
 0x1e7   : > { %v10392_v9 = vadd.f32 %v4303_v22, %v4096_v47  ;;  %v13711_v22 = vunpack.c.l.bf16 %v9852_v24 }
 0x1e8   : > { %7675 = vmatmul.msk.bf16.gmra.mxu2 %vm1523_vm2, %v10390_v30  ;;  %v2650_v6 = vrot.slane %v13710_v12, 2 }
 0x1e9   : > { %v2652_v11 = vrot.slane %v13711_v22, 2 }
 0x1ea   : > { %v2651_v47 = vsel %vm2573_vm3, %v2649_v60, %v2650_v6 }
 0x1eb   : > { %v2278_v23 = vpop.f32.mrf.mxu1 }
 0x1ec   : > { %v4308_v0 = vpop.f32.mrf.mxu0  ;;  %v3787_v17 = vpop.f32.mrf.mxu3  ;;  %v2279_v46 = vadd.f32 %v2278_v23, %v13707_v13  ;;  %7803 = vmatmul.msk.bf16.gmra.mxu0 %vm1523_vm2, %v13708_v33 }
 0x1ed   : > { %v4097_v32 = vadd.f32 %v3787_v17, %v3619_v18  ;;  %v2653_v17 = vsel %vm2573_vm3, %v2650_v6, %v2652_v11  ;;  %v13715_v11 = vunpack.c.l.bf16 %v9927_v38 }
 0x1ee   : > { %v3322_v7 = vpop.f32.mrf.mxu2  ;;  %v3622_v35 = vadd.f32 %v3317_v50, %v2279_v46  ;;  %7609 = vmatmul.msk.bf16.gmra.mxu1 %vm1523_vm2, %v13689_v49  ;;  %v13712_v46 = vld [vmem:[#allocation188_spill] sm:$0xff]  ;;  %v10414_v12 = vpack.c.bf16 %v2653_v17, %v2651_v47 }
 0x1ef   : > { %v10407_v18 = vadd.f32 %v4305_v25, %v4097_v32  ;;  %v2654_v47 = vrot.slane %v13715_v11, 2 }
 0x1f0   : > { %13713 = vst [vmem:[#allocation156_spill] sm:$0xff] %v10414_v12 }
 0x1f1   : > { %7738 = vmatmul.msk.bf16.gmra.mxu3 %vm1523_vm2, %v13689_v49 }
 0x1f3   : > { %v2280_v23 = vpop.f32.mrf.mxu1 }
 0x1f4   : > { %v4310_v53 = vpop.f32.mrf.mxu0  ;;  %v3790_v50 = vpop.f32.mrf.mxu3  ;;  %v2281_v62 = vadd.f32 %v2280_v23, %v13712_v46 }
 0x1f5   : > { %v4098_v13 = vadd.f32 %v3790_v50, %v3620_v59  ;;  %v13717_v50 = vunpack.c.l.bf16 %v9930_v37 }
 0x1f6   : > { %v3324_v30 = vpop.f32.mrf.mxu2  ;;  %v3623_v24 = vadd.f32 %v3319_v58, %v2281_v62  ;;  %v13716_v58 = vunpack.c.h.bf16 %v9927_v38 }
 0x1f7   : > { %v10416_v22 = vadd.f32 %v4308_v0, %v4098_v13  ;;  %v2657_v23 = vrot.slane %v13717_v50, 2 }
 0x1f8   : > { %7676 = vmatmul.msk.bf16.gmra.mxu2 %vm1523_vm2, %v10414_v12  ;;  %v2655_v0 = vrot.slane %v13716_v58, 2 }
 0x1f9   : > { %13714 = vst [vmem:[#allocation177_spill] sm:$0xff] %v10416_v22 }
 0x1fb   : > { %v2283_v33 = vpop.f32.mrf.mxu1 }
 0x1fc   : > { %v4313_v25 = vpop.f32.mrf.mxu0  ;;  %v3792_v32 = vpop.f32.mrf.mxu3  ;;  %v2284_v6 = vadd.f32 %v2283_v33, %v9838_v10  ;;  %7804 = vmatmul.msk.bf16.gmra.mxu0 %vm1523_vm2, %v9836_v43  ;;  %v2656_v33 = vsel %vm2573_vm3, %v2654_v47, %v2655_v0 }
 0x1fd   : > { %v4099_v60 = vadd.f32 %v3792_v32, %v3621_v28 }
 0x1fe   : > { %v3327_v59 = vpop.f32.mrf.mxu2  ;;  %v3624_v17 = vadd.f32 %v3322_v7, %v2284_v6  ;;  %7610 = vmatmul.msk.bf16.gmra.mxu1 %vm1523_vm2, %v13700_v5  ;;  %v2658_v7 = vsel %vm2573_vm3, %v2655_v0, %v2657_v23  ;;  %v13720_v23 = vld [vmem:[#allocation208_spill] sm:$0xff] }
 0x1ff   : > { %v10431_v28 = vadd.f32 %v4310_v53, %v4099_v60  ;;  %v3038_v37 = vpack.c.bf16 %v2658_v7, %v2656_v33  ;;  %v10442_v60 = vld [vmem:[%s8517_s19 + $0xc0] sm:$0xff]  }
 0x200   : > { %v13722_v7 = vld [vmem:[#allocation2_spill] sm:$0xff] }
 0x201   : > { %13718 = vst [vmem:[#allocation179_spill] sm:$0xff] %v10431_v28  ;;  %7739 = vmatmul.msk.bf16.gmra.mxu3 %vm1523_vm2, %v13700_v5  ;;  %v10445_v5 = vld [vmem:[%s8517_s19 + $0xc8] sm:$0x1] }
 0x203   : > { %v2285_v46 = vpop.f32.mrf.mxu1 }
 0x204   : > { %v4315_v10 = vpop.f32.mrf.mxu0  ;;  %v3795_v13 = vpop.f32.mrf.mxu3  ;;  %v2286_v32 = vadd.f32 %v2285_v46, %v9890_v55 }
 0x205   : > { %v4100_v62 = vadd.f32 %v3795_v13, %v3622_v35  ;;  %v13721_v35 = vld [vmem:[#allocation207_spill] sm:$0xff]  ;;  %v13723_v13 = vunpack.c.l.bf16 %v13722_v7 }
 0x206   : > { %v3329_v6 = vpop.f32.mrf.mxu2  ;;  %v3625_v11 = vadd.f32 %v3324_v30, %v2286_v32  ;;  %v13138_v30 = vunpack.c.l.bf16 %v10442_v60 }
 0x207   : > { %v10438_v58 = vadd.f32 %v4313_v25, %v4100_v62  ;;  %v2659_v46 = vrot.slane %v13723_v13, 2  ;;  %v13729_v13 = vunpack.c.l.bf16 %v10445_v5 }
 0x208   : > { %7677 = vmatmul.msk.bf16.gmra.mxu2 %vm1523_vm2, %v3038_v37  ;;  %v13725_v37 = vld [vmem:[#allocation3_spill] sm:$0xff]  ;;  %v4230_v33 = vrot.slane %v13138_v30, 1 }
 0x209   : > { %13719 = vst [vmem:[#allocation168_spill] sm:$0xff] %v10438_v58 }
 0x20b   : > { %v2288_v50 = vpop.f32.mrf.mxu1 }
 0x20c   : > { %v4318_v53 = vpop.f32.mrf.mxu0  ;;  %v3797_v47 = vpop.f32.mrf.mxu3  ;;  %v2289_v12 = vadd.f32 %v2288_v50, %v13720_v23  ;;  %7805 = vmatmul.msk.bf16.gmra.mxu0 %vm1523_vm2, %v13721_v35  ;;  %v4233_v35 = vrot.slane %v13729_v13, 1 }
 0x20d   : > { %v4101_v0 = vadd.f32 %v3797_v47, %v3623_v24  ;;  %v13724_v24 = vunpack.c.h.bf16 %v13722_v7  ;;  %v13726_v47 = vunpack.c.l.bf16 %v13725_v37 }
 0x20e   : > { %v3332_v55 = vpop.f32.mrf.mxu2  ;;  %v3626_v62 = vadd.f32 %v3327_v59, %v2289_v12  ;;  %7611 = vmatmul.msk.bf16.gmra.mxu1 %vm1523_vm2, %v9845_v3  ;;  %v13728_v12 = vunpack.c.h.bf16 %v10442_v60 }
 0x20f   : > { %v2660_v32 = vrot.slane %v13724_v24, 2  ;;  %v2662_v50 = vrot.slane %v13726_v47, 2  ;;  %v10461_v23 = vadd.f32 %v4315_v10, %v4101_v0 }
 0x210   : > { %v4231_v59 = vrot.slane %v13728_v12, 1 }
 0x211   : > { %13727 = vst [vmem:[#allocation176_spill] sm:$0xff] %v10461_v23  ;;  %7740 = vmatmul.msk.bf16.gmra.mxu3 %vm1523_vm2, %v9845_v3  ;;  %v2661_v24 = vsel %vm2573_vm3, %v2659_v46, %v2660_v32  ;;  %v2663_v37 = vsel %vm2573_vm3, %v2660_v32, %v2662_v50  ;;  %v13730_v23 = vld [vmem:[#allocation215_spill] sm:$0xff] }
 0x212   : > { %v4232_v28 = vsel %vm1008_vm1, %v4230_v33, %v4231_v59  ;;  %v4234_v30 = vsel %vm1008_vm1, %v4231_v59, %v4233_v35  ;;  %v10476_v22 = vpack.c.bf16 %v2663_v37, %v2661_v24  ;;  %v13731_v33 = vld [vmem:[#allocation7_spill] sm:$0xff] }
 0x213   : > { %v2290_v10 = vpop.f32.mrf.mxu1  ;;  %v10480_v13 = vpack.c.bf16 %v4234_v30, %v4232_v28  ;;  %v13732_v59 = vunpack.c.l.bf16 %v13731_v33  ;;  %v13733_v28 = vunpack.c.h.bf16 %v13731_v33  ;;  %v13734_v30 = vld [vmem:[#allocation8_spill] sm:$0xff] }
 0x214   : > { %v4320_v25 = vpop.f32.mrf.mxu0  ;;  %v3800_v47 = vpop.f32.mrf.mxu3  ;;  %v2291_v43 = vadd.f32 %v2290_v10, %v13730_v23  ;;  %v13735_v24 = vunpack.c.l.bf16 %v13734_v30  ;;  %v13736_v30 = vld [vmem:[#allocation6_spill] sm:$0xff] }
 0x215   : > { %v4102_v0 = vadd.f32 %v3800_v47, %v3624_v17 }
 0x216   : > { %v3334_v58 = vpop.f32.mrf.mxu2  ;;  %v3627_v12 = vadd.f32 %v3329_v6, %v2291_v43  ;;  %v2664_v43 = vrot.slane %v13732_v59, 2  ;;  %v2667_v37 = vrot.slane %v13735_v24, 2 }
 0x217   : > { %v10478_v3 = vadd.f32 %v4318_v53, %v4102_v0  ;;  %v2665_v53 = vrot.slane %v13733_v28, 2 }
 0x218   : > { %7678 = vmatmul.msk.bf16.gmra.mxu2 %vm1523_vm2, %v10476_v22 }
 0x219   : > { %v2666_v47 = vsel %vm2573_vm3, %v2664_v43, %v2665_v53  ;;  %v2668_v10 = vsel %vm2573_vm3, %v2665_v53, %v2667_v37 }
 0x21b   : > { %v2293_v17 = vpop.f32.mrf.mxu1 }
 0x21c   : > { %v4323_v46 = vpop.f32.mrf.mxu0  ;;  %v3802_v32 = vpop.f32.mrf.mxu3  ;;  %v2294_v23 = vadd.f32 %v2293_v17, %v10005_v56  ;;  %7806 = vmatmul.msk.bf16.gmra.mxu0 %vm1523_vm2, %v10480_v13 }
 0x21d   : > { %v4103_v50 = vadd.f32 %v3802_v32, %v3625_v11 }
 0x21e   : > { %v3337_v35 = vpop.f32.mrf.mxu2  ;;  %v3628_v6 = vadd.f32 %v3332_v55, %v2294_v23  ;;  %7612 = vmatmul.msk.bf16.gmra.mxu1 %vm1523_vm2, %v9927_v38  ;;  %v10502_v23 = vpack.c.bf16 %v2668_v10, %v2666_v47  ;;  %v13740_v10 = vld [vmem:[#allocation19_spill] sm:$0xff] }
 0x21f   : > { %v10495_v11 = vadd.f32 %v4320_v25, %v4103_v50 }
 0x221   : > { %7741 = vmatmul.msk.bf16.gmra.mxu3 %vm1523_vm2, %v10442_v60 }
 0x223   : > { %v2295_v0 = vpop.f32.mrf.mxu1 }
 0x224   : > { %v4325_v56 = vpop.f32.mrf.mxu0  ;;  %v3805_v55 = vpop.f32.mrf.mxu3  ;;  %v2296_v38 = vadd.f32 %v2295_v0, %v10030_v8  ;;  %v13737_v8 = vld [vmem:[#allocation18_spill] sm:$0xff] }
 0x225   : > { %v4104_v32 = vadd.f32 %v3805_v55, %v3626_v62  ;;  %v13738_v24 = vunpack.c.l.bf16 %v13737_v8  ;;  %v13741_v55 = vunpack.c.l.bf16 %v13740_v10 }
 0x226   : > { %v3339_v17 = vpop.f32.mrf.mxu2  ;;  %v3629_v33 = vadd.f32 %v3334_v58, %v2296_v38  ;;  %v13739_v58 = vunpack.c.h.bf16 %v13737_v8 }
 0x227   : > { %v10504_v59 = vadd.f32 %v4323_v46, %v4104_v32  ;;  %v2669_v37 = vrot.slane %v13738_v24, 2  ;;  %v2672_v0 = vrot.slane %v13741_v55, 2  ;;  %v13743_v55 = vld [vmem:[#allocation17_spill] sm:$0xff] }
 0x228   : > { %7679 = vmatmul.msk.bf16.gmra.mxu2 %vm1523_vm2, %v10502_v23  ;;  %v2670_v46 = vrot.slane %v13739_v58, 2 }
 0x22a   : > { %v2671_v32 = vsel %vm2573_vm3, %v2669_v37, %v2670_v46  ;;  %v2673_v38 = vsel %vm2573_vm3, %v2670_v46, %v2672_v0 }
 0x22b   : > { %v2298_v28 = vpop.f32.mrf.mxu1  ;;  %v10526_v24 = vpack.c.bf16 %v2673_v38, %v2671_v32 }
 0x22c   : > { %v4328_v25 = vpop.f32.mrf.mxu0  ;;  %v3807_v50 = vpop.f32.mrf.mxu3  ;;  %v2299_v53 = vadd.f32 %v2298_v28, %v10042_v29  ;;  %7807 = vmatmul.msk.bf16.gmra.mxu0 %vm1523_vm2, %v13736_v30 }
 0x22d   : > { %v4105_v43 = vadd.f32 %v3807_v50, %v3627_v12  ;;  %13742 = vst [vmem:[#allocation188_spill] sm:$0xff] %v10526_v24 }
 0x22e   : > { %v3342_v62 = vpop.f32.mrf.mxu2  ;;  %v3630_v47 = vadd.f32 %v3337_v35, %v2299_v53  ;;  %7613 = vmatmul.msk.bf16.gmra.mxu1 %vm1523_vm2, %v13722_v7 }
 0x22f   : > { %v10519_v12 = vadd.f32 %v4325_v56, %v4105_v43 }
 0x231   : > { %7742 = vmatmul.msk.bf16.gmra.mxu3 %vm1523_vm2, %v13722_v7 }
 0x233   : > { %v2300_v50 = vpop.f32.mrf.mxu1 }
 0x234   : > { %v4330_v29 = vpop.f32.mrf.mxu0  ;;  %v3810_v35 = vpop.f32.mrf.mxu3  ;;  %v2301_v53 = vadd.f32 %v2300_v50, %v10064_v48  ;;  %v13744_v48 = vld [vmem:[#allocation29_spill] sm:$0xff]  ;;  %v13747_v50 = vld [vmem:[#allocation30_spill] sm:$0xff] }
 0x235   : > { %v4106_v28 = vadd.f32 %v3810_v35, %v3628_v6  ;;  %v13745_v0 = vunpack.c.l.bf16 %v13744_v48 }
 0x236   : > { %v3344_v30 = vpop.f32.mrf.mxu2  ;;  %v3631_v58 = vadd.f32 %v3339_v17, %v2301_v53  ;;  %v8374_v17 = vld [vmem:[%s8517_s19 + $0xf0] sm:$0xff]  }
 0x237   : > { %v10528_v56 = vadd.f32 %v4328_v25, %v4106_v28  ;;  %v2674_v32 = vrot.slane %v13745_v0, 2  ;;  %v13746_v25 = vunpack.c.h.bf16 %v13744_v48  ;;  %v13748_v28 = vunpack.c.l.bf16 %v13747_v50 }
 0x238   : > { %7680 = vmatmul.msk.bf16.gmra.mxu2 %vm1523_vm2, %v10526_v24 }
 0x239   : > { %v2675_v35 = vrot.slane %v13746_v25, 2  ;;  %v2677_v53 = vrot.slane %v13748_v28, 2  ;;  %v13750_v28 = vld [vmem:[#allocation27_spill] sm:$0xff] }
 0x23b   : > { %v2303_v37 = vpop.f32.mrf.mxu1 }
 0x23c   : > { %v4333_v43 = vpop.f32.mrf.mxu0  ;;  %v3812_v7 = vpop.f32.mrf.mxu3  ;;  %v2304_v46 = vadd.f32 %v2303_v37, %v10076_v20  ;;  %7808 = vmatmul.msk.bf16.gmra.mxu0 %vm1523_vm2, %v13743_v55  ;;  %v2678_v37 = vsel %vm2573_vm3, %v2675_v35, %v2677_v53 }
 0x23d   : > { %v4107_v10 = vadd.f32 %v3812_v7, %v3629_v33  ;;  %v2676_v7 = vsel %vm2573_vm3, %v2674_v32, %v2675_v35 }
 0x23e   : > { %v3347_v6 = vpop.f32.mrf.mxu2  ;;  %v3632_v38 = vadd.f32 %v3342_v62, %v2304_v46  ;;  %7614 = vmatmul.msk.bf16.gmra.mxu1 %vm1523_vm2, %v8374_v17  ;;  %v10549_v48 = vpack.c.bf16 %v2678_v37, %v2676_v7 }
 0x23f   : > { %v10543_v33 = vadd.f32 %v4330_v29, %v4107_v10 }
 0x240   : > { %13749 = vst [vmem:[#allocation208_spill] sm:$0xff] %v10549_v48 }
 0x241   : > { %7743 = vmatmul.msk.bf16.gmra.mxu3 %vm1523_vm2, %v8374_v17 }
 0x243   : > { %v2305_v62 = vpop.f32.mrf.mxu1 }
 0x244   : > { %v4335_v20 = vpop.f32.mrf.mxu0  ;;  %v3815_v0 = vpop.f32.mrf.mxu3  ;;  %v2306_v24 = vadd.f32 %v2305_v62, %v10097_v31  ;;  %v13751_v31 = vld [vmem:[#allocation39_spill] sm:$0xff] }
 0x245   : > { %v4108_v46 = vadd.f32 %v3815_v0, %v3630_v47  ;;  %v13752_v53 = vunpack.c.l.bf16 %v13751_v31 }
 0x246   : > { %v3349_v55 = vpop.f32.mrf.mxu2  ;;  %v3633_v25 = vadd.f32 %v3344_v30, %v2306_v24  ;;  %v13753_v30 = vunpack.c.h.bf16 %v13751_v31 }
 0x247   : > { %v10551_v50 = vadd.f32 %v4333_v43, %v4108_v46  ;;  %v2679_v7 = vrot.slane %v13752_v53, 2  ;;  %v13754_v43 = vld [vmem:[#allocation40_spill] sm:$0xff] }
 0x248   : > { %7681 = vmatmul.msk.bf16.gmra.mxu2 %vm1523_vm2, %v10549_v48  ;;  %v2680_v24 = vrot.slane %v13753_v30, 2  ;;  %v13755_v0 = vunpack.c.l.bf16 %v13754_v43 }
 0x24a   : > { %v2682_v62 = vrot.slane %v13755_v0, 2  ;;  %v2681_v46 = vsel %vm2573_vm3, %v2679_v7, %v2680_v24 }
 0x24b   : > { %v2308_v17 = vpop.f32.mrf.mxu1 }
 0x24c   : > { %v4338_v29 = vpop.f32.mrf.mxu0  ;;  %v3817_v10 = vpop.f32.mrf.mxu3  ;;  %v2309_v35 = vadd.f32 %v2308_v17, %v10109_v15  ;;  %7809 = vmatmul.msk.bf16.gmra.mxu0 %vm1523_vm2, %v13750_v28 }
 0x24d   : > { %v4109_v32 = vadd.f32 %v3817_v10, %v3631_v58  ;;  %v2683_v10 = vsel %vm2573_vm3, %v2680_v24, %v2682_v62  ;;  %v13758_v62 = vld [vmem:[#allocation37_spill] sm:$0xff] }
 0x24e   : > { %v3352_v47 = vpop.f32.mrf.mxu2  ;;  %v3634_v37 = vadd.f32 %v3347_v6, %v2309_v35  ;;  %7615 = vmatmul.msk.bf16.gmra.mxu1 %vm1523_vm2, %v13737_v8  ;;  %v10573_v48 = vpack.c.bf16 %v2683_v10, %v2681_v46 }
 0x24f   : > { %v10566_v58 = vadd.f32 %v4335_v20, %v4109_v32 }
 0x250   : > { %13756 = vst [vmem:[#allocation2_spill] sm:$0xff] %v10573_v48 }
 0x251   : > { %7744 = vmatmul.msk.bf16.gmra.mxu3 %vm1523_vm2, %v13737_v8 }
 0x253   : > { %v2310_v17 = vpop.f32.mrf.mxu1 }
 0x254   : > { %v4340_v15 = vpop.f32.mrf.mxu0  ;;  %v3820_v6 = vpop.f32.mrf.mxu3  ;;  %v2311_v53 = vadd.f32 %v2310_v17, %v10131_v40  ;;  %v13759_v40 = vld [vmem:[#allocation50_spill] sm:$0xff] }
 0x255   : > { %v4110_v35 = vadd.f32 %v3820_v6, %v3632_v38  ;;  %v13760_v6 = vunpack.c.l.bf16 %v13759_v40 }
 0x256   : > { %v3354_v30 = vpop.f32.mrf.mxu2  ;;  %v3635_v43 = vadd.f32 %v3349_v55, %v2311_v53  ;;  %v8375_v55 = vld [vmem:[%s8517_s19 + $0x108] sm:$0xff]  }
 0x257   : > { %v10575_v20 = vadd.f32 %v4338_v29, %v4110_v35  ;;  %v2684_v46 = vrot.slane %v13760_v6, 2  ;;  %v13761_v29 = vunpack.c.h.bf16 %v13759_v40  ;;  %v13762_v35 = vld [vmem:[#allocation51_spill] sm:$0xff] }
 0x258   : > { %7682 = vmatmul.msk.bf16.gmra.mxu2 %vm1523_vm2, %v10573_v48  ;;  %v13763_v53 = vunpack.c.l.bf16 %v13762_v35 }
 0x259   : > { %13757 = vst [vmem:[#allocation3_spill] sm:$0xff] %v10575_v20  ;;  %v2685_v17 = vrot.slane %v13761_v29, 2 }
 0x25a   : > { %v2687_v48 = vrot.slane %v13763_v53, 2 }
 0x25b   : > { %v2313_v7 = vpop.f32.mrf.mxu1 }
 0x25c   : > { %v4343_v32 = vpop.f32.mrf.mxu0  ;;  %v3822_v0 = vpop.f32.mrf.mxu3  ;;  %v2314_v24 = vadd.f32 %v2313_v7, %v10143_v61  ;;  %7810 = vmatmul.msk.bf16.gmra.mxu0 %vm1523_vm2, %v13758_v62  ;;  %v2688_v7 = vsel %vm2573_vm3, %v2685_v17, %v2687_v48 }
 0x25d   : > { %v4111_v28 = vadd.f32 %v3822_v0, %v3633_v25  ;;  %v2686_v0 = vsel %vm2573_vm3, %v2684_v46, %v2685_v17  ;;  %v13765_v17 = vld [vmem:[#allocation48_spill] sm:$0xff] }
 0x25e   : > { %v3357_v38 = vpop.f32.mrf.mxu2  ;;  %v3636_v10 = vadd.f32 %v3352_v47, %v2314_v24  ;;  %7616 = vmatmul.msk.bf16.gmra.mxu1 %vm1523_vm2, %v8375_v55  ;;  %v10596_v40 = vpack.c.bf16 %v2688_v7, %v2686_v0 }
 0x25f   : > { %v10590_v25 = vadd.f32 %v4340_v15, %v4111_v28 }
 0x260   : > { %13764 = vst [vmem:[#allocation215_spill] sm:$0xff] %v10596_v40 }
 0x261   : > { %7745 = vmatmul.msk.bf16.gmra.mxu3 %vm1523_vm2, %v8375_v55 }
 0x263   : > { %v2315_v47 = vpop.f32.mrf.mxu1 }
 0x264   : > { %v4345_v61 = vpop.f32.mrf.mxu0  ;;  %v3825_v6 = vpop.f32.mrf.mxu3  ;;  %v2316_v62 = vadd.f32 %v2315_v47, %v10164_v42  ;;  %v13766_v42 = vld [vmem:[#allocation60_spill] sm:$0xff] }
 0x265   : > { %v4112_v24 = vadd.f32 %v3825_v6, %v3634_v37  ;;  %v13767_v53 = vunpack.c.l.bf16 %v13766_v42 }
 0x266   : > { %v3359_v20 = vpop.f32.mrf.mxu2  ;;  %v3637_v29 = vadd.f32 %v3354_v30, %v2316_v62  ;;  %v13768_v30 = vunpack.c.h.bf16 %v13766_v42  ;;  %v13769_v62 = vld [vmem:[#allocation61_spill] sm:$0xff] }
 0x267   : > { %v10598_v35 = vadd.f32 %v4343_v32, %v4112_v24  ;;  %v2689_v0 = vrot.slane %v13767_v53, 2  ;;  %v13770_v6 = vunpack.c.l.bf16 %v13769_v62 }
 0x268   : > { %7683 = vmatmul.msk.bf16.gmra.mxu2 %vm1523_vm2, %v10596_v40  ;;  %v2690_v32 = vrot.slane %v13768_v30, 2 }
 0x269   : > { %v2692_v47 = vrot.slane %v13770_v6, 2 }
 0x26a   : > { %v2691_v24 = vsel %vm2573_vm3, %v2689_v0, %v2690_v32 }
 0x26b   : > { %v2318_v55 = vpop.f32.mrf.mxu1 }
 0x26c   : > { %v4348_v28 = vpop.f32.mrf.mxu0  ;;  %v3827_v15 = vpop.f32.mrf.mxu3  ;;  %v2319_v48 = vadd.f32 %v2318_v55, %v10176_v16  ;;  %7811 = vmatmul.msk.bf16.gmra.mxu0 %vm1523_vm2, %v13765_v17 }
 0x26d   : > { %v4113_v46 = vadd.f32 %v3827_v15, %v3635_v43  ;;  %v2693_v15 = vsel %vm2573_vm3, %v2690_v32, %v2692_v47  ;;  %v13773_v47 = vld [vmem:[#allocation58_spill] sm:$0xff] }
 0x26e   : > { %v3362_v37 = vpop.f32.mrf.mxu2  ;;  %v3638_v7 = vadd.f32 %v3357_v38, %v2319_v48  ;;  %7617 = vmatmul.msk.bf16.gmra.mxu1 %vm1523_vm2, %v13751_v31  ;;  %v10620_v40 = vpack.c.bf16 %v2693_v15, %v2691_v24 }
 0x26f   : > { %v10613_v43 = vadd.f32 %v4345_v61, %v4113_v46 }
 0x270   : > { %13771 = vst [vmem:[#allocation7_spill] sm:$0xff] %v10620_v40 }
 0x271   : > { %7746 = vmatmul.msk.bf16.gmra.mxu3 %vm1523_vm2, %v13751_v31 }
 0x273   : > { %v2320_v55 = vpop.f32.mrf.mxu1 }
 0x274   : > { %v4350_v16 = vpop.f32.mrf.mxu0  ;;  %v3830_v38 = vpop.f32.mrf.mxu3  ;;  %v2321_v53 = vadd.f32 %v2320_v55, %v10198_v1  ;;  %v13774_v1 = vld [vmem:[#allocation71_spill] sm:$0xff] }
 0x275   : > { %v4114_v48 = vadd.f32 %v3830_v38, %v3636_v10  ;;  %v13775_v38 = vunpack.c.l.bf16 %v13774_v1 }
 0x276   : > { %v3364_v30 = vpop.f32.mrf.mxu2  ;;  %v3639_v62 = vadd.f32 %v3359_v20, %v2321_v53  ;;  %v8376_v20 = vld [vmem:[%s8517_s19 + $0x120] sm:$0xff]  }
 0x277   : > { %v10622_v61 = vadd.f32 %v4348_v28, %v4114_v48  ;;  %v2694_v24 = vrot.slane %v13775_v38, 2  ;;  %v13776_v28 = vunpack.c.h.bf16 %v13774_v1  ;;  %v13777_v48 = vld [vmem:[#allocation72_spill] sm:$0xff] }
 0x278   : > { %7684 = vmatmul.msk.bf16.gmra.mxu2 %vm1523_vm2, %v10620_v40  ;;  %v13778_v53 = vunpack.c.l.bf16 %v13777_v48 }
 0x279   : > { %13772 = vst [vmem:[#allocation8_spill] sm:$0xff] %v10622_v61  ;;  %v2695_v55 = vrot.slane %v13776_v28, 2 }
 0x27a   : > { %v2697_v40 = vrot.slane %v13778_v53, 2 }
 0x27b   : > { %v2323_v0 = vpop.f32.mrf.mxu1 }
 0x27c   : > { %v4353_v46 = vpop.f32.mrf.mxu0  ;;  %v3832_v6 = vpop.f32.mrf.mxu3  ;;  %v2324_v32 = vadd.f32 %v2323_v0, %v10210_v63  ;;  %7812 = vmatmul.msk.bf16.gmra.mxu0 %vm1523_vm2, %v13773_v47  ;;  %v2698_v0 = vsel %vm2573_vm3, %v2695_v55, %v2697_v40 }
 0x27d   : > { %v4115_v17 = vadd.f32 %v3832_v6, %v3637_v29  ;;  %v2696_v6 = vsel %vm2573_vm3, %v2694_v24, %v2695_v55  ;;  %v13781_v55 = vld [vmem:[#allocation69_spill] sm:$0xff] }
 0x27e   : > { %v3367_v10 = vpop.f32.mrf.mxu2  ;;  %v3640_v15 = vadd.f32 %v3362_v37, %v2324_v32  ;;  %7618 = vmatmul.msk.bf16.gmra.mxu1 %vm1523_vm2, %v8376_v20  ;;  %v10643_v1 = vpack.c.bf16 %v2698_v0, %v2696_v6 }
 0x27f   : > { %v10637_v29 = vadd.f32 %v4350_v16, %v4115_v17 }
 0x280   : > { %13779 = vst [vmem:[#allocation6_spill] sm:$0xff] %v10643_v1 }
 0x281   : > { %7747 = vmatmul.msk.bf16.gmra.mxu3 %vm1523_vm2, %v8376_v20 }
 0x283   : > { %v2325_v37 = vpop.f32.mrf.mxu1 }
 0x284   : > { %v4355_v63 = vpop.f32.mrf.mxu0  ;;  %v3835_v38 = vpop.f32.mrf.mxu3  ;;  %v2326_v47 = vadd.f32 %v2325_v37, %v10231_v4  ;;  %v13782_v4 = vld [vmem:[#allocation81_spill] sm:$0xff] }
 0x285   : > { %v4116_v32 = vadd.f32 %v3835_v38, %v3638_v7  ;;  %v13783_v53 = vunpack.c.l.bf16 %v13782_v4 }
 0x286   : > { %v3369_v61 = vpop.f32.mrf.mxu2  ;;  %v3641_v28 = vadd.f32 %v3364_v30, %v2326_v47  ;;  %v13784_v30 = vunpack.c.h.bf16 %v13782_v4  ;;  %v13785_v47 = vld [vmem:[#allocation82_spill] sm:$0xff] }
 0x287   : > { %v10645_v48 = vadd.f32 %v4353_v46, %v4116_v32  ;;  %v2699_v6 = vrot.slane %v13783_v53, 2  ;;  %v13786_v38 = vunpack.c.l.bf16 %v13785_v47 }
 0x288   : > { %7685 = vmatmul.msk.bf16.gmra.mxu2 %vm1523_vm2, %v10643_v1  ;;  %v2700_v46 = vrot.slane %v13784_v30, 2 }
 0x289   : > { %13780 = vst [vmem:[#allocation18_spill] sm:$0xff] %v10645_v48  ;;  %v2702_v37 = vrot.slane %v13786_v38, 2 }
 0x28a   : > { %v2701_v32 = vsel %vm2573_vm3, %v2699_v6, %v2700_v46 }
 0x28b   : > { %v2328_v20 = vpop.f32.mrf.mxu1 }
 0x28c   : > { %v4358_v17 = vpop.f32.mrf.mxu0  ;;  %v3837_v16 = vpop.f32.mrf.mxu3  ;;  %v2329_v40 = vadd.f32 %v2328_v20, %v10243_v27  ;;  %7813 = vmatmul.msk.bf16.gmra.mxu0 %vm1523_vm2, %v13781_v55 }
 0x28d   : > { %v4117_v24 = vadd.f32 %v3837_v16, %v3639_v62  ;;  %v2703_v16 = vsel %vm2573_vm3, %v2700_v46, %v2702_v37  ;;  %v13790_v37 = vld [vmem:[#allocation79_spill] sm:$0xff] }
 0x28e   : > { %v3372_v7 = vpop.f32.mrf.mxu2  ;;  %v3642_v0 = vadd.f32 %v3367_v10, %v2329_v40  ;;  %7619 = vmatmul.msk.bf16.gmra.mxu1 %vm1523_vm2, %v13766_v42  ;;  %v10667_v1 = vpack.c.bf16 %v2703_v16, %v2701_v32 }
 0x28f   : > { %v10660_v62 = vadd.f32 %v4355_v63, %v4117_v24 }
 0x290   : > { %13788 = vst [vmem:[#allocation29_spill] sm:$0xff] %v10667_v1 }
 0x291   : > { %13787 = vst [vmem:[#allocation19_spill] sm:$0xff] %v10660_v62  ;;  %7748 = vmatmul.msk.bf16.gmra.mxu3 %vm1523_vm2, %v13766_v42 }
 0x293   : > { %v2330_v20 = vpop.f32.mrf.mxu1 }
 0x294   : > { %v4360_v27 = vpop.f32.mrf.mxu0  ;;  %v3840_v10 = vpop.f32.mrf.mxu3  ;;  %v2331_v53 = vadd.f32 %v2330_v20, %v10263_v19  ;;  %v13791_v19 = vld [vmem:[#allocation93_spill] sm:$0xff] }
 0x295   : > { %v4118_v40 = vadd.f32 %v3840_v10, %v3640_v15  ;;  %v13792_v10 = vunpack.c.l.bf16 %v13791_v19 }
 0x296   : > { %v3374_v30 = vpop.f32.mrf.mxu2  ;;  %v3643_v47 = vadd.f32 %v3369_v61, %v2331_v53  ;;  %v8377_v61 = vld [vmem:[%s8517_s19 + $0x138] sm:$0xff]  }
 0x297   : > { %v10669_v63 = vadd.f32 %v4358_v17, %v4118_v40  ;;  %v2704_v32 = vrot.slane %v13792_v10, 2  ;;  %v13793_v17 = vunpack.c.h.bf16 %v13791_v19  ;;  %v13794_v40 = vld [vmem:[#allocation94_spill] sm:$0xff] }
 0x298   : > { %7686 = vmatmul.msk.bf16.gmra.mxu2 %vm1523_vm2, %v10667_v1  ;;  %v13795_v53 = vunpack.c.l.bf16 %v13794_v40 }
 0x299   : > { %13789 = vst [vmem:[#allocation30_spill] sm:$0xff] %v10669_v63  ;;  %v2705_v20 = vrot.slane %v13793_v17, 2 }
 0x29a   : > { %v2707_v1 = vrot.slane %v13795_v53, 2  ;;  %v13799_v53 = vld [vmem:[#allocation91_spill] sm:$0xff] }
 0x29b   : > { %v2333_v6 = vpop.f32.mrf.mxu1 }
 0x29c   : > { %v4363_v24 = vpop.f32.mrf.mxu0  ;;  %v3842_v38 = vpop.f32.mrf.mxu3  ;;  %v2334_v46 = vadd.f32 %v2333_v6, %v10273_v45  ;;  %7814 = vmatmul.msk.bf16.gmra.mxu0 %vm1523_vm2, %v13790_v37  ;;  %v2708_v6 = vsel %vm2573_vm3, %v2705_v20, %v2707_v1 }
 0x29d   : > { %v4119_v55 = vadd.f32 %v3842_v38, %v3641_v28  ;;  %v2706_v38 = vsel %vm2573_vm3, %v2704_v32, %v2705_v20  ;;  %v13800_v20 = vld [vmem:[#allocation90_spill] sm:$0xff] }
 0x29e   : > { %v3377_v15 = vpop.f32.mrf.mxu2  ;;  %v3644_v16 = vadd.f32 %v3372_v7, %v2334_v46  ;;  %7620 = vmatmul.msk.bf16.gmra.mxu1 %vm1523_vm2, %v8377_v61  ;;  %v10690_v19 = vpack.c.bf16 %v2708_v6, %v2706_v38 }
 0x29f   : > { %v10684_v28 = vadd.f32 %v4360_v27, %v4119_v55 }
 0x2a0   : > { %13797 = vst [vmem:[#allocation40_spill] sm:$0xff] %v10690_v19 }
 0x2a1   : > { %13796 = vst [vmem:[#allocation39_spill] sm:$0xff] %v10684_v28  ;;  %7749 = vmatmul.msk.bf16.gmra.mxu3 %vm1523_vm2, %v8377_v61  ;;  %v13811_v28 = vld [vmem:[#allocation103_spill] sm:$0xff] }
 0x2a3   : > { %v2335_v7 = vpop.f32.mrf.mxu1 }
 0x2a4   : > { %v4365_v45 = vpop.f32.mrf.mxu0  ;;  %v3845_v10 = vpop.f32.mrf.mxu3  ;;  %v2336_v37 = vadd.f32 %v2335_v7, %v10291_v54  ;;  %v13801_v54 = vld [vmem:[#allocation108_spill] sm:$0xff] }
 0x2a5   : > { %v4120_v46 = vadd.f32 %v3845_v10, %v3642_v0  ;;  %v13802_v10 = vunpack.c.l.bf16 %v13801_v54 }
 0x2a6   : > { %v3379_v63 = vpop.f32.mrf.mxu2  ;;  %v3645_v17 = vadd.f32 %v3374_v30, %v2336_v37  ;;  %v13803_v30 = vunpack.c.h.bf16 %v13801_v54  ;;  %v13804_v37 = vld [vmem:[#allocation109_spill] sm:$0xff] }
 0x2a7   : > { %v10692_v40 = vadd.f32 %v4363_v24, %v4120_v46  ;;  %v2709_v38 = vrot.slane %v13802_v10, 2  ;;  %v13805_v7 = vunpack.c.l.bf16 %v13804_v37 }
 0x2a8   : > { %7687 = vmatmul.msk.bf16.gmra.mxu2 %vm1523_vm2, %v10690_v19  ;;  %v2710_v24 = vrot.slane %v13803_v30, 2  ;;  %v13807_v19 = vld [vmem:[#allocation98_spill] sm:$0xff] }
 0x2a9   : > { %13798 = vst [vmem:[#allocation50_spill] sm:$0xff] %v10692_v40  ;;  %v2712_v46 = vrot.slane %v13805_v7, 2 }
 0x2ab   : > { %v2338_v61 = vpop.f32.mrf.mxu1 }
 0x2ac   : > { %v4368_v55 = vpop.f32.mrf.mxu0  ;;  %v3847_v27 = vpop.f32.mrf.mxu3  ;;  %v2339_v1 = vadd.f32 %v2338_v61, %v13799_v53  ;;  %7815 = vmatmul.msk.bf16.gmra.mxu0 %vm1523_vm2, %v13800_v20  ;;  %v2711_v61 = vsel %vm2573_vm3, %v2709_v38, %v2710_v24  ;;  %v2713_v53 = vsel %vm2573_vm3, %v2710_v24, %v2712_v46  ;;  %v13810_v24 = vld [vmem:[#allocation105_spill] sm:$0xff] }
 0x2ad   : > { %v4121_v32 = vadd.f32 %v3847_v27, %v3643_v47  ;;  %v10714_v40 = vpack.c.bf16 %v2713_v53, %v2711_v61 }
 0x2ae   : > { %v3382_v0 = vpop.f32.mrf.mxu2  ;;  %v3646_v6 = vadd.f32 %v3377_v15, %v2339_v1  ;;  %7621 = vmatmul.msk.bf16.gmra.mxu1 %vm1523_vm2, %v13782_v4 }
 0x2af   : > { %v10707_v47 = vadd.f32 %v4365_v45, %v4121_v32  ;;  %13808 = vst [vmem:[#allocation60_spill] sm:$0xff] %v10714_v40 }
 0x2b1   : > { %13806 = vst [vmem:[#allocation51_spill] sm:$0xff] %v10707_v47  ;;  %7750 = vmatmul.msk.bf16.gmra.mxu3 %vm1523_vm2, %v13782_v4 }
 0x2b3   : > { %v2340_v1 = vpop.f32.mrf.mxu1 }
 0x2b4   : > { %v4370_v27 = vpop.f32.mrf.mxu0  ;;  %v3850_v15 = vpop.f32.mrf.mxu3  ;;  %v2341_v20 = vadd.f32 %v2340_v1, %v13807_v19  ;;  %v13812_v19 = vld [vmem:[#allocation125_spill] sm:$0xff]  ;;  %v13815_v1 = vld [vmem:[#allocation126_spill] sm:$0xff] }
 0x2b5   : > { %v4122_v10 = vadd.f32 %v3850_v15, %v3644_v16  ;;  %v13813_v15 = vunpack.c.l.bf16 %v13812_v19 }
 0x2b6   : > { %v3384_v30 = vpop.f32.mrf.mxu2  ;;  %v3647_v37 = vadd.f32 %v3379_v63, %v2341_v20  ;;  %v8378_v63 = vld [vmem:[%s8517_s19 + $0x150] sm:$0xff]  }
 0x2b7   : > { %v10716_v45 = vadd.f32 %v4368_v55, %v4122_v10  ;;  %v2714_v61 = vrot.slane %v13813_v15, 2  ;;  %v13814_v55 = vunpack.c.h.bf16 %v13812_v19  ;;  %v13816_v10 = vunpack.c.l.bf16 %v13815_v1 }
 0x2b8   : > { %7688 = vmatmul.msk.bf16.gmra.mxu2 %vm1523_vm2, %v10714_v40 }
 0x2b9   : > { %13809 = vst [vmem:[#allocation61_spill] sm:$0xff] %v10716_v45  ;;  %v2715_v20 = vrot.slane %v13814_v55, 2  ;;  %v2717_v40 = vrot.slane %v13816_v10, 2  ;;  %v13821_v10 = vld [vmem:[#allocation122_spill] sm:$0xff] }
 0x2bb   : > { %v2343_v38 = vpop.f32.mrf.mxu1 }
 0x2bc   : > { %v4373_v32 = vpop.f32.mrf.mxu0  ;;  %v3852_v7 = vpop.f32.mrf.mxu3  ;;  %v2344_v46 = vadd.f32 %v2343_v38, %v13810_v24  ;;  %7816 = vmatmul.msk.bf16.gmra.mxu0 %vm1523_vm2, %v13811_v28  ;;  %v2716_v38 = vsel %vm2573_vm3, %v2714_v61, %v2715_v20  ;;  %v2718_v24 = vsel %vm2573_vm3, %v2715_v20, %v2717_v40  ;;  %v13818_v28 = vld [vmem:[#allocation113_spill] sm:$0xff]  ;;  %v13822_v20 = vld [vmem:[#allocation120_spill] sm:$0xff] }
 0x2bd   : > { %v4123_v47 = vadd.f32 %v3852_v7, %v3645_v17  ;;  %v10737_v19 = vpack.c.bf16 %v2718_v24, %v2716_v38 }
 0x2be   : > { %v3387_v16 = vpop.f32.mrf.mxu2  ;;  %v3648_v53 = vadd.f32 %v3382_v0, %v2344_v46  ;;  %7622 = vmatmul.msk.bf16.gmra.mxu1 %vm1523_vm2, %v8378_v63 }
 0x2bf   : > { %v10731_v17 = vadd.f32 %v4370_v27, %v4123_v47  ;;  %13819 = vst [vmem:[#allocation72_spill] sm:$0xff] %v10737_v19 }
 0x2c1   : > { %13817 = vst [vmem:[#allocation71_spill] sm:$0xff] %v10731_v17  ;;  %7751 = vmatmul.msk.bf16.gmra.mxu3 %vm1523_vm2, %v8378_v63  ;;  %v13833_v17 = vld [vmem:[#allocation138_spill] sm:$0xff] }
 0x2c3   : > { %v2345_v0 = vpop.f32.mrf.mxu1 }
 0x2c4   : > { %v4375_v7 = vpop.f32.mrf.mxu0  ;;  %v3855_v15 = vpop.f32.mrf.mxu3  ;;  %v2346_v45 = vadd.f32 %v2345_v0, %v13818_v28  ;;  %v13823_v28 = vld [vmem:[#allocation144_spill] sm:$0xff] }
 0x2c5   : > { %v4124_v46 = vadd.f32 %v3855_v15, %v3646_v6  ;;  %v13824_v15 = vunpack.c.l.bf16 %v13823_v28 }
 0x2c6   : > { %v3389_v4 = vpop.f32.mrf.mxu2  ;;  %v3649_v55 = vadd.f32 %v3384_v30, %v2346_v45  ;;  %v13825_v30 = vunpack.c.h.bf16 %v13823_v28 }
 0x2c7   : > { %v10739_v1 = vadd.f32 %v4373_v32, %v4124_v46  ;;  %v2719_v38 = vrot.slane %v13824_v15, 2  ;;  %v13826_v32 = vld [vmem:[#allocation145_spill] sm:$0xff] }
 0x2c8   : > { %7689 = vmatmul.msk.bf16.gmra.mxu2 %vm1523_vm2, %v10737_v19  ;;  %v2720_v45 = vrot.slane %v13825_v30, 2  ;;  %v13827_v0 = vunpack.c.l.bf16 %v13826_v32  ;;  %v13829_v19 = vld [vmem:[#allocation131_spill] sm:$0xff] }
 0x2c9   : > { %13820 = vst [vmem:[#allocation82_spill] sm:$0xff] %v10739_v1 }
 0x2ca   : > { %v2722_v46 = vrot.slane %v13827_v0, 2 }
 0x2cb   : > { %v2348_v63 = vpop.f32.mrf.mxu1 }
 0x2cc   : > { %v4378_v47 = vpop.f32.mrf.mxu0  ;;  %v3857_v27 = vpop.f32.mrf.mxu3  ;;  %v2349_v40 = vadd.f32 %v2348_v63, %v13821_v10  ;;  %7817 = vmatmul.msk.bf16.gmra.mxu0 %vm1523_vm2, %v13822_v20  ;;  %v2721_v63 = vsel %vm2573_vm3, %v2719_v38, %v2720_v45  ;;  %v2723_v10 = vsel %vm2573_vm3, %v2720_v45, %v2722_v46  ;;  %v13832_v45 = vld [vmem:[#allocation141_spill] sm:$0xff] }
 0x2cd   : > { %v4125_v61 = vadd.f32 %v3857_v27, %v3647_v37  ;;  %v10761_v1 = vpack.c.bf16 %v2723_v10, %v2721_v63 }
 0x2ce   : > { %v3392_v6 = vpop.f32.mrf.mxu2  ;;  %v3650_v24 = vadd.f32 %v3387_v16, %v2349_v40  ;;  %7623 = vmatmul.msk.bf16.gmra.mxu1 %vm1523_vm2, %v13801_v54 }
 0x2cf   : > { %v10754_v37 = vadd.f32 %v4375_v7, %v4125_v61  ;;  %13830 = vst [vmem:[#allocation94_spill] sm:$0xff] %v10761_v1 }
 0x2d1   : > { %13828 = vst [vmem:[#allocation93_spill] sm:$0xff] %v10754_v37  ;;  %7752 = vmatmul.msk.bf16.gmra.mxu3 %vm1523_vm2, %v13801_v54 }
 0x2d3   : > { %v2350_v40 = vpop.f32.mrf.mxu1 }
 0x2d4   : > { %v4380_v27 = vpop.f32.mrf.mxu0  ;;  %v3860_v16 = vpop.f32.mrf.mxu3  ;;  %v2351_v20 = vadd.f32 %v2350_v40, %v13829_v19  ;;  %v13834_v19 = vld [vmem:[#allocation164_spill] sm:$0xff]  ;;  %v13837_v40 = vld [vmem:[#allocation165_spill] sm:$0xff] }
 0x2d5   : > { %v4126_v15 = vadd.f32 %v3860_v16, %v3648_v53  ;;  %v13835_v16 = vunpack.c.l.bf16 %v13834_v19 }
 0x2d6   : > { %v3394_v30 = vpop.f32.mrf.mxu2  ;;  %v3651_v32 = vadd.f32 %v3389_v4, %v2351_v20  ;;  %v8379_v4 = vld [vmem:[%s8517_s19 + $0x168] sm:$0xff]  }
 0x2d7   : > { %v10763_v7 = vadd.f32 %v4378_v47, %v4126_v15  ;;  %v2724_v63 = vrot.slane %v13835_v16, 2  ;;  %v13836_v47 = vunpack.c.h.bf16 %v13834_v19  ;;  %v13838_v15 = vunpack.c.l.bf16 %v13837_v40 }
 0x2d8   : > { %7690 = vmatmul.msk.bf16.gmra.mxu2 %vm1523_vm2, %v10761_v1 }
 0x2d9   : > { %13831 = vst [vmem:[#allocation91_spill] sm:$0xff] %v10763_v7  ;;  %v2725_v20 = vrot.slane %v13836_v47, 2  ;;  %v2727_v1 = vrot.slane %v13838_v15, 2  ;;  %v13843_v15 = vld [vmem:[#allocation161_spill] sm:$0xff] }
 0x2db   : > { %v2353_v38 = vpop.f32.mrf.mxu1 }
 0x2dc   : > { %v4383_v61 = vpop.f32.mrf.mxu0  ;;  %v3862_v0 = vpop.f32.mrf.mxu3  ;;  %v2354_v46 = vadd.f32 %v2353_v38, %v13832_v45  ;;  %7818 = vmatmul.msk.bf16.gmra.mxu0 %vm1523_vm2, %v13833_v17  ;;  %v2726_v38 = vsel %vm2573_vm3, %v2724_v63, %v2725_v20  ;;  %v2728_v45 = vsel %vm2573_vm3, %v2725_v20, %v2727_v1  ;;  %v13840_v17 = vld [vmem:[#allocation150_spill] sm:$0xff] }
 0x2dd   : > { %v4127_v37 = vadd.f32 %v3862_v0, %v3649_v55  ;;  %v10784_v19 = vpack.c.bf16 %v2728_v45, %v2726_v38  ;;  %v13844_v20 = vld [vmem:[#allocation158_spill] sm:$0xff] }
 0x2de   : > { %v3397_v53 = vpop.f32.mrf.mxu2  ;;  %v3652_v10 = vadd.f32 %v3392_v6, %v2354_v46  ;;  %7624 = vmatmul.msk.bf16.gmra.mxu1 %vm1523_vm2, %v8379_v4 }
 0x2df   : > { %v10778_v55 = vadd.f32 %v4380_v27, %v4127_v37  ;;  %13841 = vst [vmem:[#allocation98_spill] sm:$0xff] %v10784_v19 }
 0x2e1   : > { %13839 = vst [vmem:[#allocation109_spill] sm:$0xff] %v10778_v55  ;;  %7753 = vmatmul.msk.bf16.gmra.mxu3 %vm1523_vm2, %v8379_v4  ;;  %v13855_v55 = vld [vmem:[#allocation178_spill] sm:$0xff] }
 0x2e3   : > { %v2355_v6 = vpop.f32.mrf.mxu1 }
 0x2e4   : > { %v4385_v0 = vpop.f32.mrf.mxu0  ;;  %v3865_v16 = vpop.f32.mrf.mxu3  ;;  %v2356_v7 = vadd.f32 %v2355_v6, %v13840_v17  ;;  %v13845_v17 = vld [vmem:[#allocation184_spill] sm:$0xff] }
 0x2e5   : > { %v4128_v46 = vadd.f32 %v3865_v16, %v3650_v24  ;;  %v13846_v16 = vunpack.c.l.bf16 %v13845_v17 }
 0x2e6   : > { %v3399_v54 = vpop.f32.mrf.mxu2  ;;  %v3653_v47 = vadd.f32 %v3394_v30, %v2356_v7  ;;  %v13847_v30 = vunpack.c.h.bf16 %v13845_v17 }
 0x2e7   : > { %v10786_v40 = vadd.f32 %v4383_v61, %v4128_v46  ;;  %v2729_v38 = vrot.slane %v13846_v16, 2  ;;  %v13848_v61 = vld [vmem:[#allocation185_spill] sm:$0xff] }
 0x2e8   : > { %7691 = vmatmul.msk.bf16.gmra.mxu2 %vm1523_vm2, %v10784_v19  ;;  %v2730_v7 = vrot.slane %v13847_v30, 2  ;;  %v13849_v6 = vunpack.c.l.bf16 %v13848_v61  ;;  %v13851_v19 = vld [vmem:[#allocation170_spill] sm:$0xff] }
 0x2e9   : > { %13842 = vst [vmem:[#allocation105_spill] sm:$0xff] %v10786_v40 }
 0x2ea   : > { %v2732_v46 = vrot.slane %v13849_v6, 2 }
 0x2eb   : > { %v2358_v4 = vpop.f32.mrf.mxu1 }
 0x2ec   : > { %v4388_v37 = vpop.f32.mrf.mxu0  ;;  %v3867_v27 = vpop.f32.mrf.mxu3  ;;  %v2359_v1 = vadd.f32 %v2358_v4, %v13843_v15  ;;  %7819 = vmatmul.msk.bf16.gmra.mxu0 %vm1523_vm2, %v13844_v20  ;;  %v2731_v4 = vsel %vm2573_vm3, %v2729_v38, %v2730_v7  ;;  %v2733_v15 = vsel %vm2573_vm3, %v2730_v7, %v2732_v46  ;;  %v13854_v7 = vld [vmem:[#allocation181_spill] sm:$0xff] }
 0x2ed   : > { %v4129_v63 = vadd.f32 %v3867_v27, %v3651_v32  ;;  %v10808_v40 = vpack.c.bf16 %v2733_v15, %v2731_v4 }
 0x2ee   : > { %v3402_v24 = vpop.f32.mrf.mxu2  ;;  %v3654_v45 = vadd.f32 %v3397_v53, %v2359_v1  ;;  %7625 = vmatmul.msk.bf16.gmra.mxu1 %vm1523_vm2, %v13823_v28 }
 0x2ef   : > { %v10801_v32 = vadd.f32 %v4385_v0, %v4129_v63  ;;  %13852 = vst [vmem:[#allocation126_spill] sm:$0xff] %v10808_v40 }
 0x2f1   : > { %13850 = vst [vmem:[#allocation125_spill] sm:$0xff] %v10801_v32  ;;  %7754 = vmatmul.msk.bf16.gmra.mxu3 %vm1523_vm2, %v13823_v28 }
 0x2f3   : > { %v2360_v1 = vpop.f32.mrf.mxu1 }
 0x2f4   : > { %v4390_v27 = vpop.f32.mrf.mxu0  ;;  %v3870_v53 = vpop.f32.mrf.mxu3  ;;  %v2361_v20 = vadd.f32 %v2360_v1, %v13851_v19  ;;  %v13856_v19 = vld [vmem:[#allocation200_spill] sm:$0xff]  ;;  %v13859_v1 = vld [vmem:[#allocation201_spill] sm:$0xff] }
 0x2f5   : > { %v4130_v16 = vadd.f32 %v3870_v53, %v3652_v10  ;;  %v13857_v53 = vunpack.c.l.bf16 %v13856_v19 }
 0x2f6   : > { %v3404_v30 = vpop.f32.mrf.mxu2  ;;  %v3655_v61 = vadd.f32 %v3399_v54, %v2361_v20  ;;  %v8380_v54 = vld [vmem:[%s8517_s19 + $0x180] sm:$0xff]  }
 0x2f7   : > { %v10810_v0 = vadd.f32 %v4388_v37, %v4130_v16  ;;  %v2734_v4 = vrot.slane %v13857_v53, 2  ;;  %v13858_v37 = vunpack.c.h.bf16 %v13856_v19  ;;  %v13860_v16 = vunpack.c.l.bf16 %v13859_v1 }
 0x2f8   : > { %7692 = vmatmul.msk.bf16.gmra.mxu2 %vm1523_vm2, %v10808_v40 }
 0x2f9   : > { %13853 = vst [vmem:[#allocation113_spill] sm:$0xff] %v10810_v0  ;;  %v2735_v20 = vrot.slane %v13858_v37, 2  ;;  %v2737_v40 = vrot.slane %v13860_v16, 2 }
 0x2fb   : > { %v2363_v38 = vpop.f32.mrf.mxu1 }
 0x2fc   : > { %v4393_v63 = vpop.f32.mrf.mxu0  ;;  %v3872_v6 = vpop.f32.mrf.mxu3  ;;  %v2364_v46 = vadd.f32 %v2363_v38, %v13854_v7  ;;  %7820 = vmatmul.msk.bf16.gmra.mxu0 %vm1523_vm2, %v13855_v55  ;;  %v2736_v38 = vsel %vm2573_vm3, %v2734_v4, %v2735_v20  ;;  %v13862_v55 = vld [vmem:[#allocation190_spill] sm:$0xff] }
 0x2fd   : > { %v4131_v32 = vadd.f32 %v3872_v6, %v3653_v47 }
 0x2fe   : > { %v3407_v10 = vpop.f32.mrf.mxu2  ;;  %v3656_v15 = vadd.f32 %v3402_v24, %v2364_v46  ;;  %7626 = vmatmul.msk.bf16.gmra.mxu1 %vm1523_vm2, %v8380_v54  ;;  %v2738_v24 = vsel %vm2573_vm3, %v2735_v20, %v2737_v40  ;;  %v13865_v20 = vld [vmem:[#allocation197_spill] sm:$0xff] }
 0x2ff   : > { %v10825_v47 = vadd.f32 %v4390_v27, %v4131_v32  ;;  %v3054_v0 = vpack.c.bf16 %v2738_v24, %v2736_v38  ;;  %v10835_v27 = vld [vmem:[%s8517_s19 + $0x198] sm:$0xff]  }
 0x301   : > { %13861 = vst [vmem:[#allocation122_spill] sm:$0xff] %v10825_v47  ;;  %7755 = vmatmul.msk.bf16.gmra.mxu3 %vm1523_vm2, %v8380_v54  ;;  %v10838_v54 = vld [vmem:[%s8517_s19 + $0x1a0] sm:$0x1] }
 0x302   : > { %13864 = vst [vmem:[#allocation131_spill] sm:$0xff] %v10838_v54 }
 0x303   : > { %v2365_v46 = vpop.f32.mrf.mxu1 }
 0x304   : > { %v4395_v6 = vpop.f32.mrf.mxu0  ;;  %v3875_v7 = vpop.f32.mrf.mxu3  ;;  %v2366_v19 = vadd.f32 %v2365_v46, %v13862_v55 }
 0x305   : > { %v4132_v53 = vadd.f32 %v3875_v7, %v3654_v45  ;;  %v13866_v45 = vld [vmem:[#allocation195_spill] sm:$0xff] }
 0x306   : > { %v3409_v37 = vpop.f32.mrf.mxu2  ;;  %v3657_v1 = vadd.f32 %v3404_v30, %v2366_v19  ;;  %v13170_v30 = vunpack.c.l.bf16 %v10835_v27 }
 0x307   : > { %v10831_v16 = vadd.f32 %v4393_v63, %v4132_v53  ;;  %v13870_v53 = vld [vmem:[#allocation13_spill] sm:$0xff] }
 0x308   : > { %7693 = vmatmul.msk.bf16.gmra.mxu2 %vm1523_vm2, %v3054_v0  ;;  %v13867_v0 = vld [vmem:[#allocation9_spill] sm:$0xff]  ;;  %v13871_v19 = vunpack.c.l.bf16 %v13870_v53  ;;  %v4235_v38 = vrot.slane %v13170_v30, 1 }
 0x309   : > { %13863 = vst [vmem:[#allocation145_spill] sm:$0xff] %v10831_v16  ;;  %v13868_v24 = vunpack.c.l.bf16 %v13867_v0 }
 0x30b   : > { %v2368_v47 = vpop.f32.mrf.mxu1  ;;  %v2739_v7 = vrot.slane %v13868_v24, 2  ;;  %v13874_v24 = vunpack.c.l.bf16 %v10838_v54 }
 0x30c   : > { %v4398_v32 = vpop.f32.mrf.mxu0  ;;  %v3877_v4 = vpop.f32.mrf.mxu3  ;;  %v2369_v28 = vadd.f32 %v2368_v47, %v13865_v20  ;;  %7821 = vmatmul.msk.bf16.gmra.mxu0 %vm1523_vm2, %v13866_v45 }
 0x30d   : > { %v4133_v40 = vadd.f32 %v3877_v4, %v3655_v61  ;;  %v13869_v61 = vunpack.c.h.bf16 %v13867_v0  ;;  %v2742_v4 = vrot.slane %v13871_v19, 2  ;;  %v4238_v45 = vrot.slane %v13874_v24, 1 }
 0x30e   : > { %v3412_v55 = vpop.f32.mrf.mxu2  ;;  %v3658_v46 = vadd.f32 %v3407_v10, %v2369_v28  ;;  %7627 = vmatmul.msk.bf16.gmra.mxu1 %vm1523_vm2, %v13845_v17  ;;  %v13873_v28 = vunpack.c.h.bf16 %v10835_v27 }
 0x30f   : > { %v2740_v47 = vrot.slane %v13869_v61, 2  ;;  %v10854_v20 = vadd.f32 %v4395_v6, %v4133_v40 }
 0x310   : > { %v4236_v10 = vrot.slane %v13873_v28, 1 }
 0x311   : > { %13872 = vst [vmem:[#allocation141_spill] sm:$0xff] %v10854_v20  ;;  %7756 = vmatmul.msk.bf16.gmra.mxu3 %vm1523_vm2, %v13845_v17  ;;  %v2741_v61 = vsel %vm2573_vm3, %v2739_v7, %v2740_v47  ;;  %v2743_v53 = vsel %vm2573_vm3, %v2740_v47, %v2742_v4  ;;  %v13875_v20 = vld [vmem:[#allocation205_spill] sm:$0xff] }
 0x312   : > { %v4237_v62 = vsel %vm1008_vm1, %v4235_v38, %v4236_v10  ;;  %v4239_v30 = vsel %vm1008_vm1, %v4236_v10, %v4238_v45  ;;  %v10869_v48 = vpack.c.bf16 %v2743_v53, %v2741_v61  ;;  %v13878_v38 = vld [vmem:[#allocation15_spill] sm:$0xff]  ;;  %v13881_v61 = vld [vmem:[#allocation16_spill] sm:$0xff] }
 0x313   : > { %v2370_v6 = vpop.f32.mrf.mxu1  ;;  %v10873_v24 = vpack.c.bf16 %v4239_v30, %v4237_v62  ;;  %v13879_v10 = vunpack.c.l.bf16 %v13878_v38  ;;  %v13880_v62 = vunpack.c.h.bf16 %v13878_v38  ;;  %v13882_v53 = vunpack.c.l.bf16 %v13881_v61 }
 0x314   : > { %v4400_v63 = vpop.f32.mrf.mxu0  ;;  %v3880_v19 = vpop.f32.mrf.mxu3  ;;  %v2371_v16 = vadd.f32 %v2370_v6, %v13875_v20  ;;  %13876 = vst [vmem:[#allocation164_spill] sm:$0xff] %v10869_v48  ;;  %v13877_v20 = vld [vmem:[#allocation210_spill] sm:$0xff] }
 0x315   : > { %v4134_v40 = vadd.f32 %v3880_v19, %v3656_v15  ;;  %v2745_v30 = vrot.slane %v13880_v62, 2  ;;  %v2747_v6 = vrot.slane %v13882_v53, 2 }
 0x316   : > { %v3414_v17 = vpop.f32.mrf.mxu2  ;;  %v3659_v28 = vadd.f32 %v3409_v37, %v2371_v16  ;;  %v2744_v37 = vrot.slane %v13879_v10, 2  ;;  %v13883_v10 = vld [vmem:[#allocation217_spill] sm:$0xff] }
 0x317   : > { %v10871_v54 = vadd.f32 %v4398_v32, %v4134_v40  ;;  %v8381_v32 = vld [vmem:[%s8517_s19 + $0x1b0] sm:$0xff]  }
 0x318   : > { %7694 = vmatmul.msk.bf16.gmra.mxu2 %vm1523_vm2, %v10869_v48 }
 0x31b   : > { %v2373_v47 = vpop.f32.mrf.mxu1 }
 0x31c   : > { %v4403_v7 = vpop.f32.mrf.mxu0  ;;  %v3882_v15 = vpop.f32.mrf.mxu3  ;;  %v2374_v19 = vadd.f32 %v2373_v47, %v13877_v20  ;;  %7822 = vmatmul.msk.bf16.gmra.mxu0 %vm1523_vm2, %v10873_v24  ;;  %v2748_v47 = vsel %vm2573_vm3, %v2745_v30, %v2747_v6  ;;  %v13885_v6 = vld [vmem:[#allocation14_spill] sm:$0xff] }
 0x31d   : > { %v4135_v4 = vadd.f32 %v3882_v15, %v3657_v1  ;;  %v2746_v15 = vsel %vm2573_vm3, %v2744_v37, %v2745_v30 }
 0x31e   : > { %v3417_v45 = vpop.f32.mrf.mxu2  ;;  %v3660_v16 = vadd.f32 %v3412_v55, %v2374_v19  ;;  %7628 = vmatmul.msk.bf16.gmra.mxu1 %vm1523_vm2, %v8381_v32  ;;  %v10895_v62 = vpack.c.bf16 %v2748_v47, %v2746_v15 }
 0x31f   : > { %v10888_v1 = vadd.f32 %v4400_v63, %v4135_v4 }
 0x320   : > { %13884 = vst [vmem:[#allocation165_spill] sm:$0xff] %v10895_v62 }
 0x321   : > { %7757 = vmatmul.msk.bf16.gmra.mxu3 %vm1523_vm2, %v10835_v27 }
 0x323   : > { %v2375_v20 = vpop.f32.mrf.mxu1 }
 0x324   : > { %v4405_v40 = vpop.f32.mrf.mxu0  ;;  %v3885_v55 = vpop.f32.mrf.mxu3  ;;  %v2376_v32 = vadd.f32 %v2375_v20, %v13883_v10 }
 0x325   : > { %v4136_v19 = vadd.f32 %v3885_v55, %v3658_v46  ;;  %v13886_v55 = vld [vmem:[#allocation23_spill] sm:$0xff] }
 0x326   : > { %v3419_v38 = vpop.f32.mrf.mxu2  ;;  %v3661_v61 = vadd.f32 %v3414_v17, %v2376_v32  ;;  %v13887_v20 = vunpack.c.l.bf16 %v13886_v55  ;;  %v13888_v17 = vunpack.c.h.bf16 %v13886_v55 }
 0x327   : > { %v10897_v53 = vadd.f32 %v4403_v7, %v4136_v19  ;;  %v13889_v19 = vld [vmem:[#allocation24_spill] sm:$0xff] }
 0x328   : > { %7695 = vmatmul.msk.bf16.gmra.mxu2 %vm1523_vm2, %v10895_v62  ;;  %v2749_v15 = vrot.slane %v13887_v20, 2  ;;  %v2750_v7 = vrot.slane %v13888_v17, 2  ;;  %v13890_v10 = vunpack.c.l.bf16 %v13889_v19 }
 0x32a   : > { %v2752_v32 = vrot.slane %v13890_v10, 2 }
 0x32b   : > { %v2378_v48 = vpop.f32.mrf.mxu1 }
 0x32c   : > { %v4408_v63 = vpop.f32.mrf.mxu0  ;;  %v3887_v4 = vpop.f32.mrf.mxu3  ;;  %v2379_v30 = vadd.f32 %v2378_v48, %v10013_v14  ;;  %7823 = vmatmul.msk.bf16.gmra.mxu0 %vm1523_vm2, %v13885_v6  ;;  %v2751_v48 = vsel %vm2573_vm3, %v2749_v15, %v2750_v7 }
 0x32d   : > { %v4137_v37 = vadd.f32 %v3887_v4, %v3659_v28  ;;  %v2753_v4 = vsel %vm2573_vm3, %v2750_v7, %v2752_v32  ;;  %v13893_v32 = vld [vmem:[#allocation22_spill] sm:$0xff] }
 0x32e   : > { %v3422_v46 = vpop.f32.mrf.mxu2  ;;  %v3662_v47 = vadd.f32 %v3417_v45, %v2379_v30  ;;  %7629 = vmatmul.msk.bf16.gmra.mxu1 %vm1523_vm2, %v13867_v0  ;;  %v10919_v62 = vpack.c.bf16 %v2753_v4, %v2751_v48 }
 0x32f   : > { %v10912_v28 = vadd.f32 %v4405_v40, %v4137_v37 }
 0x330   : > { %13891 = vst [vmem:[#allocation150_spill] sm:$0xff] %v10919_v62 }
 0x331   : > { %7758 = vmatmul.msk.bf16.gmra.mxu3 %vm1523_vm2, %v13867_v0 }
 0x333   : > { %v2380_v30 = vpop.f32.mrf.mxu1 }
 0x334   : > { %v4410_v14 = vpop.f32.mrf.mxu0  ;;  %v3890_v45 = vpop.f32.mrf.mxu3  ;;  %v2381_v20 = vadd.f32 %v2380_v30, %v10036_v26  ;;  %v13894_v26 = vld [vmem:[#allocation34_spill] sm:$0xff] }
 0x335   : > { %v4138_v6 = vadd.f32 %v3890_v45, %v3660_v16  ;;  %v13895_v45 = vunpack.c.l.bf16 %v13894_v26 }
 0x336   : > { %v3424_v17 = vpop.f32.mrf.mxu2  ;;  %v3663_v19 = vadd.f32 %v3419_v38, %v2381_v20  ;;  %v8382_v38 = vld [vmem:[%s8517_s19 + $0x1c8] sm:$0xff]  }
 0x337   : > { %v10921_v40 = vadd.f32 %v4408_v63, %v4138_v6  ;;  %v2754_v48 = vrot.slane %v13895_v45, 2  ;;  %v13896_v63 = vunpack.c.h.bf16 %v13894_v26  ;;  %v13897_v6 = vld [vmem:[#allocation35_spill] sm:$0xff] }
 0x338   : > { %7696 = vmatmul.msk.bf16.gmra.mxu2 %vm1523_vm2, %v10919_v62  ;;  %v13898_v20 = vunpack.c.l.bf16 %v13897_v6 }
 0x339   : > { %13892 = vst [vmem:[#allocation161_spill] sm:$0xff] %v10921_v40  ;;  %v2755_v30 = vrot.slane %v13896_v63, 2 }
 0x33a   : > { %v2757_v62 = vrot.slane %v13898_v20, 2 }
 0x33b   : > { %v2383_v15 = vpop.f32.mrf.mxu1 }
 0x33c   : > { %v4413_v37 = vpop.f32.mrf.mxu0  ;;  %v3892_v0 = vpop.f32.mrf.mxu3  ;;  %v2384_v7 = vadd.f32 %v2383_v15, %v10048_v36  ;;  %7824 = vmatmul.msk.bf16.gmra.mxu0 %vm1523_vm2, %v13893_v32  ;;  %v2758_v15 = vsel %vm2573_vm3, %v2755_v30, %v2757_v62 }
 0x33d   : > { %v4139_v10 = vadd.f32 %v3892_v0, %v3661_v61  ;;  %v2756_v0 = vsel %vm2573_vm3, %v2754_v48, %v2755_v30  ;;  %v13900_v30 = vld [vmem:[#allocation33_spill] sm:$0xff] }
 0x33e   : > { %v3427_v16 = vpop.f32.mrf.mxu2  ;;  %v3664_v4 = vadd.f32 %v3422_v46, %v2384_v7  ;;  %7630 = vmatmul.msk.bf16.gmra.mxu1 %vm1523_vm2, %v8382_v38  ;;  %v10942_v26 = vpack.c.bf16 %v2758_v15, %v2756_v0 }
 0x33f   : > { %v10936_v61 = vadd.f32 %v4410_v14, %v4139_v10 }
 0x340   : > { %13899 = vst [vmem:[#allocation185_spill] sm:$0xff] %v10942_v26 }
 0x341   : > { %7759 = vmatmul.msk.bf16.gmra.mxu3 %vm1523_vm2, %v8382_v38 }
 0x343   : > { %v2385_v46 = vpop.f32.mrf.mxu1 }
 0x344   : > { %v4415_v36 = vpop.f32.mrf.mxu0  ;;  %v3895_v45 = vpop.f32.mrf.mxu3  ;;  %v2386_v32 = vadd.f32 %v2385_v46, %v10070_v44  ;;  %v13901_v44 = vld [vmem:[#allocation44_spill] sm:$0xff] }
 0x345   : > { %v4140_v7 = vadd.f32 %v3895_v45, %v3662_v47  ;;  %v13902_v20 = vunpack.c.l.bf16 %v13901_v44 }
 0x346   : > { %v3429_v40 = vpop.f32.mrf.mxu2  ;;  %v3665_v63 = vadd.f32 %v3424_v17, %v2386_v32  ;;  %v13903_v17 = vunpack.c.h.bf16 %v13901_v44  ;;  %v13904_v32 = vld [vmem:[#allocation45_spill] sm:$0xff] }
 0x347   : > { %v10944_v6 = vadd.f32 %v4413_v37, %v4140_v7  ;;  %v2759_v0 = vrot.slane %v13902_v20, 2  ;;  %v13905_v45 = vunpack.c.l.bf16 %v13904_v32 }
 0x348   : > { %7697 = vmatmul.msk.bf16.gmra.mxu2 %vm1523_vm2, %v10942_v26  ;;  %v2760_v37 = vrot.slane %v13903_v17, 2 }
 0x349   : > { %v2762_v46 = vrot.slane %v13905_v45, 2 }
 0x34a   : > { %v2761_v7 = vsel %vm2573_vm3, %v2759_v0, %v2760_v37 }
 0x34b   : > { %v2388_v38 = vpop.f32.mrf.mxu1 }
 0x34c   : > { %v4418_v14 = vpop.f32.mrf.mxu0  ;;  %v3897_v10 = vpop.f32.mrf.mxu3  ;;  %v2389_v62 = vadd.f32 %v2388_v38, %v10082_v2  ;;  %7825 = vmatmul.msk.bf16.gmra.mxu0 %vm1523_vm2, %v13900_v30 }
 0x34d   : > { %v4141_v48 = vadd.f32 %v3897_v10, %v3663_v19  ;;  %v2763_v10 = vsel %vm2573_vm3, %v2760_v37, %v2762_v46  ;;  %v13908_v46 = vld [vmem:[#allocation43_spill] sm:$0xff] }
 0x34e   : > { %v3432_v47 = vpop.f32.mrf.mxu2  ;;  %v3666_v15 = vadd.f32 %v3427_v16, %v2389_v62  ;;  %7631 = vmatmul.msk.bf16.gmra.mxu1 %vm1523_vm2, %v13886_v55  ;;  %v10966_v26 = vpack.c.bf16 %v2763_v10, %v2761_v7 }
 0x34f   : > { %v10959_v19 = vadd.f32 %v4415_v36, %v4141_v48 }
 0x350   : > { %13906 = vst [vmem:[#allocation170_spill] sm:$0xff] %v10966_v26 }
 0x351   : > { %7760 = vmatmul.msk.bf16.gmra.mxu3 %vm1523_vm2, %v13886_v55 }
 0x353   : > { %v2390_v38 = vpop.f32.mrf.mxu1 }
 0x354   : > { %v4420_v2 = vpop.f32.mrf.mxu0  ;;  %v3900_v16 = vpop.f32.mrf.mxu3  ;;  %v2391_v20 = vadd.f32 %v2390_v38, %v10103_v52  ;;  %v13909_v52 = vld [vmem:[#allocation55_spill] sm:$0xff] }
 0x355   : > { %v4142_v62 = vadd.f32 %v3900_v16, %v3664_v4  ;;  %v13910_v16 = vunpack.c.l.bf16 %v13909_v52 }
 0x356   : > { %v3434_v17 = vpop.f32.mrf.mxu2  ;;  %v3667_v32 = vadd.f32 %v3429_v40, %v2391_v20  ;;  %v8383_v40 = vld [vmem:[%s8517_s19 + $0x1e0] sm:$0xff]  }
 0x357   : > { %v10968_v36 = vadd.f32 %v4418_v14, %v4142_v62  ;;  %v2764_v7 = vrot.slane %v13910_v16, 2  ;;  %v13911_v14 = vunpack.c.h.bf16 %v13909_v52  ;;  %v13912_v62 = vld [vmem:[#allocation56_spill] sm:$0xff] }
 0x358   : > { %7698 = vmatmul.msk.bf16.gmra.mxu2 %vm1523_vm2, %v10966_v26  ;;  %v13913_v20 = vunpack.c.l.bf16 %v13912_v62 }
 0x359   : > { %13907 = vst [vmem:[#allocation181_spill] sm:$0xff] %v10968_v36  ;;  %v2765_v38 = vrot.slane %v13911_v14, 2 }
 0x35a   : > { %v2767_v26 = vrot.slane %v13913_v20, 2 }
 0x35b   : > { %v2393_v0 = vpop.f32.mrf.mxu1 }
 0x35c   : > { %v4423_v48 = vpop.f32.mrf.mxu0  ;;  %v3902_v45 = vpop.f32.mrf.mxu3  ;;  %v2394_v37 = vadd.f32 %v2393_v0, %v10115_v57  ;;  %7826 = vmatmul.msk.bf16.gmra.mxu0 %vm1523_vm2, %v13908_v46  ;;  %v2768_v0 = vsel %vm2573_vm3, %v2765_v38, %v2767_v26 }
 0x35d   : > { %v4143_v30 = vadd.f32 %v3902_v45, %v3665_v63  ;;  %v2766_v45 = vsel %vm2573_vm3, %v2764_v7, %v2765_v38  ;;  %v13917_v38 = vld [vmem:[#allocation54_spill] sm:$0xff] }
 0x35e   : > { %v3437_v4 = vpop.f32.mrf.mxu2  ;;  %v3668_v10 = vadd.f32 %v3432_v47, %v2394_v37  ;;  %7632 = vmatmul.msk.bf16.gmra.mxu1 %vm1523_vm2, %v8383_v40  ;;  %v10989_v52 = vpack.c.bf16 %v2768_v0, %v2766_v45 }
 0x35f   : > { %v10983_v63 = vadd.f32 %v4420_v2, %v4143_v30 }
 0x360   : > { %13915 = vst [vmem:[#allocation201_spill] sm:$0xff] %v10989_v52 }
 0x361   : > { %13914 = vst [vmem:[#allocation200_spill] sm:$0xff] %v10983_v63  ;;  %7761 = vmatmul.msk.bf16.gmra.mxu3 %vm1523_vm2, %v8383_v40 }
 0x363   : > { %v2395_v47 = vpop.f32.mrf.mxu1 }
 0x364   : > { %v4425_v57 = vpop.f32.mrf.mxu0  ;;  %v3905_v16 = vpop.f32.mrf.mxu3  ;;  %v2396_v46 = vadd.f32 %v2395_v47, %v10137_v39  ;;  %v13918_v39 = vld [vmem:[#allocation65_spill] sm:$0xff] }
 0x365   : > { %v4144_v37 = vadd.f32 %v3905_v16, %v3666_v15  ;;  %v13919_v20 = vunpack.c.l.bf16 %v13918_v39 }
 0x366   : > { %v3439_v36 = vpop.f32.mrf.mxu2  ;;  %v3669_v14 = vadd.f32 %v3434_v17, %v2396_v46  ;;  %v13920_v17 = vunpack.c.h.bf16 %v13918_v39  ;;  %v13921_v46 = vld [vmem:[#allocation66_spill] sm:$0xff] }
 0x367   : > { %v10991_v62 = vadd.f32 %v4423_v48, %v4144_v37  ;;  %v2769_v45 = vrot.slane %v13919_v20, 2  ;;  %v13922_v16 = vunpack.c.l.bf16 %v13921_v46 }
 0x368   : > { %7699 = vmatmul.msk.bf16.gmra.mxu2 %vm1523_vm2, %v10989_v52  ;;  %v2770_v48 = vrot.slane %v13920_v17, 2 }
 0x369   : > { %13916 = vst [vmem:[#allocation190_spill] sm:$0xff] %v10991_v62  ;;  %v2772_v47 = vrot.slane %v13922_v16, 2 }
 0x36a   : > { %v2771_v37 = vsel %vm2573_vm3, %v2769_v45, %v2770_v48 }
 0x36b   : > { %v2398_v40 = vpop.f32.mrf.mxu1 }
 0x36c   : > { %v4428_v30 = vpop.f32.mrf.mxu0  ;;  %v3907_v2 = vpop.f32.mrf.mxu3  ;;  %v2399_v26 = vadd.f32 %v2398_v40, %v10149_v21  ;;  %7827 = vmatmul.msk.bf16.gmra.mxu0 %vm1523_vm2, %v13917_v38 }
 0x36d   : > { %v4145_v7 = vadd.f32 %v3907_v2, %v3667_v32  ;;  %v2773_v2 = vsel %vm2573_vm3, %v2770_v48, %v2772_v47  ;;  %v13926_v47 = vld [vmem:[#allocation64_spill] sm:$0xff] }
 0x36e   : > { %v3442_v15 = vpop.f32.mrf.mxu2  ;;  %v3670_v0 = vadd.f32 %v3437_v4, %v2399_v26  ;;  %7633 = vmatmul.msk.bf16.gmra.mxu1 %vm1523_vm2, %v13901_v44  ;;  %v11013_v52 = vpack.c.bf16 %v2773_v2, %v2771_v37 }
 0x36f   : > { %v11006_v32 = vadd.f32 %v4425_v57, %v4145_v7 }
 0x370   : > { %13924 = vst [vmem:[#allocation9_spill] sm:$0xff] %v11013_v52 }
 0x371   : > { %13923 = vst [vmem:[#allocation197_spill] sm:$0xff] %v11006_v32  ;;  %7762 = vmatmul.msk.bf16.gmra.mxu3 %vm1523_vm2, %v13901_v44 }
 0x373   : > { %v2400_v40 = vpop.f32.mrf.mxu1 }
 0x374   : > { %v4430_v21 = vpop.f32.mrf.mxu0  ;;  %v3910_v4 = vpop.f32.mrf.mxu3  ;;  %v2401_v20 = vadd.f32 %v2400_v40, %v10170_v51  ;;  %v13927_v51 = vld [vmem:[#allocation76_spill] sm:$0xff] }
 0x375   : > { %v4146_v26 = vadd.f32 %v3910_v4, %v3668_v10  ;;  %v13928_v4 = vunpack.c.l.bf16 %v13927_v51 }
 0x376   : > { %v3444_v17 = vpop.f32.mrf.mxu2  ;;  %v3671_v46 = vadd.f32 %v3439_v36, %v2401_v20  ;;  %v8384_v36 = vld [vmem:[%s8517_s19 + $0x1f8] sm:$0xff]  }
 0x377   : > { %v11015_v57 = vadd.f32 %v4428_v30, %v4146_v26  ;;  %v2774_v37 = vrot.slane %v13928_v4, 2  ;;  %v13929_v30 = vunpack.c.h.bf16 %v13927_v51  ;;  %v13930_v26 = vld [vmem:[#allocation77_spill] sm:$0xff] }
 0x378   : > { %7700 = vmatmul.msk.bf16.gmra.mxu2 %vm1523_vm2, %v11013_v52  ;;  %v13931_v20 = vunpack.c.l.bf16 %v13930_v26 }
 0x379   : > { %13925 = vst [vmem:[#allocation13_spill] sm:$0xff] %v11015_v57  ;;  %v2775_v40 = vrot.slane %v13929_v30, 2 }
 0x37a   : > { %v2777_v52 = vrot.slane %v13931_v20, 2  ;;  %v13936_v20 = vld [vmem:[#allocation253_spill] sm:$0xff] }
 0x37b   : > { %v2403_v45 = vpop.f32.mrf.mxu1 }
 0x37c   : > { %v4433_v7 = vpop.f32.mrf.mxu0  ;;  %v3912_v16 = vpop.f32.mrf.mxu3  ;;  %v2404_v48 = vadd.f32 %v2403_v45, %v10182_v41  ;;  %7828 = vmatmul.msk.bf16.gmra.mxu0 %vm1523_vm2, %v13926_v47  ;;  %v2778_v45 = vsel %vm2573_vm3, %v2775_v40, %v2777_v52  ;;  %v13933_v47 = vld [vmem:[#allocation249_spill] sm:$0xff] }
 0x37d   : > { %v4147_v38 = vadd.f32 %v3912_v16, %v3669_v14  ;;  %v2776_v16 = vsel %vm2573_vm3, %v2774_v37, %v2775_v40  ;;  %v13937_v40 = vld [vmem:[#allocation75_spill] sm:$0xff] }
 0x37e   : > { %v3447_v10 = vpop.f32.mrf.mxu2  ;;  %v3672_v2 = vadd.f32 %v3442_v15, %v2404_v48  ;;  %7634 = vmatmul.msk.bf16.gmra.mxu1 %vm1523_vm2, %v8384_v36  ;;  %v11036_v51 = vpack.c.bf16 %v2778_v45, %v2776_v16 }
 0x37f   : > { %v11030_v14 = vadd.f32 %v4430_v21, %v4147_v38 }
 0x380   : > { %13934 = vst [vmem:[#allocation210_spill] sm:$0xff] %v11036_v51 }
 0x381   : > { %13932 = vst [vmem:[#allocation205_spill] sm:$0xff] %v11030_v14  ;;  %7763 = vmatmul.msk.bf16.gmra.mxu3 %vm1523_vm2, %v8384_v36  ;;  %v13948_v14 = vld [vmem:[#allocation85_spill] sm:$0xff] }
 0x383   : > { %v2405_v15 = vpop.f32.mrf.mxu1 }
 0x384   : > { %v4435_v41 = vpop.f32.mrf.mxu0  ;;  %v3915_v4 = vpop.f32.mrf.mxu3  ;;  %v2406_v57 = vadd.f32 %v2405_v15, %v13933_v47  ;;  %v13938_v47 = vld [vmem:[#allocation86_spill] sm:$0xff] }
 0x385   : > { %v4148_v48 = vadd.f32 %v3915_v4, %v3670_v0  ;;  %v13939_v4 = vunpack.c.l.bf16 %v13938_v47 }
 0x386   : > { %v3449_v32 = vpop.f32.mrf.mxu2  ;;  %v3673_v30 = vadd.f32 %v3444_v17, %v2406_v57  ;;  %v13940_v17 = vunpack.c.h.bf16 %v13938_v47 }
 0x387   : > { %v11038_v26 = vadd.f32 %v4433_v7, %v4148_v48  ;;  %v2779_v16 = vrot.slane %v13939_v4, 2  ;;  %v13941_v7 = vld [vmem:[#allocation87_spill] sm:$0xff] }
 0x388   : > { %7701 = vmatmul.msk.bf16.gmra.mxu2 %vm1523_vm2, %v11036_v51  ;;  %v2780_v57 = vrot.slane %v13940_v17, 2  ;;  %v13942_v15 = vunpack.c.l.bf16 %v13941_v7  ;;  %v13944_v51 = vld [vmem:[#allocation256_spill] sm:$0xff] }
 0x389   : > { %13935 = vst [vmem:[#allocation15_spill] sm:$0xff] %v11038_v26 }
 0x38a   : > { %v2782_v48 = vrot.slane %v13942_v15, 2 }
 0x38b   : > { %v2408_v36 = vpop.f32.mrf.mxu1 }
 0x38c   : > { %v4438_v38 = vpop.f32.mrf.mxu0  ;;  %v3917_v21 = vpop.f32.mrf.mxu3  ;;  %v2409_v52 = vadd.f32 %v2408_v36, %v13936_v20  ;;  %7829 = vmatmul.msk.bf16.gmra.mxu0 %vm1523_vm2, %v13937_v40  ;;  %v2781_v36 = vsel %vm2573_vm3, %v2779_v16, %v2780_v57  ;;  %v2783_v20 = vsel %vm2573_vm3, %v2780_v57, %v2782_v48  ;;  %v13947_v57 = vld [vmem:[#allocation260_spill] sm:$0xff] }
 0x38d   : > { %v4149_v37 = vadd.f32 %v3917_v21, %v3671_v46  ;;  %v11060_v26 = vpack.c.bf16 %v2783_v20, %v2781_v36 }
 0x38e   : > { %v3452_v0 = vpop.f32.mrf.mxu2  ;;  %v3674_v45 = vadd.f32 %v3447_v10, %v2409_v52  ;;  %7635 = vmatmul.msk.bf16.gmra.mxu1 %vm1523_vm2, %v13918_v39 }
 0x38f   : > { %v11053_v46 = vadd.f32 %v4435_v41, %v4149_v37  ;;  %13945 = vst [vmem:[#allocation217_spill] sm:$0xff] %v11060_v26 }
 0x391   : > { %13943 = vst [vmem:[#allocation16_spill] sm:$0xff] %v11053_v46  ;;  %7764 = vmatmul.msk.bf16.gmra.mxu3 %vm1523_vm2, %v13918_v39 }
 0x393   : > { %v2410_v52 = vpop.f32.mrf.mxu1 }
 0x394   : > { %v4440_v21 = vpop.f32.mrf.mxu0  ;;  %v3920_v10 = vpop.f32.mrf.mxu3  ;;  %v2411_v40 = vadd.f32 %v2410_v52, %v13944_v51  ;;  %v13949_v51 = vld [vmem:[#allocation100_spill] sm:$0xff]  ;;  %v13952_v52 = vld [vmem:[#allocation101_spill] sm:$0xff] }
 0x395   : > { %v4150_v4 = vadd.f32 %v3920_v10, %v3672_v2  ;;  %v13950_v10 = vunpack.c.l.bf16 %v13949_v51 }
 0x396   : > { %v3454_v17 = vpop.f32.mrf.mxu2  ;;  %v3675_v7 = vadd.f32 %v3449_v32, %v2411_v40  ;;  %v8385_v32 = vld [vmem:[%s8517_s19 + $0x210] sm:$0xff]  }
 0x397   : > { %v11062_v41 = vadd.f32 %v4438_v38, %v4150_v4  ;;  %v2784_v36 = vrot.slane %v13950_v10, 2  ;;  %v13951_v38 = vunpack.c.h.bf16 %v13949_v51  ;;  %v13953_v4 = vunpack.c.l.bf16 %v13952_v52 }
 0x398   : > { %7702 = vmatmul.msk.bf16.gmra.mxu2 %vm1523_vm2, %v11060_v26 }
 0x399   : > { %13946 = vst [vmem:[#allocation14_spill] sm:$0xff] %v11062_v41  ;;  %v2785_v40 = vrot.slane %v13951_v38, 2  ;;  %v2787_v26 = vrot.slane %v13953_v4, 2  ;;  %v13958_v4 = vld [vmem:[#allocation107_spill] sm:$0xff] }
 0x39b   : > { %v2413_v16 = vpop.f32.mrf.mxu1 }
 0x39c   : > { %v4443_v37 = vpop.f32.mrf.mxu0  ;;  %v3922_v15 = vpop.f32.mrf.mxu3  ;;  %v2414_v48 = vadd.f32 %v2413_v16, %v13947_v57  ;;  %7830 = vmatmul.msk.bf16.gmra.mxu0 %vm1523_vm2, %v13948_v14  ;;  %v2786_v16 = vsel %vm2573_vm3, %v2784_v36, %v2785_v40  ;;  %v2788_v57 = vsel %vm2573_vm3, %v2785_v40, %v2787_v26  ;;  %v13955_v14 = vld [vmem:[#allocation262_spill] sm:$0xff]  ;;  %v13959_v40 = vld [vmem:[#allocation99_spill] sm:$0xff] }
 0x39d   : > { %v4151_v46 = vadd.f32 %v3922_v15, %v3673_v30  ;;  %v11083_v51 = vpack.c.bf16 %v2788_v57, %v2786_v16 }
 0x39e   : > { %v3457_v2 = vpop.f32.mrf.mxu2  ;;  %v3676_v20 = vadd.f32 %v3452_v0, %v2414_v48  ;;  %7636 = vmatmul.msk.bf16.gmra.mxu1 %vm1523_vm2, %v8385_v32 }
 0x39f   : > { %v11077_v30 = vadd.f32 %v4440_v21, %v4151_v46  ;;  %13956 = vst [vmem:[#allocation24_spill] sm:$0xff] %v11083_v51 }
 0x3a1   : > { %13954 = vst [vmem:[#allocation23_spill] sm:$0xff] %v11077_v30  ;;  %7765 = vmatmul.msk.bf16.gmra.mxu3 %vm1523_vm2, %v8385_v32  ;;  %v13970_v30 = vld [vmem:[#allocation115_spill] sm:$0xff] }
 0x3a3   : > { %v2415_v0 = vpop.f32.mrf.mxu1 }
 0x3a4   : > { %v4445_v15 = vpop.f32.mrf.mxu0  ;;  %v3925_v10 = vpop.f32.mrf.mxu3  ;;  %v2416_v41 = vadd.f32 %v2415_v0, %v13955_v14  ;;  %v13960_v14 = vld [vmem:[#allocation116_spill] sm:$0xff] }
 0x3a5   : > { %v4152_v48 = vadd.f32 %v3925_v10, %v3674_v45  ;;  %v13961_v10 = vunpack.c.l.bf16 %v13960_v14 }
 0x3a6   : > { %v3459_v39 = vpop.f32.mrf.mxu2  ;;  %v3677_v38 = vadd.f32 %v3454_v17, %v2416_v41  ;;  %v13962_v17 = vunpack.c.h.bf16 %v13960_v14 }
 0x3a7   : > { %v11085_v52 = vadd.f32 %v4443_v37, %v4152_v48  ;;  %v2789_v16 = vrot.slane %v13961_v10, 2  ;;  %v13963_v37 = vld [vmem:[#allocation117_spill] sm:$0xff] }
 0x3a8   : > { %7703 = vmatmul.msk.bf16.gmra.mxu2 %vm1523_vm2, %v11083_v51  ;;  %v2790_v41 = vrot.slane %v13962_v17, 2  ;;  %v13964_v0 = vunpack.c.l.bf16 %v13963_v37  ;;  %v13966_v51 = vld [vmem:[#allocation114_spill] sm:$0xff] }
 0x3a9   : > { %13957 = vst [vmem:[#allocation34_spill] sm:$0xff] %v11085_v52 }
 0x3aa   : > { %v2792_v48 = vrot.slane %v13964_v0, 2 }
 0x3ab   : > { %v2418_v32 = vpop.f32.mrf.mxu1 }
 0x3ac   : > { %v4448_v46 = vpop.f32.mrf.mxu0  ;;  %v3927_v21 = vpop.f32.mrf.mxu3  ;;  %v2419_v26 = vadd.f32 %v2418_v32, %v13958_v4  ;;  %7831 = vmatmul.msk.bf16.gmra.mxu0 %vm1523_vm2, %v13959_v40  ;;  %v2791_v32 = vsel %vm2573_vm3, %v2789_v16, %v2790_v41  ;;  %v2793_v4 = vsel %vm2573_vm3, %v2790_v41, %v2792_v48  ;;  %v13969_v41 = vld [vmem:[#allocation124_spill] sm:$0xff] }
 0x3ad   : > { %v4153_v36 = vadd.f32 %v3927_v21, %v3675_v7  ;;  %v11107_v52 = vpack.c.bf16 %v2793_v4, %v2791_v32 }
 0x3ae   : > { %v3462_v45 = vpop.f32.mrf.mxu2  ;;  %v3678_v57 = vadd.f32 %v3457_v2, %v2419_v26  ;;  %7637 = vmatmul.msk.bf16.gmra.mxu1 %vm1523_vm2, %v13938_v47 }
 0x3af   : > { %v11100_v7 = vadd.f32 %v4445_v15, %v4153_v36  ;;  %13967 = vst [vmem:[#allocation44_spill] sm:$0xff] %v11107_v52 }
 0x3b1   : > { %13965 = vst [vmem:[#allocation35_spill] sm:$0xff] %v11100_v7  ;;  %7766 = vmatmul.msk.bf16.gmra.mxu3 %vm1523_vm2, %v13938_v47 }
 0x3b3   : > { %v2420_v26 = vpop.f32.mrf.mxu1 }
 0x3b4   : > { %v4450_v21 = vpop.f32.mrf.mxu0  ;;  %v3930_v2 = vpop.f32.mrf.mxu3  ;;  %v2421_v40 = vadd.f32 %v2420_v26, %v13966_v51  ;;  %v13971_v51 = vld [vmem:[#allocation134_spill] sm:$0xff]  ;;  %v13974_v26 = vld [vmem:[#allocation135_spill] sm:$0xff] }
 0x3b5   : > { %v4154_v10 = vadd.f32 %v3930_v2, %v3676_v20  ;;  %v13972_v2 = vunpack.c.l.bf16 %v13971_v51 }
 0x3b6   : > { %v3464_v17 = vpop.f32.mrf.mxu2  ;;  %v3679_v37 = vadd.f32 %v3459_v39, %v2421_v40  ;;  %v8386_v39 = vld [vmem:[%s8517_s19 + $0x228] sm:$0xff]  }
 0x3b7   : > { %v11109_v15 = vadd.f32 %v4448_v46, %v4154_v10  ;;  %v2794_v32 = vrot.slane %v13972_v2, 2  ;;  %v13973_v46 = vunpack.c.h.bf16 %v13971_v51  ;;  %v13975_v10 = vunpack.c.l.bf16 %v13974_v26 }
 0x3b8   : > { %7704 = vmatmul.msk.bf16.gmra.mxu2 %vm1523_vm2, %v11107_v52 }
 0x3b9   : > { %13968 = vst [vmem:[#allocation45_spill] sm:$0xff] %v11109_v15  ;;  %v2795_v40 = vrot.slane %v13973_v46, 2  ;;  %v2797_v52 = vrot.slane %v13975_v10, 2  ;;  %v13980_v10 = vld [vmem:[#allocation143_spill] sm:$0xff] }
 0x3bb   : > { %v2423_v16 = vpop.f32.mrf.mxu1 }
 0x3bc   : > { %v4453_v36 = vpop.f32.mrf.mxu0  ;;  %v3932_v0 = vpop.f32.mrf.mxu3  ;;  %v2424_v48 = vadd.f32 %v2423_v16, %v13969_v41  ;;  %7832 = vmatmul.msk.bf16.gmra.mxu0 %vm1523_vm2, %v13970_v30  ;;  %v2796_v16 = vsel %vm2573_vm3, %v2794_v32, %v2795_v40  ;;  %v2798_v41 = vsel %vm2573_vm3, %v2795_v40, %v2797_v52  ;;  %v13977_v30 = vld [vmem:[#allocation132_spill] sm:$0xff]  ;;  %v13981_v40 = vld [vmem:[#allocation133_spill] sm:$0xff] }
 0x3bd   : > { %v4155_v7 = vadd.f32 %v3932_v0, %v3677_v38  ;;  %v11130_v51 = vpack.c.bf16 %v2798_v41, %v2796_v16 }
 0x3be   : > { %v3467_v20 = vpop.f32.mrf.mxu2  ;;  %v3680_v4 = vadd.f32 %v3462_v45, %v2424_v48  ;;  %7638 = vmatmul.msk.bf16.gmra.mxu1 %vm1523_vm2, %v8386_v39 }
 0x3bf   : > { %v11124_v38 = vadd.f32 %v4450_v21, %v4155_v7  ;;  %13978 = vst [vmem:[#allocation56_spill] sm:$0xff] %v11130_v51 }
 0x3c1   : > { %13976 = vst [vmem:[#allocation55_spill] sm:$0xff] %v11124_v38  ;;  %7767 = vmatmul.msk.bf16.gmra.mxu3 %vm1523_vm2, %v8386_v39  ;;  %v13992_v38 = vld [vmem:[#allocation152_spill] sm:$0xff] }
 0x3c3   : > { %v2425_v45 = vpop.f32.mrf.mxu1 }
 0x3c4   : > { %v4455_v0 = vpop.f32.mrf.mxu0  ;;  %v3935_v2 = vpop.f32.mrf.mxu3  ;;  %v2426_v15 = vadd.f32 %v2425_v45, %v13977_v30  ;;  %v13982_v30 = vld [vmem:[#allocation153_spill] sm:$0xff] }
 0x3c5   : > { %v4156_v48 = vadd.f32 %v3935_v2, %v3678_v57  ;;  %v13983_v2 = vunpack.c.l.bf16 %v13982_v30 }
 0x3c6   : > { %v3469_v47 = vpop.f32.mrf.mxu2  ;;  %v3681_v46 = vadd.f32 %v3464_v17, %v2426_v15  ;;  %v13984_v17 = vunpack.c.h.bf16 %v13982_v30 }
 0x3c7   : > { %v11132_v26 = vadd.f32 %v4453_v36, %v4156_v48  ;;  %v2799_v16 = vrot.slane %v13983_v2, 2  ;;  %v13985_v36 = vld [vmem:[#allocation154_spill] sm:$0xff] }
 0x3c8   : > { %7705 = vmatmul.msk.bf16.gmra.mxu2 %vm1523_vm2, %v11130_v51  ;;  %v2800_v15 = vrot.slane %v13984_v17, 2  ;;  %v13986_v45 = vunpack.c.l.bf16 %v13985_v36  ;;  %v13988_v51 = vld [vmem:[#allocation151_spill] sm:$0xff] }
 0x3c9   : > { %13979 = vst [vmem:[#allocation66_spill] sm:$0xff] %v11132_v26 }
 0x3ca   : > { %v2802_v48 = vrot.slane %v13986_v45, 2 }
 0x3cb   : > { %v2428_v39 = vpop.f32.mrf.mxu1 }
 0x3cc   : > { %v4458_v7 = vpop.f32.mrf.mxu0  ;;  %v3937_v21 = vpop.f32.mrf.mxu3  ;;  %v2429_v52 = vadd.f32 %v2428_v39, %v13980_v10  ;;  %7833 = vmatmul.msk.bf16.gmra.mxu0 %vm1523_vm2, %v13981_v40  ;;  %v2801_v39 = vsel %vm2573_vm3, %v2799_v16, %v2800_v15  ;;  %v2803_v10 = vsel %vm2573_vm3, %v2800_v15, %v2802_v48  ;;  %v13991_v15 = vld [vmem:[#allocation163_spill] sm:$0xff] }
 0x3cd   : > { %v4157_v32 = vadd.f32 %v3937_v21, %v3679_v37  ;;  %v11154_v26 = vpack.c.bf16 %v2803_v10, %v2801_v39 }
 0x3ce   : > { %v3472_v57 = vpop.f32.mrf.mxu2  ;;  %v3682_v41 = vadd.f32 %v3467_v20, %v2429_v52  ;;  %7639 = vmatmul.msk.bf16.gmra.mxu1 %vm1523_vm2, %v13960_v14 }
 0x3cf   : > { %v11147_v37 = vadd.f32 %v4455_v0, %v4157_v32  ;;  %13989 = vst [vmem:[#allocation77_spill] sm:$0xff] %v11154_v26 }
 0x3d1   : > { %13987 = vst [vmem:[#allocation76_spill] sm:$0xff] %v11147_v37  ;;  %7768 = vmatmul.msk.bf16.gmra.mxu3 %vm1523_vm2, %v13960_v14 }
 0x3d3   : > { %v2430_v52 = vpop.f32.mrf.mxu1 }
 0x3d4   : > { %v4460_v21 = vpop.f32.mrf.mxu0  ;;  %v3940_v20 = vpop.f32.mrf.mxu3  ;;  %v2431_v40 = vadd.f32 %v2430_v52, %v13988_v51  ;;  %v13993_v51 = vld [vmem:[#allocation173_spill] sm:$0xff]  ;;  %v13996_v52 = vld [vmem:[#allocation174_spill] sm:$0xff] }
 0x3d5   : > { %v4158_v2 = vadd.f32 %v3940_v20, %v3680_v4  ;;  %v13994_v20 = vunpack.c.l.bf16 %v13993_v51 }
 0x3d6   : > { %v3474_v17 = vpop.f32.mrf.mxu2  ;;  %v3683_v36 = vadd.f32 %v3469_v47, %v2431_v40  ;;  %v8387_v47 = vld [vmem:[%s8517_s19 + $0x240] sm:$0xff]  }
 0x3d7   : > { %v11156_v0 = vadd.f32 %v4458_v7, %v4158_v2  ;;  %v2804_v39 = vrot.slane %v13994_v20, 2  ;;  %v13995_v7 = vunpack.c.h.bf16 %v13993_v51  ;;  %v13997_v2 = vunpack.c.l.bf16 %v13996_v52 }
 0x3d8   : > { %7706 = vmatmul.msk.bf16.gmra.mxu2 %vm1523_vm2, %v11154_v26 }
 0x3d9   : > { %13990 = vst [vmem:[#allocation249_spill] sm:$0xff] %v11156_v0  ;;  %v2805_v40 = vrot.slane %v13995_v7, 2  ;;  %v2807_v26 = vrot.slane %v13997_v2, 2  ;;  %v14002_v2 = vld [vmem:[#allocation183_spill] sm:$0xff] }
 0x3db   : > { %v2433_v16 = vpop.f32.mrf.mxu1 }
 0x3dc   : > { %v4463_v32 = vpop.f32.mrf.mxu0  ;;  %v3942_v45 = vpop.f32.mrf.mxu3  ;;  %v2434_v48 = vadd.f32 %v2433_v16, %v13991_v15  ;;  %7834 = vmatmul.msk.bf16.gmra.mxu0 %vm1523_vm2, %v13992_v38  ;;  %v2806_v16 = vsel %vm2573_vm3, %v2804_v39, %v2805_v40  ;;  %v2808_v15 = vsel %vm2573_vm3, %v2805_v40, %v2807_v26  ;;  %v13999_v38 = vld [vmem:[#allocation171_spill] sm:$0xff]  ;;  %v14003_v40 = vld [vmem:[#allocation172_spill] sm:$0xff] }
 0x3dd   : > { %v4159_v37 = vadd.f32 %v3942_v45, %v3681_v46  ;;  %v11177_v51 = vpack.c.bf16 %v2808_v15, %v2806_v16 }
 0x3de   : > { %v3477_v4 = vpop.f32.mrf.mxu2  ;;  %v3684_v10 = vadd.f32 %v3472_v57, %v2434_v48  ;;  %7640 = vmatmul.msk.bf16.gmra.mxu1 %vm1523_vm2, %v8387_v47 }
 0x3df   : > { %v11171_v46 = vadd.f32 %v4460_v21, %v4159_v37  ;;  %14000 = vst [vmem:[#allocation87_spill] sm:$0xff] %v11177_v51 }
 0x3e1   : > { %13998 = vst [vmem:[#allocation253_spill] sm:$0xff] %v11171_v46  ;;  %7769 = vmatmul.msk.bf16.gmra.mxu3 %vm1523_vm2, %v8387_v47  ;;  %v14014_v46 = vld [vmem:[#allocation192_spill] sm:$0xff] }
 0x3e3   : > { %v2435_v57 = vpop.f32.mrf.mxu1 }
 0x3e4   : > { %v4465_v45 = vpop.f32.mrf.mxu0  ;;  %v3945_v20 = vpop.f32.mrf.mxu3  ;;  %v2436_v0 = vadd.f32 %v2435_v57, %v13999_v38  ;;  %v14004_v38 = vld [vmem:[#allocation4_spill] sm:$0xff] }
 0x3e5   : > { %v4160_v48 = vadd.f32 %v3945_v20, %v3682_v41  ;;  %v14005_v20 = vunpack.c.l.bf16 %v14004_v38 }
 0x3e6   : > { %v3479_v14 = vpop.f32.mrf.mxu2  ;;  %v3685_v7 = vadd.f32 %v3474_v17, %v2436_v0  ;;  %v14006_v17 = vunpack.c.h.bf16 %v14004_v38 }
 0x3e7   : > { %v11179_v52 = vadd.f32 %v4463_v32, %v4160_v48  ;;  %v2809_v16 = vrot.slane %v14005_v20, 2  ;;  %v14007_v32 = vld [vmem:[#allocation5_spill] sm:$0xff] }
 0x3e8   : > { %7707 = vmatmul.msk.bf16.gmra.mxu2 %vm1523_vm2, %v11177_v51  ;;  %v2810_v0 = vrot.slane %v14006_v17, 2  ;;  %v14008_v57 = vunpack.c.l.bf16 %v14007_v32  ;;  %v14010_v51 = vld [vmem:[#allocation191_spill] sm:$0xff] }
 0x3e9   : > { %14001 = vst [vmem:[#allocation256_spill] sm:$0xff] %v11179_v52 }
 0x3ea   : > { %v2812_v48 = vrot.slane %v14008_v57, 2 }
 0x3eb   : > { %v2438_v47 = vpop.f32.mrf.mxu1 }
 0x3ec   : > { %v4468_v37 = vpop.f32.mrf.mxu0  ;;  %v3947_v21 = vpop.f32.mrf.mxu3  ;;  %v2439_v26 = vadd.f32 %v2438_v47, %v14002_v2  ;;  %7835 = vmatmul.msk.bf16.gmra.mxu0 %vm1523_vm2, %v14003_v40  ;;  %v2811_v47 = vsel %vm2573_vm3, %v2809_v16, %v2810_v0  ;;  %v2813_v2 = vsel %vm2573_vm3, %v2810_v0, %v2812_v48  ;;  %v14013_v0 = vld [vmem:[#allocation199_spill] sm:$0xff] }
 0x3ed   : > { %v4161_v39 = vadd.f32 %v3947_v21, %v3683_v36  ;;  %v11201_v52 = vpack.c.bf16 %v2813_v2, %v2811_v47 }
 0x3ee   : > { %v3482_v41 = vpop.f32.mrf.mxu2  ;;  %v3686_v15 = vadd.f32 %v3477_v4, %v2439_v26  ;;  %7641 = vmatmul.msk.bf16.gmra.mxu1 %vm1523_vm2, %v13982_v30 }
 0x3ef   : > { %v11194_v36 = vadd.f32 %v4465_v45, %v4161_v39  ;;  %14011 = vst [vmem:[#allocation100_spill] sm:$0xff] %v11201_v52 }
 0x3f1   : > { %14009 = vst [vmem:[#allocation260_spill] sm:$0xff] %v11194_v36  ;;  %7770 = vmatmul.msk.bf16.gmra.mxu3 %vm1523_vm2, %v13982_v30 }
 0x3f3   : > { %v2440_v26 = vpop.f32.mrf.mxu1 }
 0x3f4   : > { %v4470_v21 = vpop.f32.mrf.mxu0  ;;  %v3950_v4 = vpop.f32.mrf.mxu3  ;;  %v2441_v40 = vadd.f32 %v2440_v26, %v14010_v51  ;;  %v14015_v51 = vld [vmem:[#allocation11_spill] sm:$0xff]  ;;  %v14018_v26 = vld [vmem:[#allocation12_spill] sm:$0xff] }
 0x3f5   : > { %v4162_v20 = vadd.f32 %v3950_v4, %v3684_v10  ;;  %v14016_v4 = vunpack.c.l.bf16 %v14015_v51 }
 0x3f6   : > { %v3484_v17 = vpop.f32.mrf.mxu2  ;;  %v3687_v32 = vadd.f32 %v3479_v14, %v2441_v40  ;;  %v8388_v14 = vld [vmem:[%s8517_s19 + $0x258] sm:$0xff]  }
 0x3f7   : > { %v11203_v45 = vadd.f32 %v4468_v37, %v4162_v20  ;;  %v2814_v47 = vrot.slane %v14016_v4, 2  ;;  %v14017_v37 = vunpack.c.h.bf16 %v14015_v51  ;;  %v14019_v20 = vunpack.c.l.bf16 %v14018_v26 }
 0x3f8   : > { %7708 = vmatmul.msk.bf16.gmra.mxu2 %vm1523_vm2, %v11201_v52 }
 0x3f9   : > { %14012 = vst [vmem:[#allocation101_spill] sm:$0xff] %v11203_v45  ;;  %v2815_v40 = vrot.slane %v14017_v37, 2  ;;  %v2817_v52 = vrot.slane %v14019_v20, 2 }
 0x3fb   : > { %v2443_v16 = vpop.f32.mrf.mxu1 }
 0x3fc   : > { %v4473_v39 = vpop.f32.mrf.mxu0  ;;  %v3952_v57 = vpop.f32.mrf.mxu3  ;;  %v2444_v48 = vadd.f32 %v2443_v16, %v14013_v0  ;;  %7836 = vmatmul.msk.bf16.gmra.mxu0 %vm1523_vm2, %v14014_v46  ;;  %v2816_v16 = vsel %vm2573_vm3, %v2814_v47, %v2815_v40  ;;  %v14021_v46 = vld [vmem:[#allocation206_spill] sm:$0xff] }
 0x3fd   : > { %v4163_v36 = vadd.f32 %v3952_v57, %v3685_v7 }
 0x3fe   : > { %v3487_v10 = vpop.f32.mrf.mxu2  ;;  %v3688_v2 = vadd.f32 %v3482_v41, %v2444_v48  ;;  %7642 = vmatmul.msk.bf16.gmra.mxu1 %vm1523_vm2, %v8388_v14  ;;  %v2818_v41 = vsel %vm2573_vm3, %v2815_v40, %v2817_v52  ;;  %v14024_v40 = vld [vmem:[#allocation212_spill] sm:$0xff] }
 0x3ff   : > { %v11218_v7 = vadd.f32 %v4470_v21, %v4163_v36  ;;  %v3070_v45 = vpack.c.bf16 %v2818_v41, %v2816_v16  ;;  %v11228_v21 = vld [vmem:[%s8517_s19 + $0x270] sm:$0xff]  }
 0x401   : > { %14020 = vst [vmem:[#allocation262_spill] sm:$0xff] %v11218_v7  ;;  %7771 = vmatmul.msk.bf16.gmra.mxu3 %vm1523_vm2, %v8388_v14  ;;  %v11231_v14 = vld [vmem:[%s8517_s19 + $0x278] sm:$0x1] }
 0x402   : > { %14023 = vst [vmem:[#allocation117_spill] sm:$0xff] %v11231_v14 }
 0x403   : > { %v2445_v48 = vpop.f32.mrf.mxu1 }
 0x404   : > { %v4475_v57 = vpop.f32.mrf.mxu0  ;;  %v3955_v0 = vpop.f32.mrf.mxu3  ;;  %v2446_v51 = vadd.f32 %v2445_v48, %v14021_v46 }
 0x405   : > { %v4164_v4 = vadd.f32 %v3955_v0, %v3686_v15  ;;  %v14025_v15 = vld [vmem:[#allocation10_spill] sm:$0xff] }
 0x406   : > { %v3489_v37 = vpop.f32.mrf.mxu2  ;;  %v3689_v26 = vadd.f32 %v3484_v17, %v2446_v51  ;;  %v13206_v17 = vunpack.c.l.bf16 %v11228_v21 }
 0x407   : > { %v11224_v20 = vadd.f32 %v4473_v39, %v4164_v4  ;;  %v14029_v4 = vld [vmem:[#allocation21_spill] sm:$0xff] }
 0x408   : > { %7709 = vmatmul.msk.bf16.gmra.mxu2 %vm1523_vm2, %v3070_v45  ;;  %v14026_v45 = vld [vmem:[#allocation20_spill] sm:$0xff]  ;;  %v14030_v51 = vunpack.c.l.bf16 %v14029_v4  ;;  %v4240_v16 = vrot.slane %v13206_v17, 1 }
 0x409   : > { %14022 = vst [vmem:[#allocation107_spill] sm:$0xff] %v11224_v20  ;;  %v14027_v41 = vunpack.c.l.bf16 %v14026_v45 }
 0x40b   : > { %v2448_v7 = vpop.f32.mrf.mxu1  ;;  %v2819_v0 = vrot.slane %v14027_v41, 2  ;;  %v14033_v41 = vunpack.c.l.bf16 %v11231_v14 }
 0x40c   : > { %v4478_v36 = vpop.f32.mrf.mxu0  ;;  %v3957_v47 = vpop.f32.mrf.mxu3  ;;  %v2449_v30 = vadd.f32 %v2448_v7, %v14024_v40  ;;  %7837 = vmatmul.msk.bf16.gmra.mxu0 %vm1523_vm2, %v14025_v15 }
 0x40d   : > { %v4165_v52 = vadd.f32 %v3957_v47, %v3687_v32  ;;  %v14028_v32 = vunpack.c.h.bf16 %v14026_v45  ;;  %v2822_v47 = vrot.slane %v14030_v51, 2  ;;  %v4243_v15 = vrot.slane %v14033_v41, 1 }
 0x40e   : > { %v3492_v46 = vpop.f32.mrf.mxu2  ;;  %v3690_v48 = vadd.f32 %v3487_v10, %v2449_v30  ;;  %7643 = vmatmul.msk.bf16.gmra.mxu1 %vm1523_vm2, %v14004_v38  ;;  %v14032_v30 = vunpack.c.h.bf16 %v11228_v21 }
 0x40f   : > { %v2820_v7 = vrot.slane %v14028_v32, 2  ;;  %v11247_v40 = vadd.f32 %v4475_v57, %v4165_v52 }
 0x410   : > { %v4241_v10 = vrot.slane %v14032_v30, 1 }
 0x411   : > { %14031 = vst [vmem:[#allocation114_spill] sm:$0xff] %v11247_v40  ;;  %7772 = vmatmul.msk.bf16.gmra.mxu3 %vm1523_vm2, %v14004_v38  ;;  %v2821_v32 = vsel %vm2573_vm3, %v2819_v0, %v2820_v7  ;;  %v2823_v4 = vsel %vm2573_vm3, %v2820_v7, %v2822_v47  ;;  %v14034_v40 = vld [vmem:[#allocation218_spill] sm:$0xff] }
 0x412   : > { %v4242_v62 = vsel %vm1008_vm1, %v4240_v16, %v4241_v10  ;;  %v4244_v17 = vsel %vm1008_vm1, %v4241_v10, %v4243_v15  ;;  %v11262_v63 = vpack.c.bf16 %v2823_v4, %v2821_v32  ;;  %v14038_v16 = vld [vmem:[#allocation31_spill] sm:$0xff]  ;;  %v14041_v32 = vld [vmem:[#allocation32_spill] sm:$0xff] }
 0x413   : > { %v2450_v57 = vpop.f32.mrf.mxu1  ;;  %v11266_v41 = vpack.c.bf16 %v4244_v17, %v4242_v62  ;;  %v14039_v10 = vunpack.c.l.bf16 %v14038_v16  ;;  %v14040_v62 = vunpack.c.h.bf16 %v14038_v16  ;;  %v14042_v4 = vunpack.c.l.bf16 %v14041_v32 }
 0x414   : > { %v4480_v39 = vpop.f32.mrf.mxu0  ;;  %v3960_v51 = vpop.f32.mrf.mxu3  ;;  %v2451_v20 = vadd.f32 %v2450_v57, %v14034_v40  ;;  %14035 = vst [vmem:[#allocation124_spill] sm:$0xff] %v11262_v63  ;;  %v14037_v40 = vld [vmem:[#allocation222_spill] sm:$0xff] }
 0x415   : > { %v4166_v52 = vadd.f32 %v3960_v51, %v3688_v2  ;;  %14036 = vst [vmem:[#allocation134_spill] sm:$0xff] %v11266_v41  ;;  %v2825_v17 = vrot.slane %v14040_v62, 2  ;;  %v2827_v57 = vrot.slane %v14042_v4, 2 }
 0x416   : > { %v3494_v38 = vpop.f32.mrf.mxu2  ;;  %v3691_v30 = vadd.f32 %v3489_v37, %v2451_v20  ;;  %v2824_v37 = vrot.slane %v14039_v10, 2  ;;  %v14044_v10 = vld [vmem:[#allocation224_spill] sm:$0xff] }
 0x417   : > { %v11264_v14 = vadd.f32 %v4478_v36, %v4166_v52  ;;  %v8389_v36 = vld [vmem:[%s8517_s19 + $0x288] sm:$0xff]  }
 0x418   : > { %7710 = vmatmul.msk.bf16.gmra.mxu2 %vm1523_vm2, %v11262_v63 }
 0x41b   : > { %v2453_v7 = vpop.f32.mrf.mxu1 }
 0x41c   : > { %v4483_v0 = vpop.f32.mrf.mxu0  ;;  %v3962_v2 = vpop.f32.mrf.mxu3  ;;  %v2454_v51 = vadd.f32 %v2453_v7, %v14037_v40  ;;  %7838 = vmatmul.msk.bf16.gmra.mxu0 %vm1523_vm2, %v11266_v41  ;;  %v2828_v7 = vsel %vm2573_vm3, %v2825_v17, %v2827_v57  ;;  %v14047_v41 = vld [vmem:[#allocation227_spill] sm:$0xff]  ;;  %v14048_v57 = vld [vmem:[#allocation28_spill] sm:$0xff] }
 0x41d   : > { %v4167_v47 = vadd.f32 %v3962_v2, %v3689_v26  ;;  %v2826_v2 = vsel %vm2573_vm3, %v2824_v37, %v2825_v17 }
 0x41e   : > { %v3497_v15 = vpop.f32.mrf.mxu2  ;;  %v3692_v20 = vadd.f32 %v3492_v46, %v2454_v51  ;;  %7644 = vmatmul.msk.bf16.gmra.mxu1 %vm1523_vm2, %v8389_v36  ;;  %v11288_v62 = vpack.c.bf16 %v2828_v7, %v2826_v2 }
 0x41f   : > { %v11281_v26 = vadd.f32 %v4480_v39, %v4167_v47 }
 0x420   : > { %14045 = vst [vmem:[#allocation132_spill] sm:$0xff] %v11288_v62 }
 0x421   : > { %14043 = vst [vmem:[#allocation135_spill] sm:$0xff] %v11281_v26  ;;  %7773 = vmatmul.msk.bf16.gmra.mxu3 %vm1523_vm2, %v11228_v21 }
 0x423   : > { %v2455_v40 = vpop.f32.mrf.mxu1 }
 0x424   : > { %v4485_v52 = vpop.f32.mrf.mxu0  ;;  %v3965_v46 = vpop.f32.mrf.mxu3  ;;  %v2456_v36 = vadd.f32 %v2455_v40, %v14044_v10 }
 0x425   : > { %v4168_v51 = vadd.f32 %v3965_v46, %v3690_v48  ;;  %v14049_v46 = vld [vmem:[#allocation41_spill] sm:$0xff] }
 0x426   : > { %v3499_v16 = vpop.f32.mrf.mxu2  ;;  %v3693_v32 = vadd.f32 %v3494_v38, %v2456_v36  ;;  %v14050_v40 = vunpack.c.l.bf16 %v14049_v46  ;;  %v14051_v38 = vunpack.c.h.bf16 %v14049_v46 }
 0x427   : > { %v11290_v4 = vadd.f32 %v4483_v0, %v4168_v51  ;;  %v14052_v51 = vld [vmem:[#allocation42_spill] sm:$0xff] }
 0x428   : > { %7711 = vmatmul.msk.bf16.gmra.mxu2 %vm1523_vm2, %v11288_v62  ;;  %v2829_v2 = vrot.slane %v14050_v40, 2  ;;  %v2830_v0 = vrot.slane %v14051_v38, 2  ;;  %v14053_v10 = vunpack.c.l.bf16 %v14052_v51  ;;  %v14055_v40 = vld [vmem:[#allocation229_spill] sm:$0xff] }
 0x429   : > { %14046 = vst [vmem:[#allocation143_spill] sm:$0xff] %v11290_v4 }
 0x42a   : > { %v2832_v36 = vrot.slane %v14053_v10, 2 }
 0x42b   : > { %v2458_v63 = vpop.f32.mrf.mxu1 }
 0x42c   : > { %v4488_v39 = vpop.f32.mrf.mxu0  ;;  %v3967_v47 = vpop.f32.mrf.mxu3  ;;  %v2459_v17 = vadd.f32 %v2458_v63, %v14047_v41  ;;  %7839 = vmatmul.msk.bf16.gmra.mxu0 %vm1523_vm2, %v14048_v57  ;;  %v2831_v41 = vsel %vm2573_vm3, %v2829_v2, %v2830_v0 }
 0x42d   : > { %v4169_v37 = vadd.f32 %v3967_v47, %v3691_v30  ;;  %v2833_v47 = vsel %vm2573_vm3, %v2830_v0, %v2832_v36  ;;  %v14058_v0 = vld [vmem:[#allocation232_spill] sm:$0xff] }
 0x42e   : > { %v3502_v48 = vpop.f32.mrf.mxu2  ;;  %v3694_v7 = vadd.f32 %v3497_v15, %v2459_v17  ;;  %7645 = vmatmul.msk.bf16.gmra.mxu1 %vm1523_vm2, %v14026_v45  ;;  %v11312_v4 = vpack.c.bf16 %v2833_v47, %v2831_v41 }
 0x42f   : > { %v11305_v30 = vadd.f32 %v4485_v52, %v4169_v37 }
 0x430   : > { %14056 = vst [vmem:[#allocation151_spill] sm:$0xff] %v11312_v4 }
 0x431   : > { %14054 = vst [vmem:[#allocation154_spill] sm:$0xff] %v11305_v30  ;;  %7774 = vmatmul.msk.bf16.gmra.mxu3 %vm1523_vm2, %v14026_v45  ;;  %v14059_v30 = vld [vmem:[#allocation38_spill] sm:$0xff] }
 0x433   : > { %v2460_v17 = vpop.f32.mrf.mxu1 }
 0x434   : > { %v4490_v63 = vpop.f32.mrf.mxu0  ;;  %v3970_v15 = vpop.f32.mrf.mxu3  ;;  %v2461_v62 = vadd.f32 %v2460_v17, %v14055_v40 }
 0x435   : > { %v4170_v57 = vadd.f32 %v3970_v15, %v3692_v20  ;;  %v14060_v15 = vld [vmem:[#allocation52_spill] sm:$0xff] }
 0x436   : > { %v3504_v38 = vpop.f32.mrf.mxu2  ;;  %v3695_v51 = vadd.f32 %v3499_v16, %v2461_v62  ;;  %v14061_v17 = vunpack.c.l.bf16 %v14060_v15  ;;  %v8390_v16 = vld [vmem:[%s8517_s19 + $0x2a0] sm:$0xff]   ;;  %v14062_v62 = vunpack.c.h.bf16 %v14060_v15 }
 0x437   : > { %v11314_v52 = vadd.f32 %v4488_v39, %v4170_v57  ;;  %v14063_v57 = vld [vmem:[#allocation53_spill] sm:$0xff] }
 0x438   : > { %7712 = vmatmul.msk.bf16.gmra.mxu2 %vm1523_vm2, %v11312_v4  ;;  %v2834_v41 = vrot.slane %v14061_v17, 2  ;;  %v2835_v39 = vrot.slane %v14062_v62, 2  ;;  %v14064_v40 = vunpack.c.l.bf16 %v14063_v57 }
 0x439   : > { %14057 = vst [vmem:[#allocation163_spill] sm:$0xff] %v11314_v52 }
 0x43a   : > { %v2837_v4 = vrot.slane %v14064_v40, 2  ;;  %v14069_v40 = vld [vmem:[#allocation237_spill] sm:$0xff] }
 0x43b   : > { %v2463_v2 = vpop.f32.mrf.mxu1 }
 0x43c   : > { %v4493_v37 = vpop.f32.mrf.mxu0  ;;  %v3972_v45 = vpop.f32.mrf.mxu3  ;;  %v2464_v36 = vadd.f32 %v2463_v2, %v14058_v0  ;;  %7840 = vmatmul.msk.bf16.gmra.mxu0 %vm1523_vm2, %v14059_v30  ;;  %v2836_v2 = vsel %vm2573_vm3, %v2834_v41, %v2835_v39  ;;  %v2838_v0 = vsel %vm2573_vm3, %v2835_v39, %v2837_v4  ;;  %v14066_v30 = vld [vmem:[#allocation234_spill] sm:$0xff]  ;;  %v14070_v39 = vld [vmem:[#allocation49_spill] sm:$0xff] }
 0x43d   : > { %v4171_v10 = vadd.f32 %v3972_v45, %v3693_v32  ;;  %v11335_v15 = vpack.c.bf16 %v2838_v0, %v2836_v2 }
 0x43e   : > { %v3507_v20 = vpop.f32.mrf.mxu2  ;;  %v3696_v47 = vadd.f32 %v3502_v48, %v2464_v36  ;;  %7646 = vmatmul.msk.bf16.gmra.mxu1 %vm1523_vm2, %v8390_v16 }
 0x43f   : > { %v11329_v32 = vadd.f32 %v4490_v63, %v4171_v10  ;;  %14067 = vst [vmem:[#allocation174_spill] sm:$0xff] %v11335_v15 }
 0x441   : > { %14065 = vst [vmem:[#allocation173_spill] sm:$0xff] %v11329_v32  ;;  %7775 = vmatmul.msk.bf16.gmra.mxu3 %vm1523_vm2, %v8390_v16  ;;  %v14081_v32 = vld [vmem:[#allocation59_spill] sm:$0xff] }
 0x443   : > { %v2465_v48 = vpop.f32.mrf.mxu1 }
 0x444   : > { %v4495_v45 = vpop.f32.mrf.mxu0  ;;  %v3975_v17 = vpop.f32.mrf.mxu3  ;;  %v2466_v52 = vadd.f32 %v2465_v48, %v14066_v30  ;;  %v14071_v30 = vld [vmem:[#allocation62_spill] sm:$0xff] }
 0x445   : > { %v4172_v36 = vadd.f32 %v3975_v17, %v3694_v7  ;;  %v14072_v17 = vunpack.c.l.bf16 %v14071_v30 }
 0x446   : > { %v3509_v26 = vpop.f32.mrf.mxu2  ;;  %v3697_v62 = vadd.f32 %v3504_v38, %v2466_v52  ;;  %v14073_v38 = vunpack.c.h.bf16 %v14071_v30 }
 0x447   : > { %v11337_v57 = vadd.f32 %v4493_v37, %v4172_v36  ;;  %v2839_v2 = vrot.slane %v14072_v17, 2  ;;  %v14074_v37 = vld [vmem:[#allocation63_spill] sm:$0xff] }
 0x448   : > { %7713 = vmatmul.msk.bf16.gmra.mxu2 %vm1523_vm2, %v11335_v15  ;;  %v2840_v52 = vrot.slane %v14073_v38, 2  ;;  %v14075_v48 = vunpack.c.l.bf16 %v14074_v37  ;;  %v14077_v15 = vld [vmem:[#allocation239_spill] sm:$0xff] }
 0x449   : > { %14068 = vst [vmem:[#allocation171_spill] sm:$0xff] %v11337_v57 }
 0x44a   : > { %v2842_v36 = vrot.slane %v14075_v48, 2 }
 0x44b   : > { %v2468_v16 = vpop.f32.mrf.mxu1 }
 0x44c   : > { %v4498_v63 = vpop.f32.mrf.mxu0  ;;  %v3977_v10 = vpop.f32.mrf.mxu3  ;;  %v2469_v4 = vadd.f32 %v2468_v16, %v14069_v40  ;;  %7841 = vmatmul.msk.bf16.gmra.mxu0 %vm1523_vm2, %v14070_v39  ;;  %v2841_v16 = vsel %vm2573_vm3, %v2839_v2, %v2840_v52  ;;  %v2843_v40 = vsel %vm2573_vm3, %v2840_v52, %v2842_v36  ;;  %v14080_v52 = vld [vmem:[#allocation242_spill] sm:$0xff] }
 0x44d   : > { %v4173_v41 = vadd.f32 %v3977_v10, %v3695_v51  ;;  %v11359_v57 = vpack.c.bf16 %v2843_v40, %v2841_v16 }
 0x44e   : > { %v3512_v7 = vpop.f32.mrf.mxu2  ;;  %v3698_v0 = vadd.f32 %v3507_v20, %v2469_v4  ;;  %7647 = vmatmul.msk.bf16.gmra.mxu1 %vm1523_vm2, %v14049_v46 }
 0x44f   : > { %v11352_v51 = vadd.f32 %v4495_v45, %v4173_v41  ;;  %14078 = vst [vmem:[#allocation5_spill] sm:$0xff] %v11359_v57 }
 0x451   : > { %14076 = vst [vmem:[#allocation183_spill] sm:$0xff] %v11352_v51  ;;  %7776 = vmatmul.msk.bf16.gmra.mxu3 %vm1523_vm2, %v14049_v46 }
 0x453   : > { %v2470_v4 = vpop.f32.mrf.mxu1 }
 0x454   : > { %v4500_v10 = vpop.f32.mrf.mxu0  ;;  %v3980_v20 = vpop.f32.mrf.mxu3  ;;  %v2471_v39 = vadd.f32 %v2470_v4, %v14077_v15  ;;  %v14082_v15 = vld [vmem:[#allocation73_spill] sm:$0xff]  ;;  %v14085_v4 = vld [vmem:[#allocation74_spill] sm:$0xff] }
 0x455   : > { %v4174_v17 = vadd.f32 %v3980_v20, %v3696_v47  ;;  %v14083_v20 = vunpack.c.l.bf16 %v14082_v15 }
 0x456   : > { %v3514_v38 = vpop.f32.mrf.mxu2  ;;  %v3699_v37 = vadd.f32 %v3509_v26, %v2471_v39  ;;  %v8391_v26 = vld [vmem:[%s8517_s19 + $0x2b8] sm:$0xff]  }
 0x457   : > { %v11361_v45 = vadd.f32 %v4498_v63, %v4174_v17  ;;  %v2844_v16 = vrot.slane %v14083_v20, 2  ;;  %v14084_v63 = vunpack.c.h.bf16 %v14082_v15  ;;  %v14086_v17 = vunpack.c.l.bf16 %v14085_v4 }
 0x458   : > { %7714 = vmatmul.msk.bf16.gmra.mxu2 %vm1523_vm2, %v11359_v57 }
 0x459   : > { %14079 = vst [vmem:[#allocation191_spill] sm:$0xff] %v11361_v45  ;;  %v2845_v39 = vrot.slane %v14084_v63, 2  ;;  %v2847_v57 = vrot.slane %v14086_v17, 2  ;;  %v14091_v17 = vld [vmem:[#allocation247_spill] sm:$0xff] }
 0x45b   : > { %v2473_v2 = vpop.f32.mrf.mxu1 }
 0x45c   : > { %v4503_v41 = vpop.f32.mrf.mxu0  ;;  %v3982_v48 = vpop.f32.mrf.mxu3  ;;  %v2474_v36 = vadd.f32 %v2473_v2, %v14080_v52  ;;  %7842 = vmatmul.msk.bf16.gmra.mxu0 %vm1523_vm2, %v14081_v32  ;;  %v2846_v2 = vsel %vm2573_vm3, %v2844_v16, %v2845_v39  ;;  %v2848_v52 = vsel %vm2573_vm3, %v2845_v39, %v2847_v57  ;;  %v14088_v32 = vld [vmem:[#allocation244_spill] sm:$0xff]  ;;  %v14092_v39 = vld [vmem:[#allocation70_spill] sm:$0xff] }
 0x45d   : > { %v4175_v51 = vadd.f32 %v3982_v48, %v3697_v62  ;;  %v11382_v15 = vpack.c.bf16 %v2848_v52, %v2846_v2 }
 0x45e   : > { %v3517_v47 = vpop.f32.mrf.mxu2  ;;  %v3700_v40 = vadd.f32 %v3512_v7, %v2474_v36  ;;  %7648 = vmatmul.msk.bf16.gmra.mxu1 %vm1523_vm2, %v8391_v26 }
 0x45f   : > { %v11376_v62 = vadd.f32 %v4500_v10, %v4175_v51  ;;  %14089 = vst [vmem:[#allocation11_spill] sm:$0xff] %v11382_v15 }
 0x461   : > { %14087 = vst [vmem:[#allocation199_spill] sm:$0xff] %v11376_v62  ;;  %7777 = vmatmul.msk.bf16.gmra.mxu3 %vm1523_vm2, %v8391_v26  ;;  %v14103_v62 = vld [vmem:[#allocation80_spill] sm:$0xff] }
 0x463   : > { %v2475_v7 = vpop.f32.mrf.mxu1 }
 0x464   : > { %v4505_v48 = vpop.f32.mrf.mxu0  ;;  %v3985_v20 = vpop.f32.mrf.mxu3  ;;  %v2476_v45 = vadd.f32 %v2475_v7, %v14088_v32  ;;  %v14093_v32 = vld [vmem:[#allocation83_spill] sm:$0xff] }
 0x465   : > { %v4176_v36 = vadd.f32 %v3985_v20, %v3698_v0  ;;  %v14094_v20 = vunpack.c.l.bf16 %v14093_v32 }
 0x466   : > { %v3519_v46 = vpop.f32.mrf.mxu2  ;;  %v3701_v63 = vadd.f32 %v3514_v38, %v2476_v45  ;;  %v14095_v38 = vunpack.c.h.bf16 %v14093_v32 }
 0x467   : > { %v11384_v4 = vadd.f32 %v4503_v41, %v4176_v36  ;;  %v2849_v2 = vrot.slane %v14094_v20, 2  ;;  %v14096_v41 = vld [vmem:[#allocation84_spill] sm:$0xff] }
 0x468   : > { %7715 = vmatmul.msk.bf16.gmra.mxu2 %vm1523_vm2, %v11382_v15  ;;  %v2850_v45 = vrot.slane %v14095_v38, 2  ;;  %v14097_v7 = vunpack.c.l.bf16 %v14096_v41  ;;  %v14099_v15 = vld [vmem:[#allocation250_spill] sm:$0xff] }
 0x469   : > { %14090 = vst [vmem:[#allocation12_spill] sm:$0xff] %v11384_v4 }
 0x46a   : > { %v2852_v36 = vrot.slane %v14097_v7, 2 }
 0x46b   : > { %v2478_v26 = vpop.f32.mrf.mxu1 }
 0x46c   : > { %v4508_v51 = vpop.f32.mrf.mxu0  ;;  %v3987_v10 = vpop.f32.mrf.mxu3  ;;  %v2479_v57 = vadd.f32 %v2478_v26, %v14091_v17  ;;  %7843 = vmatmul.msk.bf16.gmra.mxu0 %vm1523_vm2, %v14092_v39  ;;  %v2851_v26 = vsel %vm2573_vm3, %v2849_v2, %v2850_v45  ;;  %v2853_v17 = vsel %vm2573_vm3, %v2850_v45, %v2852_v36  ;;  %v14102_v45 = vld [vmem:[#allocation254_spill] sm:$0xff] }
 0x46d   : > { %v4177_v16 = vadd.f32 %v3987_v10, %v3699_v37  ;;  %v11406_v4 = vpack.c.bf16 %v2853_v17, %v2851_v26 }
 0x46e   : > { %v3522_v0 = vpop.f32.mrf.mxu2  ;;  %v3702_v52 = vadd.f32 %v3517_v47, %v2479_v57  ;;  %7649 = vmatmul.msk.bf16.gmra.mxu1 %vm1523_vm2, %v14071_v30 }
 0x46f   : > { %v11399_v37 = vadd.f32 %v4505_v48, %v4177_v16  ;;  %14100 = vst [vmem:[#allocation212_spill] sm:$0xff] %v11406_v4 }
 0x471   : > { %14098 = vst [vmem:[#allocation206_spill] sm:$0xff] %v11399_v37  ;;  %7778 = vmatmul.msk.bf16.gmra.mxu3 %vm1523_vm2, %v14071_v30 }
 0x473   : > { %v2480_v57 = vpop.f32.mrf.mxu1 }
 0x474   : > { %v4510_v10 = vpop.f32.mrf.mxu0  ;;  %v3990_v47 = vpop.f32.mrf.mxu3  ;;  %v2481_v39 = vadd.f32 %v2480_v57, %v14099_v15  ;;  %v14104_v15 = vld [vmem:[#allocation95_spill] sm:$0xff]  ;;  %v14107_v57 = vld [vmem:[#allocation96_spill] sm:$0xff] }
 0x475   : > { %v4178_v20 = vadd.f32 %v3990_v47, %v3700_v40  ;;  %v14105_v47 = vunpack.c.l.bf16 %v14104_v15 }
 0x476   : > { %v3524_v38 = vpop.f32.mrf.mxu2  ;;  %v3703_v41 = vadd.f32 %v3519_v46, %v2481_v39  ;;  %v8392_v46 = vld [vmem:[%s8517_s19 + $0x2d0] sm:$0xff]  }
 0x477   : > { %v11408_v48 = vadd.f32 %v4508_v51, %v4178_v20  ;;  %v2854_v26 = vrot.slane %v14105_v47, 2  ;;  %v14106_v51 = vunpack.c.h.bf16 %v14104_v15  ;;  %v14108_v20 = vunpack.c.l.bf16 %v14107_v57 }
 0x478   : > { %7716 = vmatmul.msk.bf16.gmra.mxu2 %vm1523_vm2, %v11406_v4 }
 0x479   : > { %14101 = vst [vmem:[#allocation20_spill] sm:$0xff] %v11408_v48  ;;  %v2855_v39 = vrot.slane %v14106_v51, 2  ;;  %v2857_v4 = vrot.slane %v14108_v20, 2  ;;  %v14113_v20 = vld [vmem:[#allocation97_spill] sm:$0xff] }
 0x47b   : > { %v2483_v2 = vpop.f32.mrf.mxu1 }
 0x47c   : > { %v4513_v16 = vpop.f32.mrf.mxu0  ;;  %v3992_v7 = vpop.f32.mrf.mxu3  ;;  %v2484_v36 = vadd.f32 %v2483_v2, %v14102_v45  ;;  %7844 = vmatmul.msk.bf16.gmra.mxu0 %vm1523_vm2, %v14103_v62  ;;  %v2856_v2 = vsel %vm2573_vm3, %v2854_v26, %v2855_v39  ;;  %v2858_v45 = vsel %vm2573_vm3, %v2855_v39, %v2857_v4  ;;  %v14110_v62 = vld [vmem:[#allocation257_spill] sm:$0xff]  ;;  %v14114_v39 = vld [vmem:[#allocation92_spill] sm:$0xff] }
 0x47d   : > { %v4179_v37 = vadd.f32 %v3992_v7, %v3701_v63  ;;  %v11429_v15 = vpack.c.bf16 %v2858_v45, %v2856_v2 }
 0x47e   : > { %v3527_v40 = vpop.f32.mrf.mxu2  ;;  %v3704_v17 = vadd.f32 %v3522_v0, %v2484_v36  ;;  %7650 = vmatmul.msk.bf16.gmra.mxu1 %vm1523_vm2, %v8392_v46 }
 0x47f   : > { %v11423_v63 = vadd.f32 %v4510_v10, %v4179_v37  ;;  %14111 = vst [vmem:[#allocation218_spill] sm:$0xff] %v11429_v15 }
 0x481   : > { %14109 = vst [vmem:[#allocation21_spill] sm:$0xff] %v11423_v63  ;;  %7779 = vmatmul.msk.bf16.gmra.mxu3 %vm1523_vm2, %v8392_v46  ;;  %v14125_v63 = vld [vmem:[#allocation106_spill] sm:$0xff] }
 0x483   : > { %v2485_v0 = vpop.f32.mrf.mxu1 }
 0x484   : > { %v4515_v7 = vpop.f32.mrf.mxu0  ;;  %v3995_v47 = vpop.f32.mrf.mxu3  ;;  %v2486_v48 = vadd.f32 %v2485_v0, %v14110_v62  ;;  %v14115_v62 = vld [vmem:[#allocation110_spill] sm:$0xff] }
 0x485   : > { %v4180_v36 = vadd.f32 %v3995_v47, %v3702_v52  ;;  %v14116_v47 = vunpack.c.l.bf16 %v14115_v62 }
 0x486   : > { %v3529_v30 = vpop.f32.mrf.mxu2  ;;  %v3705_v51 = vadd.f32 %v3524_v38, %v2486_v48  ;;  %v14117_v38 = vunpack.c.h.bf16 %v14115_v62 }
 0x487   : > { %v11431_v57 = vadd.f32 %v4513_v16, %v4180_v36  ;;  %v2859_v2 = vrot.slane %v14116_v47, 2  ;;  %v14118_v16 = vld [vmem:[#allocation111_spill] sm:$0xff] }
 0x488   : > { %7717 = vmatmul.msk.bf16.gmra.mxu2 %vm1523_vm2, %v11429_v15  ;;  %v2860_v48 = vrot.slane %v14117_v38, 2  ;;  %v14119_v0 = vunpack.c.l.bf16 %v14118_v16  ;;  %v14121_v15 = vld [vmem:[#allocation104_spill] sm:$0xff] }
 0x489   : > { %14112 = vst [vmem:[#allocation222_spill] sm:$0xff] %v11431_v57 }
 0x48a   : > { %v2862_v36 = vrot.slane %v14119_v0, 2 }
 0x48b   : > { %v2488_v46 = vpop.f32.mrf.mxu1 }
 0x48c   : > { %v4518_v37 = vpop.f32.mrf.mxu0  ;;  %v3997_v10 = vpop.f32.mrf.mxu3  ;;  %v2489_v4 = vadd.f32 %v2488_v46, %v14113_v20  ;;  %7845 = vmatmul.msk.bf16.gmra.mxu0 %vm1523_vm2, %v14114_v39  ;;  %v2861_v46 = vsel %vm2573_vm3, %v2859_v2, %v2860_v48  ;;  %v2863_v20 = vsel %vm2573_vm3, %v2860_v48, %v2862_v36  ;;  %v14124_v48 = vld [vmem:[#allocation112_spill] sm:$0xff] }
 0x48d   : > { %v4181_v26 = vadd.f32 %v3997_v10, %v3703_v41  ;;  %v11453_v57 = vpack.c.bf16 %v2863_v20, %v2861_v46 }
 0x48e   : > { %v3532_v52 = vpop.f32.mrf.mxu2  ;;  %v3706_v45 = vadd.f32 %v3527_v40, %v2489_v4  ;;  %7651 = vmatmul.msk.bf16.gmra.mxu1 %vm1523_vm2, %v14093_v32 }
 0x48f   : > { %v11446_v41 = vadd.f32 %v4515_v7, %v4181_v26  ;;  %14122 = vst [vmem:[#allocation32_spill] sm:$0xff] %v11453_v57 }
 0x491   : > { %14120 = vst [vmem:[#allocation31_spill] sm:$0xff] %v11446_v41  ;;  %7780 = vmatmul.msk.bf16.gmra.mxu3 %vm1523_vm2, %v14093_v32 }
 0x493   : > { %v2490_v4 = vpop.f32.mrf.mxu1 }
 0x494   : > { %v4520_v10 = vpop.f32.mrf.mxu0  ;;  %v4000_v40 = vpop.f32.mrf.mxu3  ;;  %v2491_v39 = vadd.f32 %v2490_v4, %v14121_v15  ;;  %v14126_v15 = vld [vmem:[#allocation127_spill] sm:$0xff]  ;;  %v14129_v4 = vld [vmem:[#allocation128_spill] sm:$0xff] }
 0x495   : > { %v4182_v47 = vadd.f32 %v4000_v40, %v3704_v17  ;;  %v14127_v40 = vunpack.c.l.bf16 %v14126_v15 }
 0x496   : > { %v3534_v38 = vpop.f32.mrf.mxu2  ;;  %v3707_v16 = vadd.f32 %v3529_v30, %v2491_v39  ;;  %v8393_v30 = vld [vmem:[%s8517_s19 + $0x2e8] sm:$0xff]  }
 0x497   : > { %v11455_v7 = vadd.f32 %v4518_v37, %v4182_v47  ;;  %v2864_v46 = vrot.slane %v14127_v40, 2  ;;  %v14128_v37 = vunpack.c.h.bf16 %v14126_v15  ;;  %v14130_v47 = vunpack.c.l.bf16 %v14129_v4 }
 0x498   : > { %7718 = vmatmul.msk.bf16.gmra.mxu2 %vm1523_vm2, %v11453_v57 }
 0x499   : > { %14123 = vst [vmem:[#allocation224_spill] sm:$0xff] %v11455_v7  ;;  %v2865_v39 = vrot.slane %v14128_v37, 2  ;;  %v2867_v57 = vrot.slane %v14130_v47, 2  ;;  %v14135_v47 = vld [vmem:[#allocation130_spill] sm:$0xff] }
 0x49b   : > { %v2493_v2 = vpop.f32.mrf.mxu1 }
 0x49c   : > { %v4523_v26 = vpop.f32.mrf.mxu0  ;;  %v4002_v0 = vpop.f32.mrf.mxu3  ;;  %v2494_v36 = vadd.f32 %v2493_v2, %v14124_v48  ;;  %7846 = vmatmul.msk.bf16.gmra.mxu0 %vm1523_vm2, %v14125_v63  ;;  %v2866_v2 = vsel %vm2573_vm3, %v2864_v46, %v2865_v39  ;;  %v2868_v48 = vsel %vm2573_vm3, %v2865_v39, %v2867_v57  ;;  %v14132_v63 = vld [vmem:[#allocation121_spill] sm:$0xff]  ;;  %v14136_v39 = vld [vmem:[#allocation123_spill] sm:$0xff] }
 0x49d   : > { %v4183_v41 = vadd.f32 %v4002_v0, %v3705_v51  ;;  %v11476_v15 = vpack.c.bf16 %v2868_v48, %v2866_v2 }
 0x49e   : > { %v3537_v17 = vpop.f32.mrf.mxu2  ;;  %v3708_v20 = vadd.f32 %v3532_v52, %v2494_v36  ;;  %7652 = vmatmul.msk.bf16.gmra.mxu1 %vm1523_vm2, %v8393_v30 }
 0x49f   : > { %v11470_v51 = vadd.f32 %v4520_v10, %v4183_v41  ;;  %14133 = vst [vmem:[#allocation28_spill] sm:$0xff] %v11476_v15 }
 0x4a1   : > { %14131 = vst [vmem:[#allocation227_spill] sm:$0xff] %v11470_v51  ;;  %7781 = vmatmul.msk.bf16.gmra.mxu3 %vm1523_vm2, %v8393_v30  ;;  %v14147_v51 = vld [vmem:[#allocation142_spill] sm:$0xff] }
 0x4a3   : > { %v2495_v52 = vpop.f32.mrf.mxu1 }
 0x4a4   : > { %v4525_v0 = vpop.f32.mrf.mxu0  ;;  %v4005_v40 = vpop.f32.mrf.mxu3  ;;  %v2496_v7 = vadd.f32 %v2495_v52, %v14132_v63  ;;  %v14137_v63 = vld [vmem:[#allocation146_spill] sm:$0xff] }
 0x4a5   : > { %v4184_v36 = vadd.f32 %v4005_v40, %v3706_v45  ;;  %v14138_v40 = vunpack.c.l.bf16 %v14137_v63 }
 0x4a6   : > { %v3539_v32 = vpop.f32.mrf.mxu2  ;;  %v3709_v37 = vadd.f32 %v3534_v38, %v2496_v7  ;;  %v14139_v38 = vunpack.c.h.bf16 %v14137_v63 }
 0x4a7   : > { %v11478_v4 = vadd.f32 %v4523_v26, %v4184_v36  ;;  %v2869_v2 = vrot.slane %v14138_v40, 2  ;;  %v14140_v26 = vld [vmem:[#allocation147_spill] sm:$0xff] }
 0x4a8   : > { %7719 = vmatmul.msk.bf16.gmra.mxu2 %vm1523_vm2, %v11476_v15  ;;  %v2870_v7 = vrot.slane %v14139_v38, 2  ;;  %v14141_v52 = vunpack.c.l.bf16 %v14140_v26  ;;  %v14143_v15 = vld [vmem:[#allocation140_spill] sm:$0xff] }
 0x4a9   : > { %14134 = vst [vmem:[#allocation42_spill] sm:$0xff] %v11478_v4 }
 0x4aa   : > { %v2872_v36 = vrot.slane %v14141_v52, 2 }
 0x4ab   : > { %v2498_v30 = vpop.f32.mrf.mxu1 }
 0x4ac   : > { %v4528_v41 = vpop.f32.mrf.mxu0  ;;  %v4007_v10 = vpop.f32.mrf.mxu3  ;;  %v2499_v57 = vadd.f32 %v2498_v30, %v14135_v47  ;;  %7847 = vmatmul.msk.bf16.gmra.mxu0 %vm1523_vm2, %v14136_v39  ;;  %v2871_v30 = vsel %vm2573_vm3, %v2869_v2, %v2870_v7  ;;  %v2873_v47 = vsel %vm2573_vm3, %v2870_v7, %v2872_v36  ;;  %v14146_v7 = vld [vmem:[#allocation149_spill] sm:$0xff] }
 0x4ad   : > { %v4185_v46 = vadd.f32 %v4007_v10, %v3707_v16  ;;  %v11500_v4 = vpack.c.bf16 %v2873_v47, %v2871_v30 }
 0x4ae   : > { %v3542_v45 = vpop.f32.mrf.mxu2  ;;  %v3710_v48 = vadd.f32 %v3537_v17, %v2499_v57  ;;  %7653 = vmatmul.msk.bf16.gmra.mxu1 %vm1523_vm2, %v14115_v62 }
 0x4af   : > { %v11493_v16 = vadd.f32 %v4525_v0, %v4185_v46  ;;  %14144 = vst [vmem:[#allocation232_spill] sm:$0xff] %v11500_v4 }
 0x4b1   : > { %14142 = vst [vmem:[#allocation229_spill] sm:$0xff] %v11493_v16  ;;  %7782 = vmatmul.msk.bf16.gmra.mxu3 %vm1523_vm2, %v14115_v62 }
 0x4b3   : > { %v2500_v57 = vpop.f32.mrf.mxu1 }
 0x4b4   : > { %v4530_v10 = vpop.f32.mrf.mxu0  ;;  %v4010_v17 = vpop.f32.mrf.mxu3  ;;  %v2501_v39 = vadd.f32 %v2500_v57, %v14143_v15  ;;  %v14148_v15 = vld [vmem:[#allocation166_spill] sm:$0xff]  ;;  %v14151_v57 = vld [vmem:[#allocation167_spill] sm:$0xff] }
 0x4b5   : > { %v4186_v40 = vadd.f32 %v4010_v17, %v3708_v20  ;;  %v14149_v17 = vunpack.c.l.bf16 %v14148_v15 }
 0x4b6   : > { %v3544_v38 = vpop.f32.mrf.mxu2  ;;  %v3711_v26 = vadd.f32 %v3539_v32, %v2501_v39  ;;  %v8394_v32 = vld [vmem:[%s8517_s19 + $0x300] sm:$0xff]  }
 0x4b7   : > { %v11502_v0 = vadd.f32 %v4528_v41, %v4186_v40  ;;  %v2874_v30 = vrot.slane %v14149_v17, 2  ;;  %v14150_v41 = vunpack.c.h.bf16 %v14148_v15  ;;  %v14152_v40 = vunpack.c.l.bf16 %v14151_v57 }
 0x4b8   : > { %7720 = vmatmul.msk.bf16.gmra.mxu2 %vm1523_vm2, %v11500_v4 }
 0x4b9   : > { %14145 = vst [vmem:[#allocation52_spill] sm:$0xff] %v11502_v0  ;;  %v2875_v39 = vrot.slane %v14150_v41, 2  ;;  %v2877_v4 = vrot.slane %v14152_v40, 2  ;;  %v14157_v40 = vld [vmem:[#allocation169_spill] sm:$0xff] }
 0x4bb   : > { %v2503_v2 = vpop.f32.mrf.mxu1 }
 0x4bc   : > { %v4533_v46 = vpop.f32.mrf.mxu0  ;;  %v4012_v52 = vpop.f32.mrf.mxu3  ;;  %v2504_v36 = vadd.f32 %v2503_v2, %v14146_v7  ;;  %7848 = vmatmul.msk.bf16.gmra.mxu0 %vm1523_vm2, %v14147_v51  ;;  %v2876_v2 = vsel %vm2573_vm3, %v2874_v30, %v2875_v39  ;;  %v2878_v7 = vsel %vm2573_vm3, %v2875_v39, %v2877_v4  ;;  %v14154_v51 = vld [vmem:[#allocation160_spill] sm:$0xff]  ;;  %v14158_v39 = vld [vmem:[#allocation162_spill] sm:$0xff] }
 0x4bd   : > { %v4187_v16 = vadd.f32 %v4012_v52, %v3709_v37  ;;  %v11523_v15 = vpack.c.bf16 %v2878_v7, %v2876_v2 }
 0x4be   : > { %v3547_v20 = vpop.f32.mrf.mxu2  ;;  %v3712_v47 = vadd.f32 %v3542_v45, %v2504_v36  ;;  %7654 = vmatmul.msk.bf16.gmra.mxu1 %vm1523_vm2, %v8394_v32 }
 0x4bf   : > { %v11517_v37 = vadd.f32 %v4530_v10, %v4187_v16  ;;  %14155 = vst [vmem:[#allocation234_spill] sm:$0xff] %v11523_v15 }
 0x4c1   : > { %14153 = vst [vmem:[#allocation53_spill] sm:$0xff] %v11517_v37  ;;  %7783 = vmatmul.msk.bf16.gmra.mxu3 %vm1523_vm2, %v8394_v32  ;;  %v14169_v37 = vld [vmem:[#allocation182_spill] sm:$0xff] }
 0x4c3   : > { %v2505_v45 = vpop.f32.mrf.mxu1 }
 0x4c4   : > { %v4535_v52 = vpop.f32.mrf.mxu0  ;;  %v4015_v17 = vpop.f32.mrf.mxu3  ;;  %v2506_v0 = vadd.f32 %v2505_v45, %v14154_v51  ;;  %v14159_v51 = vld [vmem:[#allocation186_spill] sm:$0xff] }
 0x4c5   : > { %v4188_v36 = vadd.f32 %v4015_v17, %v3710_v48  ;;  %v14160_v17 = vunpack.c.l.bf16 %v14159_v51 }
 0x4c6   : > { %v3549_v62 = vpop.f32.mrf.mxu2  ;;  %v3713_v41 = vadd.f32 %v3544_v38, %v2506_v0  ;;  %v14161_v38 = vunpack.c.h.bf16 %v14159_v51 }
 0x4c7   : > { %v11525_v57 = vadd.f32 %v4533_v46, %v4188_v36  ;;  %v2879_v2 = vrot.slane %v14160_v17, 2  ;;  %v14162_v46 = vld [vmem:[#allocation187_spill] sm:$0xff] }
 0x4c8   : > { %7721 = vmatmul.msk.bf16.gmra.mxu2 %vm1523_vm2, %v11523_v15  ;;  %v2880_v0 = vrot.slane %v14161_v38, 2  ;;  %v14163_v45 = vunpack.c.l.bf16 %v14162_v46  ;;  %v14165_v15 = vld [vmem:[#allocation180_spill] sm:$0xff] }
 0x4c9   : > { %14156 = vst [vmem:[#allocation237_spill] sm:$0xff] %v11525_v57 }
 0x4ca   : > { %v2882_v36 = vrot.slane %v14163_v45, 2 }
 0x4cb   : > { %v2508_v32 = vpop.f32.mrf.mxu1 }
 0x4cc   : > { %v4538_v16 = vpop.f32.mrf.mxu0  ;;  %v4017_v10 = vpop.f32.mrf.mxu3  ;;  %v2509_v4 = vadd.f32 %v2508_v32, %v14157_v40  ;;  %7849 = vmatmul.msk.bf16.gmra.mxu0 %vm1523_vm2, %v14158_v39  ;;  %v2881_v32 = vsel %vm2573_vm3, %v2879_v2, %v2880_v0  ;;  %v2883_v40 = vsel %vm2573_vm3, %v2880_v0, %v2882_v36  ;;  %v14168_v0 = vld [vmem:[#allocation189_spill] sm:$0xff] }
 0x4cd   : > { %v4189_v30 = vadd.f32 %v4017_v10, %v3711_v26  ;;  %v11547_v57 = vpack.c.bf16 %v2883_v40, %v2881_v32 }
 0x4ce   : > { %v3552_v48 = vpop.f32.mrf.mxu2  ;;  %v3714_v7 = vadd.f32 %v3547_v20, %v2509_v4  ;;  %7655 = vmatmul.msk.bf16.gmra.mxu1 %vm1523_vm2, %v14137_v63 }
 0x4cf   : > { %v11540_v26 = vadd.f32 %v4535_v52, %v4189_v30  ;;  %14166 = vst [vmem:[#allocation239_spill] sm:$0xff] %v11547_v57 }
 0x4d1   : > { %14164 = vst [vmem:[#allocation63_spill] sm:$0xff] %v11540_v26  ;;  %7784 = vmatmul.msk.bf16.gmra.mxu3 %vm1523_vm2, %v14137_v63 }
 0x4d3   : > { %v2510_v4 = vpop.f32.mrf.mxu1 }
 0x4d4   : > { %v4540_v10 = vpop.f32.mrf.mxu0  ;;  %v4020_v20 = vpop.f32.mrf.mxu3  ;;  %v2511_v39 = vadd.f32 %v2510_v4, %v14165_v15  ;;  %v14170_v15 = vld [vmem:[#allocation202_spill] sm:$0xff]  ;;  %v14173_v4 = vld [vmem:[#allocation203_spill] sm:$0xff] }
 0x4d5   : > { %v4190_v17 = vadd.f32 %v4020_v20, %v3712_v47  ;;  %v14171_v20 = vunpack.c.l.bf16 %v14170_v15 }
 0x4d6   : > { %v3554_v38 = vpop.f32.mrf.mxu2  ;;  %v3715_v46 = vadd.f32 %v3549_v62, %v2511_v39  ;;  %v8395_v62 = vld [vmem:[%s8517_s19 + $0x318] sm:$0xff]  }
 0x4d7   : > { %v11549_v52 = vadd.f32 %v4538_v16, %v4190_v17  ;;  %v2884_v32 = vrot.slane %v14171_v20, 2  ;;  %v14172_v16 = vunpack.c.h.bf16 %v14170_v15  ;;  %v14174_v17 = vunpack.c.l.bf16 %v14173_v4 }
 0x4d8   : > { %7722 = vmatmul.msk.bf16.gmra.mxu2 %vm1523_vm2, %v11547_v57 }
 0x4d9   : > { %14167 = vst [vmem:[#allocation242_spill] sm:$0xff] %v11549_v52  ;;  %v2885_v39 = vrot.slane %v14172_v16, 2  ;;  %v2887_v57 = vrot.slane %v14174_v17, 2  ;;  %v14179_v17 = vld [vmem:[#allocation204_spill] sm:$0xff] }
 0x4db   : > { %v2513_v2 = vpop.f32.mrf.mxu1 }
 0x4dc   : > { %v4543_v30 = vpop.f32.mrf.mxu0  ;;  %v4022_v45 = vpop.f32.mrf.mxu3  ;;  %v2514_v36 = vadd.f32 %v2513_v2, %v14168_v0  ;;  %7850 = vmatmul.msk.bf16.gmra.mxu0 %vm1523_vm2, %v14169_v37  ;;  %v2886_v2 = vsel %vm2573_vm3, %v2884_v32, %v2885_v39  ;;  %v2888_v0 = vsel %vm2573_vm3, %v2885_v39, %v2887_v57  ;;  %v14176_v37 = vld [vmem:[#allocation196_spill] sm:$0xff]  ;;  %v14180_v39 = vld [vmem:[#allocation198_spill] sm:$0xff] }
 0x4dd   : > { %v4191_v26 = vadd.f32 %v4022_v45, %v3713_v41  ;;  %v11570_v15 = vpack.c.bf16 %v2888_v0, %v2886_v2 }
 0x4de   : > { %v3557_v47 = vpop.f32.mrf.mxu2  ;;  %v3716_v40 = vadd.f32 %v3552_v48, %v2514_v36  ;;  %7656 = vmatmul.msk.bf16.gmra.mxu1 %vm1523_vm2, %v8395_v62 }
 0x4df   : > { %v11564_v41 = vadd.f32 %v4540_v10, %v4191_v26  ;;  %14177 = vst [vmem:[#allocation74_spill] sm:$0xff] %v11570_v15 }
 0x4e1   : > { %14175 = vst [vmem:[#allocation73_spill] sm:$0xff] %v11564_v41  ;;  %7785 = vmatmul.msk.bf16.gmra.mxu3 %vm1523_vm2, %v8395_v62  ;;  %v14191_v41 = vld [vmem:[#allocation211_spill] sm:$0xff] }
 0x4e3   : > { %v2515_v48 = vpop.f32.mrf.mxu1 }
 0x4e4   : > { %v4545_v45 = vpop.f32.mrf.mxu0  ;;  %v4025_v20 = vpop.f32.mrf.mxu3  ;;  %v2516_v52 = vadd.f32 %v2515_v48, %v14176_v37  ;;  %v14181_v37 = vld [vmem:[#allocation213_spill] sm:$0xff] }
 0x4e5   : > { %v4192_v36 = vadd.f32 %v4025_v20, %v3714_v7  ;;  %v14182_v20 = vunpack.c.l.bf16 %v14181_v37 }
 0x4e6   : > { %v3559_v63 = vpop.f32.mrf.mxu2  ;;  %v3717_v16 = vadd.f32 %v3554_v38, %v2516_v52  ;;  %v14183_v38 = vunpack.c.h.bf16 %v14181_v37 }
 0x4e7   : > { %v11572_v4 = vadd.f32 %v4543_v30, %v4192_v36  ;;  %v2889_v2 = vrot.slane %v14182_v20, 2  ;;  %v14184_v30 = vld [vmem:[#allocation214_spill] sm:$0xff] }
 0x4e8   : > { %7723 = vmatmul.msk.bf16.gmra.mxu2 %vm1523_vm2, %v11570_v15  ;;  %v2890_v52 = vrot.slane %v14183_v38, 2  ;;  %v14185_v48 = vunpack.c.l.bf16 %v14184_v30  ;;  %v14187_v15 = vld [vmem:[#allocation209_spill] sm:$0xff] }
 0x4e9   : > { %14178 = vst [vmem:[#allocation244_spill] sm:$0xff] %v11572_v4 }
 0x4ea   : > { %v2892_v36 = vrot.slane %v14185_v48, 2 }
 0x4eb   : > { %v2518_v62 = vpop.f32.mrf.mxu1 }
 0x4ec   : > { %v4548_v26 = vpop.f32.mrf.mxu0  ;;  %v4027_v10 = vpop.f32.mrf.mxu3  ;;  %v2519_v57 = vadd.f32 %v2518_v62, %v14179_v17  ;;  %7851 = vmatmul.msk.bf16.gmra.mxu0 %vm1523_vm2, %v14180_v39  ;;  %v2891_v62 = vsel %vm2573_vm3, %v2889_v2, %v2890_v52  ;;  %v2893_v17 = vsel %vm2573_vm3, %v2890_v52, %v2892_v36  ;;  %v14190_v52 = vld [vmem:[#allocation216_spill] sm:$0xff] }
 0x4ed   : > { %v4193_v32 = vadd.f32 %v4027_v10, %v3715_v46  ;;  %v11594_v4 = vpack.c.bf16 %v2893_v17, %v2891_v62  ;;  %v8396_v62 = vld [vmem:[%s8517_s19 + $0x330] sm:$0xff]  }
 0x4ee   : > { %v3562_v7 = vpop.f32.mrf.mxu2  ;;  %v3718_v0 = vadd.f32 %v3557_v47, %v2519_v57  ;;  %7657 = vmatmul.msk.bf16.gmra.mxu1 %vm1523_vm2, %v14159_v51 }
 0x4ef   : > { %v11587_v46 = vadd.f32 %v4545_v45, %v4193_v32  ;;  %14188 = vst [vmem:[#allocation84_spill] sm:$0xff] %v11594_v4 }
 0x4f1   : > { %14186 = vst [vmem:[#allocation247_spill] sm:$0xff] %v11587_v46  ;;  %7786 = vmatmul.msk.bf16.gmra.mxu3 %vm1523_vm2, %v14159_v51 }
 0x4f3   : > { %v2520_v57 = vpop.f32.mrf.mxu1 }
 0x4f4   : > { %v4550_v10 = vpop.f32.mrf.mxu0  ;;  %v4030_v47 = vpop.f32.mrf.mxu3  ;;  %v2521_v39 = vadd.f32 %v2520_v57, %v14187_v15 }
 0x4f5   : > { %v4194_v20 = vadd.f32 %v4030_v47, %v3716_v40  ;;  %v14193_v47 = vld [vmem:[#allocation220_spill] sm:$0xff] }
 0x4f6   : > { %v3564_v38 = vpop.f32.mrf.mxu2  ;;  %v3719_v30 = vadd.f32 %v3559_v63, %v2521_v39 }
 0x4f7   : > { %v11596_v45 = vadd.f32 %v4548_v26, %v4194_v20 }
 0x4f8   : > { %7724 = vmatmul.msk.bf16.gmra.mxu2 %vm1523_vm2, %v11594_v4 }
 0x4f9   : > { %14189 = vst [vmem:[#allocation250_spill] sm:$0xff] %v11596_v45 }
 0x4fb   : > { %v2523_v2 = vpop.f32.mrf.mxu1 }
 0x4fc   : > { %v4553_v32 = vpop.f32.mrf.mxu0  ;;  %v4032_v48 = vpop.f32.mrf.mxu3  ;;  %v2524_v36 = vadd.f32 %v2523_v2, %v14190_v52  ;;  %7852 = vmatmul.msk.bf16.gmra.mxu0 %vm1523_vm2, %v14191_v41  ;;  %v8397_v52 = vld [vmem:[%s8517_s19 + $0x18] sm:$0xff]  }
 0x4fd   : > { %v4195_v46 = vadd.f32 %v4032_v48, %v3717_v16 }
 0x4fe   : > { %v3567_v40 = vpop.f32.mrf.mxu2  ;;  %v3720_v15 = vadd.f32 %v3562_v7, %v2524_v36  ;;  %7658 = vmatmul.msk.bf16.gmra.mxu1 %vm1523_vm2, %v8396_v62  ;;  %v11614_v36 = vld [vmem:[%s8517_s19 + $0x348] sm:$0xff]  }
 0x4ff   : > { %v11605_v63 = vadd.f32 %v4550_v10, %v4195_v46  ;;  %v11617_v46 = vld [vmem:[%s8517_s19 + $0x350] sm:$0x1] }
 0x500   : > { %14195 = vst [vmem:[#allocation96_spill] sm:$0xff] %v11617_v46 }
 0x501   : > { %14192 = vst [vmem:[#allocation254_spill] sm:$0xff] %v11605_v63  ;;  %7787 = vmatmul.msk.bf16.gmra.mxu3 %vm1523_vm2, %v8396_v62  ;;  %v14196_v63 = vld [vmem:[#allocation223_spill] sm:$0xff] }
 0x503   : > { %v2525_v16 = vpop.f32.mrf.mxu1 }
 0x504   : > { %v4555_v26 = vpop.f32.mrf.mxu0  ;;  %v4035_v39 = vpop.f32.mrf.mxu3  ;;  %v2526_v57 = vadd.f32 %v2525_v16, %v14193_v47  ;;  %v13246_v16 = vunpack.c.l.bf16 %v11617_v46 }
 0x505   : > { %v4196_v17 = vadd.f32 %v4035_v39, %v3718_v0  ;;  %v14197_v0 = vld [vmem:[#allocation221_spill] sm:$0xff] }
 0x506   : > { %v3569_v20 = vpop.f32.mrf.mxu2  ;;  %v3721_v48 = vadd.f32 %v3564_v38, %v2526_v57  ;;  %v13243_v38 = vunpack.c.l.bf16 %v11614_v36 }
 0x507   : > { %v11609_v2 = vadd.f32 %v4553_v32, %v4196_v17  ;;  %v13245_v32 = vunpack.c.h.bf16 %v11614_v36 }
 0x508   : > { %7921 = vmatmul.msk.bf16.vlgmr.msra.gmra.mxu2 %vm1523_vm2, %v8397_v52  ;;  %v4248_v52 = vrot.slane %v13246_v16, 1 }
 0x509   : > { %14194 = vst [vmem:[#allocation95_spill] sm:$0xff] %v11609_v2  ;;  %v4246_v57 = vrot.slane %v13245_v32, 1  ;;  %v14202_v32 = vld [vmem:[#allocation26_spill] sm:$0xff] }
 0x50b   : > { %v2528_v62 = vpop.f32.mrf.mxu1 }
 0x50c   : > { %v4558_v7 = vpop.f32.mrf.mxu0  ;;  %v4037_v10 = vpop.f32.mrf.mxu3  ;;  %v2529_v41 = vadd.f32 %v2528_v62, %v14196_v63  ;;  %7853 = vmatmul.msk.bf16.gmra.mxu0 %vm1523_vm2, %v14197_v0  ;;  %v4245_v63 = vrot.slane %v13243_v38, 1  ;;  %v14199_v62 = vld [vmem:[#allocation226_spill] sm:$0xff] }
 0x50d   : > { %v4197_v4 = vadd.f32 %v4037_v10, %v3719_v30 }
 0x50e   : > { %v3572_v39 = vpop.f32.mrf.mxu2  ;;  %v3722_v17 = vadd.f32 %v3567_v40, %v2529_v41  ;;  %7659 = vmatmul.msk.bf16.gmra.mxu1 %vm1523_vm2, %v14181_v37 }
 0x50f   : > { %v11627_v47 = vadd.f32 %v4555_v26, %v4197_v4  ;;  %v4247_v26 = vsel %vm1008_vm1, %v4245_v63, %v4246_v57 }
 0x511   : > { %14198 = vst [vmem:[#allocation257_spill] sm:$0xff] %v11627_v47  ;;  %7788 = vmatmul.msk.bf16.gmra.mxu3 %vm1523_vm2, %v14181_v37  ;;  %v4249_v47 = vsel %vm1008_vm1, %v4246_v57, %v4248_v52 }
 0x512   : > { %v11642_v38 = vpack.c.bf16 %v4249_v47, %v4247_v26 }
 0x513   : > { %v2530_v41 = vpop.f32.mrf.mxu1 }
 0x514   : > { %v4560_v30 = vpop.f32.mrf.mxu0  ;;  %v4040_v10 = vpop.f32.mrf.mxu3  ;;  %v2531_v0 = vadd.f32 %v2530_v41, %v14199_v62  ;;  %14201 = vst [vmem:[#allocation111_spill] sm:$0xff] %v11642_v38 }
 0x515   : > { %v4198_v40 = vadd.f32 %v4040_v10, %v3720_v15  ;;  %v14203_v15 = vld [vmem:[#allocation228_spill] sm:$0xff] }
 0x516   : > { %v3574_v4 = vpop.f32.mrf.mxu2  ;;  %v3723_v2 = vadd.f32 %v3569_v20, %v2531_v0  ;;  %v14204_v20 = vld [vmem:[#allocation219_spill] sm:$0xff] }
 0x517   : > { %v11640_v45 = vadd.f32 %v4558_v7, %v4198_v40 }
 0x518   : > { %7922 = vmatmul.msk.bf16.gmra.mxu2 %vm1523_vm2, %v14202_v32 }
 0x519   : > { %14200 = vst [vmem:[#allocation97_spill] sm:$0xff] %v11640_v45 }
 0x51b   : > { %v2533_v46 = vpop.f32.mrf.mxu1 }
 0x51c   : > { %v4563_v37 = vpop.f32.mrf.mxu0  ;;  %v4042_v16 = vpop.f32.mrf.mxu3  ;;  %v2534_v10 = vadd.f32 %v2533_v46, %v14203_v15  ;;  %7854 = vmatmul.msk.bf16.gmra.mxu0 %vm1523_vm2, %v11642_v38  ;;  %v14208_v15 = vld [vmem:[#allocation233_spill] sm:$0xff] }
 0x51d   : > { %v4199_v51 = vadd.f32 %v4042_v16, %v3721_v48  ;;  %v14206_v16 = vld [vmem:[#allocation231_spill] sm:$0xff] }
 0x51e   : > { %v3577_v63 = vpop.f32.mrf.mxu2  ;;  %v3724_v57 = vadd.f32 %v3572_v39, %v2534_v10  ;;  %7856 = vmatmul.msk.bf16.vlgmr.msra.gmra.mxu1 %vm1523_vm2, %v14204_v20  ;;  %v8398_v39 = vld [vmem:[%s8517_s19 + $0x30] sm:$0xff]   ;;  %v14209_v20 = vld [vmem:[#allocation225_spill] sm:$0xff] }
 0x51f   : > { %v11651_v7 = vadd.f32 %v4560_v30, %v4199_v51 }
 0x521   : > { %14205 = vst [vmem:[#allocation104_spill] sm:$0xff] %v11651_v7  ;;  %7789 = vmatmul.msk.bf16.gmra.mxu3 %vm1523_vm2, %v11614_v36 }
 0x523   : > { %v2535_v47 = vpop.f32.mrf.mxu1 }
 0x524   : > { %v4565_v0 = vpop.f32.mrf.mxu0  ;;  %v4045_v32 = vpop.f32.mrf.mxu3  ;;  %v2536_v46 = vadd.f32 %v2535_v47, %v14206_v16 }
 0x525   : > { %v4200_v48 = vadd.f32 %v4045_v32, %v3722_v17 }
 0x526   : > { %v3579_v52 = vpop.f32.mrf.mxu2  ;;  %v3725_v41 = vadd.f32 %v3574_v4, %v2536_v46 }
 0x527   : > { %v11656_v40 = vadd.f32 %v4563_v37, %v4200_v48  ;;  %v14211_v37 = vld [vmem:[#allocation25_spill] sm:$0xff] }
 0x528   : > { %7923 = vmatmul.msk.bf16.gmra.mxu2 %vm1523_vm2, %v8398_v39 }
 0x529   : > { %14207 = vst [vmem:[#allocation112_spill] sm:$0xff] %v11656_v40 }
 0x52b   : > { %v2538_v51 = vpop.f32.mrf.mxu1 }
 0x52c   : > { %v4568_v62 = vpop.f32.mrf.mxu0  ;;  %v4047_v26 = vpop.f32.mrf.mxu3  ;;  %v2539_v10 = vadd.f32 %v2538_v51, %v14208_v15  ;;  %8051 = vmatmul.msk.bf16.vlgmr.msra.gmra.mxu0 %vm1523_vm2, %v14209_v20 }
 0x52d   : > { %v4201_v30 = vadd.f32 %v4047_v26, %v3723_v2  ;;  %v14212_v2 = vld [vmem:[#allocation236_spill] sm:$0xff] }
 0x52e   : > { %v3582_v38 = vpop.f32.mrf.mxu2  ;;  %v3726_v17 = vadd.f32 %v3577_v63, %v2539_v10  ;;  %7857 = vmatmul.msk.bf16.gmra.mxu1 %vm1523_vm2, %v14209_v20  ;;  %v14214_v63 = vld [vmem:[#allocation47_spill] sm:$0xff]  ;;  %v14215_v20 = vld [vmem:[#allocation238_spill] sm:$0xff] }
 0x52f   : > { %v11665_v4 = vadd.f32 %v4565_v0, %v4201_v30 }
 0x531   : > { %14210 = vst [vmem:[#allocation127_spill] sm:$0xff] %v11665_v4  ;;  %7986 = vmatmul.msk.bf16.vlgmr.msra.gmra.mxu3 %vm1523_vm2, %v14211_v37  ;;  %v14216_v37 = vld [vmem:[#allocation230_spill] sm:$0xff] }
 0x533   : > { %v2540_v48 = vpop.f32.mrf.mxu1 }
 0x534   : > { %v4570_v32 = vpop.f32.mrf.mxu0  ;;  %v4050_v47 = vpop.f32.mrf.mxu3  ;;  %v2541_v46 = vadd.f32 %v2540_v48, %v14212_v2 }
 0x535   : > { %v4202_v16 = vadd.f32 %v4050_v47, %v3724_v57 }
 0x536   : > { %v3584_v39 = vpop.f32.mrf.mxu2  ;;  %v3727_v26 = vadd.f32 %v3579_v52, %v2541_v46  ;;  %v14219_v46 = vld [vmem:[#allocation241_spill] sm:$0xff] }
 0x537   : > { %v11670_v51 = vadd.f32 %v4568_v62, %v4202_v16  ;;  %v14218_v62 = vld [vmem:[#allocation36_spill] sm:$0xff] }
 0x538   : > { %7924 = vmatmul.msk.bf16.gmra.mxu2 %vm1523_vm2, %v14214_v63 }
 0x539   : > { %14213 = vst [vmem:[#allocation128_spill] sm:$0xff] %v11670_v51 }
 0x53b   : > { %v2543_v0 = vpop.f32.mrf.mxu1 }
 0x53c   : > { %v4573_v15 = vpop.f32.mrf.mxu0  ;;  %v4052_v10 = vpop.f32.mrf.mxu3  ;;  %v2544_v4 = vadd.f32 %v2543_v0, %v14215_v20  ;;  %8052 = vmatmul.msk.bf16.gmra.mxu0 %vm1523_vm2, %v14216_v37 }
 0x53d   : > { %v4203_v30 = vadd.f32 %v4052_v10, %v3725_v41 }
 0x53e   : > { %v3587_v57 = vpop.f32.mrf.mxu2  ;;  %v3728_v47 = vadd.f32 %v3582_v38, %v2544_v4  ;;  %7858 = vmatmul.msk.bf16.gmra.mxu1 %vm1523_vm2, %v14216_v37  ;;  %v8399_v38 = vld [vmem:[%s8517_s19 + $0x48] sm:$0xff]  }
 0x53f   : > { %v11679_v52 = vadd.f32 %v4570_v32, %v4203_v30  ;;  %v14221_v37 = vld [vmem:[#allocation243_spill] sm:$0xff] }
 0x541   : > { %14217 = vst [vmem:[#allocation121_spill] sm:$0xff] %v11679_v52  ;;  %7987 = vmatmul.msk.bf16.gmra.mxu3 %vm1523_vm2, %v14218_v62  ;;  %v14222_v62 = vld [vmem:[#allocation235_spill] sm:$0xff] }
 0x543   : > { %v2545_v2 = vpop.f32.mrf.mxu1 }
 0x544   : > { %v4575_v48 = vpop.f32.mrf.mxu0  ;;  %v4055_v16 = vpop.f32.mrf.mxu3  ;;  %v2546_v63 = vadd.f32 %v2545_v2, %v14219_v46 }
 0x545   : > { %v4204_v41 = vadd.f32 %v4055_v16, %v3726_v17 }
 0x546   : > { %v3589_v10 = vpop.f32.mrf.mxu2  ;;  %v3729_v0 = vadd.f32 %v3584_v39, %v2546_v63 }
 0x547   : > { %v11684_v20 = vadd.f32 %v4573_v15, %v4204_v41  ;;  %v14224_v15 = vld [vmem:[#allocation46_spill] sm:$0xff] }
 0x548   : > { %7925 = vmatmul.msk.bf16.gmra.mxu2 %vm1523_vm2, %v8399_v38 }
 0x549   : > { %14220 = vst [vmem:[#allocation130_spill] sm:$0xff] %v11684_v20 }
 0x54b   : > { %v2548_v32 = vpop.f32.mrf.mxu1 }
 0x54c   : > { %v4578_v51 = vpop.f32.mrf.mxu0  ;;  %v4057_v4 = vpop.f32.mrf.mxu3  ;;  %v2549_v52 = vadd.f32 %v2548_v32, %v14221_v37  ;;  %8053 = vmatmul.msk.bf16.gmra.mxu0 %vm1523_vm2, %v14222_v62 }
 0x54d   : > { %v4205_v30 = vadd.f32 %v4057_v4, %v3727_v26  ;;  %v14225_v26 = vld [vmem:[#allocation246_spill] sm:$0xff] }
 0x54e   : > { %v3592_v40 = vpop.f32.mrf.mxu2  ;;  %v3730_v17 = vadd.f32 %v3587_v57, %v2549_v52  ;;  %7859 = vmatmul.msk.bf16.gmra.mxu1 %vm1523_vm2, %v14222_v62  ;;  %v14227_v57 = vld [vmem:[#allocation68_spill] sm:$0xff] }
 0x54f   : > { %v11693_v39 = vadd.f32 %v4575_v48, %v4205_v30  ;;  %v14228_v62 = vld [vmem:[#allocation248_spill] sm:$0xff] }
 0x551   : > { %14223 = vst [vmem:[#allocation147_spill] sm:$0xff] %v11693_v39  ;;  %7988 = vmatmul.msk.bf16.gmra.mxu3 %vm1523_vm2, %v14224_v15  ;;  %v14229_v15 = vld [vmem:[#allocation240_spill] sm:$0xff] }
 0x553   : > { %v2550_v41 = vpop.f32.mrf.mxu1 }
 0x554   : > { %v4580_v16 = vpop.f32.mrf.mxu0  ;;  %v4060_v2 = vpop.f32.mrf.mxu3  ;;  %v2551_v63 = vadd.f32 %v2550_v41, %v14225_v26 }
 0x555   : > { %v4206_v46 = vadd.f32 %v4060_v2, %v3728_v47 }
 0x556   : > { %v3594_v38 = vpop.f32.mrf.mxu2  ;;  %v3731_v4 = vadd.f32 %v3589_v10, %v2551_v63  ;;  %v14231_v10 = vld [vmem:[#allocation57_spill] sm:$0xff]  ;;  %v14232_v63 = vld [vmem:[#allocation252_spill] sm:$0xff] }
 0x557   : > { %v11698_v32 = vadd.f32 %v4578_v51, %v4206_v46 }
 0x558   : > { %7926 = vmatmul.msk.bf16.gmra.mxu2 %vm1523_vm2, %v14227_v57 }
 0x559   : > { %14226 = vst [vmem:[#allocation140_spill] sm:$0xff] %v11698_v32 }
 0x55b   : > { %v2553_v48 = vpop.f32.mrf.mxu1 }
 0x55c   : > { %v4583_v37 = vpop.f32.mrf.mxu0  ;;  %v4062_v52 = vpop.f32.mrf.mxu3  ;;  %v2554_v39 = vadd.f32 %v2553_v48, %v14228_v62  ;;  %8054 = vmatmul.msk.bf16.gmra.mxu0 %vm1523_vm2, %v14229_v15 }
 0x55d   : > { %v4207_v30 = vadd.f32 %v4062_v52, %v3729_v0 }
 0x55e   : > { %v3597_v47 = vpop.f32.mrf.mxu2  ;;  %v3732_v2 = vadd.f32 %v3592_v40, %v2554_v39  ;;  %7860 = vmatmul.msk.bf16.gmra.mxu1 %vm1523_vm2, %v14229_v15  ;;  %v8400_v40 = vld [vmem:[%s8517_s19 + $0x60] sm:$0xff]   ;;  %v14234_v15 = vld [vmem:[#allocation255_spill] sm:$0xff] }
 0x55f   : > { %v11707_v51 = vadd.f32 %v4580_v16, %v4207_v30 }
 0x561   : > { %14230 = vst [vmem:[#allocation149_spill] sm:$0xff] %v11707_v51  ;;  %7989 = vmatmul.msk.bf16.gmra.mxu3 %vm1523_vm2, %v14231_v10  ;;  %v14235_v10 = vld [vmem:[#allocation245_spill] sm:$0xff] }
 0x563   : > { %v2555_v26 = vpop.f32.mrf.mxu1 }
 0x564   : > { %v4585_v41 = vpop.f32.mrf.mxu0  ;;  %v4065_v46 = vpop.f32.mrf.mxu3  ;;  %v2556_v57 = vadd.f32 %v2555_v26, %v14232_v63 }
 0x565   : > { %v4208_v0 = vadd.f32 %v4065_v46, %v3730_v17 }
 0x566   : > { %v3599_v52 = vpop.f32.mrf.mxu2  ;;  %v3733_v48 = vadd.f32 %v3594_v38, %v2556_v57 }
 0x567   : > { %v11712_v62 = vadd.f32 %v4583_v37, %v4208_v0  ;;  %v14237_v37 = vld [vmem:[#allocation67_spill] sm:$0xff] }
 0x568   : > { %7927 = vmatmul.msk.bf16.gmra.mxu2 %vm1523_vm2, %v8400_v40 }
 0x569   : > { %14233 = vst [vmem:[#allocation166_spill] sm:$0xff] %v11712_v62 }
 0x56b   : > { %v2558_v16 = vpop.f32.mrf.mxu1 }
 0x56c   : > { %v4588_v32 = vpop.f32.mrf.mxu0  ;;  %v4067_v39 = vpop.f32.mrf.mxu3  ;;  %v2559_v51 = vadd.f32 %v2558_v16, %v14234_v15  ;;  %8055 = vmatmul.msk.bf16.gmra.mxu0 %vm1523_vm2, %v14235_v10 }
 0x56d   : > { %v4209_v30 = vadd.f32 %v4067_v39, %v3731_v4  ;;  %v14238_v4 = vld [vmem:[#allocation259_spill] sm:$0xff] }
 0x56e   : > { %v3602_v20 = vpop.f32.mrf.mxu2  ;;  %v3734_v17 = vadd.f32 %v3597_v47, %v2559_v51  ;;  %7861 = vmatmul.msk.bf16.gmra.mxu1 %vm1523_vm2, %v14235_v10  ;;  %v14240_v47 = vld [vmem:[#allocation89_spill] sm:$0xff] }
 0x56f   : > { %v11721_v38 = vadd.f32 %v4585_v41, %v4209_v30  ;;  %v14241_v10 = vld [vmem:[#allocation261_spill] sm:$0xff] }
 0x571   : > { %14236 = vst [vmem:[#allocation167_spill] sm:$0xff] %v11721_v38  ;;  %7990 = vmatmul.msk.bf16.gmra.mxu3 %vm1523_vm2, %v14237_v37  ;;  %v14242_v37 = vld [vmem:[#allocation251_spill] sm:$0xff] }
 0x573   : > { %v2560_v0 = vpop.f32.mrf.mxu1 }
 0x574   : > { %v4590_v46 = vpop.f32.mrf.mxu0  ;;  %v4070_v26 = vpop.f32.mrf.mxu3  ;;  %v2561_v57 = vadd.f32 %v2560_v0, %v14238_v4 }
 0x575   : > { %v4210_v63 = vadd.f32 %v4070_v26, %v3732_v2 }
 0x576   : > { %v3604_v40 = vpop.f32.mrf.mxu2  ;;  %v3735_v39 = vadd.f32 %v3599_v52, %v2561_v57  ;;  %v14244_v52 = vld [vmem:[#allocation78_spill] sm:$0xff]  ;;  %v14245_v57 = vld [vmem:[#allocation264_spill] sm:$0xff] }
 0x577   : > { %v11726_v16 = vadd.f32 %v4588_v32, %v4210_v63 }
 0x578   : > { %7928 = vmatmul.msk.bf16.gmra.mxu2 %vm1523_vm2, %v14240_v47 }
 0x579   : > { %14239 = vst [vmem:[#allocation160_spill] sm:$0xff] %v11726_v16 }
 0x57b   : > { %v2563_v41 = vpop.f32.mrf.mxu1 }
 0x57c   : > { %v4593_v15 = vpop.f32.mrf.mxu0  ;;  %v4072_v51 = vpop.f32.mrf.mxu3  ;;  %v2564_v38 = vadd.f32 %v2563_v41, %v14241_v10  ;;  %8056 = vmatmul.msk.bf16.gmra.mxu0 %vm1523_vm2, %v14242_v37 }
 0x57d   : > { %v4211_v30 = vadd.f32 %v4072_v51, %v3733_v48 }
 0x57e   : > { %v3607_v2 = vpop.f32.mrf.mxu2  ;;  %v3736_v26 = vadd.f32 %v3602_v20, %v2564_v38  ;;  %7862 = vmatmul.msk.bf16.gmra.mxu1 %vm1523_vm2, %v14242_v37  ;;  %v8401_v20 = vld [vmem:[%s8517_s19 + $0x78] sm:$0xff]  }
 0x57f   : > { %v11735_v32 = vadd.f32 %v4590_v46, %v4211_v30  ;;  %v14247_v37 = vld [vmem:[#allocation265_spill] sm:$0xff] }
 0x581   : > { %14243 = vst [vmem:[#allocation169_spill] sm:$0xff] %v11735_v32  ;;  %7991 = vmatmul.msk.bf16.gmra.mxu3 %vm1523_vm2, %v14244_v52  ;;  %v14248_v52 = vld [vmem:[#allocation258_spill] sm:$0xff] }
 0x583   : > { %v2565_v4 = vpop.f32.mrf.mxu1 }
 0x584   : > { %v4595_v0 = vpop.f32.mrf.mxu0  ;;  %v4075_v63 = vpop.f32.mrf.mxu3  ;;  %v2566_v47 = vadd.f32 %v2565_v4, %v14245_v57 }
 0x585   : > { %v4212_v48 = vadd.f32 %v4075_v63, %v3734_v17 }
 0x586   : > { %v3609_v51 = vpop.f32.mrf.mxu2  ;;  %v3737_v41 = vadd.f32 %v3604_v40, %v2566_v47 }
 0x587   : > { %v11740_v10 = vadd.f32 %v4593_v15, %v4212_v48  ;;  %v14250_v15 = vld [vmem:[#allocation88_spill] sm:$0xff] }
 0x588   : > { %7929 = vmatmul.msk.bf16.gmra.mxu2 %vm1523_vm2, %v8401_v20 }
 0x589   : > { %14246 = vst [vmem:[#allocation187_spill] sm:$0xff] %v11740_v10 }
 0x58b   : > { %v2568_v46 = vpop.f32.mrf.mxu1 }
 0x58c   : > { %v4598_v16 = vpop.f32.mrf.mxu0  ;;  %v4077_v38 = vpop.f32.mrf.mxu3  ;;  %v2569_v32 = vadd.f32 %v2568_v46, %v14247_v37  ;;  %8057 = vmatmul.msk.bf16.gmra.mxu0 %vm1523_vm2, %v14248_v52 }
 0x58d   : > { %v4213_v30 = vadd.f32 %v4077_v38, %v3735_v39  ;;  %v14251_v39 = vld [vmem:[#allocation267_spill] sm:$0xff] }
 0x58e   : > { %v5272_v62 = vpop.f32.mrf.mxu2  ;;  %v3738_v17 = vadd.f32 %v3607_v2, %v2569_v32  ;;  %7863 = vmatmul.msk.bf16.gmra.mxu1 %vm1523_vm2, %v14248_v52  ;;  %v14253_v2 = vld [vmem:[#allocation119_spill] sm:$0xff]  ;;  %v14254_v52 = vld [vmem:[#allocation269_spill] sm:$0xff] }
 0x58f   : > { %v11749_v40 = vadd.f32 %v4595_v0, %v4213_v30 }
 0x591   : > { %14249 = vst [vmem:[#allocation180_spill] sm:$0xff] %v11749_v40  ;;  %7992 = vmatmul.msk.bf16.gmra.mxu3 %vm1523_vm2, %v14250_v15  ;;  %v14255_v15 = vld [vmem:[#allocation263_spill] sm:$0xff] }
 0x593   : > { %v2570_v48 = vpop.f32.mrf.mxu1 }
 0x594   : > { %v4600_v63 = vpop.f32.mrf.mxu0  ;;  %v4080_v4 = vpop.f32.mrf.mxu3  ;;  %v2571_v47 = vadd.f32 %v2570_v48, %v14251_v39 }
 0x595   : > { %v4214_v57 = vadd.f32 %v4080_v4, %v3736_v26 }
 0x596   : > { %v5274_v20 = vpop.f32.mrf.mxu2  ;;  %v3739_v38 = vadd.f32 %v3609_v51, %v2571_v47  ;;  %v14257_v51 = vld [vmem:[#allocation102_spill] sm:$0xff]  ;;  %v14258_v47 = vld [vmem:[#allocation139_spill] sm:$0xff] }
 0x597   : > { %v11754_v46 = vadd.f32 %v4598_v16, %v4214_v57 }
 0x598   : > { %7930 = vmatmul.msk.bf16.gmra.mxu2 %vm1523_vm2, %v14253_v2 }
 0x599   : > { %14252 = vst [vmem:[#allocation189_spill] sm:$0xff] %v11754_v46 }
 0x59b   : > { %v4794_v0 = vpop.f32.mrf.mxu1 }
 0x59c   : > { %v4603_v37 = vpop.f32.mrf.mxu0  ;;  %v4082_v32 = vpop.f32.mrf.mxu3  ;;  %v5114_v40 = vadd.f32 %v4794_v0, %v14254_v52  ;;  %8058 = vmatmul.msk.bf16.gmra.mxu0 %vm1523_vm2, %v14255_v15 }
 0x59d   : > { %v4215_v30 = vadd.f32 %v4082_v32, %v3737_v41 }
 0x59e   : > { %v5277_v26 = vpop.f32.mrf.mxu2  ;;  %v5592_v4 = vadd.f32 %v5272_v62, %v5114_v40  ;;  %7864 = vmatmul.msk.bf16.gmra.mxu1 %vm1523_vm2, %v14255_v15  ;;  %v8402_v62 = vld [vmem:[%s8517_s19 + $0x90] sm:$0xff]   ;;  %v14260_v15 = vld [vmem:[#allocation270_spill] sm:$0xff] }
 0x59f   : > { %v11763_v16 = vadd.f32 %v4600_v63, %v4215_v30 }
 0x5a1   : > { %14256 = vst [vmem:[#allocation202_spill] sm:$0xff] %v11763_v16  ;;  %7993 = vmatmul.msk.bf16.gmra.mxu3 %vm1523_vm2, %v14257_v51  ;;  %v14261_v51 = vld [vmem:[#allocation266_spill] sm:$0xff] }
 0x5a3   : > { %v4796_v39 = vpop.f32.mrf.mxu1 }
 0x5a4   : > { %v4605_v48 = vpop.f32.mrf.mxu0  ;;  %v4085_v57 = vpop.f32.mrf.mxu3  ;;  %v5115_v2 = vadd.f32 %v4796_v39, %v14258_v47 }
 0x5a5   : > { %v4216_v41 = vadd.f32 %v4085_v57, %v3738_v17 }
 0x5a6   : > { %v5279_v32 = vpop.f32.mrf.mxu2  ;;  %v5593_v0 = vadd.f32 %v5274_v20, %v5115_v2 }
 0x5a7   : > { %v11768_v52 = vadd.f32 %v4603_v37, %v4216_v41  ;;  %v14263_v37 = vld [vmem:[#allocation118_spill] sm:$0xff] }
 0x5a8   : > { %7931 = vmatmul.msk.bf16.gmra.mxu2 %vm1523_vm2, %v8402_v62 }
 0x5a9   : > { %14259 = vst [vmem:[#allocation203_spill] sm:$0xff] %v11768_v52 }
 0x5ab   : > { %v4799_v63 = vpop.f32.mrf.mxu1 }
 0x5ac   : > { %v6296_v46 = vpop.f32.mrf.mxu0  ;;  %v4087_v40 = vpop.f32.mrf.mxu3  ;;  %v5116_v16 = vadd.f32 %v4799_v63, %v14260_v15  ;;  %8059 = vmatmul.msk.bf16.gmra.mxu0 %vm1523_vm2, %v14261_v51 }
 0x5ad   : > { %v4217_v30 = vadd.f32 %v4087_v40, %v3739_v38  ;;  %v14264_v38 = vld [vmem:[#allocation137_spill] sm:$0xff]  ;;  %v8159_v40 = vld [vmem:[%s12778_s3 + $0x8] sm:$0xff] }
 0x5ae   : > { %v5282_v10 = vpop.f32.mrf.mxu2  ;;  %v5594_v17 = vadd.f32 %v5277_v26, %v5116_v16  ;;  %7865 = vmatmul.msk.bf16.gmra.mxu1 %vm1523_vm2, %v14261_v51 }
 0x5af   : > { %v11777_v20 = vadd.f32 %v4605_v48, %v4217_v30  ;;  %7340 = vmatpush.bf16.msrb.mxu1 %v8159_v40  ;;  %v11788_v48 = vld [vmem:[%s12777_s2] ss:$0 sm:$0xff] }
 0x5b1   : > { %14262 = vst [vmem:[#allocation196_spill] sm:$0xff] %v11777_v20  ;;  %7994 = vmatmul.msk.bf16.gmra.mxu3 %vm1523_vm2, %v14263_v37  ;;  %v14265_v37 = vld [vmem:[#allocation159_spill] sm:$0xff] }
 0x5b2   : > { %v8403_v20 = vld [vmem:[%s8517_s19 + $0xa8] sm:$0xff]  }
 0x5b3   : > { %v4801_v41 = vpop.f32.mrf.mxu1 }
 0x5b4   : > { %v6298_v57 = vpop.f32.mrf.mxu0  ;;  %v5790_v39 = vpop.f32.mrf.mxu3  ;;  %v5117_v2 = vadd.f32 %v4801_v41, %v14264_v38  ;;  %v14266_v41 = vld [vmem:[#allocation268_spill] sm:$0xff] }
 0x5b5   : > { %v6110_v47 = vadd.f32 %v5790_v39, %v5592_v4 }
 0x5b6   : > { %v5284_v62 = vpop.f32.mrf.mxu2  ;;  %v5595_v16 = vadd.f32 %v5279_v32, %v5117_v2 }
 0x5b7   : > { %v6616_v26 = vadd.f32 %v6296_v46, %v6110_v47 }
 0x5b8   : > { %7932 = vmatmul.msk.bf16.gmra.mxu2 %vm1523_vm2, %v13689_v49  ;;  %v14267_v49 = vld [vmem:[#allocation136_spill] sm:$0xff] }
 0x5b9   : > { %v6748_v15 = vadd.f32 %v11788_v48, %v6616_v26 }
 0x5bb   : > { %v4804_v30 = vpop.f32.mrf.mxu1  ;;  %v6876_v38 = vmax.f32 %v6748_v15, 0.0 }
 0x5bc   : > { %v6301_v63 = vpop.f32.mrf.mxu0  ;;  %v5792_v4 = vpop.f32.mrf.mxu3  ;;  %v5118_v39 = vadd.f32 %v4804_v30, %v14265_v37  ;;  %8060 = vmatmul.msk.bf16.gmra.mxu0 %vm1523_vm2, %v14266_v41 }
 0x5bd   : > { %v6111_v51 = vadd.f32 %v5792_v4, %v5593_v0  ;;  %v7005_v30 = vsel %vm7004_vm4, %v6876_v38, 0.0 }
 0x5be   : > { %v5287_v46 = vpop.f32.mrf.mxu2  ;;  %v5596_v47 = vadd.f32 %v5282_v10, %v5118_v39  ;;  %7866 = vmatmul.msk.bf16.gmra.mxu1 %vm1523_vm2, %v14266_v41 }
 0x5bf   : > { %v6617_v32 = vadd.f32 %v6298_v57, %v6111_v51 }
 0x5c1   : > { %v6749_v2 = vadd.f32 %v11788_v48, %v6617_v32  ;;  %7995 = vmatmul.msk.bf16.gmra.mxu3 %vm1523_vm2, %v14267_v49 }
 0x5c3   : > { %v6877_v40 = vmax.f32 %v6749_v2, 0.0  ;;  %v4806_v4 = vpop.f32.mrf.mxu1 }
 0x5c4   : > { %v6303_v0 = vpop.f32.mrf.mxu0  ;;  %v5795_v26 = vpop.f32.mrf.mxu3  ;;  %v5119_v51 = vadd.f32 %v4806_v4, %v10384_v34  ;;  %v14269_v4 = vld [vmem:[#allocation155_spill] sm:$0xff] }
 0x5c5   : > { %v7006_v57 = vsel %vm7004_vm4, %v6877_v40, 0.0  ;;  %v6112_v10 = vadd.f32 %v5795_v26, %v5594_v17  ;;  %v14268_v40 = vld [vmem:[#allocation129_spill] sm:$0xff] }
 0x5c6   : > { %v5289_v37 = vpop.f32.mrf.mxu2  ;;  %v7007_v15 = vadd.f32 %v7006_v57, %v7005_v30  ;;  %v5597_v41 = vadd.f32 %v5284_v62, %v5119_v51 }
 0x5c7   : > { %v6618_v39 = vadd.f32 %v6301_v63, %v6112_v10 }
 0x5c8   : > { %7933 = vmatmul.msk.bf16.gmra.mxu2 %vm1523_vm2, %v8403_v20 }
 0x5c9   : > { %v6750_v32 = vadd.f32 %v11788_v48, %v6618_v39 }
 0x5cb   : > { %v6878_v2 = vmax.f32 %v6750_v32, 0.0  ;;  %v4809_v7 = vpop.f32.mrf.mxu1  ;;  %v14270_v32 = vld [vmem:[#allocation194_spill] sm:$0xff] }
 0x5cc   : > { %v6306_v49 = vpop.f32.mrf.mxu0  ;;  %v5797_v52 = vpop.f32.mrf.mxu3  ;;  %v5120_v17 = vadd.f32 %v4809_v7, %v10392_v9  ;;  %8061 = vmatmul.msk.bf16.gmra.mxu0 %vm1523_vm2, %v14268_v40 }
 0x5cd   : > { %v7008_v38 = vsel %vm7004_vm4, %v6878_v2, 0.0  ;;  %v6113_v45 = vadd.f32 %v5797_v52, %v5595_v16 }
 0x5ce   : > { %v5292_v34 = vpop.f32.mrf.mxu2  ;;  %v7009_v63 = vadd.f32 %v7008_v38, %v7007_v15  ;;  %v5598_v26 = vadd.f32 %v5287_v46, %v5120_v17  ;;  %7867 = vmatmul.msk.bf16.gmra.mxu1 %vm1523_vm2, %v14268_v40 }
 0x5cf   : > { %v6619_v62 = vadd.f32 %v6303_v0, %v6113_v45 }
 0x5d1   : > { %v6751_v20 = vadd.f32 %v11788_v48, %v6619_v62  ;;  %7996 = vmatmul.msk.bf16.gmra.mxu3 %vm1523_vm2, %v14269_v4  ;;  %v14272_v4 = vld [vmem:[#allocation157_spill] sm:$0xff] }
 0x5d3   : > { %v6879_v57 = vmax.f32 %v6751_v20, 0.0  ;;  %v4811_v16 = vpop.f32.mrf.mxu1  ;;  %v14271_v20 = vld [vmem:[#allocation177_spill] sm:$0xff] }
 0x5d4   : > { %v6308_v30 = vpop.f32.mrf.mxu0  ;;  %v5800_v52 = vpop.f32.mrf.mxu3  ;;  %v5121_v10 = vadd.f32 %v4811_v16, %v10407_v18 }
 0x5d5   : > { %v7010_v9 = vsel %vm7004_vm4, %v6879_v57, 0.0  ;;  %v6114_v7 = vadd.f32 %v5800_v52, %v5596_v47  ;;  %v14273_v52 = vld [vmem:[#allocation175_spill] sm:$0xff] }
 0x5d6   : > { %v5294_v51 = vpop.f32.mrf.mxu2  ;;  %v7011_v45 = vadd.f32 %v7010_v9, %v7009_v63  ;;  %v5599_v0 = vadd.f32 %v5289_v37, %v5121_v10 }
 0x5d7   : > { %v6620_v46 = vadd.f32 %v6306_v49, %v6114_v7 }
 0x5d8   : > { %7934 = vmatmul.msk.bf16.gmra.mxu2 %vm1523_vm2, %v14270_v32 }
 0x5d9   : > { %v6752_v15 = vadd.f32 %v11788_v48, %v6620_v46 }
 0x5db   : > { %v6880_v2 = vmax.f32 %v6752_v15, 0.0  ;;  %v4814_v17 = vpop.f32.mrf.mxu1  ;;  %v14274_v15 = vld [vmem:[#allocation179_spill] sm:$0xff] }
 0x5dc   : > { %v6311_v39 = vpop.f32.mrf.mxu0  ;;  %v5802_v38 = vpop.f32.mrf.mxu3  ;;  %v5122_v47 = vadd.f32 %v4814_v17, %v14271_v20  ;;  %8062 = vmatmul.msk.bf16.gmra.mxu0 %vm1523_vm2, %v14272_v4  ;;  %v14275_v17 = vunpack.c.l.bf16 %v10442_v60 }
 0x5dd   : > { %v7012_v40 = vsel %vm7004_vm4, %v6880_v2, 0.0  ;;  %v6115_v62 = vadd.f32 %v5802_v38, %v5597_v41 }
 0x5de   : > { %v5297_v18 = vpop.f32.mrf.mxu2  ;;  %v7013_v49 = vadd.f32 %v7012_v40, %v7011_v45  ;;  %v5600_v63 = vadd.f32 %v5292_v34, %v5122_v47  ;;  %7868 = vmatmul.msk.bf16.gmra.mxu1 %vm1523_vm2, %v14272_v4  ;;  %v4736_v40 = vrot.slane %v14275_v17, 2  ;;  %v8404_v4 = vld [vmem:[%s8517_s19 + $0xc0] sm:$0xff]   ;;  %v14280_v17 = vld [vmem:[#allocation193_spill] sm:$0xff] }
 0x5df   : > { %v6621_v37 = vadd.f32 %v6308_v30, %v6115_v62  ;;  %v14276_v62 = vunpack.c.h.bf16 %v10442_v60 }
 0x5e1   : > { %v6753_v57 = vadd.f32 %v11788_v48, %v6621_v37  ;;  %7997 = vmatmul.msk.bf16.gmra.mxu3 %vm1523_vm2, %v14273_v52  ;;  %v4737_v20 = vrot.slane %v14276_v62, 2 }
 0x5e3   : > { %v6881_v41 = vmax.f32 %v6753_v57, 0.0  ;;  %v4816_v7 = vpop.f32.mrf.mxu1 }
 0x5e4   : > { %v6313_v16 = vpop.f32.mrf.mxu0  ;;  %v5805_v9 = vpop.f32.mrf.mxu3  ;;  %v5123_v45 = vadd.f32 %v4816_v7, %v14274_v15  ;;  %v14279_v7 = vld [vmem:[#allocation148_spill] sm:$0xff] }
 0x5e5   : > { %v7014_v10 = vsel %vm7004_vm4, %v6881_v41, 0.0  ;;  %v6116_v46 = vadd.f32 %v5805_v9, %v5598_v26  ;;  %v14278_v41 = vld [vmem:[#allocation168_spill] sm:$0xff] }
 0x5e6   : > { %v5299_v30 = vpop.f32.mrf.mxu2  ;;  %v7015_v34 = vadd.f32 %v7014_v10, %v7013_v49  ;;  %v5601_v2 = vadd.f32 %v5294_v51, %v5123_v45  ;;  %v14277_v49 = vunpack.c.l.bf16 %v10445_v5  ;;  %v11850_v5 = vld [vmem:[%s8517_s19 + $0xcc] sm:$0xff]  }
 0x5e7   : > { %v6622_v32 = vadd.f32 %v6311_v39, %v6116_v46  ;;  %v4738_v46 = vsel %vm2573_vm3, %v4736_v40, %v4737_v20  ;;  %v587_v40 = vunpack.c.h.bf16 %v11850_v5 }
 0x5e8   : > { %7935 = vmatmul.msk.bf16.gmra.mxu2 %vm1523_vm2, %v8404_v4  ;;  %v4739_v39 = vrot.slane %v14277_v49, 2 }
 0x5e9   : > { %v6754_v38 = vadd.f32 %v11788_v48, %v6622_v32 }
 0x5ea   : > { %v4740_v15 = vsel %vm2573_vm3, %v4737_v20, %v4739_v39 }
 0x5eb   : > { %v6882_v26 = vmax.f32 %v6754_v38, 0.0  ;;  %v4819_v57 = vpop.f32.mrf.mxu1  ;;  %v4764_v38 = vpack.c.bf16 %v4740_v15, %v4738_v46 }
 0x5ec   : > { %v6316_v47 = vpop.f32.mrf.mxu0  ;;  %v5807_v37 = vpop.f32.mrf.mxu3  ;;  %v5124_v9 = vadd.f32 %v4819_v57, %v14278_v41  ;;  %8063 = vmatmul.msk.bf16.gmra.mxu0 %vm1523_vm2, %v14279_v7 }
 0x5ed   : > { %v7016_v51 = vsel %vm7004_vm4, %v6882_v26, 0.0  ;;  %v6117_v52 = vadd.f32 %v5807_v37, %v5599_v0  ;;  %v14281_v37 = vld [vmem:[#allocation176_spill] sm:$0xff] }
 0x5ee   : > { %v5302_v60 = vpop.f32.mrf.mxu2  ;;  %v7017_v10 = vadd.f32 %v7016_v51, %v7015_v34  ;;  %v5602_v32 = vadd.f32 %v5297_v18, %v5124_v9  ;;  %7869 = vmatmul.msk.bf16.gmra.mxu1 %vm1523_vm2, %v14279_v7  ;;  %v586_v34 = vunpack.c.l.bf16 %v11850_v5 }
 0x5ef   : > { %v6623_v45 = vadd.f32 %v6313_v16, %v6117_v52 }
 0x5f1   : > { %v6755_v0 = vadd.f32 %v11788_v48, %v6623_v45  ;;  %7998 = vmatmul.msk.bf16.gmra.mxu3 %vm1523_vm2, %v14280_v17  ;;  %v14282_v17 = vld [vmem:[#allocation156_spill] sm:$0xff] }
 0x5f3   : > { %v6883_v4 = vmax.f32 %v6755_v0, 0.0  ;;  %v4821_v16 = vpop.f32.mrf.mxu1 }
 0x5f4   : > { %v6318_v62 = vpop.f32.mrf.mxu0  ;;  %v5810_v20 = vpop.f32.mrf.mxu3  ;;  %v5125_v57 = vadd.f32 %v4821_v16, %v14281_v37  ;;  %v14283_v16 = vld [vmem:[#allocation207_spill] sm:$0xff] }
 0x5f5   : > { %v7018_v18 = vsel %vm7004_vm4, %v6883_v4, 0.0  ;;  %v6118_v26 = vadd.f32 %v5810_v20, %v5600_v63 }
 0x5f6   : > { %v5304_v49 = vpop.f32.mrf.mxu2  ;;  %v7019_v39 = vadd.f32 %v7018_v18, %v7017_v10  ;;  %v5603_v52 = vadd.f32 %v5299_v30, %v5125_v57 }
 0x5f7   : > { %v6624_v51 = vadd.f32 %v6316_v47, %v6118_v26 }
 0x5f8   : > { %7936 = vmatmul.msk.bf16.gmra.mxu2 %vm1523_vm2, %v11850_v5 }
 0x5f9   : > { %v6756_v41 = vadd.f32 %v11788_v48, %v6624_v51 }
 0x5fb   : > { %v6884_v7 = vmax.f32 %v6756_v41, 0.0  ;;  %v4824_v15 = vpop.f32.mrf.mxu1 }
 0x5fc   : > { %v6321_v9 = vpop.f32.mrf.mxu0  ;;  %v5812_v46 = vpop.f32.mrf.mxu3  ;;  %v5126_v63 = vadd.f32 %v4824_v15, %v10478_v3  ;;  %8064 = vmatmul.msk.bf16.gmra.mxu0 %vm1523_vm2, %v14282_v17  ;;  %v8405_v15 = vld [vmem:[%s8517_s19 + $0xf0] sm:$0xff]  }
 0x5fd   : > { %v7020_v45 = vsel %vm7004_vm4, %v6884_v7, 0.0  ;;  %v6119_v0 = vadd.f32 %v5812_v46, %v5601_v2 }
 0x5fe   : > { %v5307_v10 = vpop.f32.mrf.mxu2  ;;  %v7021_v47 = vadd.f32 %v7020_v45, %v7019_v39  ;;  %v5604_v4 = vadd.f32 %v5302_v60, %v5126_v63  ;;  %7870 = vmatmul.msk.bf16.gmra.mxu1 %vm1523_vm2, %v14282_v17 }
 0x5ff   : > { %v6625_v30 = vadd.f32 %v6318_v62, %v6119_v0  ;;  %v372_v0 = vld [vmem:[%s8517_s19 + $0xd4] sm:$0x1] }
 0x601   : > { %v6757_v20 = vadd.f32 %v11788_v48, %v6625_v30  ;;  %7999 = vmatmul.msk.bf16.gmra.mxu3 %vm1523_vm2, %v14283_v16 }
 0x603   : > { %v6885_v2 = vmax.f32 %v6757_v20, 0.0  ;;  %v4826_v26 = vpop.f32.mrf.mxu1 }
 0x604   : > { %v6323_v18 = vpop.f32.mrf.mxu0  ;;  %v5815_v3 = vpop.f32.mrf.mxu3  ;;  %v5127_v62 = vadd.f32 %v4826_v26, %v10495_v11 }
 0x605   : > { %v7022_v37 = vsel %vm7004_vm4, %v6885_v2, 0.0  ;;  %v6120_v57 = vadd.f32 %v5815_v3, %v5602_v32 }
 0x606   : > { %v5309_v60 = vpop.f32.mrf.mxu2  ;;  %v7023_v39 = vadd.f32 %v7022_v37, %v7021_v47  ;;  %v5605_v41 = vadd.f32 %v5304_v49, %v5127_v62  ;;  %v588_v49 = vunpack.c.l.bf16 %v372_v0 }
 0x607   : > { %v6626_v51 = vadd.f32 %v6321_v9, %v6120_v57 }
 0x608   : > { %7937 = vmatmul.msk.bf16.gmra.mxu2 %vm1523_vm2, %v8405_v15  ;;  %v6241_v26 = vrot.slane %v588_v49, 2  ;;  %v5735_v15 = vrot.slane %v588_v49, 1 }
 0x609   : > { %v6758_v7 = vadd.f32 %v11788_v48, %v6626_v51 }
 0x60b   : > { %v6886_v45 = vmax.f32 %v6758_v7, 0.0  ;;  %v4829_v17 = vpop.f32.mrf.mxu1 }
 0x60c   : > { %v6326_v46 = vpop.f32.mrf.mxu0  ;;  %v5817_v63 = vpop.f32.mrf.mxu3  ;;  %v5128_v32 = vadd.f32 %v4829_v17, %v10504_v59  ;;  %8065 = vmatmul.msk.bf16.gmra.mxu0 %vm1523_vm2, %v4764_v38  ;;  %v6239_v59 = vrot.slane %v587_v40, 2 }
 0x60d   : > { %v7024_v30 = vsel %vm7004_vm4, %v6886_v45, 0.0  ;;  %v6121_v20 = vadd.f32 %v5817_v63, %v5603_v52  ;;  %v6238_v52 = vrot.slane %v586_v34, 2 }
 0x60e   : > { %v5312_v11 = vpop.f32.mrf.mxu2  ;;  %v7025_v9 = vadd.f32 %v7024_v30, %v7023_v39  ;;  %v5606_v16 = vadd.f32 %v5307_v10, %v5128_v32  ;;  %7871 = vmatmul.msk.bf16.gmra.mxu1 %vm1523_vm2, %v4764_v38  ;;  %v5732_v10 = vrot.slane %v586_v34, 1  ;;  %v6242_v0 = vsel %vm2573_vm3, %v6239_v59, %v6241_v26 }
 0x60f   : > { %v6627_v47 = vadd.f32 %v6323_v18, %v6121_v20  ;;  %v6240_v45 = vsel %vm2573_vm3, %v6238_v52, %v6239_v59 }
 0x610   : > { %v6266_v34 = vpack.c.bf16 %v6242_v0, %v6240_v45 }
 0x611   : > { %v6759_v2 = vadd.f32 %v11788_v48, %v6627_v47  ;;  %8000 = vmatmul.msk.bf16.gmra.mxu3 %vm1523_vm2, %v10480_v13  ;;  %v5733_v13 = vrot.slane %v587_v40, 1 }
 0x613   : > { %v6887_v37 = vmax.f32 %v6759_v2, 0.0  ;;  %v4831_v62 = vpop.f32.mrf.mxu1 }
 0x614   : > { %v6328_v3 = vpop.f32.mrf.mxu0  ;;  %v5820_v57 = vpop.f32.mrf.mxu3  ;;  %v5129_v39 = vadd.f32 %v4831_v62, %v10519_v12  ;;  %v5736_v12 = vsel %vm1008_vm1, %v5733_v13, %v5735_v15 }
 0x615   : > { %v7026_v38 = vsel %vm7004_vm4, %v6887_v37, 0.0  ;;  %v6122_v18 = vadd.f32 %v5820_v57, %v5604_v4  ;;  %v5734_v4 = vsel %vm1008_vm1, %v5732_v10, %v5733_v13  ;;  %v8406_v13 = vld [vmem:[%s8517_s19 + $0x108] sm:$0xff]  }
 0x616   : > { %v5314_v51 = vpop.f32.mrf.mxu2  ;;  %v7027_v7 = vadd.f32 %v7026_v38, %v7025_v9  ;;  %v5607_v17 = vadd.f32 %v5309_v60, %v5129_v39  ;;  %v5760_v60 = vpack.c.bf16 %v5736_v12, %v5734_v4  ;;  %v14284_v4 = vld [vmem:[#allocation17_spill] sm:$0xff] }
 0x617   : > { %v6628_v63 = vadd.f32 %v6326_v46, %v6122_v18 }
 0x618   : > { %7938 = vmatmul.msk.bf16.gmra.mxu2 %vm1523_vm2, %v13737_v8 }
 0x619   : > { %v6760_v30 = vadd.f32 %v11788_v48, %v6628_v63 }
 0x61b   : > { %v6888_v5 = vmax.f32 %v6760_v30, 0.0  ;;  %v4834_v32 = vpop.f32.mrf.mxu1 }
 0x61c   : > { %v6331_v20 = vpop.f32.mrf.mxu0  ;;  %v5822_v40 = vpop.f32.mrf.mxu3  ;;  %v5130_v46 = vadd.f32 %v4834_v32, %v10528_v56  ;;  %8066 = vmatmul.msk.bf16.gmra.mxu0 %vm1523_vm2, %v6266_v34 }
 0x61d   : > { %v7028_v9 = vsel %vm7004_vm4, %v6888_v5, 0.0  ;;  %v6123_v49 = vadd.f32 %v5822_v40, %v5605_v41 }
 0x61e   : > { %v5317_v47 = vpop.f32.mrf.mxu2  ;;  %v7029_v2 = vadd.f32 %v7028_v9, %v7027_v7  ;;  %v5608_v59 = vadd.f32 %v5312_v11, %v5130_v46  ;;  %7872 = vmatmul.msk.bf16.gmra.mxu1 %vm1523_vm2, %v10476_v22 }
 0x61f   : > { %v6629_v52 = vadd.f32 %v6328_v3, %v6123_v49 }
 0x621   : > { %v6761_v8 = vadd.f32 %v11788_v48, %v6629_v52  ;;  %8001 = vmatmul.msk.bf16.gmra.mxu3 %vm1523_vm2, %v5760_v60 }
 0x623   : > { %v6889_v37 = vmax.f32 %v6761_v8, 0.0  ;;  %v4836_v57 = vpop.f32.mrf.mxu1 }
 0x624   : > { %v6333_v26 = vpop.f32.mrf.mxu0  ;;  %v5825_v41 = vpop.f32.mrf.mxu3  ;;  %v5131_v10 = vadd.f32 %v4836_v57, %v10543_v33  ;;  %v14285_v57 = vld [vmem:[#allocation3_spill] sm:$0xff] }
 0x625   : > { %v7030_v56 = vsel %vm7004_vm4, %v6889_v37, 0.0  ;;  %v6124_v62 = vadd.f32 %v5825_v41, %v5606_v16 }
 0x626   : > { %v5319_v38 = vpop.f32.mrf.mxu2  ;;  %v7031_v3 = vadd.f32 %v7030_v56, %v7029_v2  ;;  %v5609_v18 = vadd.f32 %v5314_v51, %v5131_v10  ;;  %v14286_v56 = vld [vmem:[#allocation188_spill] sm:$0xff] }
 0x627   : > { %v6630_v11 = vadd.f32 %v6331_v20, %v6124_v62 }
 0x628   : > { %7939 = vmatmul.msk.bf16.gmra.mxu2 %vm1523_vm2, %v8406_v13 }
 0x629   : > { %v6762_v22 = vadd.f32 %v11788_v48, %v6630_v11 }
 0x62b   : > { %v6890_v7 = vmax.f32 %v6762_v22, 0.0  ;;  %v4839_v45 = vpop.f32.mrf.mxu1 }
 0x62c   : > { %v6336_v39 = vpop.f32.mrf.mxu0  ;;  %v5827_v15 = vpop.f32.mrf.mxu3  ;;  %v5132_v16 = vadd.f32 %v4839_v45, %v10551_v50  ;;  %8067 = vmatmul.msk.bf16.gmra.mxu0 %vm1523_vm2, %v10502_v23 }
 0x62d   : > { %v7032_v0 = vsel %vm7004_vm4, %v6890_v7, 0.0  ;;  %v6125_v63 = vadd.f32 %v5827_v15, %v5607_v17 }
 0x62e   : > { %v5322_v33 = vpop.f32.mrf.mxu2  ;;  %v7033_v30 = vadd.f32 %v7032_v0, %v7031_v3  ;;  %v5610_v34 = vadd.f32 %v5317_v47, %v5132_v16  ;;  %7873 = vmatmul.msk.bf16.gmra.mxu1 %vm1523_vm2, %v10502_v23  ;;  %v14287_v3 = vld [vmem:[#allocation27_spill] sm:$0xff] }
 0x62f   : > { %v6631_v51 = vadd.f32 %v6333_v26, %v6125_v63  ;;  %v8167_v63 = vld [vmem:[%s12780_s5 + $0x38] sm:$0xff] }
 0x630   : > { %7431 = vmatpush.bf16.msrb.mxu2 %v8167_v63 }
 0x631   : > { %v6763_v20 = vadd.f32 %v11788_v48, %v6631_v51  ;;  %8002 = vmatmul.msk.bf16.gmra.mxu3 %vm1523_vm2, %v14284_v4 }
 0x633   : > { %v6891_v5 = vmax.f32 %v6763_v20, 0.0  ;;  %v4841_v40 = vpop.f32.mrf.mxu1  ;;  %v8407_v20 = vld [vmem:[%s8517_s19 + $0x120] sm:$0xff]  }
 0x634   : > { %v6338_v12 = vpop.f32.mrf.mxu0  ;;  %v5830_v17 = vpop.f32.mrf.mxu3  ;;  %v5133_v9 = vadd.f32 %v4841_v40, %v10566_v58  ;;  %v14288_v40 = vld [vmem:[#allocation208_spill] sm:$0xff] }
 0x635   : > { %v7034_v50 = vsel %vm7004_vm4, %v6891_v5, 0.0  ;;  %v6126_v32 = vadd.f32 %v5830_v17, %v5608_v59 }
 0x636   : > { %v5324_v49 = vpop.f32.mrf.mxu2  ;;  %v7035_v46 = vadd.f32 %v7034_v50, %v7033_v30  ;;  %v5611_v47 = vadd.f32 %v5319_v38, %v5133_v9 }
 0x637   : > { %v6632_v60 = vadd.f32 %v6336_v39, %v6126_v32 }
 0x638   : > { %7940 = vmatmul.msk.bf16.gmra.mxu2 %vm1523_vm2, %v13751_v31 }
 0x639   : > { %v6764_v23 = vadd.f32 %v11788_v48, %v6632_v60  ;;  %v14289_v60 = vld [vmem:[#allocation37_spill] sm:$0xff] }
 0x63b   : > { %v6892_v52 = vmax.f32 %v6764_v23, 0.0  ;;  %v4844_v26 = vpop.f32.mrf.mxu1 }
 0x63c   : > { %v6341_v2 = vpop.f32.mrf.mxu0  ;;  %v5832_v8 = vpop.f32.mrf.mxu3  ;;  %v5134_v59 = vadd.f32 %v4844_v26, %v14285_v57  ;;  %8068 = vmatmul.msk.bf16.gmra.mxu0 %vm1523_vm2, %v14286_v56 }
 0x63d   : > { %v7036_v37 = vsel %vm7004_vm4, %v6892_v52, 0.0  ;;  %v6127_v41 = vadd.f32 %v5832_v8, %v5609_v18 }
 0x63e   : > { %v5327_v58 = vpop.f32.mrf.mxu2  ;;  %v7037_v62 = vadd.f32 %v7036_v37, %v7035_v46  ;;  %v5612_v38 = vadd.f32 %v5322_v33, %v5134_v59  ;;  %7874 = vmatmul.msk.bf16.gmra.mxu1 %vm1523_vm2, %v14286_v56 }
 0x63f   : > { %v6633_v10 = vadd.f32 %v6338_v12, %v6127_v41 }
 0x641   : > { %v6765_v31 = vadd.f32 %v11788_v48, %v6633_v10  ;;  %8003 = vmatmul.msk.bf16.gmra.mxu3 %vm1523_vm2, %v14287_v3 }
 0x643   : > { %v6893_v18 = vmax.f32 %v6765_v31, 0.0  ;;  %v4846_v39 = vpop.f32.mrf.mxu1 }
 0x644   : > { %v6343_v11 = vpop.f32.mrf.mxu0  ;;  %v5835_v22 = vpop.f32.mrf.mxu3  ;;  %v5135_v15 = vadd.f32 %v4846_v39, %v10590_v25 }
 0x645   : > { %v7038_v13 = vsel %vm7004_vm4, %v6893_v18, 0.0  ;;  %v6128_v7 = vadd.f32 %v5835_v22, %v5610_v34  ;;  %v14290_v18 = vld [vmem:[#allocation8_spill] sm:$0xff]  ;;  %v14291_v22 = vld [vmem:[#allocation2_spill] sm:$0xff] }
 0x646   : > { %v5329_v45 = vpop.f32.mrf.mxu2  ;;  %v7039_v0 = vadd.f32 %v7038_v13, %v7037_v62  ;;  %v5613_v33 = vadd.f32 %v5324_v49, %v5135_v15  ;;  %v14292_v15 = vld [vmem:[#allocation48_spill] sm:$0xff] }
 0x647   : > { %v6634_v16 = vadd.f32 %v6341_v2, %v6128_v7 }
 0x648   : > { %7941 = vmatmul.msk.bf16.gmra.mxu2 %vm1523_vm2, %v8407_v20 }
 0x649   : > { %v6766_v30 = vadd.f32 %v11788_v48, %v6634_v16 }
 0x64b   : > { %v6894_v4 = vmax.f32 %v6766_v30, 0.0  ;;  %v4849_v34 = vpop.f32.mrf.mxu1 }
 0x64c   : > { %v6346_v51 = vpop.f32.mrf.mxu0  ;;  %v5837_v12 = vpop.f32.mrf.mxu3  ;;  %v5136_v17 = vadd.f32 %v4849_v34, %v10598_v35  ;;  %8069 = vmatmul.msk.bf16.gmra.mxu0 %vm1523_vm2, %v14288_v40 }
 0x64d   : > { %v7040_v25 = vsel %vm7004_vm4, %v6894_v4, 0.0  ;;  %v6129_v5 = vadd.f32 %v5837_v12, %v5611_v47 }
 0x64e   : > { %v5332_v50 = vpop.f32.mrf.mxu2  ;;  %v7041_v32 = vadd.f32 %v7040_v25, %v7039_v0  ;;  %v5614_v49 = vadd.f32 %v5327_v58, %v5136_v17  ;;  %7875 = vmatmul.msk.bf16.gmra.mxu1 %vm1523_vm2, %v14288_v40  ;;  %v8408_v17 = vld [vmem:[%s8517_s19 + $0x138] sm:$0xff]  }
 0x64f   : > { %v6635_v9 = vadd.f32 %v6343_v11, %v6129_v5 }
 0x651   : > { %v6767_v46 = vadd.f32 %v11788_v48, %v6635_v9  ;;  %8004 = vmatmul.msk.bf16.gmra.mxu3 %vm1523_vm2, %v14289_v60  ;;  %v14293_v60 = vld [vmem:[#allocation18_spill] sm:$0xff] }
 0x653   : > { %v6895_v2 = vmax.f32 %v6767_v46, 0.0  ;;  %v4851_v52 = vpop.f32.mrf.mxu1 }
 0x654   : > { %v6348_v23 = vpop.f32.mrf.mxu0  ;;  %v5840_v47 = vpop.f32.mrf.mxu3  ;;  %v5137_v26 = vadd.f32 %v4851_v52, %v10613_v43 }
 0x655   : > { %v7042_v35 = vsel %vm7004_vm4, %v6895_v2, 0.0  ;;  %v6130_v8 = vadd.f32 %v5840_v47, %v5612_v38 }
 0x656   : > { %v5334_v37 = vpop.f32.mrf.mxu2  ;;  %v7043_v41 = vadd.f32 %v7042_v35, %v7041_v32  ;;  %v5615_v59 = vadd.f32 %v5329_v45, %v5137_v26 }
 0x657   : > { %v6636_v57 = vadd.f32 %v6346_v51, %v6130_v8  ;;  %v14295_v8 = vld [vmem:[#allocation58_spill] sm:$0xff] }
 0x658   : > { %7942 = vmatmul.msk.bf16.gmra.mxu2 %vm1523_vm2, %v13766_v42 }
 0x659   : > { %v6768_v56 = vadd.f32 %v11788_v48, %v6636_v57 }
 0x65b   : > { %v6896_v62 = vmax.f32 %v6768_v56, 0.0  ;;  %v4854_v31 = vpop.f32.mrf.mxu1 }
 0x65c   : > { %v6351_v58 = vpop.f32.mrf.mxu0  ;;  %v5842_v10 = vpop.f32.mrf.mxu3  ;;  %v5138_v38 = vadd.f32 %v4854_v31, %v14290_v18  ;;  %8070 = vmatmul.msk.bf16.gmra.mxu0 %vm1523_vm2, %v14291_v22 }
 0x65d   : > { %v7044_v3 = vsel %vm7004_vm4, %v6896_v62, 0.0  ;;  %v6131_v11 = vadd.f32 %v5842_v10, %v5613_v33 }
 0x65e   : > { %v5337_v43 = vpop.f32.mrf.mxu2  ;;  %v7045_v39 = vadd.f32 %v7044_v3, %v7043_v41  ;;  %v5616_v7 = vadd.f32 %v5332_v50, %v5138_v38  ;;  %7876 = vmatmul.msk.bf16.gmra.mxu1 %vm1523_vm2, %v14291_v22  ;;  %v14297_v22 = vld [vmem:[#allocation81_spill] sm:$0xff] }
 0x65f   : > { %v6637_v13 = vadd.f32 %v6348_v23, %v6131_v11  ;;  %v14294_v23 = vld [vmem:[#allocation215_spill] sm:$0xff] }
 0x661   : > { %v6769_v42 = vadd.f32 %v11788_v48, %v6637_v13  ;;  %8005 = vmatmul.msk.bf16.gmra.mxu3 %vm1523_vm2, %v14292_v15 }
 0x663   : > { %v6897_v0 = vmax.f32 %v6769_v42, 0.0  ;;  %v4856_v16 = vpop.f32.mrf.mxu1 }
 0x664   : > { %v6353_v45 = vpop.f32.mrf.mxu0  ;;  %v5845_v63 = vpop.f32.mrf.mxu3  ;;  %v5139_v51 = vadd.f32 %v4856_v16, %v10637_v29 }
 0x665   : > { %v7046_v33 = vsel %vm7004_vm4, %v6897_v0, 0.0  ;;  %v6132_v30 = vadd.f32 %v5845_v63, %v5614_v49  ;;  %v14299_v0 = vld [vmem:[#allocation7_spill] sm:$0xff] }
 0x666   : > { %v5339_v20 = vpop.f32.mrf.mxu2  ;;  %v7047_v4 = vadd.f32 %v7046_v33, %v7045_v39  ;;  %v5617_v34 = vadd.f32 %v5334_v37, %v5139_v51 }
 0x667   : > { %v6638_v12 = vadd.f32 %v6351_v58, %v6132_v30  ;;  %v14296_v58 = vld [vmem:[#allocation19_spill] sm:$0xff] }
 0x668   : > { %7943 = vmatmul.msk.bf16.gmra.mxu2 %vm1523_vm2, %v8408_v17 }
 0x669   : > { %v6770_v25 = vadd.f32 %v11788_v48, %v6638_v12 }
 0x66b   : > { %v6898_v40 = vmax.f32 %v6770_v25, 0.0  ;;  %v4859_v32 = vpop.f32.mrf.mxu1 }
 0x66c   : > { %v6356_v5 = vpop.f32.mrf.mxu0  ;;  %v5847_v50 = vpop.f32.mrf.mxu3  ;;  %v5140_v49 = vadd.f32 %v4859_v32, %v14293_v60  ;;  %8071 = vmatmul.msk.bf16.gmra.mxu0 %vm1523_vm2, %v14294_v23 }
 0x66d   : > { %v7048_v9 = vsel %vm7004_vm4, %v6898_v40, 0.0  ;;  %v6133_v46 = vadd.f32 %v5847_v50, %v5615_v59  ;;  %v14301_v40 = vld [vmem:[#allocation39_spill] sm:$0xff] }
 0x66e   : > { %v5342_v29 = vpop.f32.mrf.mxu2  ;;  %v7049_v2 = vadd.f32 %v7048_v9, %v7047_v4  ;;  %v5618_v52 = vadd.f32 %v5337_v43, %v5140_v49  ;;  %7877 = vmatmul.msk.bf16.gmra.mxu1 %vm1523_vm2, %v14294_v23 }
 0x66f   : > { %v6639_v47 = vadd.f32 %v6353_v45, %v6133_v46  ;;  %v14298_v45 = vld [vmem:[#allocation30_spill] sm:$0xff] }
 0x671   : > { %v6771_v35 = vadd.f32 %v11788_v48, %v6639_v47  ;;  %8006 = vmatmul.msk.bf16.gmra.mxu3 %vm1523_vm2, %v14295_v8 }
 0x673   : > { %v6899_v37 = vmax.f32 %v6771_v35, 0.0  ;;  %v4861_v57 = vpop.f32.mrf.mxu1 }
 0x674   : > { %v6358_v26 = vpop.f32.mrf.mxu0  ;;  %v5850_v41 = vpop.f32.mrf.mxu3  ;;  %v5141_v62 = vadd.f32 %v4861_v57, %v14296_v58 }
 0x675   : > { %v7050_v59 = vsel %vm7004_vm4, %v6899_v37, 0.0  ;;  %v6134_v56 = vadd.f32 %v5850_v41, %v5616_v7  ;;  %v14302_v37 = vld [vmem:[#allocation50_spill] sm:$0xff] }
 0x676   : > { %v5344_v10 = vpop.f32.mrf.mxu2  ;;  %v7051_v31 = vadd.f32 %v7050_v59, %v7049_v2  ;;  %v5619_v11 = vadd.f32 %v5339_v20, %v5141_v62  ;;  %v14300_v20 = vld [vmem:[#allocation69_spill] sm:$0xff]  ;;  %v14303_v41 = vld [vmem:[#allocation6_spill] sm:$0xff] }
 0x677   : > { %v6640_v3 = vadd.f32 %v6356_v5, %v6134_v56 }
 0x678   : > { %7944 = vmatmul.msk.bf16.gmra.mxu2 %vm1523_vm2, %v14297_v22 }
 0x679   : > { %v6772_v18 = vadd.f32 %v11788_v48, %v6640_v3 }
 0x67b   : > { %v6900_v43 = vmax.f32 %v6772_v18, 0.0  ;;  %v4864_v13 = vpop.f32.mrf.mxu1 }
 0x67c   : > { %v6361_v38 = vpop.f32.mrf.mxu0  ;;  %v5852_v39 = vpop.f32.mrf.mxu3  ;;  %v5142_v7 = vadd.f32 %v4864_v13, %v14298_v45  ;;  %8072 = vmatmul.msk.bf16.gmra.mxu0 %vm1523_vm2, %v14299_v0 }
 0x67d   : > { %v7052_v42 = vsel %vm7004_vm4, %v6900_v43, 0.0  ;;  %v6135_v15 = vadd.f32 %v5852_v39, %v5617_v34  ;;  %v14305_v43 = vld [vmem:[#allocation51_spill] sm:$0xff] }
 0x67e   : > { %v5347_v63 = vpop.f32.mrf.mxu2  ;;  %v7053_v16 = vadd.f32 %v7052_v42, %v7051_v31  ;;  %v5620_v30 = vadd.f32 %v5342_v29, %v5142_v7  ;;  %7878 = vmatmul.msk.bf16.gmra.mxu1 %vm1523_vm2, %v14299_v0  ;;  %v8409_v29 = vld [vmem:[%s8517_s19 + $0x150] sm:$0xff]  }
 0x67f   : > { %v6641_v33 = vadd.f32 %v6358_v26, %v6135_v15 }
 0x681   : > { %v6773_v51 = vadd.f32 %v11788_v48, %v6641_v33  ;;  %8007 = vmatmul.msk.bf16.gmra.mxu3 %vm1523_vm2, %v14300_v20 }
 0x683   : > { %v6901_v12 = vmax.f32 %v6773_v51, 0.0  ;;  %v4866_v25 = vpop.f32.mrf.mxu1 }
 0x684   : > { %v6363_v4 = vpop.f32.mrf.mxu0  ;;  %v5855_v34 = vpop.f32.mrf.mxu3  ;;  %v5143_v50 = vadd.f32 %v4866_v25, %v14301_v40 }
 0x685   : > { %v7054_v5 = vsel %vm7004_vm4, %v6901_v12, 0.0  ;;  %v6136_v17 = vadd.f32 %v5855_v34, %v5618_v52  ;;  %v14307_v12 = vld [vmem:[#allocation61_spill] sm:$0xff] }
 0x686   : > { %v5349_v32 = vpop.f32.mrf.mxu2  ;;  %v7055_v9 = vadd.f32 %v7054_v5, %v7053_v16  ;;  %v5621_v60 = vadd.f32 %v5344_v10, %v5143_v50  ;;  %v14304_v10 = vld [vmem:[#allocation79_spill] sm:$0xff]  ;;  %v14308_v34 = vld [vmem:[#allocation29_spill] sm:$0xff] }
 0x687   : > { %v6642_v46 = vadd.f32 %v6361_v38, %v6136_v17 }
 0x688   : > { %7945 = vmatmul.msk.bf16.gmra.mxu2 %vm1523_vm2, %v8409_v29 }
 0x689   : > { %v6774_v49 = vadd.f32 %v11788_v48, %v6642_v46 }
 0x68b   : > { %v6902_v2 = vmax.f32 %v6774_v49, 0.0  ;;  %v4869_v35 = vpop.f32.mrf.mxu1 }
 0x68c   : > { %v6366_v23 = vpop.f32.mrf.mxu0  ;;  %v5857_v47 = vpop.f32.mrf.mxu3  ;;  %v5144_v52 = vadd.f32 %v4869_v35, %v14302_v37  ;;  %8073 = vmatmul.msk.bf16.gmra.mxu0 %vm1523_vm2, %v14303_v41 }
 0x68d   : > { %v7056_v8 = vsel %vm7004_vm4, %v6902_v2, 0.0  ;;  %v6137_v26 = vadd.f32 %v5857_v47, %v5619_v11  ;;  %v14310_v2 = vld [vmem:[#allocation71_spill] sm:$0xff] }
 0x68e   : > { %v5352_v57 = vpop.f32.mrf.mxu2  ;;  %v7057_v59 = vadd.f32 %v7056_v8, %v7055_v9  ;;  %v5622_v58 = vadd.f32 %v5347_v63, %v5144_v52  ;;  %7879 = vmatmul.msk.bf16.gmra.mxu1 %vm1523_vm2, %v14303_v41  ;;  %v14306_v63 = vld [vmem:[#allocation108_spill] sm:$0xff] }
 0x68f   : > { %v6643_v56 = vadd.f32 %v6363_v4, %v6137_v26 }
 0x691   : > { %v6775_v62 = vadd.f32 %v11788_v48, %v6643_v56  ;;  %8008 = vmatmul.msk.bf16.gmra.mxu3 %vm1523_vm2, %v14304_v10 }
 0x693   : > { %v6903_v3 = vmax.f32 %v6775_v62, 0.0  ;;  %v4871_v18 = vpop.f32.mrf.mxu1 }
 0x694   : > { %v6368_v31 = vpop.f32.mrf.mxu0  ;;  %v5860_v11 = vpop.f32.mrf.mxu3  ;;  %v5145_v39 = vadd.f32 %v4871_v18, %v14305_v43 }
 0x695   : > { %v7058_v38 = vsel %vm7004_vm4, %v6903_v3, 0.0  ;;  %v6138_v22 = vadd.f32 %v5860_v11, %v5620_v30  ;;  %v14311_v3 = vld [vmem:[#allocation82_spill] sm:$0xff]  ;;  %v14312_v11 = vld [vmem:[#allocation40_spill] sm:$0xff] }
 0x696   : > { %v5354_v13 = vpop.f32.mrf.mxu2  ;;  %v7059_v42 = vadd.f32 %v7058_v38, %v7057_v59  ;;  %v5623_v45 = vadd.f32 %v5349_v32, %v5145_v39  ;;  %v14309_v32 = vld [vmem:[#allocation90_spill] sm:$0xff] }
 0x697   : > { %v6644_v15 = vadd.f32 %v6366_v23, %v6138_v22 }
 0x698   : > { %7946 = vmatmul.msk.bf16.gmra.mxu2 %vm1523_vm2, %v14306_v63 }
 0x699   : > { %v6776_v7 = vadd.f32 %v11788_v48, %v6644_v15 }
 0x69b   : > { %v6904_v16 = vmax.f32 %v6776_v7, 0.0  ;;  %v4874_v51 = vpop.f32.mrf.mxu1 }
 0x69c   : > { %v6371_v0 = vpop.f32.mrf.mxu0  ;;  %v5862_v33 = vpop.f32.mrf.mxu3  ;;  %v5146_v30 = vadd.f32 %v4874_v51, %v14307_v12  ;;  %8074 = vmatmul.msk.bf16.gmra.mxu0 %vm1523_vm2, %v14308_v34 }
 0x69d   : > { %v7060_v20 = vsel %vm7004_vm4, %v6904_v16, 0.0  ;;  %v6139_v4 = vadd.f32 %v5862_v33, %v5621_v60  ;;  %v14314_v16 = vld [vmem:[#allocation93_spill] sm:$0xff] }
 0x69e   : > { %v5357_v25 = vpop.f32.mrf.mxu2  ;;  %v7061_v5 = vadd.f32 %v7060_v20, %v7059_v42  ;;  %v5624_v40 = vadd.f32 %v5352_v57, %v5146_v30  ;;  %7880 = vmatmul.msk.bf16.gmra.mxu1 %vm1523_vm2, %v14308_v34  ;;  %v8410_v57 = vld [vmem:[%s8517_s19 + $0x168] sm:$0xff]   ;;  %v14315_v34 = vld [vmem:[#allocation144_spill] sm:$0xff] }
 0x69f   : > { %v6645_v17 = vadd.f32 %v6368_v31, %v6139_v4 }
 0x6a1   : > { %v6777_v50 = vadd.f32 %v11788_v48, %v6645_v17  ;;  %8009 = vmatmul.msk.bf16.gmra.mxu3 %vm1523_vm2, %v14309_v32  ;;  %v14316_v32 = vld [vmem:[#allocation91_spill] sm:$0xff] }
 0x6a3   : > { %v6905_v46 = vmax.f32 %v6777_v50, 0.0  ;;  %v4876_v49 = vpop.f32.mrf.mxu1 }
 0x6a4   : > { %v6373_v9 = vpop.f32.mrf.mxu0  ;;  %v5865_v60 = vpop.f32.mrf.mxu3  ;;  %v5147_v47 = vadd.f32 %v4876_v49, %v14310_v2  ;;  %v14318_v2 = vld [vmem:[#allocation120_spill] sm:$0xff] }
 0x6a5   : > { %v7062_v23 = vsel %vm7004_vm4, %v6905_v46, 0.0  ;;  %v6140_v29 = vadd.f32 %v5865_v60, %v5622_v58  ;;  %v14317_v46 = vld [vmem:[#allocation60_spill] sm:$0xff] }
 0x6a6   : > { %v5359_v35 = vpop.f32.mrf.mxu2  ;;  %v7063_v8 = vadd.f32 %v7062_v23, %v7061_v5  ;;  %v5625_v37 = vadd.f32 %v5354_v13, %v5147_v47  ;;  %v14313_v13 = vld [vmem:[#allocation103_spill] sm:$0xff] }
 0x6a7   : > { %v6646_v26 = vadd.f32 %v6371_v0, %v6140_v29 }
 0x6a8   : > { %7947 = vmatmul.msk.bf16.gmra.mxu2 %vm1523_vm2, %v8410_v57  ;;  %v14319_v57 = vld [vmem:[#allocation109_spill] sm:$0xff] }
 0x6a9   : > { %v6778_v52 = vadd.f32 %v11788_v48, %v6646_v26 }
 0x6ab   : > { %v6906_v59 = vmax.f32 %v6778_v52, 0.0  ;;  %v4879_v62 = vpop.f32.mrf.mxu1 }
 0x6ac   : > { %v6376_v41 = vpop.f32.mrf.mxu0  ;;  %v5867_v56 = vpop.f32.mrf.mxu3  ;;  %v5148_v58 = vadd.f32 %v4879_v62, %v14311_v3  ;;  %8075 = vmatmul.msk.bf16.gmra.mxu0 %vm1523_vm2, %v14312_v11 }
 0x6ad   : > { %v7064_v10 = vsel %vm7004_vm4, %v6906_v59, 0.0  ;;  %v6141_v31 = vadd.f32 %v5867_v56, %v5623_v45 }
 0x6ae   : > { %v5362_v18 = vpop.f32.mrf.mxu2  ;;  %v7065_v38 = vadd.f32 %v7064_v10, %v7063_v8  ;;  %v5626_v43 = vadd.f32 %v5357_v25, %v5148_v58  ;;  %7881 = vmatmul.msk.bf16.gmra.mxu1 %vm1523_vm2, %v14312_v11  ;;  %v8166_v10 = vld [vmem:[%s12780_s5 + $0x30] sm:$0xff] }
 0x6af   : > { %v6647_v22 = vadd.f32 %v6373_v9, %v6141_v31  ;;  %7432 = vmatpush.bf16.msrb.mxu2 %v8166_v10  ;;  %v14327_v10 = vld [vmem:[#allocation158_spill] sm:$0xff] }
 0x6b1   : > { %v6779_v39 = vadd.f32 %v11788_v48, %v6647_v22  ;;  %8010 = vmatmul.msk.bf16.gmra.mxu3 %vm1523_vm2, %v14313_v13 }
 0x6b3   : > { %v6907_v15 = vmax.f32 %v6779_v39, 0.0  ;;  %v4881_v7 = vpop.f32.mrf.mxu1 }
 0x6b4   : > { %v6378_v42 = vpop.f32.mrf.mxu0  ;;  %v5870_v45 = vpop.f32.mrf.mxu3  ;;  %v5149_v33 = vadd.f32 %v4881_v7, %v14314_v16 }
 0x6b5   : > { %v7066_v0 = vsel %vm7004_vm4, %v6907_v15, 0.0  ;;  %v6142_v63 = vadd.f32 %v5870_v45, %v5624_v40  ;;  %v14321_v45 = vld [vmem:[#allocation72_spill] sm:$0xff] }
 0x6b6   : > { %v5364_v51 = vpop.f32.mrf.mxu2  ;;  %v12039_v20 = vadd.f32 %v7066_v0, %v7065_v38  ;;  %v5627_v12 = vadd.f32 %v5359_v35, %v5149_v33 }
 0x6b7   : > { %v6648_v4 = vadd.f32 %v6376_v41, %v6142_v63 }
 0x6b8   : > { %7948 = vmatmul.msk.bf16.gmra.mxu2 %vm1523_vm2, %v14315_v34 }
 0x6b9   : > { %v6780_v17 = vadd.f32 %v11788_v48, %v6648_v4 }
 0x6bb   : > { %v4884_v5 = vpop.f32.mrf.mxu1  ;;  %v6908_v23 = vmax.f32 %v6780_v17, 0.0  ;;  %v14323_v17 = vld [vmem:[#allocation125_spill] sm:$0xff] }
 0x6bc   : > { %v6381_v30 = vpop.f32.mrf.mxu0  ;;  %v5872_v25 = vpop.f32.mrf.mxu3  ;;  %v5150_v9 = vadd.f32 %v4884_v5, %v14316_v32  ;;  %8076 = vmatmul.msk.bf16.gmra.mxu0 %vm1523_vm2, %v14317_v46 }
 0x6bd   : > { %v6143_v50 = vadd.f32 %v5872_v25, %v5625_v37  ;;  %v7074_v37 = vsel %vm7004_vm4, %v6908_v23, 0.0 }
 0x6be   : > { %v5367_v40 = vpop.f32.mrf.mxu2  ;;  %v5628_v49 = vadd.f32 %v5362_v18, %v5150_v9  ;;  %7882 = vmatmul.msk.bf16.gmra.mxu1 %vm1523_vm2, %v14317_v46  ;;  %v8411_v18 = vld [vmem:[%s8517_s19 + $0x180] sm:$0xff]  }
 0x6bf   : > { %v6649_v60 = vadd.f32 %v6378_v42, %v6143_v50  ;;  %v14320_v42 = vld [vmem:[#allocation105_spill] sm:$0xff] }
 0x6c1   : > { %v6781_v29 = vadd.f32 %v11788_v48, %v6649_v60  ;;  %8011 = vmatmul.msk.bf16.gmra.mxu3 %vm1523_vm2, %v14318_v2 }
 0x6c3   : > { %v6909_v35 = vmax.f32 %v6781_v29, 0.0  ;;  %v4886_v26 = vpop.f32.mrf.mxu1  ;;  %v14324_v29 = vld [vmem:[#allocation184_spill] sm:$0xff] }
 0x6c4   : > { %v6383_v47 = vpop.f32.mrf.mxu0  ;;  %v5875_v8 = vpop.f32.mrf.mxu3  ;;  %v5151_v59 = vadd.f32 %v4886_v26, %v14319_v57 }
 0x6c5   : > { %v7075_v52 = vsel %vm7004_vm4, %v6909_v35, 0.0  ;;  %v6144_v41 = vadd.f32 %v5875_v8, %v5626_v43 }
 0x6c6   : > { %v5369_v56 = vpop.f32.mrf.mxu2  ;;  %v7076_v62 = vadd.f32 %v7075_v52, %v7074_v37  ;;  %v5629_v3 = vadd.f32 %v5364_v51, %v5151_v59  ;;  %v14322_v51 = vld [vmem:[#allocation138_spill] sm:$0xff]  ;;  %v14325_v37 = vld [vmem:[#allocation113_spill] sm:$0xff] }
 0x6c7   : > { %v6650_v31 = vadd.f32 %v6381_v30, %v6144_v41  ;;  %v14326_v52 = vld [vmem:[#allocation94_spill] sm:$0xff] }
 0x6c8   : > { %7949 = vmatmul.msk.bf16.gmra.mxu2 %vm1523_vm2, %v8411_v18 }
 0x6c9   : > { %v6782_v58 = vadd.f32 %v11788_v48, %v6650_v31  ;;  %v12070_v48 = vld [vmem:[%s12777_s2] ss:$0 sm:$0xff] }
 0x6cb   : > { %v6910_v38 = vmax.f32 %v6782_v58, 0.0  ;;  %v4889_v43 = vpop.f32.mrf.mxu1 }
 0x6cc   : > { %v6386_v11 = vpop.f32.mrf.mxu0  ;;  %v5877_v22 = vpop.f32.mrf.mxu3  ;;  %v5152_v15 = vadd.f32 %v4889_v43, %v14320_v42  ;;  %8077 = vmatmul.msk.bf16.gmra.mxu0 %vm1523_vm2, %v14321_v45 }
 0x6cd   : > { %v7077_v39 = vsel %vm7004_vm4, %v6910_v38, 0.0  ;;  %v6145_v13 = vadd.f32 %v5877_v22, %v5627_v12  ;;  %v14328_v22 = vld [vmem:[#allocation122_spill] sm:$0xff] }
 0x6ce   : > { %v5372_v7 = vpop.f32.mrf.mxu2  ;;  %v7078_v0 = vadd.f32 %v7077_v39, %v7076_v62  ;;  %v5630_v16 = vadd.f32 %v5367_v40, %v5152_v15  ;;  %7883 = vmatmul.msk.bf16.gmra.mxu1 %vm1523_vm2, %v14321_v45 }
 0x6cf   : > { %v6651_v63 = vadd.f32 %v6383_v47, %v6145_v13 }
 0x6d1   : > { %v6783_v33 = vadd.f32 %v12070_v48, %v6651_v63  ;;  %8012 = vmatmul.msk.bf16.gmra.mxu3 %vm1523_vm2, %v14322_v51  ;;  %v14330_v63 = vunpack.c.h.bf16 %v10835_v27 }
 0x6d3   : > { %v6911_v12 = vmax.f32 %v6783_v33, 0.0  ;;  %v4891_v34 = vpop.f32.mrf.mxu1  ;;  %v4742_v33 = vrot.slane %v14330_v63, 2  ;;  %v14337_v63 = vld [vmem:[#allocation126_spill] sm:$0xff] }
 0x6d4   : > { %v6388_v4 = vpop.f32.mrf.mxu0  ;;  %v5880_v30 = vpop.f32.mrf.mxu3  ;;  %v5153_v50 = vadd.f32 %v4891_v34, %v14323_v17  ;;  %v14331_v34 = vld [vmem:[#allocation131_spill] sm:$0xff] }
 0x6d5   : > { %v7079_v25 = vsel %vm7004_vm4, %v6911_v12, 0.0  ;;  %v6146_v5 = vadd.f32 %v5880_v30, %v5628_v49 }
 0x6d6   : > { %v5374_v32 = vpop.f32.mrf.mxu2  ;;  %v7080_v9 = vadd.f32 %v7079_v25, %v7078_v0  ;;  %v5631_v40 = vadd.f32 %v5369_v56, %v5153_v50  ;;  %v14332_v25 = vunpack.c.l.bf16 %v14331_v34 }
 0x6d7   : > { %v6652_v46 = vadd.f32 %v6386_v11, %v6146_v5 }
 0x6d8   : > { %7950 = vmatmul.msk.bf16.gmra.mxu2 %vm1523_vm2, %v14324_v29  ;;  %v4744_v5 = vrot.slane %v14332_v25, 2 }
 0x6d9   : > { %v6784_v60 = vadd.f32 %v12070_v48, %v6652_v46  ;;  %v14334_v46 = vld [vmem:[#allocation98_spill] sm:$0xff] }
 0x6da   : > { %v4745_v29 = vsel %vm2573_vm3, %v4742_v33, %v4744_v5 }
 0x6db   : > { %v6912_v2 = vmax.f32 %v6784_v60, 0.0  ;;  %v4894_v35 = vpop.f32.mrf.mxu1 }
 0x6dc   : > { %v6391_v23 = vpop.f32.mrf.mxu0  ;;  %v5882_v47 = vpop.f32.mrf.mxu3  ;;  %v5154_v49 = vadd.f32 %v4894_v35, %v14325_v37  ;;  %8078 = vmatmul.msk.bf16.gmra.mxu0 %vm1523_vm2, %v14326_v52  ;;  %v12109_v35 = vld [vmem:[%s8517_s19 + $0x1a4] sm:$0xff]  }
 0x6dd   : > { %v7081_v8 = vsel %vm7004_vm4, %v6912_v2, 0.0  ;;  %v6147_v26 = vadd.f32 %v5882_v47, %v5629_v3 }
 0x6de   : > { %v5377_v41 = vpop.f32.mrf.mxu2  ;;  %v7082_v57 = vadd.f32 %v7081_v8, %v7080_v9  ;;  %v5632_v56 = vadd.f32 %v5372_v7, %v5154_v49  ;;  %7884 = vmatmul.msk.bf16.gmra.mxu1 %vm1523_vm2, %v14326_v52  ;;  %v14329_v7 = vunpack.c.l.bf16 %v10835_v27  ;;  %v640_v49 = vunpack.c.l.bf16 %v12109_v35 }
 0x6df   : > { %v6653_v59 = vadd.f32 %v6388_v4, %v6147_v26  ;;  %v8413_v4 = vld [vmem:[%s8517_s19 + $0x198] sm:$0xff]   ;;  %v14335_v26 = vld [vmem:[#allocation178_spill] sm:$0xff]  ;;  %v641_v52 = vunpack.c.h.bf16 %v12109_v35 }
 0x6e0   : > { %v4741_v0 = vrot.slane %v14329_v7, 2 }
 0x6e1   : > { %v6785_v62 = vadd.f32 %v12070_v48, %v6653_v59  ;;  %8013 = vmatmul.msk.bf16.gmra.mxu3 %vm1523_vm2, %v14327_v10 }
 0x6e3   : > { %v6913_v3 = vmax.f32 %v6785_v62, 0.0  ;;  %v4896_v11 = vpop.f32.mrf.mxu1 }
 0x6e4   : > { %v6393_v31 = vpop.f32.mrf.mxu0  ;;  %v5885_v58 = vpop.f32.mrf.mxu3  ;;  %v5155_v43 = vadd.f32 %v4896_v11, %v14328_v22 }
 0x6e5   : > { %v7083_v18 = vsel %vm7004_vm4, %v6913_v3, 0.0  ;;  %v6148_v38 = vadd.f32 %v5885_v58, %v5630_v16 }
 0x6e6   : > { %v5379_v39 = vpop.f32.mrf.mxu2  ;;  %v7084_v13 = vadd.f32 %v7083_v18, %v7082_v57  ;;  %v5633_v15 = vadd.f32 %v5374_v32, %v5155_v43  ;;  %v14333_v32 = vld [vmem:[#allocation145_spill] sm:$0xff] }
 0x6e7   : > { %v6654_v42 = vadd.f32 %v6391_v23, %v6148_v38  ;;  %v4743_v23 = vsel %vm2573_vm3, %v4741_v0, %v4742_v33 }
 0x6e8   : > { %7951 = vmatmul.msk.bf16.gmra.mxu2 %vm1523_vm2, %v8413_v4  ;;  %v4765_v8 = vpack.c.bf16 %v4745_v29, %v4743_v23  ;;  %v8414_v23 = vld [vmem:[%s8517_s19 + $0x1c8] sm:$0xff]  }
 0x6e9   : > { %v6786_v45 = vadd.f32 %v12070_v48, %v6654_v42 }
 0x6eb   : > { %v6914_v16 = vmax.f32 %v6786_v45, 0.0  ;;  %v4899_v30 = vpop.f32.mrf.mxu1 }
 0x6ec   : > { %v6396_v51 = vpop.f32.mrf.mxu0  ;;  %v5887_v12 = vpop.f32.mrf.mxu3  ;;  %v5156_v9 = vadd.f32 %v4899_v30, %v14333_v32  ;;  %8079 = vmatmul.msk.bf16.gmra.mxu0 %vm1523_vm2, %v14334_v46 }
 0x6ed   : > { %v7085_v17 = vsel %vm7004_vm4, %v6914_v16, 0.0  ;;  %v6149_v50 = vadd.f32 %v5887_v12, %v5631_v40  ;;  %v14338_v12 = vld [vmem:[#allocation195_spill] sm:$0xff] }
 0x6ee   : > { %v5382_v27 = vpop.f32.mrf.mxu2  ;;  %v7086_v60 = vadd.f32 %v7085_v17, %v7084_v13  ;;  %v5634_v47 = vadd.f32 %v5377_v41, %v5156_v9  ;;  %7885 = vmatmul.msk.bf16.gmra.mxu1 %vm1523_vm2, %v14334_v46 }
 0x6ef   : > { %v6655_v2 = vadd.f32 %v6393_v31, %v6149_v50  ;;  %v14336_v31 = vld [vmem:[#allocation141_spill] sm:$0xff] }
 0x6f1   : > { %v6787_v40 = vadd.f32 %v12070_v48, %v6655_v2  ;;  %8014 = vmatmul.msk.bf16.gmra.mxu3 %vm1523_vm2, %v14335_v26  ;;  %v426_v2 = vld [vmem:[%s8517_s19 + $0x1ac] sm:$0x1] }
 0x6f3   : > { %v6915_v57 = vmax.f32 %v6787_v40, 0.0  ;;  %v4901_v62 = vpop.f32.mrf.mxu1 }
 0x6f4   : > { %v6398_v37 = vpop.f32.mrf.mxu0  ;;  %v5890_v59 = vpop.f32.mrf.mxu3  ;;  %v5157_v3 = vadd.f32 %v4901_v62, %v14336_v31  ;;  %v642_v62 = vunpack.c.l.bf16 %v426_v2 }
 0x6f5   : > { %v7087_v41 = vsel %vm7004_vm4, %v6915_v57, 0.0  ;;  %v6150_v10 = vadd.f32 %v5890_v59, %v5632_v56 }
 0x6f6   : > { %v5384_v58 = vpop.f32.mrf.mxu2  ;;  %v7088_v11 = vadd.f32 %v7087_v41, %v7086_v60  ;;  %v5635_v38 = vadd.f32 %v5379_v39, %v5157_v3 }
 0x6f7   : > { %v6656_v18 = vadd.f32 %v6396_v51, %v6150_v10 }
 0x6f8   : > { %7952 = vmatmul.msk.bf16.gmra.mxu2 %vm1523_vm2, %v12109_v35 }
 0x6f9   : > { %v6788_v22 = vadd.f32 %v12070_v48, %v6656_v18 }
 0x6fb   : > { %v6916_v13 = vmax.f32 %v6788_v22, 0.0  ;;  %v4904_v45 = vpop.f32.mrf.mxu1 }
 0x6fc   : > { %v6401_v43 = vpop.f32.mrf.mxu0  ;;  %v5892_v42 = vpop.f32.mrf.mxu3  ;;  %v5158_v56 = vadd.f32 %v4904_v45, %v10871_v54  ;;  %8080 = vmatmul.msk.bf16.gmra.mxu0 %vm1523_vm2, %v14337_v63 }
 0x6fd   : > { %v7089_v7 = vsel %vm7004_vm4, %v6916_v13, 0.0  ;;  %v6151_v0 = vadd.f32 %v5892_v42, %v5633_v15 }
 0x6fe   : > { %v5387_v33 = vpop.f32.mrf.mxu2  ;;  %v7090_v51 = vadd.f32 %v7089_v7, %v7088_v11  ;;  %v5636_v4 = vadd.f32 %v5382_v27, %v5158_v56  ;;  %7886 = vmatmul.msk.bf16.gmra.mxu1 %vm1523_vm2, %v14337_v63  ;;  %v6246_v11 = vrot.slane %v642_v62, 2 }
 0x6ff   : > { %v6657_v39 = vadd.f32 %v6398_v37, %v6151_v0  ;;  %v5740_v0 = vrot.slane %v642_v62, 1  ;;  %v8415_v62 = vld [vmem:[%s8517_s19 + $0x1e0] sm:$0xff]  }
 0x701   : > { %v6789_v16 = vadd.f32 %v12070_v48, %v6657_v39  ;;  %8015 = vmatmul.msk.bf16.gmra.mxu3 %vm1523_vm2, %v14338_v12 }
 0x703   : > { %v6917_v15 = vmax.f32 %v6789_v16, 0.0  ;;  %v4906_v34 = vpop.f32.mrf.mxu1 }
 0x704   : > { %v6403_v30 = vpop.f32.mrf.mxu0  ;;  %v5895_v54 = vpop.f32.mrf.mxu3  ;;  %v5159_v17 = vadd.f32 %v4906_v34, %v10888_v1 }
 0x705   : > { %v7091_v25 = vsel %vm7004_vm4, %v6917_v15, 0.0  ;;  %v6152_v5 = vadd.f32 %v5895_v54, %v5634_v47  ;;  %v14339_v54 = vld [vmem:[#allocation161_spill] sm:$0xff] }
 0x706   : > { %v5389_v50 = vpop.f32.mrf.mxu2  ;;  %v7092_v32 = vadd.f32 %v7091_v25, %v7090_v51  ;;  %v5637_v46 = vadd.f32 %v5384_v58, %v5159_v17  ;;  %v6243_v58 = vrot.slane %v640_v49, 2 }
 0x707   : > { %v6658_v9 = vadd.f32 %v6401_v43, %v6152_v5  ;;  %v5737_v43 = vrot.slane %v640_v49, 1 }
 0x708   : > { %7953 = vmatmul.msk.bf16.gmra.mxu2 %vm1523_vm2, %v8414_v23 }
 0x709   : > { %v6790_v27 = vadd.f32 %v12070_v48, %v6658_v9  ;;  %v14340_v9 = vld [vmem:[#allocation164_spill] sm:$0xff] }
 0x70b   : > { %v6918_v29 = vmax.f32 %v6790_v27, 0.0  ;;  %v4909_v26 = vpop.f32.mrf.mxu1 }
 0x70c   : > { %v6406_v60 = vpop.f32.mrf.mxu0  ;;  %v5897_v40 = vpop.f32.mrf.mxu3  ;;  %v5160_v47 = vadd.f32 %v4909_v26, %v10897_v53  ;;  %8081 = vmatmul.msk.bf16.gmra.mxu0 %vm1523_vm2, %v4765_v8  ;;  %v6244_v53 = vrot.slane %v641_v52, 2 }
 0x70d   : > { %v7093_v37 = vsel %vm7004_vm4, %v6918_v29, 0.0  ;;  %v6153_v57 = vadd.f32 %v5897_v40, %v5635_v38 }
 0x70e   : > { %v5392_v1 = vpop.f32.mrf.mxu2  ;;  %v7094_v59 = vadd.f32 %v7093_v37, %v7092_v32  ;;  %v5638_v10 = vadd.f32 %v5387_v33, %v5160_v47  ;;  %7887 = vmatmul.msk.bf16.gmra.mxu1 %vm1523_vm2, %v4765_v8  ;;  %v6245_v56 = vsel %vm2573_vm3, %v6243_v58, %v6244_v53  ;;  %v6247_v63 = vsel %vm2573_vm3, %v6244_v53, %v6246_v11  ;;  %v14341_v11 = vld [vmem:[#allocation165_spill] sm:$0xff] }
 0x70f   : > { %v6659_v41 = vadd.f32 %v6403_v30, %v6153_v57  ;;  %v6267_v49 = vpack.c.bf16 %v6247_v63, %v6245_v56 }
 0x711   : > { %v6791_v31 = vadd.f32 %v12070_v48, %v6659_v41  ;;  %8016 = vmatmul.msk.bf16.gmra.mxu3 %vm1523_vm2, %v10873_v24  ;;  %v5738_v24 = vrot.slane %v641_v52, 1 }
 0x713   : > { %v6919_v18 = vmax.f32 %v6791_v31, 0.0  ;;  %v4911_v22 = vpop.f32.mrf.mxu1 }
 0x714   : > { %v6408_v3 = vpop.f32.mrf.mxu0  ;;  %v5900_v38 = vpop.f32.mrf.mxu3  ;;  %v5161_v42 = vadd.f32 %v4911_v22, %v10912_v28  ;;  %v5741_v28 = vsel %vm1008_vm1, %v5738_v24, %v5740_v0 }
 0x715   : > { %v7095_v8 = vsel %vm7004_vm4, %v6919_v18, 0.0  ;;  %v6154_v13 = vadd.f32 %v5900_v38, %v5636_v4  ;;  %v5739_v4 = vsel %vm1008_vm1, %v5737_v43, %v5738_v24 }
 0x716   : > { %v5394_v45 = vpop.f32.mrf.mxu2  ;;  %v7096_v7 = vadd.f32 %v7095_v8, %v7094_v59  ;;  %v5639_v51 = vadd.f32 %v5389_v50, %v5161_v42  ;;  %v5761_v25 = vpack.c.bf16 %v5741_v28, %v5739_v4  ;;  %v14342_v8 = vld [vmem:[#allocation22_spill] sm:$0xff] }
 0x717   : > { %v6660_v33 = vadd.f32 %v6406_v60, %v6154_v13 }
 0x718   : > { %7954 = vmatmul.msk.bf16.gmra.mxu2 %vm1523_vm2, %v13886_v55 }
 0x719   : > { %v6792_v39 = vadd.f32 %v12070_v48, %v6660_v33 }
 0x71b   : > { %v6920_v35 = vmax.f32 %v6792_v39, 0.0  ;;  %v4914_v12 = vpop.f32.mrf.mxu1 }
 0x71c   : > { %v6411_v16 = vpop.f32.mrf.mxu0  ;;  %v5902_v52 = vpop.f32.mrf.mxu3  ;;  %v5162_v34 = vadd.f32 %v4914_v12, %v14339_v54  ;;  %8082 = vmatmul.msk.bf16.gmra.mxu0 %vm1523_vm2, %v6267_v49  ;;  %v14343_v12 = vld [vmem:[#allocation181_spill] sm:$0xff] }
 0x71d   : > { %v7097_v30 = vsel %vm7004_vm4, %v6920_v35, 0.0  ;;  %v6155_v15 = vadd.f32 %v5902_v52, %v5637_v46 }
 0x71e   : > { %v5397_v5 = vpop.f32.mrf.mxu2  ;;  %v7098_v17 = vadd.f32 %v7097_v30, %v7096_v7  ;;  %v5640_v32 = vadd.f32 %v5392_v1, %v5162_v34  ;;  %7888 = vmatmul.msk.bf16.gmra.mxu1 %vm1523_vm2, %v14340_v9 }
 0x71f   : > { %v6661_v50 = vadd.f32 %v6408_v3, %v6155_v15  ;;  %v14344_v15 = vld [vmem:[#allocation150_spill] sm:$0xff] }
 0x721   : > { %v6793_v55 = vadd.f32 %v12070_v48, %v6661_v50  ;;  %8017 = vmatmul.msk.bf16.gmra.mxu3 %vm1523_vm2, %v5761_v25 }
 0x723   : > { %v6921_v60 = vmax.f32 %v6793_v55, 0.0  ;;  %v4916_v23 = vpop.f32.mrf.mxu1 }
 0x724   : > { %v6413_v27 = vpop.f32.mrf.mxu0  ;;  %v5905_v46 = vpop.f32.mrf.mxu3  ;;  %v5163_v40 = vadd.f32 %v4916_v23, %v10936_v61 }
 0x725   : > { %v7099_v29 = vsel %vm7004_vm4, %v6921_v60, 0.0  ;;  %v6156_v2 = vadd.f32 %v5905_v46, %v5638_v10  ;;  %v14346_v60 = vld [vmem:[#allocation200_spill] sm:$0xff] }
 0x726   : > { %v5399_v26 = vpop.f32.mrf.mxu2  ;;  %v7100_v37 = vadd.f32 %v7099_v29, %v7098_v17  ;;  %v5641_v47 = vadd.f32 %v5394_v45, %v5163_v40 }
 0x727   : > { %v6662_v57 = vadd.f32 %v6411_v16, %v6156_v2  ;;  %v8165_v2 = vld [vmem:[%s12780_s5 + $0x28] sm:$0xff] }
 0x728   : > { %7955 = vmatmul.msk.bf16.gmra.mxu2 %vm1523_vm2, %v8415_v62 }
 0x729   : > { %v6794_v1 = vadd.f32 %v12070_v48, %v6662_v57  ;;  %7433 = vmatpush.bf16.msrb.mxu2 %v8165_v2 }
 0x72b   : > { %v6922_v41 = vmax.f32 %v6794_v1, 0.0  ;;  %v4919_v3 = vpop.f32.mrf.mxu1 }
 0x72c   : > { %v6416_v59 = vpop.f32.mrf.mxu0  ;;  %v5907_v31 = vpop.f32.mrf.mxu3  ;;  %v5164_v10 = vadd.f32 %v4919_v3, %v10944_v6  ;;  %8083 = vmatmul.msk.bf16.gmra.mxu0 %vm1523_vm2, %v14341_v11  ;;  %v14347_v3 = vld [vmem:[#allocation190_spill] sm:$0xff] }
 0x72d   : > { %v7101_v58 = vsel %vm7004_vm4, %v6922_v41, 0.0  ;;  %v6157_v53 = vadd.f32 %v5907_v31, %v5639_v51 }
 0x72e   : > { %v5402_v61 = vpop.f32.mrf.mxu2  ;;  %v7102_v18 = vadd.f32 %v7101_v58, %v7100_v37  ;;  %v5642_v22 = vadd.f32 %v5397_v5, %v5164_v10  ;;  %7889 = vmatmul.msk.bf16.gmra.mxu1 %vm1523_vm2, %v14341_v11  ;;  %v14345_v5 = vld [vmem:[#allocation33_spill] sm:$0xff] }
 0x72f   : > { %v6663_v38 = vadd.f32 %v6413_v27, %v6157_v53  ;;  %v14348_v53 = vld [vmem:[#allocation185_spill] sm:$0xff] }
 0x731   : > { %v6795_v43 = vadd.f32 %v12070_v48, %v6663_v38  ;;  %8018 = vmatmul.msk.bf16.gmra.mxu3 %vm1523_vm2, %v14342_v8 }
 0x733   : > { %v6923_v42 = vmax.f32 %v6795_v43, 0.0  ;;  %v4921_v45 = vpop.f32.mrf.mxu1 }
 0x734   : > { %v6418_v13 = vpop.f32.mrf.mxu0  ;;  %v5910_v24 = vpop.f32.mrf.mxu3  ;;  %v5165_v0 = vadd.f32 %v4921_v45, %v10959_v19 }
 0x735   : > { %v7103_v6 = vsel %vm7004_vm4, %v6923_v42, 0.0  ;;  %v6158_v7 = vadd.f32 %v5910_v24, %v5640_v32 }
 0x736   : > { %v5404_v56 = vpop.f32.mrf.mxu2  ;;  %v7104_v63 = vadd.f32 %v7103_v6, %v7102_v18  ;;  %v5643_v51 = vadd.f32 %v5399_v26, %v5165_v0  ;;  %v14350_v6 = vld [vmem:[#allocation197_spill] sm:$0xff] }
 0x737   : > { %v6664_v33 = vadd.f32 %v6416_v59, %v6158_v7 }
 0x738   : > { %7956 = vmatmul.msk.bf16.gmra.mxu2 %vm1523_vm2, %v13901_v44 }
 0x739   : > { %v6796_v39 = vadd.f32 %v12070_v48, %v6664_v33 }
 0x73b   : > { %v6924_v16 = vmax.f32 %v6796_v39, 0.0  ;;  %v4924_v28 = vpop.f32.mrf.mxu1 }
 0x73c   : > { %v6421_v49 = vpop.f32.mrf.mxu0  ;;  %v5912_v4 = vpop.f32.mrf.mxu3  ;;  %v5166_v30 = vadd.f32 %v4924_v28, %v14343_v12  ;;  %8084 = vmatmul.msk.bf16.gmra.mxu0 %vm1523_vm2, %v14344_v15  ;;  %v14352_v12 = vld [vmem:[#allocation13_spill] sm:$0xff] }
 0x73d   : > { %v7105_v35 = vsel %vm7004_vm4, %v6924_v16, 0.0  ;;  %v6159_v52 = vadd.f32 %v5912_v4, %v5641_v47  ;;  %v8416_v47 = vld [vmem:[%s8517_s19 + $0x1f8] sm:$0xff]  }
 0x73e   : > { %v5407_v19 = vpop.f32.mrf.mxu2  ;;  %v7106_v54 = vadd.f32 %v7105_v35, %v7104_v63  ;;  %v5644_v25 = vadd.f32 %v5402_v61, %v5166_v30  ;;  %7890 = vmatmul.msk.bf16.gmra.mxu1 %vm1523_vm2, %v14344_v15  ;;  %v14353_v15 = vld [vmem:[#allocation170_spill] sm:$0xff] }
 0x73f   : > { %v6665_v34 = vadd.f32 %v6418_v13, %v6159_v52 }
 0x741   : > { %v6797_v44 = vadd.f32 %v12070_v48, %v6665_v34  ;;  %8019 = vmatmul.msk.bf16.gmra.mxu3 %vm1523_vm2, %v14345_v5  ;;  %v14354_v5 = vld [vmem:[#allocation54_spill] sm:$0xff] }
 0x743   : > { %v6925_v50 = vmax.f32 %v6797_v44, 0.0  ;;  %v4926_v9 = vpop.f32.mrf.mxu1 }
 0x744   : > { %v6423_v17 = vpop.f32.mrf.mxu0  ;;  %v5915_v32 = vpop.f32.mrf.mxu3  ;;  %v5167_v46 = vadd.f32 %v4926_v9, %v14346_v60  ;;  %v14355_v60 = vld [vmem:[#allocation205_spill] sm:$0xff] }
 0x745   : > { %v7107_v55 = vsel %vm7004_vm4, %v6925_v50, 0.0  ;;  %v6160_v27 = vadd.f32 %v5915_v32, %v5642_v22  ;;  %v14349_v22 = vld [vmem:[#allocation43_spill] sm:$0xff] }
 0x746   : > { %v5409_v23 = vpop.f32.mrf.mxu2  ;;  %v7108_v29 = vadd.f32 %v7107_v55, %v7106_v54  ;;  %v5645_v26 = vadd.f32 %v5404_v56, %v5167_v46 }
 0x747   : > { %v6666_v40 = vadd.f32 %v6421_v49, %v6160_v27  ;;  %v14351_v49 = vld [vmem:[#allocation65_spill] sm:$0xff] }
 0x748   : > { %7957 = vmatmul.msk.bf16.gmra.mxu2 %vm1523_vm2, %v8416_v47 }
 0x749   : > { %v6798_v37 = vadd.f32 %v12070_v48, %v6666_v40 }
 0x74b   : > { %v6926_v1 = vmax.f32 %v6798_v37, 0.0  ;;  %v4929_v62 = vpop.f32.mrf.mxu1 }
 0x74c   : > { %v6426_v57 = vpop.f32.mrf.mxu0  ;;  %v5917_v59 = vpop.f32.mrf.mxu3  ;;  %v5168_v58 = vadd.f32 %v4929_v62, %v14347_v3  ;;  %8085 = vmatmul.msk.bf16.gmra.mxu0 %vm1523_vm2, %v14348_v53 }
 0x74d   : > { %v7109_v41 = vsel %vm7004_vm4, %v6926_v1, 0.0  ;;  %v6161_v31 = vadd.f32 %v5917_v59, %v5643_v51 }
 0x74e   : > { %v5412_v10 = vpop.f32.mrf.mxu2  ;;  %v7110_v11 = vadd.f32 %v7109_v41, %v7108_v29  ;;  %v5646_v18 = vadd.f32 %v5407_v19, %v5168_v58  ;;  %7891 = vmatmul.msk.bf16.gmra.mxu1 %vm1523_vm2, %v14348_v53  ;;  %v14357_v58 = vld [vmem:[#allocation201_spill] sm:$0xff] }
 0x74f   : > { %v6667_v61 = vadd.f32 %v6423_v17, %v6161_v31  ;;  %v14356_v31 = vld [vmem:[#allocation15_spill] sm:$0xff] }
 0x751   : > { %v6799_v38 = vadd.f32 %v12070_v48, %v6667_v61  ;;  %8020 = vmatmul.msk.bf16.gmra.mxu3 %vm1523_vm2, %v14349_v22 }
 0x753   : > { %v6927_v8 = vmax.f32 %v6799_v38, 0.0  ;;  %v4931_v42 = vpop.f32.mrf.mxu1  ;;  %v14358_v38 = vld [vmem:[#allocation64_spill] sm:$0xff] }
 0x754   : > { %v6428_v43 = vpop.f32.mrf.mxu0  ;;  %v5920_v13 = vpop.f32.mrf.mxu3  ;;  %v5169_v7 = vadd.f32 %v4931_v42, %v14350_v6 }
 0x755   : > { %v7111_v24 = vsel %vm7004_vm4, %v6927_v8, 0.0  ;;  %v6162_v45 = vadd.f32 %v5920_v13, %v5644_v25 }
 0x756   : > { %v5414_v0 = vpop.f32.mrf.mxu2  ;;  %v7112_v56 = vadd.f32 %v7111_v24, %v7110_v11  ;;  %v5647_v33 = vadd.f32 %v5409_v23, %v5169_v7 }
 0x757   : > { %v6668_v63 = vadd.f32 %v6426_v57, %v6162_v45  ;;  %v8417_v57 = vld [vmem:[%s8517_s19 + $0x210] sm:$0xff]  }
 0x758   : > { %7958 = vmatmul.msk.bf16.gmra.mxu2 %vm1523_vm2, %v14351_v49  ;;  %v14359_v45 = vld [vmem:[#allocation16_spill] sm:$0xff] }
 0x759   : > { %v6800_v51 = vadd.f32 %v12070_v48, %v6668_v63 }
 0x75b   : > { %v6928_v16 = vmax.f32 %v6800_v51, 0.0  ;;  %v4934_v28 = vpop.f32.mrf.mxu1 }
 0x75c   : > { %v6431_v39 = vpop.f32.mrf.mxu0  ;;  %v5922_v4 = vpop.f32.mrf.mxu3  ;;  %v5170_v30 = vadd.f32 %v4934_v28, %v14352_v12  ;;  %8086 = vmatmul.msk.bf16.gmra.mxu0 %vm1523_vm2, %v14353_v15 }
 0x75d   : > { %v7113_v35 = vsel %vm7004_vm4, %v6928_v16, 0.0  ;;  %v6163_v52 = vadd.f32 %v5922_v4, %v5645_v26 }
 0x75e   : > { %v5417_v19 = vpop.f32.mrf.mxu2  ;;  %v7114_v54 = vadd.f32 %v7113_v35, %v7112_v56  ;;  %v5648_v25 = vadd.f32 %v5412_v10, %v5170_v30  ;;  %7892 = vmatmul.msk.bf16.gmra.mxu1 %vm1523_vm2, %v14353_v15  ;;  %v14362_v30 = vld [vmem:[#allocation9_spill] sm:$0xff] }
 0x75f   : > { %v6669_v34 = vadd.f32 %v6428_v43, %v6163_v52  ;;  %v14361_v52 = vld [vmem:[#allocation14_spill] sm:$0xff] }
 0x761   : > { %v6801_v44 = vadd.f32 %v12070_v48, %v6669_v34  ;;  %8021 = vmatmul.msk.bf16.gmra.mxu3 %vm1523_vm2, %v14354_v5 }
 0x763   : > { %v6929_v50 = vmax.f32 %v6801_v44, 0.0  ;;  %v4936_v9 = vpop.f32.mrf.mxu1  ;;  %v14363_v44 = vld [vmem:[#allocation75_spill] sm:$0xff] }
 0x764   : > { %v6433_v17 = vpop.f32.mrf.mxu0  ;;  %v5925_v32 = vpop.f32.mrf.mxu3  ;;  %v5171_v46 = vadd.f32 %v4936_v9, %v14355_v60 }
 0x765   : > { %v7115_v55 = vsel %vm7004_vm4, %v6929_v50, 0.0  ;;  %v6164_v27 = vadd.f32 %v5925_v32, %v5646_v18 }
 0x766   : > { %v5419_v23 = vpop.f32.mrf.mxu2  ;;  %v7116_v29 = vadd.f32 %v7115_v55, %v7114_v54  ;;  %v5649_v40 = vadd.f32 %v5414_v0, %v5171_v46 }
 0x767   : > { %v6670_v2 = vadd.f32 %v6431_v39, %v6164_v27  ;;  %v14360_v39 = vld [vmem:[#allocation86_spill] sm:$0xff]  ;;  %v14364_v27 = vld [vmem:[#allocation23_spill] sm:$0xff] }
 0x768   : > { %7959 = vmatmul.msk.bf16.gmra.mxu2 %vm1523_vm2, %v8417_v57 }
 0x769   : > { %v6802_v26 = vadd.f32 %v12070_v48, %v6670_v2 }
 0x76b   : > { %v6930_v47 = vmax.f32 %v6802_v26, 0.0  ;;  %v4939_v59 = vpop.f32.mrf.mxu1 }
 0x76c   : > { %v6436_v37 = vpop.f32.mrf.mxu0  ;;  %v5927_v1 = vpop.f32.mrf.mxu3  ;;  %v5172_v3 = vadd.f32 %v4939_v59, %v14356_v31  ;;  %8087 = vmatmul.msk.bf16.gmra.mxu0 %vm1523_vm2, %v14357_v58 }
 0x76d   : > { %v7117_v62 = vsel %vm7004_vm4, %v6930_v47, 0.0  ;;  %v6165_v41 = vadd.f32 %v5927_v1, %v5647_v33 }
 0x76e   : > { %v5422_v53 = vpop.f32.mrf.mxu2  ;;  %v7118_v10 = vadd.f32 %v7117_v62, %v7116_v29  ;;  %v5650_v61 = vadd.f32 %v5417_v19, %v5172_v3  ;;  %7893 = vmatmul.msk.bf16.gmra.mxu1 %vm1523_vm2, %v14357_v58  ;;  %v14366_v3 = vld [vmem:[#allocation210_spill] sm:$0xff] }
 0x76f   : > { %v6671_v11 = vadd.f32 %v6433_v17, %v6165_v41  ;;  %v14365_v41 = vld [vmem:[#allocation34_spill] sm:$0xff] }
 0x771   : > { %v6803_v18 = vadd.f32 %v12070_v48, %v6671_v11  ;;  %8022 = vmatmul.msk.bf16.gmra.mxu3 %vm1523_vm2, %v14358_v38 }
 0x773   : > { %v6931_v43 = vmax.f32 %v6803_v18, 0.0  ;;  %v4941_v13 = vpop.f32.mrf.mxu1  ;;  %v14367_v18 = vld [vmem:[#allocation85_spill] sm:$0xff] }
 0x774   : > { %v6438_v22 = vpop.f32.mrf.mxu0  ;;  %v5930_v8 = vpop.f32.mrf.mxu3  ;;  %v5173_v6 = vadd.f32 %v4941_v13, %v14359_v45 }
 0x775   : > { %v7119_v42 = vsel %vm7004_vm4, %v6931_v43, 0.0  ;;  %v6166_v24 = vadd.f32 %v5930_v8, %v5648_v25 }
 0x776   : > { %v5424_v7 = vpop.f32.mrf.mxu2  ;;  %v7120_v0 = vadd.f32 %v7119_v42, %v7118_v10  ;;  %v5651_v63 = vadd.f32 %v5419_v23, %v5173_v6 }
 0x777   : > { %v6672_v56 = vadd.f32 %v6436_v37, %v6166_v24  ;;  %v8418_v37 = vld [vmem:[%s8517_s19 + $0x228] sm:$0xff]  }
 0x778   : > { %7960 = vmatmul.msk.bf16.gmra.mxu2 %vm1523_vm2, %v14360_v39  ;;  %v14368_v24 = vld [vmem:[#allocation35_spill] sm:$0xff] }
 0x779   : > { %v6804_v33 = vadd.f32 %v12070_v48, %v6672_v56 }
 0x77b   : > { %v6932_v49 = vmax.f32 %v6804_v33, 0.0  ;;  %v4944_v4 = vpop.f32.mrf.mxu1 }
 0x77c   : > { %v6441_v51 = vpop.f32.mrf.mxu0  ;;  %v5932_v16 = vpop.f32.mrf.mxu3  ;;  %v5174_v12 = vadd.f32 %v4944_v4, %v14361_v52  ;;  %8088 = vmatmul.msk.bf16.gmra.mxu0 %vm1523_vm2, %v14362_v30 }
 0x77d   : > { %v7121_v28 = vsel %vm7004_vm4, %v6932_v49, 0.0  ;;  %v6167_v35 = vadd.f32 %v5932_v16, %v5649_v40 }
 0x77e   : > { %v5427_v15 = vpop.f32.mrf.mxu2  ;;  %v7122_v19 = vadd.f32 %v7121_v28, %v7120_v0  ;;  %v5652_v34 = vadd.f32 %v5422_v53, %v5174_v12  ;;  %7894 = vmatmul.msk.bf16.gmra.mxu1 %vm1523_vm2, %v14362_v30  ;;  %v14371_v12 = vld [vmem:[#allocation217_spill] sm:$0xff] }
 0x77f   : > { %v6673_v54 = vadd.f32 %v6438_v22, %v6167_v35  ;;  %v14370_v35 = vld [vmem:[#allocation45_spill] sm:$0xff] }
 0x781   : > { %v6805_v25 = vadd.f32 %v12070_v48, %v6673_v54  ;;  %8023 = vmatmul.msk.bf16.gmra.mxu3 %vm1523_vm2, %v14363_v44 }
 0x783   : > { %v6933_v17 = vmax.f32 %v6805_v25, 0.0  ;;  %v4946_v32 = vpop.f32.mrf.mxu1  ;;  %v14372_v25 = vld [vmem:[#allocation99_spill] sm:$0xff] }
 0x784   : > { %v6443_v5 = vpop.f32.mrf.mxu0  ;;  %v5935_v50 = vpop.f32.mrf.mxu3  ;;  %v5175_v60 = vadd.f32 %v4946_v32, %v14364_v27  ;;  %v14373_v27 = vld [vmem:[#allocation55_spill] sm:$0xff] }
 0x785   : > { %v7123_v9 = vsel %vm7004_vm4, %v6933_v17, 0.0  ;;  %v6168_v55 = vadd.f32 %v5935_v50, %v5650_v61  ;;  %v8440_v17 = vmov 256.0  }
 0x786   : > { %v5429_v46 = vpop.f32.mrf.mxu2  ;;  %v7124_v23 = vadd.f32 %v7123_v9, %v7122_v19  ;;  %v5653_v2 = vadd.f32 %v5424_v7, %v5175_v60  ;;  %8363 = vrcp.f32 %v8440_v17 }
 0x787   : > { %v6674_v29 = vadd.f32 %v6441_v51, %v6168_v55  ;;  %v14369_v51 = vld [vmem:[#allocation116_spill] sm:$0xff] }
 0x788   : > { %7961 = vmatmul.msk.bf16.gmra.mxu2 %vm1523_vm2, %v8418_v37 }
 0x789   : > { %v6806_v40 = vadd.f32 %v12070_v48, %v6674_v29 }
 0x78b   : > { %v6934_v57 = vmax.f32 %v6806_v40, 0.0  ;;  %v4949_v1 = vpop.f32.mrf.mxu1  ;;  %v7068_v40 = vrot.slane %v12039_v20, 4 }
 0x78c   : > { %v6446_v26 = vpop.f32.mrf.mxu0  ;;  %v5937_v47 = vpop.f32.mrf.mxu3  ;;  %v5176_v31 = vadd.f32 %v4949_v1, %v14365_v41  ;;  %8089 = vmatmul.msk.bf16.gmra.mxu0 %vm1523_vm2, %v14366_v3 }
 0x78d   : > { %v7125_v59 = vsel %vm7004_vm4, %v6934_v57, 0.0  ;;  %v6169_v62 = vadd.f32 %v5937_v47, %v5651_v63  ;;  %v8364_v37 = vpop.eup %8363  ;;  %v8419_v47 = vld [vmem:[%s8517_s19 + $0x240] sm:$0xff]  }
 0x78e   : > { %v5432_v58 = vpop.f32.mrf.mxu2  ;;  %v7126_v53 = vadd.f32 %v7125_v59, %v7124_v23  ;;  %v5654_v11 = vadd.f32 %v5427_v15, %v5176_v31  ;;  %7895 = vmatmul.msk.bf16.gmra.mxu1 %vm1523_vm2, %v14366_v3  ;;  %v7069_v59 = vadd.f32 %v7068_v40, %v12039_v20  ;;  %v7282_v31 = vmul.f32 256.0, %v8364_v37 }
 0x78f   : > { %v6675_v10 = vadd.f32 %v6443_v5, %v6169_v62  ;;  %vm7286_vm5 = vweird.f32 %v8364_v37 }
 0x790   : > { %v7283_v20 = vsub.f32 1.0, %v7282_v31 }
 0x791   : > { %v6807_v61 = vadd.f32 %v12070_v48, %v6675_v10  ;;  %8024 = vmatmul.msk.bf16.gmra.mxu3 %vm1523_vm2, %v14367_v18 }
 0x793   : > { %v6935_v22 = vmax.f32 %v6807_v61, 0.0  ;;  %v4951_v8 = vpop.f32.mrf.mxu1 }
 0x794   : > { %v6448_v38 = vpop.f32.mrf.mxu0  ;;  %v5940_v43 = vpop.f32.mrf.mxu3  ;;  %v5177_v45 = vadd.f32 %v4951_v8, %v14368_v24 }
 0x795   : > { %v7127_v13 = vsel %vm7004_vm4, %v6935_v22, 0.0  ;;  %v6170_v42 = vadd.f32 %v5940_v43, %v5652_v34  ;;  %v7070_v43 = vrot.slane %v7069_v59, 2 }
 0x796   : > { %v5434_v6 = vpop.f32.mrf.mxu2  ;;  %v7128_v7 = vadd.f32 %v7127_v13, %v7126_v53  ;;  %v5655_v56 = vadd.f32 %v5429_v46, %v5177_v45  ;;  %v14374_v53 = vld [vmem:[#allocation66_spill] sm:$0xff]  ;;  %v14376_v13 = vld [vmem:[#allocation115_spill] sm:$0xff] }
 0x797   : > { %v6676_v0 = vadd.f32 %v6446_v26, %v6170_v42  ;;  %v7071_v45 = vadd.f32 %v7070_v43, %v7069_v59  ;;  %v8164_v43 = vld [vmem:[%s12780_s5 + $0x20] sm:$0xff] }
 0x798   : > { %7962 = vmatmul.msk.bf16.gmra.mxu2 %vm1523_vm2, %v14369_v51 }
 0x799   : > { %v6808_v63 = vadd.f32 %v12070_v48, %v6676_v0  ;;  %v7284_v0 = vmul.f32 %v8364_v37, %v7283_v20  ;;  %7434 = vmatpush.bf16.msrb.mxu2 %v8164_v43 }
 0x79b   : > { %v6936_v39 = vmax.f32 %v6808_v63, 0.0  ;;  %v4954_v16 = vpop.f32.mrf.mxu1 }
 0x79c   : > { %v6451_v33 = vpop.f32.mrf.mxu0  ;;  %v5942_v49 = vpop.f32.mrf.mxu3  ;;  %v5178_v52 = vadd.f32 %v4954_v16, %v14370_v35  ;;  %8090 = vmatmul.msk.bf16.gmra.mxu0 %vm1523_vm2, %v14371_v12  ;;  %v8158_v16 = vld [vmem:[%s12778_s3] sm:$0xff]  ;;  %v7072_v35 = vrot.slane %v7071_v45, 1 }
 0x79d   : > { %v7129_v4 = vsel %vm7004_vm4, %v6936_v39, 0.0  ;;  %v6171_v28 = vadd.f32 %v5942_v49, %v5653_v2  ;;  %7341 = vmatpush.bf16.msrb.mxu1 %v8158_v16 }
 0x79e   : > { %v5437_v30 = vpop.f32.mrf.mxu2  ;;  %v7130_v15 = vadd.f32 %v7129_v4, %v7128_v7  ;;  %v5656_v54 = vadd.f32 %v5432_v58, %v5178_v52  ;;  %7896 = vmatmul.msk.bf16.gmra.mxu1 %vm1523_vm2, %v14371_v12  ;;  %v7285_v12 = vadd.f32 %v8364_v37, %v7284_v0 }
 0x79f   : > { %v6677_v19 = vadd.f32 %v6448_v38, %v6171_v28 }
 0x7a1   : > { %v6809_v34 = vadd.f32 %v12070_v48, %v6677_v19  ;;  %8025 = vmatmul.msk.bf16.gmra.mxu3 %vm1523_vm2, %v14372_v25  ;;  %v14378_v19 = vld [vmem:[#allocation153_spill] sm:$0xff] }
 0x7a3   : > { %v6937_v5 = vmax.f32 %v6809_v34, 0.0  ;;  %v4956_v32 = vpop.f32.mrf.mxu1 }
 0x7a4   : > { %v6453_v44 = vpop.f32.mrf.mxu0  ;;  %v5945_v50 = vpop.f32.mrf.mxu3  ;;  %v5179_v60 = vadd.f32 %v4956_v32, %v14373_v27  ;;  %v14379_v32 = vld [vmem:[#allocation249_spill] sm:$0xff] }
 0x7a5   : > { %v7131_v9 = vsel %vm7004_vm4, %v6937_v5, 0.0  ;;  %v6172_v55 = vadd.f32 %v5945_v50, %v5654_v11  ;;  %v14375_v11 = vld [vmem:[#allocation24_spill] sm:$0xff]  ;;  %v12305_v5 = vsel %vm7286_vm5, %v8364_v37, %v7285_v12 }
 0x7a6   : > { %v5439_v46 = vpop.f32.mrf.mxu2  ;;  %v7132_v23 = vadd.f32 %v7131_v9, %v7130_v15  ;;  %v5657_v2 = vadd.f32 %v5434_v6, %v5179_v60 }
 0x7a7   : > { %v6678_v29 = vadd.f32 %v6451_v33, %v6172_v55  ;;  %v14377_v33 = vld [vmem:[#allocation76_spill] sm:$0xff] }
 0x7a8   : > { %7963 = vmatmul.msk.bf16.gmra.mxu2 %vm1523_vm2, %v8419_v47  ;;  %v14380_v55 = vld [vmem:[#allocation44_spill] sm:$0xff] }
 0x7a9   : > { %v6810_v26 = vadd.f32 %v12070_v48, %v6678_v29 }
 0x7ab   : > { %v6938_v1 = vmax.f32 %v6810_v26, 0.0  ;;  %v4959_v41 = vpop.f32.mrf.mxu1 }
 0x7ac   : > { %v6456_v57 = vpop.f32.mrf.mxu0  ;;  %v5947_v62 = vpop.f32.mrf.mxu3  ;;  %v5180_v10 = vadd.f32 %v4959_v41, %v14374_v53  ;;  %8091 = vmatmul.msk.bf16.gmra.mxu0 %vm1523_vm2, %v14375_v11 }
 0x7ad   : > { %v7133_v3 = vsel %vm7004_vm4, %v6938_v1, 0.0  ;;  %v6173_v58 = vadd.f32 %v5947_v62, %v5655_v56 }
 0x7ae   : > { %v5442_v61 = vpop.f32.mrf.mxu2  ;;  %v7134_v18 = vadd.f32 %v7133_v3, %v7132_v23  ;;  %v5658_v22 = vadd.f32 %v5437_v30, %v5180_v10  ;;  %7897 = vmatmul.msk.bf16.gmra.mxu1 %vm1523_vm2, %v14375_v11  ;;  %v14382_v10 = vld [vmem:[#allocation253_spill] sm:$0xff] }
 0x7af   : > { %v6679_v38 = vadd.f32 %v6453_v44, %v6173_v58 }
 0x7b1   : > { %v6811_v8 = vadd.f32 %v12070_v48, %v6679_v38  ;;  %8026 = vmatmul.msk.bf16.gmra.mxu3 %vm1523_vm2, %v14376_v13 }
 0x7b3   : > { %v6939_v24 = vmax.f32 %v6811_v8, 0.0  ;;  %v4961_v7 = vpop.f32.mrf.mxu1 }
 0x7b4   : > { %v6458_v42 = vpop.f32.mrf.mxu0  ;;  %v5950_v6 = vpop.f32.mrf.mxu3  ;;  %v5181_v51 = vadd.f32 %v4961_v7, %v14377_v33 }
 0x7b5   : > { %v7135_v56 = vsel %vm7004_vm4, %v6939_v24, 0.0  ;;  %v6174_v63 = vadd.f32 %v5950_v6, %v5656_v54  ;;  %v7073_v54 = vadd.f32 %v7072_v35, %v7071_v45  ;;  %v8420_v6 = vld [vmem:[%s8517_s19 + $0x258] sm:$0xff]  }
 0x7b6   : > { %v5444_v39 = vpop.f32.mrf.mxu2  ;;  %v7136_v49 = vadd.f32 %v7135_v56, %v7134_v18  ;;  %v5659_v28 = vadd.f32 %v5439_v46, %v5181_v51  ;;  %v14383_v51 = vld [vmem:[#allocation256_spill] sm:$0xff] }
 0x7b7   : > { %v6680_v4 = vadd.f32 %v6456_v57, %v6174_v63  ;;  %v7288_v29 = vmul.f32 %v12305_v5, %v7073_v54  ;;  %v14381_v57 = vld [vmem:[#allocation133_spill] sm:$0xff] }
 0x7b8   : > { %v7137_v52 = vrot.slane %v7136_v49, 4  ;;  %7964 = vmatmul.msk.bf16.gmra.mxu2 %vm1523_vm2, %v14378_v19 }
 0x7b9   : > { %v6812_v17 = vadd.f32 %v12070_v48, %v6680_v4  ;;  %v7292_v59 = vpack.c.bf16 %v7288_v29, %v7288_v29 }
 0x7ba   : > { %v7138_v30 = vadd.f32 %v7137_v52, %v7136_v49  ;;  %v14384_v49 = vld [vmem:[#allocation56_spill] sm:$0xff] }
 0x7bb   : > { %v4964_v44 = vpop.f32.mrf.mxu1  ;;  %v6940_v26 = vmax.f32 %v6812_v17, 0.0  ;;  %v7308_v13 = vunpack.c.l.b16 %v7292_v59 }
 0x7bc   : > { %v6461_v15 = vpop.f32.mrf.mxu0  ;;  %v7139_v34 = vrot.slane %v7138_v30, 2  ;;  %v5952_v25 = vpop.f32.mrf.mxu3  ;;  %v5182_v9 = vadd.f32 %v4964_v44, %v14379_v32  ;;  %8092 = vmatmul.msk.bf16.gmra.mxu0 %vm1523_vm2, %v14380_v55  ;;  %v14386_v44 = vld [vmem:[#allocation260_spill] sm:$0xff] }
 0x7bd   : > { %v6175_v50 = vadd.f32 %v5952_v25, %v5657_v2  ;;  %v7143_v3 = vsel %vm7004_vm4, %v6940_v26, 0.0 }
 0x7be   : > { %v5447_v27 = vpop.f32.mrf.mxu2  ;;  %v7140_v60 = vadd.f32 %v7139_v34, %v7138_v30  ;;  %v5660_v23 = vadd.f32 %v5442_v61, %v5182_v9  ;;  %7898 = vmatmul.msk.bf16.gmra.mxu1 %vm1523_vm2, %v14380_v55  ;;  %v14385_v30 = vld [vmem:[#allocation152_spill] sm:$0xff] }
 0x7bf   : > { %v6681_v46 = vadd.f32 %v6458_v42, %v6175_v50 }
 0x7c0   : > { %v7141_v40 = vrot.slane %v7140_v60, 1 }
 0x7c1   : > { %v6813_v37 = vadd.f32 %v12070_v48, %v6681_v46  ;;  %8027 = vmatmul.msk.bf16.gmra.mxu3 %vm1523_vm2, %v14381_v57  ;;  %v14387_v46 = vld [vmem:[#allocation4_spill] sm:$0xff]  ;;  %v14388_v57 = vld [vmem:[#allocation101_spill] sm:$0xff] }
 0x7c2   : > { %v7142_v2 = vadd.f32 %v7141_v40, %v7140_v60 }
 0x7c3   : > { %v6941_v1 = vmax.f32 %v6813_v37, 0.0  ;;  %v4966_v31 = vpop.f32.mrf.mxu1 }
 0x7c4   : > { %v6463_v47 = vpop.f32.mrf.mxu0  ;;  %v7289_v62 = vmul.f32 %v12305_v5, %v7142_v2  ;;  %v5955_v41 = vpop.f32.mrf.mxu3  ;;  %v5183_v11 = vadd.f32 %v4966_v31, %v14382_v10 }
 0x7c5   : > { %v7144_v58 = vsel %vm7004_vm4, %v6941_v1, 0.0  ;;  %v6176_v53 = vadd.f32 %v5955_v41, %v5658_v22 }
 0x7c6   : > { %v5449_v61 = vpop.f32.mrf.mxu2  ;;  %v7293_v18 = vpack.c.bf16 %v7289_v62, %v7289_v62  ;;  %v7145_v38 = vadd.f32 %v7144_v58, %v7143_v3  ;;  %v5661_v8 = vadd.f32 %v5444_v39, %v5183_v11  ;;  %v14390_v3 = vld [vmem:[#allocation172_spill] sm:$0xff] }
 0x7c7   : > { %v6682_v20 = vadd.f32 %v6461_v15, %v6176_v53 }
 0x7c8   : > { %v7309_v42 = vunpack.c.l.b16 %v7293_v18  ;;  %7965 = vmatmul.msk.bf16.gmra.mxu2 %vm1523_vm2, %v8420_v6 }
 0x7c9   : > { %v6814_v24 = vadd.f32 %v12070_v48, %v6682_v20 }
 0x7ca   : > { %v12327_v22 = vsel %vm7312_vm6, %v7309_v42, %v7308_v13 }
 0x7cb   : > { %v6942_v7 = vmax.f32 %v6814_v24, 0.0  ;;  %v4969_v56 = vpop.f32.mrf.mxu1 }
 0x7cc   : > { %v6466_v45 = vpop.f32.mrf.mxu0  ;;  %v5957_v0 = vpop.f32.mrf.mxu3  ;;  %v5184_v39 = vadd.f32 %v4969_v56, %v14383_v51  ;;  %8093 = vmatmul.msk.bf16.gmra.mxu0 %vm1523_vm2, %v14384_v49 }
 0x7cd   : > { %v7146_v63 = vsel %vm7004_vm4, %v6942_v7, 0.0  ;;  %v6177_v33 = vadd.f32 %v5957_v0, %v5659_v28  ;;  %v14393_v7 = vunpack.c.h.bf16 %v11228_v21 }
 0x7ce   : > { %v5452_v16 = vpop.f32.mrf.mxu2  ;;  %v7147_v4 = vadd.f32 %v7146_v63, %v7145_v38  ;;  %v5662_v52 = vadd.f32 %v5447_v27, %v5184_v39  ;;  %7899 = vmatmul.msk.bf16.gmra.mxu1 %vm1523_vm2, %v14384_v49  ;;  %v14391_v38 = vld [vmem:[#allocation262_spill] sm:$0xff]  ;;  %v8422_v63 = vld [vmem:[%s8517_s19 + $0x270] sm:$0xff]   ;;  %v14394_v49 = vld [vmem:[#allocation117_spill] sm:$0xff] }
 0x7cf   : > { %v6683_v35 = vadd.f32 %v6463_v47, %v6177_v33  ;;  %v14389_v47 = vld [vmem:[#allocation77_spill] sm:$0xff]  ;;  %v4747_v0 = vrot.slane %v14393_v7, 2  ;;  %v14402_v7 = vld [vmem:[#allocation135_spill] sm:$0xff] }
 0x7d1   : > { %v6815_v12 = vadd.f32 %v12070_v48, %v6683_v35  ;;  %8028 = vmatmul.msk.bf16.gmra.mxu3 %vm1523_vm2, %v14385_v30  ;;  %v12343_v48 = vld [vmem:[%s12777_s2] ss:$0 sm:$0xff] }
 0x7d3   : > { %v6943_v19 = vmax.f32 %v6815_v12, 0.0  ;;  %v4971_v54 = vpop.f32.mrf.mxu1  ;;  %v14396_v12 = vld [vmem:[#allocation107_spill] sm:$0xff] }
 0x7d4   : > { %v6468_v15 = vpop.f32.mrf.mxu0  ;;  %v5960_v28 = vpop.f32.mrf.mxu3  ;;  %v5185_v17 = vadd.f32 %v4971_v54, %v14386_v44  ;;  %v12377_v44 = vld [vmem:[%s8517_s19 + $0x27c] sm:$0xff]  }
 0x7d5   : > { %v7148_v34 = vsel %vm7004_vm4, %v6943_v19, 0.0  ;;  %v6178_v25 = vadd.f32 %v5960_v28, %v5660_v23 }
 0x7d6   : > { %v5454_v50 = vpop.f32.mrf.mxu2  ;;  %v7149_v32 = vadd.f32 %v7148_v34, %v7147_v4  ;;  %v5663_v55 = vadd.f32 %v5449_v61, %v5185_v17 }
 0x7d7   : > { %v6684_v9 = vadd.f32 %v6466_v45, %v6178_v25  ;;  %v14392_v45 = vunpack.c.l.bf16 %v11228_v21 }
 0x7d8   : > { %7966 = vmatmul.msk.bf16.gmra.mxu2 %vm1523_vm2, %v14387_v46 }
 0x7d9   : > { %v6816_v27 = vadd.f32 %v12343_v48, %v6684_v9  ;;  %v4746_v6 = vrot.slane %v14392_v45, 2 }
 0x7db   : > { %v6944_v29 = vmax.f32 %v6816_v27, 0.0  ;;  %v4974_v23 = vpop.f32.mrf.mxu1  ;;  %v4748_v28 = vsel %vm2573_vm3, %v4746_v6, %v4747_v0  ;;  %v695_v27 = vunpack.c.h.bf16 %v12377_v44 }
 0x7dc   : > { %v6471_v60 = vpop.f32.mrf.mxu0  ;;  %v5962_v40 = vpop.f32.mrf.mxu3  ;;  %v5186_v2 = vadd.f32 %v4974_v23, %v14388_v57  ;;  %8094 = vmatmul.msk.bf16.gmra.mxu0 %vm1523_vm2, %v14389_v47 }
 0x7dd   : > { %v7150_v26 = vsel %vm7004_vm4, %v6944_v29, 0.0  ;;  %v6179_v37 = vadd.f32 %v5962_v40, %v5661_v8 }
 0x7de   : > { %v5457_v1 = vpop.f32.mrf.mxu2  ;;  %v7151_v59 = vadd.f32 %v7150_v26, %v7149_v32  ;;  %v5664_v41 = vadd.f32 %v5452_v16, %v5186_v2  ;;  %7900 = vmatmul.msk.bf16.gmra.mxu1 %vm1523_vm2, %v14389_v47  ;;  %v14395_v16 = vunpack.c.l.bf16 %v14394_v49  ;;  %v14398_v32 = vld [vmem:[#allocation192_spill] sm:$0xff]  ;;  %v14399_v26 = vld [vmem:[#allocation114_spill] sm:$0xff] }
 0x7df   : > { %v6685_v62 = vadd.f32 %v6468_v15, %v6179_v37  ;;  %v14397_v15 = vld [vmem:[#allocation87_spill] sm:$0xff] }
 0x7e0   : > { %v4749_v4 = vrot.slane %v14395_v16, 2  ;;  %v8423_v16 = vld [vmem:[%s8517_s19 + $0x2a0] sm:$0xff]  }
 0x7e1   : > { %v6817_v31 = vadd.f32 %v12343_v48, %v6685_v62  ;;  %8029 = vmatmul.msk.bf16.gmra.mxu3 %vm1523_vm2, %v14390_v3 }
 0x7e2   : > { %v4750_v54 = vsel %vm2573_vm3, %v4747_v0, %v4749_v4 }
 0x7e3   : > { %v6945_v53 = vmax.f32 %v6817_v31, 0.0  ;;  %v4976_v11 = vpop.f32.mrf.mxu1  ;;  %v4766_v17 = vpack.c.bf16 %v4750_v54, %v4748_v28 }
 0x7e4   : > { %v6473_v58 = vpop.f32.mrf.mxu0  ;;  %v5965_v10 = vpop.f32.mrf.mxu3  ;;  %v5187_v43 = vadd.f32 %v4976_v11, %v14391_v38  ;;  %v14400_v11 = vld [vmem:[#allocation100_spill] sm:$0xff] }
 0x7e5   : > { %v7152_v61 = vsel %vm7004_vm4, %v6945_v53, 0.0  ;;  %v6180_v18 = vadd.f32 %v5965_v10, %v5662_v52 }
 0x7e6   : > { %v5459_v20 = vpop.f32.mrf.mxu2  ;;  %v7153_v8 = vadd.f32 %v7152_v61, %v7151_v59  ;;  %v5665_v42 = vadd.f32 %v5454_v50, %v5187_v43 }
 0x7e7   : > { %v6686_v13 = vadd.f32 %v6471_v60, %v6180_v18 }
 0x7e8   : > { %7967 = vmatmul.msk.bf16.gmra.mxu2 %vm1523_vm2, %v8422_v63 }
 0x7e9   : > { %v6818_v24 = vadd.f32 %v12343_v48, %v6686_v13 }
 0x7eb   : > { %v6946_v33 = vmax.f32 %v6818_v24, 0.0  ;;  %v4979_v39 = vpop.f32.mrf.mxu1 }
 0x7ec   : > { %v6476_v56 = vpop.f32.mrf.mxu0  ;;  %v5967_v51 = vpop.f32.mrf.mxu3  ;;  %v5188_v30 = vadd.f32 %v4979_v39, %v14396_v12  ;;  %8095 = vmatmul.msk.bf16.gmra.mxu0 %vm1523_vm2, %v14397_v15 }
 0x7ed   : > { %v7154_v35 = vsel %vm7004_vm4, %v6946_v33, 0.0  ;;  %v6181_v52 = vadd.f32 %v5967_v51, %v5663_v55  ;;  %v694_v55 = vunpack.c.l.bf16 %v12377_v44 }
 0x7ee   : > { %v5462_v21 = vpop.f32.mrf.mxu2  ;;  %v7155_v19 = vadd.f32 %v7154_v35, %v7153_v8  ;;  %v5666_v25 = vadd.f32 %v5457_v1, %v5188_v30  ;;  %7901 = vmatmul.msk.bf16.gmra.mxu1 %vm1523_vm2, %v14397_v15  ;;  %v14401_v8 = vld [vmem:[#allocation10_spill] sm:$0xff] }
 0x7ef   : > { %v6687_v34 = vadd.f32 %v6473_v58, %v6181_v52  ;;  %v480_v35 = vld [vmem:[%s8517_s19 + $0x284] sm:$0x1] }
 0x7f1   : > { %v6819_v50 = vadd.f32 %v12343_v48, %v6687_v34  ;;  %8030 = vmatmul.msk.bf16.gmra.mxu3 %vm1523_vm2, %v14398_v32  ;;  %v696_v34 = vunpack.c.l.bf16 %v480_v35  ;;  %v14409_v35 = vld [vmem:[#allocation173_spill] sm:$0xff] }
 0x7f3   : > { %v6947_v60 = vmax.f32 %v6819_v50, 0.0  ;;  %v4981_v29 = vpop.f32.mrf.mxu1 }
 0x7f4   : > { %v6478_v9 = vpop.f32.mrf.mxu0  ;;  %v5970_v46 = vpop.f32.mrf.mxu3  ;;  %v5189_v37 = vadd.f32 %v4981_v29, %v14399_v26  ;;  %v6249_v29 = vrot.slane %v695_v27, 2 }
 0x7f5   : > { %v7156_v40 = vsel %vm7004_vm4, %v6947_v60, 0.0  ;;  %v6182_v23 = vadd.f32 %v5970_v46, %v5664_v41  ;;  %v6248_v46 = vrot.slane %v694_v55, 2 }
 0x7f6   : > { %v5464_v57 = vpop.f32.mrf.mxu2  ;;  %v7157_v2 = vadd.f32 %v7156_v40, %v7155_v19  ;;  %v5667_v1 = vadd.f32 %v5459_v20, %v5189_v37  ;;  %v6251_v40 = vrot.slane %v696_v34, 2 }
 0x7f7   : > { %v6688_v47 = vadd.f32 %v6476_v56, %v6182_v23 }
 0x7f8   : > { %7968 = vmatmul.msk.bf16.gmra.mxu2 %vm1523_vm2, %v12377_v44 }
 0x7f9   : > { %v6820_v59 = vadd.f32 %v12343_v48, %v6688_v47  ;;  %v14405_v47 = vld [vmem:[#allocation154_spill] sm:$0xff] }
 0x7fb   : > { %v6948_v31 = vmax.f32 %v6820_v59, 0.0  ;;  %v4984_v58 = vpop.f32.mrf.mxu1  ;;  %v5743_v59 = vrot.slane %v695_v27, 1 }
 0x7fc   : > { %v6481_v62 = vpop.f32.mrf.mxu0  ;;  %v5972_v3 = vpop.f32.mrf.mxu3  ;;  %v5190_v41 = vadd.f32 %v4984_v58, %v11264_v14  ;;  %8096 = vmatmul.msk.bf16.gmra.mxu0 %vm1523_vm2, %v14400_v11  ;;  %v6250_v58 = vsel %vm2573_vm3, %v6248_v46, %v6249_v29  ;;  %v14410_v46 = vld [vmem:[#allocation171_spill] sm:$0xff] }
 0x7fd   : > { %v7158_v53 = vsel %vm7004_vm4, %v6948_v31, 0.0  ;;  %v6183_v10 = vadd.f32 %v5972_v3, %v5665_v42  ;;  %v5745_v3 = vrot.slane %v696_v34, 1 }
 0x7fe   : > { %v5467_v61 = vpop.f32.mrf.mxu2  ;;  %v7159_v18 = vadd.f32 %v7158_v53, %v7157_v2  ;;  %v5668_v43 = vadd.f32 %v5462_v21, %v5190_v41  ;;  %7902 = vmatmul.msk.bf16.gmra.mxu1 %vm1523_vm2, %v14400_v11  ;;  %v14403_v21 = vld [vmem:[#allocation143_spill] sm:$0xff]  ;;  %v6252_v53 = vsel %vm2573_vm3, %v6249_v29, %v6251_v40  ;;  %v14411_v29 = vld [vmem:[#allocation132_spill] sm:$0xff] }
 0x7ff   : > { %v6689_v38 = vadd.f32 %v6478_v9, %v6183_v10  ;;  %v14404_v9 = vld [vmem:[#allocation134_spill] sm:$0xff] }
 0x801   : > { %v6821_v20 = vadd.f32 %v12343_v48, %v6689_v38  ;;  %8031 = vmatmul.msk.bf16.gmra.mxu3 %vm1523_vm2, %v14401_v8  ;;  %v5746_v38 = vsel %vm1008_vm1, %v5743_v59, %v5745_v3  ;;  %v14413_v3 = vld [vmem:[#allocation183_spill] sm:$0xff] }
 0x803   : > { %v6949_v42 = vmax.f32 %v6821_v20, 0.0  ;;  %v4986_v24 = vpop.f32.mrf.mxu1 }
 0x804   : > { %v6483_v13 = vpop.f32.mrf.mxu0  ;;  %v5975_v14 = vpop.f32.mrf.mxu3  ;;  %v5191_v0 = vadd.f32 %v4986_v24, %v14402_v7 }
 0x805   : > { %v7160_v45 = vsel %vm7004_vm4, %v6949_v42, 0.0  ;;  %v6184_v6 = vadd.f32 %v5975_v14, %v5666_v25  ;;  %v14407_v42 = vld [vmem:[#allocation163_spill] sm:$0xff] }
 0x806   : > { %v5469_v56 = vpop.f32.mrf.mxu2  ;;  %v7161_v63 = vadd.f32 %v7160_v45, %v7159_v18  ;;  %v5669_v51 = vadd.f32 %v5464_v57, %v5191_v0  ;;  %v5742_v57 = vrot.slane %v694_v55, 1  ;;  %v6268_v55 = vpack.c.bf16 %v6252_v53, %v6250_v58 }
 0x807   : > { %v6690_v33 = vadd.f32 %v6481_v62, %v6184_v6 }
 0x808   : > { %7969 = vmatmul.msk.bf16.gmra.mxu2 %vm1523_vm2, %v8423_v16  ;;  %v5744_v18 = vsel %vm1008_vm1, %v5742_v57, %v5743_v59 }
 0x809   : > { %v6822_v39 = vadd.f32 %v12343_v48, %v6690_v33  ;;  %v5762_v24 = vpack.c.bf16 %v5746_v38, %v5744_v18  ;;  %v14414_v18 = vld [vmem:[#allocation62_spill] sm:$0xff] }
 0x80b   : > { %v6950_v4 = vmax.f32 %v6822_v39, 0.0  ;;  %v4989_v12 = vpop.f32.mrf.mxu1 }
 0x80c   : > { %v6486_v49 = vpop.f32.mrf.mxu0  ;;  %v5977_v52 = vpop.f32.mrf.mxu3  ;;  %v5192_v19 = vadd.f32 %v4989_v12, %v14403_v21  ;;  %8097 = vmatmul.msk.bf16.gmra.mxu0 %vm1523_vm2, %v4766_v17 }
 0x80d   : > { %v7162_v30 = vsel %vm7004_vm4, %v6950_v4, 0.0  ;;  %v6185_v15 = vadd.f32 %v5977_v52, %v5667_v1 }
 0x80e   : > { %v5472_v28 = vpop.f32.mrf.mxu2  ;;  %v7163_v54 = vadd.f32 %v7162_v30, %v7161_v63  ;;  %v5670_v50 = vadd.f32 %v5467_v61, %v5192_v19  ;;  %7903 = vmatmul.msk.bf16.gmra.mxu1 %vm1523_vm2, %v4766_v17 }
 0x80f   : > { %v6691_v25 = vadd.f32 %v6483_v13, %v6185_v15 }
 0x811   : > { %v6823_v32 = vadd.f32 %v12343_v48, %v6691_v25  ;;  %8032 = vmatmul.msk.bf16.gmra.mxu3 %vm1523_vm2, %v14404_v9 }
 0x813   : > { %v6951_v23 = vmax.f32 %v6823_v32, 0.0  ;;  %v4991_v37 = vpop.f32.mrf.mxu1 }
 0x814   : > { %v6488_v60 = vpop.f32.mrf.mxu0  ;;  %v5980_v26 = vpop.f32.mrf.mxu3  ;;  %v5193_v1 = vadd.f32 %v4991_v37, %v14405_v47 }
 0x815   : > { %v7164_v17 = vsel %vm7004_vm4, %v6951_v23, 0.0  ;;  %v6186_v2 = vadd.f32 %v5980_v26, %v5668_v43  ;;  %v14406_v43 = vld [vmem:[#allocation41_spill] sm:$0xff] }
 0x816   : > { %v5474_v62 = vpop.f32.mrf.mxu2  ;;  %v7165_v31 = vadd.f32 %v7164_v17, %v7163_v54  ;;  %v5671_v41 = vadd.f32 %v5469_v56, %v5193_v1  ;;  %v14408_v56 = vld [vmem:[#allocation124_spill] sm:$0xff]  ;;  %v8424_v54 = vld [vmem:[%s8517_s19 + $0x2b8] sm:$0xff]   ;;  %v14412_v17 = vld [vmem:[#allocation38_spill] sm:$0xff] }
 0x817   : > { %v6692_v10 = vadd.f32 %v6486_v49, %v6186_v2 }
 0x818   : > { %7970 = vmatmul.msk.bf16.gmra.mxu2 %vm1523_vm2, %v14406_v43 }
 0x819   : > { %v6824_v11 = vadd.f32 %v12343_v48, %v6692_v10 }
 0x81b   : > { %v6952_v44 = vmax.f32 %v6824_v11, 0.0  ;;  %v4994_v20 = vpop.f32.mrf.mxu1 }
 0x81c   : > { %v6491_v61 = vpop.f32.mrf.mxu0  ;;  %v5982_v27 = vpop.f32.mrf.mxu3  ;;  %v5194_v14 = vadd.f32 %v4994_v20, %v14407_v42  ;;  %8098 = vmatmul.msk.bf16.gmra.mxu0 %vm1523_vm2, %v6268_v55  ;;  %v14416_v42 = vld [vmem:[#allocation151_spill] sm:$0xff] }
 0x81d   : > { %v7166_v8 = vsel %vm7004_vm4, %v6952_v44, 0.0  ;;  %v6187_v13 = vadd.f32 %v5982_v27, %v5669_v51 }
 0x81e   : > { %v5477_v45 = vpop.f32.mrf.mxu2  ;;  %v7167_v6 = vadd.f32 %v7166_v8, %v7165_v31  ;;  %v5672_v0 = vadd.f32 %v5472_v28, %v5194_v14  ;;  %7904 = vmatmul.msk.bf16.gmra.mxu1 %vm1523_vm2, %v14408_v56  ;;  %v14415_v8 = vld [vmem:[#allocation191_spill] sm:$0xff] }
 0x81f   : > { %v6693_v7 = vadd.f32 %v6488_v60, %v6187_v13 }
 0x821   : > { %v6825_v63 = vadd.f32 %v12343_v48, %v6693_v7  ;;  %8033 = vmatmul.msk.bf16.gmra.mxu3 %vm1523_vm2, %v5762_v24 }
 0x823   : > { %v6953_v39 = vmax.f32 %v6825_v63, 0.0  ;;  %v4996_v49 = vpop.f32.mrf.mxu1 }
 0x824   : > { %v6493_v33 = vpop.f32.mrf.mxu0  ;;  %v5985_v51 = vpop.f32.mrf.mxu3  ;;  %v5195_v52 = vadd.f32 %v4996_v49, %v14409_v35 }
 0x825   : > { %v7168_v16 = vsel %vm7004_vm4, %v6953_v39, 0.0  ;;  %v6188_v4 = vadd.f32 %v5985_v51, %v5670_v50 }
 0x826   : > { %v5479_v12 = vpop.f32.mrf.mxu2  ;;  %v7169_v30 = vadd.f32 %v7168_v16, %v7167_v6  ;;  %v5673_v21 = vadd.f32 %v5474_v62, %v5195_v52  ;;  %v14418_v16 = vld [vmem:[#allocation199_spill] sm:$0xff] }
 0x827   : > { %v6694_v15 = vadd.f32 %v6491_v61, %v6188_v4 }
 0x828   : > { %7971 = vmatmul.msk.bf16.gmra.mxu2 %vm1523_vm2, %v8424_v54 }
 0x829   : > { %v6826_v19 = vadd.f32 %v12343_v48, %v6694_v15 }
 0x82b   : > { %v6954_v34 = vmax.f32 %v6826_v19, 0.0  ;;  %v4999_v32 = vpop.f32.mrf.mxu1 }
 0x82c   : > { %v6496_v28 = vpop.f32.mrf.mxu0  ;;  %v5987_v25 = vpop.f32.mrf.mxu3  ;;  %v5196_v50 = vadd.f32 %v4999_v32, %v14410_v46  ;;  %8099 = vmatmul.msk.bf16.gmra.mxu0 %vm1523_vm2, %v14411_v29 }
 0x82d   : > { %v7170_v9 = vsel %vm7004_vm4, %v6954_v34, 0.0  ;;  %v6189_v60 = vadd.f32 %v5987_v25, %v5671_v41 }
 0x82e   : > { %v5482_v40 = vpop.f32.mrf.mxu2  ;;  %v7171_v23 = vadd.f32 %v7170_v9, %v7169_v30  ;;  %v5674_v37 = vadd.f32 %v5477_v45, %v5196_v50  ;;  %7905 = vmatmul.msk.bf16.gmra.mxu1 %vm1523_vm2, %v14411_v29  ;;  %v14420_v50 = vld [vmem:[#allocation174_spill] sm:$0xff] }
 0x82f   : > { %v6695_v26 = vadd.f32 %v6493_v33, %v6189_v60  ;;  %v14419_v60 = vld [vmem:[#allocation12_spill] sm:$0xff] }
 0x831   : > { %v6827_v57 = vadd.f32 %v12343_v48, %v6695_v26  ;;  %8034 = vmatmul.msk.bf16.gmra.mxu3 %vm1523_vm2, %v14412_v17 }
 0x833   : > { %v6955_v47 = vmax.f32 %v6827_v57, 0.0  ;;  %v5001_v59 = vpop.f32.mrf.mxu1  ;;  %v14421_v57 = vld [vmem:[#allocation59_spill] sm:$0xff] }
 0x834   : > { %v6498_v2 = vpop.f32.mrf.mxu0  ;;  %v5990_v1 = vpop.f32.mrf.mxu3  ;;  %v5197_v58 = vadd.f32 %v5001_v59, %v14413_v3 }
 0x835   : > { %v7172_v62 = vsel %vm7004_vm4, %v6955_v47, 0.0  ;;  %v6190_v31 = vadd.f32 %v5990_v1, %v5672_v0  ;;  %v14417_v0 = vld [vmem:[#allocation49_spill] sm:$0xff] }
 0x836   : > { %v5484_v53 = vpop.f32.mrf.mxu2  ;;  %v7173_v10 = vadd.f32 %v7172_v62, %v7171_v23  ;;  %v5675_v11 = vadd.f32 %v5479_v12, %v5197_v58  ;;  %v8163_v12 = vld [vmem:[%s12780_s5 + $0x18] sm:$0xff] }
 0x837   : > { %v6696_v41 = vadd.f32 %v6496_v28, %v6190_v31  ;;  %7435 = vmatpush.bf16.msrb.mxu2 %v8163_v12  ;;  %v8425_v28 = vld [vmem:[%s8517_s19 + $0x2d0] sm:$0xff]   ;;  %v14422_v31 = vld [vmem:[#allocation206_spill] sm:$0xff] }
 0x838   : > { %7972 = vmatmul.msk.bf16.gmra.mxu2 %vm1523_vm2, %v14414_v18 }
 0x839   : > { %v6828_v55 = vadd.f32 %v12343_v48, %v6696_v41 }
 0x83b   : > { %v6956_v38 = vmax.f32 %v6828_v55, 0.0  ;;  %v5004_v44 = vpop.f32.mrf.mxu1 }
 0x83c   : > { %v6501_v61 = vpop.f32.mrf.mxu0  ;;  %v5992_v43 = vpop.f32.mrf.mxu3  ;;  %v5198_v13 = vadd.f32 %v5004_v44, %v14415_v8  ;;  %8100 = vmatmul.msk.bf16.gmra.mxu0 %vm1523_vm2, %v14416_v42 }
 0x83d   : > { %v7174_v27 = vsel %vm7004_vm4, %v6956_v38, 0.0  ;;  %v6191_v20 = vadd.f32 %v5992_v43, %v5673_v21 }
 0x83e   : > { %v5487_v14 = vpop.f32.mrf.mxu2  ;;  %v7175_v24 = vadd.f32 %v7174_v27, %v7173_v10  ;;  %v5676_v6 = vadd.f32 %v5482_v40, %v5198_v13  ;;  %7906 = vmatmul.msk.bf16.gmra.mxu1 %vm1523_vm2, %v14416_v42  ;;  %v14425_v13 = vld [vmem:[#allocation5_spill] sm:$0xff] }
 0x83f   : > { %v6697_v45 = vadd.f32 %v6498_v2, %v6191_v20  ;;  %v14424_v20 = vld [vmem:[#allocation20_spill] sm:$0xff] }
 0x841   : > { %v6829_v7 = vadd.f32 %v12343_v48, %v6697_v45  ;;  %8035 = vmatmul.msk.bf16.gmra.mxu3 %vm1523_vm2, %v14417_v0 }
 0x843   : > { %v6957_v63 = vmax.f32 %v6829_v7, 0.0  ;;  %v5006_v39 = vpop.f32.mrf.mxu1  ;;  %v14426_v7 = vld [vmem:[#allocation70_spill] sm:$0xff] }
 0x844   : > { %v6503_v56 = vpop.f32.mrf.mxu0  ;;  %v5995_v33 = vpop.f32.mrf.mxu3  ;;  %v5199_v4 = vadd.f32 %v5006_v39, %v14418_v16 }
 0x845   : > { %v7176_v51 = vsel %vm7004_vm4, %v6957_v63, 0.0  ;;  %v6192_v49 = vadd.f32 %v5995_v33, %v5674_v37 }
 0x846   : > { %v5489_v35 = vpop.f32.mrf.mxu2  ;;  %v7177_v52 = vadd.f32 %v7176_v51, %v7175_v24  ;;  %v5677_v15 = vadd.f32 %v5484_v53, %v5199_v4 }
 0x847   : > { %v6698_v30 = vadd.f32 %v6501_v61, %v6192_v49  ;;  %v14423_v61 = vld [vmem:[#allocation83_spill] sm:$0xff]  ;;  %v14427_v49 = vld [vmem:[#allocation21_spill] sm:$0xff] }
 0x848   : > { %7973 = vmatmul.msk.bf16.gmra.mxu2 %vm1523_vm2, %v8425_v28 }
 0x849   : > { %v6830_v21 = vadd.f32 %v12343_v48, %v6698_v30 }
 0x84b   : > { %v6958_v54 = vmax.f32 %v6830_v21, 0.0  ;;  %v5009_v25 = vpop.f32.mrf.mxu1  ;;  %v8426_v21 = vld [vmem:[%s8517_s19 + $0x2e8] sm:$0xff]  }
 0x84c   : > { %v6506_v19 = vpop.f32.mrf.mxu0  ;;  %v5997_v34 = vpop.f32.mrf.mxu3  ;;  %v5200_v46 = vadd.f32 %v5009_v25, %v14419_v60  ;;  %8101 = vmatmul.msk.bf16.gmra.mxu0 %vm1523_vm2, %v14420_v50  ;;  %v14429_v60 = vld [vmem:[#allocation11_spill] sm:$0xff] }
 0x84d   : > { %v7178_v32 = vsel %vm7004_vm4, %v6958_v54, 0.0  ;;  %v6193_v9 = vadd.f32 %v5997_v34, %v5675_v11 }
 0x84e   : > { %v5492_v29 = vpop.f32.mrf.mxu2  ;;  %v7179_v40 = vadd.f32 %v7178_v32, %v7177_v52  ;;  %v5678_v26 = vadd.f32 %v5487_v14, %v5200_v46  ;;  %7907 = vmatmul.msk.bf16.gmra.mxu1 %vm1523_vm2, %v14420_v50  ;;  %v14428_v32 = vld [vmem:[#allocation222_spill] sm:$0xff] }
 0x84f   : > { %v6699_v23 = vadd.f32 %v6503_v56, %v6193_v9 }
 0x851   : > { %v6831_v37 = vadd.f32 %v12343_v48, %v6699_v23  ;;  %8036 = vmatmul.msk.bf16.gmra.mxu3 %vm1523_vm2, %v14421_v57 }
 0x853   : > { %v6959_v2 = vmax.f32 %v6831_v37, 0.0  ;;  %v5011_v1 = vpop.f32.mrf.mxu1 }
 0x854   : > { %v6508_v17 = vpop.f32.mrf.mxu0  ;;  %v6000_v47 = vpop.f32.mrf.mxu3  ;;  %v5201_v3 = vadd.f32 %v5011_v1, %v14422_v31 }
 0x855   : > { %v7180_v59 = vsel %vm7004_vm4, %v6959_v2, 0.0  ;;  %v6194_v62 = vadd.f32 %v6000_v47, %v5676_v6 }
 0x856   : > { %v5494_v58 = vpop.f32.mrf.mxu2  ;;  %v7181_v53 = vadd.f32 %v7180_v59, %v7179_v40  ;;  %v5679_v41 = vadd.f32 %v5489_v35, %v5201_v3  ;;  %v14431_v59 = vld [vmem:[#allocation31_spill] sm:$0xff] }
 0x857   : > { %v6700_v10 = vadd.f32 %v6506_v19, %v6194_v62 }
 0x858   : > { %7974 = vmatmul.msk.bf16.gmra.mxu2 %vm1523_vm2, %v14423_v61 }
 0x859   : > { %v6832_v11 = vadd.f32 %v12343_v48, %v6700_v10 }
 0x85b   : > { %v6960_v18 = vmax.f32 %v6832_v11, 0.0  ;;  %v5014_v43 = vpop.f32.mrf.mxu1  ;;  %v14432_v11 = vld [vmem:[#allocation110_spill] sm:$0xff] }
 0x85c   : > { %v6511_v55 = vpop.f32.mrf.mxu0  ;;  %v6002_v38 = vpop.f32.mrf.mxu3  ;;  %v5202_v8 = vadd.f32 %v5014_v43, %v14424_v20  ;;  %8102 = vmatmul.msk.bf16.gmra.mxu0 %vm1523_vm2, %v14425_v13  ;;  %v14434_v20 = vld [vmem:[#allocation212_spill] sm:$0xff] }
 0x85d   : > { %v7182_v44 = vsel %vm7004_vm4, %v6960_v18, 0.0  ;;  %v6195_v27 = vadd.f32 %v6002_v38, %v5677_v15 }
 0x85e   : > { %v5497_v42 = vpop.f32.mrf.mxu2  ;;  %v7183_v14 = vadd.f32 %v7182_v44, %v7181_v53  ;;  %v5680_v45 = vadd.f32 %v5492_v29, %v5202_v8  ;;  %7908 = vmatmul.msk.bf16.gmra.mxu1 %vm1523_vm2, %v14425_v13  ;;  %v14433_v44 = vld [vmem:[#allocation224_spill] sm:$0xff] }
 0x85f   : > { %v6701_v24 = vadd.f32 %v6508_v17, %v6195_v27 }
 0x861   : > { %v6833_v6 = vadd.f32 %v12343_v48, %v6701_v24  ;;  %8037 = vmatmul.msk.bf16.gmra.mxu3 %vm1523_vm2, %v14426_v7 }
 0x863   : > { %v6961_v56 = vmax.f32 %v6833_v6, 0.0  ;;  %v5016_v33 = vpop.f32.mrf.mxu1 }
 0x864   : > { %v6513_v0 = vpop.f32.mrf.mxu0  ;;  %v6005_v63 = vpop.f32.mrf.mxu3  ;;  %v5203_v16 = vadd.f32 %v5016_v33, %v14427_v49 }
 0x865   : > { %v7184_v39 = vsel %vm7004_vm4, %v6961_v56, 0.0  ;;  %v6196_v51 = vadd.f32 %v6005_v63, %v5678_v26  ;;  %v14430_v26 = vld [vmem:[#allocation80_spill] sm:$0xff] }
 0x866   : > { %v5499_v4 = vpop.f32.mrf.mxu2  ;;  %v7185_v35 = vadd.f32 %v7184_v39, %v7183_v14  ;;  %v5681_v12 = vadd.f32 %v5494_v58, %v5203_v16  ;;  %v14436_v39 = vld [vmem:[#allocation227_spill] sm:$0xff] }
 0x867   : > { %v6702_v52 = vadd.f32 %v6511_v55, %v6196_v51 }
 0x868   : > { %7975 = vmatmul.msk.bf16.gmra.mxu2 %vm1523_vm2, %v8426_v21 }
 0x869   : > { %v6834_v30 = vadd.f32 %v12343_v48, %v6702_v52 }
 0x86b   : > { %v6962_v19 = vmax.f32 %v6834_v30, 0.0  ;;  %v5019_v54 = vpop.f32.mrf.mxu1  ;;  %v8427_v30 = vld [vmem:[%s8517_s19 + $0x300] sm:$0xff]  }
 0x86c   : > { %v6516_v15 = vpop.f32.mrf.mxu0  ;;  %v6007_v28 = vpop.f32.mrf.mxu3  ;;  %v5204_v9 = vadd.f32 %v5019_v54, %v14428_v32  ;;  %8103 = vmatmul.msk.bf16.gmra.mxu0 %vm1523_vm2, %v14429_v60  ;;  %v14438_v32 = vld [vmem:[#allocation218_spill] sm:$0xff] }
 0x86d   : > { %v7186_v34 = vsel %vm7004_vm4, %v6962_v19, 0.0  ;;  %v6197_v25 = vadd.f32 %v6007_v28, %v5679_v41 }
 0x86e   : > { %v5502_v46 = vpop.f32.mrf.mxu2  ;;  %v7187_v50 = vadd.f32 %v7186_v34, %v7185_v35  ;;  %v5682_v40 = vadd.f32 %v5497_v42, %v5204_v9  ;;  %7909 = vmatmul.msk.bf16.gmra.mxu1 %vm1523_vm2, %v14429_v60  ;;  %v14437_v34 = vld [vmem:[#allocation42_spill] sm:$0xff] }
 0x86f   : > { %v6703_v29 = vadd.f32 %v6513_v0, %v6197_v25 }
 0x871   : > { %v6835_v23 = vadd.f32 %v12343_v48, %v6703_v29  ;;  %8038 = vmatmul.msk.bf16.gmra.mxu3 %vm1523_vm2, %v14430_v26 }
 0x873   : > { %v6963_v57 = vmax.f32 %v6835_v23, 0.0  ;;  %v5021_v2 = vpop.f32.mrf.mxu1 }
 0x874   : > { %v6518_v37 = vpop.f32.mrf.mxu0  ;;  %v6010_v17 = vpop.f32.mrf.mxu3  ;;  %v5205_v62 = vadd.f32 %v5021_v2, %v14431_v59 }
 0x875   : > { %v7188_v47 = vsel %vm7004_vm4, %v6963_v57, 0.0  ;;  %v6198_v1 = vadd.f32 %v6010_v17, %v5680_v45  ;;  %v14435_v45 = vld [vmem:[#allocation92_spill] sm:$0xff] }
 0x876   : > { %v5504_v31 = vpop.f32.mrf.mxu2  ;;  %v7189_v3 = vadd.f32 %v7188_v47, %v7187_v50  ;;  %v5683_v53 = vadd.f32 %v5499_v4, %v5205_v62  ;;  %v14440_v47 = vld [vmem:[#allocation229_spill] sm:$0xff] }
 0x877   : > { %v6704_v58 = vadd.f32 %v6516_v15, %v6198_v1 }
 0x878   : > { %7976 = vmatmul.msk.bf16.gmra.mxu2 %vm1523_vm2, %v14432_v11 }
 0x879   : > { %v6836_v10 = vadd.f32 %v12343_v48, %v6704_v58 }
 0x87b   : > { %v6964_v55 = vmax.f32 %v6836_v10, 0.0  ;;  %v5024_v18 = vpop.f32.mrf.mxu1  ;;  %v14441_v10 = vld [vmem:[#allocation146_spill] sm:$0xff] }
 0x87c   : > { %v6521_v41 = vpop.f32.mrf.mxu0  ;;  %v6012_v61 = vpop.f32.mrf.mxu3  ;;  %v5206_v27 = vadd.f32 %v5024_v18, %v14433_v44  ;;  %8104 = vmatmul.msk.bf16.gmra.mxu0 %vm1523_vm2, %v14434_v20  ;;  %v14443_v44 = vld [vmem:[#allocation32_spill] sm:$0xff] }
 0x87d   : > { %v7190_v38 = vsel %vm7004_vm4, %v6964_v55, 0.0  ;;  %v6199_v43 = vadd.f32 %v6012_v61, %v5681_v12 }
 0x87e   : > { %v5507_v8 = vpop.f32.mrf.mxu2  ;;  %v7191_v13 = vadd.f32 %v7190_v38, %v7189_v3  ;;  %v5684_v14 = vadd.f32 %v5502_v46, %v5206_v27  ;;  %7910 = vmatmul.msk.bf16.gmra.mxu1 %vm1523_vm2, %v14434_v20  ;;  %v14442_v38 = vld [vmem:[#allocation52_spill] sm:$0xff] }
 0x87f   : > { %v6705_v42 = vadd.f32 %v6518_v37, %v6199_v43 }
 0x881   : > { %v6837_v24 = vadd.f32 %v12343_v48, %v6705_v42  ;;  %8039 = vmatmul.msk.bf16.gmra.mxu3 %vm1523_vm2, %v14435_v45 }
 0x883   : > { %v6965_v7 = vmax.f32 %v6837_v24, 0.0  ;;  %v5026_v56 = vpop.f32.mrf.mxu1 }
 0x884   : > { %v6523_v6 = vpop.f32.mrf.mxu0  ;;  %v6015_v0 = vpop.f32.mrf.mxu3  ;;  %v5207_v51 = vadd.f32 %v5026_v56, %v14436_v39 }
 0x885   : > { %v7192_v63 = vsel %vm7004_vm4, %v6965_v7, 0.0  ;;  %v6200_v33 = vadd.f32 %v6015_v0, %v5682_v40  ;;  %v14439_v40 = vld [vmem:[#allocation106_spill] sm:$0xff] }
 0x886   : > { %v5509_v49 = vpop.f32.mrf.mxu2  ;;  %v7193_v16 = vadd.f32 %v7192_v63, %v7191_v13  ;;  %v5685_v35 = vadd.f32 %v5504_v31, %v5207_v51  ;;  %v14445_v63 = vld [vmem:[#allocation53_spill] sm:$0xff] }
 0x887   : > { %v6706_v4 = vadd.f32 %v6521_v41, %v6200_v33 }
 0x888   : > { %7977 = vmatmul.msk.bf16.gmra.mxu2 %vm1523_vm2, %v8427_v30 }
 0x889   : > { %v6838_v52 = vadd.f32 %v12343_v48, %v6706_v4 }
 0x88b   : > { %v6966_v15 = vmax.f32 %v6838_v52, 0.0  ;;  %v5029_v19 = vpop.f32.mrf.mxu1  ;;  %v8428_v52 = vld [vmem:[%s8517_s19 + $0x318] sm:$0xff]  }
 0x88c   : > { %v6526_v12 = vpop.f32.mrf.mxu0  ;;  %v6017_v21 = vpop.f32.mrf.mxu3  ;;  %v5208_v25 = vadd.f32 %v5029_v19, %v14437_v34  ;;  %8105 = vmatmul.msk.bf16.gmra.mxu0 %vm1523_vm2, %v14438_v32  ;;  %v14447_v34 = vld [vmem:[#allocation28_spill] sm:$0xff] }
 0x88d   : > { %v7194_v28 = vsel %vm7004_vm4, %v6966_v15, 0.0  ;;  %v6201_v54 = vadd.f32 %v6017_v21, %v5683_v53 }
 0x88e   : > { %v5512_v9 = vpop.f32.mrf.mxu2  ;;  %v7195_v60 = vadd.f32 %v7194_v28, %v7193_v16  ;;  %v5686_v50 = vadd.f32 %v5507_v8, %v5208_v25  ;;  %7911 = vmatmul.msk.bf16.gmra.mxu1 %vm1523_vm2, %v14438_v32  ;;  %v14446_v28 = vld [vmem:[#allocation237_spill] sm:$0xff] }
 0x88f   : > { %v6707_v46 = vadd.f32 %v6523_v6, %v6201_v54 }
 0x891   : > { %v6839_v29 = vadd.f32 %v12343_v48, %v6707_v46  ;;  %8040 = vmatmul.msk.bf16.gmra.mxu3 %vm1523_vm2, %v14439_v40 }
 0x893   : > { %v6967_v26 = vmax.f32 %v6839_v29, 0.0  ;;  %v5031_v57 = vpop.f32.mrf.mxu1 }
 0x894   : > { %v6528_v23 = vpop.f32.mrf.mxu0  ;;  %v6020_v37 = vpop.f32.mrf.mxu3  ;;  %v5209_v1 = vadd.f32 %v5031_v57, %v14440_v47 }
 0x895   : > { %v7196_v17 = vsel %vm7004_vm4, %v6967_v26, 0.0  ;;  %v6202_v2 = vadd.f32 %v6020_v37, %v5684_v14  ;;  %v14444_v14 = vld [vmem:[#allocation123_spill] sm:$0xff] }
 0x896   : > { %v5514_v59 = vpop.f32.mrf.mxu2  ;;  %v7197_v62 = vadd.f32 %v7196_v17, %v7195_v60  ;;  %v5687_v3 = vadd.f32 %v5509_v49, %v5209_v1  ;;  %v14449_v17 = vld [vmem:[#allocation63_spill] sm:$0xff] }
 0x897   : > { %v6708_v31 = vadd.f32 %v6526_v12, %v6202_v2 }
 0x898   : > { %7978 = vmatmul.msk.bf16.gmra.mxu2 %vm1523_vm2, %v14441_v10 }
 0x899   : > { %v6840_v58 = vadd.f32 %v12343_v48, %v6708_v31 }
 0x89b   : > { %v6968_v41 = vmax.f32 %v6840_v58, 0.0  ;;  %v5034_v55 = vpop.f32.mrf.mxu1 }
 0x89c   : > { %v6531_v53 = vpop.f32.mrf.mxu0  ;;  %v6022_v11 = vpop.f32.mrf.mxu3  ;;  %v5210_v43 = vadd.f32 %v5034_v55, %v14442_v38  ;;  %8106 = vmatmul.msk.bf16.gmra.mxu0 %vm1523_vm2, %v14443_v44 }
 0x89d   : > { %v7198_v61 = vsel %vm7004_vm4, %v6968_v41, 0.0  ;;  %v6203_v18 = vadd.f32 %v6022_v11, %v5685_v35 }
 0x89e   : > { %v5517_v27 = vpop.f32.mrf.mxu2  ;;  %v7199_v20 = vadd.f32 %v7198_v61, %v7197_v62  ;;  %v5688_v13 = vadd.f32 %v5512_v9, %v5210_v43  ;;  %7912 = vmatmul.msk.bf16.gmra.mxu1 %vm1523_vm2, %v14443_v44  ;;  %v14452_v43 = vld [vmem:[#allocation232_spill] sm:$0xff] }
 0x89f   : > { %v6709_v8 = vadd.f32 %v6528_v23, %v6203_v18  ;;  %v14451_v18 = vld [vmem:[#allocation242_spill] sm:$0xff] }
 0x8a1   : > { %v6841_v42 = vadd.f32 %v12343_v48, %v6709_v8  ;;  %8041 = vmatmul.msk.bf16.gmra.mxu3 %vm1523_vm2, %v14444_v14 }
 0x8a3   : > { %v6969_v45 = vmax.f32 %v6841_v42, 0.0  ;;  %v5036_v7 = vpop.f32.mrf.mxu1 }
 0x8a4   : > { %v6533_v24 = vpop.f32.mrf.mxu0  ;;  %v6025_v6 = vpop.f32.mrf.mxu3  ;;  %v5211_v33 = vadd.f32 %v5036_v7, %v14445_v63 }
 0x8a5   : > { %v7200_v0 = vsel %vm7004_vm4, %v6969_v45, 0.0  ;;  %v6204_v56 = vadd.f32 %v6025_v6, %v5686_v50  ;;  %v14448_v50 = vld [vmem:[#allocation142_spill] sm:$0xff] }
 0x8a6   : > { %v5519_v39 = vpop.f32.mrf.mxu2  ;;  %v7201_v51 = vadd.f32 %v7200_v0, %v7199_v20  ;;  %v5689_v16 = vadd.f32 %v5514_v59, %v5211_v33 }
 0x8a7   : > { %v6710_v49 = vadd.f32 %v6531_v53, %v6204_v56  ;;  %v14450_v53 = vld [vmem:[#allocation186_spill] sm:$0xff] }
 0x8a8   : > { %7979 = vmatmul.msk.bf16.gmra.mxu2 %vm1523_vm2, %v8428_v52 }
 0x8a9   : > { %v6842_v4 = vadd.f32 %v12343_v48, %v6710_v49  ;;  %v14454_v49 = vld [vmem:[#allocation73_spill] sm:$0xff] }
 0x8ab   : > { %v6970_v12 = vmax.f32 %v6842_v4, 0.0  ;;  %v5039_v15 = vpop.f32.mrf.mxu1 }
 0x8ac   : > { %v6536_v35 = vpop.f32.mrf.mxu0  ;;  %v6027_v30 = vpop.f32.mrf.mxu3  ;;  %v5212_v54 = vadd.f32 %v5039_v15, %v14446_v28  ;;  %8107 = vmatmul.msk.bf16.gmra.mxu0 %vm1523_vm2, %v14447_v34 }
 0x8ad   : > { %v7202_v21 = vsel %vm7004_vm4, %v6970_v12, 0.0  ;;  %v6205_v19 = vadd.f32 %v6027_v30, %v5687_v3  ;;  %v8162_v12 = vld [vmem:[%s12780_s5 + $0x10] sm:$0xff] }
 0x8ae   : > { %v5522_v25 = vpop.f32.mrf.mxu2  ;;  %v7203_v32 = vadd.f32 %v7202_v21, %v7201_v51  ;;  %v5690_v60 = vadd.f32 %v5517_v27, %v5212_v54  ;;  %7913 = vmatmul.msk.bf16.gmra.mxu1 %vm1523_vm2, %v14447_v34  ;;  %7436 = vmatpush.bf16.msrb.mxu2 %v8162_v12  ;;  %v8429_v54 = vld [vmem:[%s8517_s19 + $0x330] sm:$0xff]   ;;  %v14463_v12 = vunpack.c.l.bf16 %v11614_v36 }
 0x8af   : > { %v6711_v9 = vadd.f32 %v6533_v24, %v6205_v19  ;;  %v14453_v24 = vld [vmem:[#allocation162_spill] sm:$0xff] }
 0x8b1   : > { %v6843_v46 = vadd.f32 %v12343_v48, %v6711_v9  ;;  %8042 = vmatmul.msk.bf16.gmra.mxu3 %vm1523_vm2, %v14448_v50  ;;  %v14455_v50 = vld [vmem:[#allocation244_spill] sm:$0xff] }
 0x8b3   : > { %v6971_v40 = vmax.f32 %v6843_v46, 0.0  ;;  %v5041_v26 = vpop.f32.mrf.mxu1 }
 0x8b4   : > { %v6538_v29 = vpop.f32.mrf.mxu0  ;;  %v6030_v23 = vpop.f32.mrf.mxu3  ;;  %v5213_v2 = vadd.f32 %v5041_v26, %v14449_v17  ;;  %v14457_v17 = vld [vmem:[#allocation182_spill] sm:$0xff] }
 0x8b5   : > { %v7204_v37 = vsel %vm7004_vm4, %v6971_v40, 0.0  ;;  %v6206_v57 = vadd.f32 %v6030_v23, %v5688_v13  ;;  %v14456_v40 = vld [vmem:[#allocation234_spill] sm:$0xff] }
 0x8b6   : > { %v5524_v47 = vpop.f32.mrf.mxu2  ;;  %v7205_v1 = vadd.f32 %v7204_v37, %v7203_v32  ;;  %v5691_v62 = vadd.f32 %v5519_v39, %v5213_v2 }
 0x8b7   : > { %v6712_v59 = vadd.f32 %v6536_v35, %v6206_v57 }
 0x8b8   : > { %v7206_v31 = vrot.slane %v7205_v1, 4  ;;  %7980 = vmatmul.msk.bf16.gmra.mxu2 %vm1523_vm2, %v14450_v53 }
 0x8b9   : > { %v6844_v55 = vadd.f32 %v12343_v48, %v6712_v59 }
 0x8ba   : > { %v7207_v3 = vadd.f32 %v7206_v31, %v7205_v1 }
 0x8bb   : > { %v5044_v11 = vpop.f32.mrf.mxu1  ;;  %v6972_v42 = vmax.f32 %v6844_v55, 0.0 }
 0x8bc   : > { %v6541_v58 = vpop.f32.mrf.mxu0  ;;  %v7208_v10 = vrot.slane %v7207_v3, 2  ;;  %v6032_v41 = vpop.f32.mrf.mxu3  ;;  %v5214_v38 = vadd.f32 %v5044_v11, %v14451_v18  ;;  %8108 = vmatmul.msk.bf16.gmra.mxu0 %vm1523_vm2, %v14452_v43  ;;  %v14459_v18 = vld [vmem:[#allocation213_spill] sm:$0xff] }
 0x8bd   : > { %v6207_v61 = vadd.f32 %v6032_v41, %v5689_v16  ;;  %v7212_v33 = vsel %vm7004_vm4, %v6972_v42, 0.0  ;;  %v14461_v42 = vld [vmem:[#allocation239_spill] sm:$0xff] }
 0x8be   : > { %v5527_v44 = vpop.f32.mrf.mxu2  ;;  %v7209_v27 = vadd.f32 %v7208_v10, %v7207_v3  ;;  %v5692_v8 = vadd.f32 %v5522_v25, %v5214_v38  ;;  %7914 = vmatmul.msk.bf16.gmra.mxu1 %vm1523_vm2, %v14452_v43  ;;  %v14458_v3 = vld [vmem:[#allocation247_spill] sm:$0xff] }
 0x8bf   : > { %v6713_v20 = vadd.f32 %v6538_v29, %v6207_v61 }
 0x8c0   : > { %v7210_v13 = vrot.slane %v7209_v27, 1 }
 0x8c1   : > { %v6845_v14 = vadd.f32 %v12343_v48, %v6713_v20  ;;  %8043 = vmatmul.msk.bf16.gmra.mxu3 %vm1523_vm2, %v14453_v24 }
 0x8c2   : > { %v7211_v45 = vadd.f32 %v7210_v13, %v7209_v27 }
 0x8c3   : > { %v6973_v7 = vmax.f32 %v6845_v14, 0.0  ;;  %v5046_v63 = vpop.f32.mrf.mxu1 }
 0x8c4   : > { %v6543_v6 = vpop.f32.mrf.mxu0  ;;  %v7290_v0 = vmul.f32 %v12305_v5, %v7211_v45  ;;  %v6035_v56 = vpop.f32.mrf.mxu3  ;;  %v5215_v16 = vadd.f32 %v5046_v63, %v14454_v49 }
 0x8c5   : > { %v7213_v39 = vsel %vm7004_vm4, %v6973_v7, 0.0  ;;  %v6208_v51 = vadd.f32 %v6035_v56, %v5690_v60 }
 0x8c6   : > { %v5529_v4 = vpop.f32.mrf.mxu2  ;;  %v7294_v35 = vpack.c.bf16 %v7290_v0, %v7290_v0  ;;  %v7214_v52 = vadd.f32 %v7213_v39, %v7212_v33  ;;  %v5693_v15 = vadd.f32 %v5524_v47, %v5215_v16  ;;  %v14462_v0 = vld [vmem:[#allocation198_spill] sm:$0xff] }
 0x8c7   : > { %v6714_v30 = vadd.f32 %v6541_v58, %v6208_v51 }
 0x8c8   : > { %v7310_v21 = vunpack.c.l.b16 %v7294_v35  ;;  %7981 = vmatmul.msk.bf16.gmra.mxu2 %vm1523_vm2, %v8429_v54 }
 0x8c9   : > { %v6846_v19 = vadd.f32 %v12343_v48, %v6714_v30  ;;  %v4751_v30 = vrot.slane %v14463_v12, 2 }
 0x8ca   : > { %v12588_v34 = vsel %vm7314_vm7, %v7310_v21, %v12327_v22 }
 0x8cb   : > { %v6974_v25 = vmax.f32 %v6846_v19, 0.0  ;;  %v5049_v9 = vpop.f32.mrf.mxu1 }
 0x8cc   : > { %v6546_v28 = vpop.f32.mrf.mxu0  ;;  %v6037_v32 = vpop.f32.mrf.mxu3  ;;  %v5216_v29 = vadd.f32 %v5049_v9, %v14455_v50  ;;  %8109 = vmatmul.msk.bf16.gmra.mxu0 %vm1523_vm2, %v14456_v40  ;;  %v14465_v9 = vld [vmem:[#allocation96_spill] sm:$0xff] }
 0x8cd   : > { %v7215_v60 = vsel %vm7004_vm4, %v6974_v25, 0.0  ;;  %v6209_v46 = vadd.f32 %v6037_v32, %v5691_v62 }
 0x8ce   : > { %v5532_v23 = vpop.f32.mrf.mxu2  ;;  %v7216_v26 = vadd.f32 %v7215_v60, %v7214_v52  ;;  %v5694_v57 = vadd.f32 %v5527_v44, %v5216_v29  ;;  %7915 = vmatmul.msk.bf16.gmra.mxu1 %vm1523_vm2, %v14456_v40  ;;  %v12619_v52 = vld [vmem:[%s12777_s2] ss:$0 sm:$0xff]  ;;  %v14466_v60 = vunpack.c.l.bf16 %v14465_v9  ;;  %v14467_v40 = vld [vmem:[#allocation95_spill] sm:$0xff] }
 0x8cf   : > { %v6715_v37 = vadd.f32 %v6543_v6, %v6209_v46 }
 0x8d0   : > { %v4754_v46 = vrot.slane %v14466_v60, 2 }
 0x8d1   : > { %v6847_v22 = vadd.f32 %v12343_v48, %v6715_v37  ;;  %8044 = vmatmul.msk.bf16.gmra.mxu3 %vm1523_vm2, %v14457_v17 }
 0x8d3   : > { %v6975_v47 = vmax.f32 %v6847_v22, 0.0  ;;  %v5051_v59 = vpop.f32.mrf.mxu1 }
 0x8d4   : > { %v6548_v2 = vpop.f32.mrf.mxu0  ;;  %v6040_v1 = vpop.f32.mrf.mxu3  ;;  %v5217_v58 = vadd.f32 %v5051_v59, %v14458_v3 }
 0x8d5   : > { %v7217_v62 = vsel %vm7004_vm4, %v6975_v47, 0.0  ;;  %v6210_v31 = vadd.f32 %v6040_v1, %v5692_v8  ;;  %v14460_v8 = vld [vmem:[#allocation250_spill] sm:$0xff]  ;;  %v12639_v47 = vld [vmem:[%s8517_s19 + $0x354] sm:$0xff]  }
 0x8d6   : > { %v12601_v53 = vpop.f32.mrf.mxu2  ;;  %v7218_v10 = vadd.f32 %v7217_v62, %v7216_v26  ;;  %v5695_v11 = vadd.f32 %v5529_v4, %v5217_v58  ;;  %v14468_v26 = vld [vmem:[#allocation74_spill] sm:$0xff]  ;;  %v14469_v62 = vld [vmem:[#allocation211_spill] sm:$0xff]  ;;  %v748_v3 = vunpack.c.l.bf16 %v12639_v47  ;;  %v749_v58 = vunpack.c.h.bf16 %v12639_v47 }
 0x8d7   : > { %v6716_v41 = vadd.f32 %v6546_v28, %v6210_v31  ;;  %v8431_v28 = vld [vmem:[%s8517_s19 + $0x348] sm:$0xff]  }
 0x8d8   : > { %7982 = vmatmul.msk.bf16.gmra.mxu2 %vm1523_vm2, %v14459_v18  ;;  %v14470_v18 = vld [vmem:[#allocation257_spill] sm:$0xff] }
 0x8d9   : > { %v6848_v55 = vadd.f32 %v12343_v48, %v6716_v41 }
 0x8db   : > { %v6976_v38 = vmax.f32 %v6848_v55, 0.0  ;;  %v5054_v44 = vpop.f32.mrf.mxu1 }
 0x8dc   : > { %v6551_v61 = vpop.f32.mrf.mxu0  ;;  %v6042_v43 = vpop.f32.mrf.mxu3  ;;  %v5218_v13 = vadd.f32 %v5054_v44, %v14460_v8  ;;  %8110 = vmatmul.msk.bf16.gmra.mxu0 %vm1523_vm2, %v14461_v42 }
 0x8dd   : > { %v7219_v27 = vsel %vm7004_vm4, %v6976_v38, 0.0  ;;  %v6211_v20 = vadd.f32 %v6042_v43, %v5693_v15  ;;  %v14464_v15 = vunpack.c.h.bf16 %v11614_v36 }
 0x8de   : > { %v5537_v14 = vpop.f32.mrf.mxu2  ;;  %v7220_v24 = vadd.f32 %v7219_v27, %v7218_v10  ;;  %v5696_v6 = vadd.f32 %v5532_v23, %v5218_v13  ;;  %7916 = vmatmul.msk.bf16.gmra.mxu1 %vm1523_vm2, %v14461_v42  ;;  %v14471_v27 = vld [vmem:[#allocation254_spill] sm:$0xff] }
 0x8df   : > { %v6717_v45 = vadd.f32 %v6548_v2, %v6211_v20  ;;  %v4752_v21 = vrot.slane %v14464_v15, 2 }
 0x8e1   : > { %v6849_v7 = vadd.f32 %v12343_v48, %v6717_v45  ;;  %8045 = vmatmul.msk.bf16.gmra.mxu3 %vm1523_vm2, %v14462_v0  ;;  %v4755_v22 = vsel %vm2573_vm3, %v4752_v21, %v4754_v46 }
 0x8e3   : > { %v6977_v63 = vmax.f32 %v6849_v7, 0.0  ;;  %v5056_v39 = vpop.f32.mrf.mxu1 }
 0x8e4   : > { %v6553_v56 = vpop.f32.mrf.mxu0  ;;  %v6045_v33 = vpop.f32.mrf.mxu3  ;;  %v5219_v20 = vadd.f32 %v5056_v39, %v14471_v27 }
 0x8e5   : > { %v7221_v51 = vsel %vm7004_vm4, %v6977_v63, 0.0  ;;  %v6212_v49 = vadd.f32 %v6045_v33, %v5694_v57  ;;  %v4753_v57 = vsel %vm2573_vm3, %v4751_v30, %v4752_v21  ;;  %v14472_v63 = vld [vmem:[#allocation97_spill] sm:$0xff] }
 0x8e6   : > { %v5539_v16 = vpop.f32.mrf.mxu2  ;;  %v7222_v4 = vadd.f32 %v7221_v51, %v7220_v24  ;;  %v4767_v1 = vpack.c.bf16 %v4755_v22, %v4753_v57  ;;  %v5697_v24 = vadd.f32 %v12601_v53, %v5219_v20  ;;  %v14473_v51 = vld [vmem:[#allocation84_spill] sm:$0xff] }
 0x8e7   : > { %v6718_v35 = vadd.f32 %v6551_v61, %v6212_v49  ;;  %v14476_v57 = vld [vmem:[#allocation112_spill] sm:$0xff] }
 0x8e8   : > { %7983 = vmatmul.msk.bf16.gmra.mxu2 %vm1523_vm2, %v8431_v28  ;;  %v14475_v28 = vld [vmem:[#allocation104_spill] sm:$0xff] }
 0x8e9   : > { %v6850_v48 = vadd.f32 %v12619_v52, %v6718_v35  ;;  %v14474_v35 = vld [vmem:[#allocation221_spill] sm:$0xff] }
 0x8eb   : > { %v6978_v54 = vmax.f32 %v6850_v48, 0.0  ;;  %v5059_v32 = vpop.f32.mrf.mxu1 }
 0x8ec   : > { %v6556_v19 = vpop.f32.mrf.mxu0  ;;  %v6047_v25 = vpop.f32.mrf.mxu3  ;;  %v5220_v23 = vadd.f32 %v5059_v32, %v14467_v40  ;;  %8111 = vmatmul.msk.bf16.gmra.mxu0 %vm1523_vm2, %v14468_v26  ;;  %v534_v40 = vld [vmem:[%s8517_s19 + $0x35c] sm:$0x1] }
 0x8ed   : > { %v7223_v50 = vsel %vm7004_vm4, %v6978_v54, 0.0  ;;  %v6213_v29 = vadd.f32 %v6047_v25, %v5695_v11 }
 0x8ee   : > { %v5542_v36 = vpop.f32.mrf.mxu2  ;;  %v7224_v37 = vadd.f32 %v7223_v50, %v7222_v4  ;;  %v5698_v2 = vadd.f32 %v5537_v14, %v5220_v23  ;;  %7917 = vmatmul.msk.bf16.gmra.mxu1 %vm1523_vm2, %v14468_v26 }
 0x8ef   : > { %v6719_v17 = vadd.f32 %v6553_v56, %v6213_v29 }
 0x8f1   : > { %v6851_v59 = vadd.f32 %v12619_v52, %v6719_v17  ;;  %8046 = vmatmul.msk.bf16.gmra.mxu3 %vm1523_vm2, %v14469_v62 }
 0x8f3   : > { %v6979_v10 = vmax.f32 %v6851_v59, 0.0  ;;  %v5061_v11 = vpop.f32.mrf.mxu1 }
 0x8f4   : > { %v6558_v31 = vpop.f32.mrf.mxu0  ;;  %v6050_v41 = vpop.f32.mrf.mxu3  ;;  %v5221_v38 = vadd.f32 %v5061_v11, %v14470_v18 }
 0x8f5   : > { %v7225_v55 = vsel %vm7004_vm4, %v6979_v10, 0.0  ;;  %v6214_v61 = vadd.f32 %v6050_v41, %v5696_v6  ;;  %v14477_v10 = vld [vmem:[#allocation111_spill] sm:$0xff] }
 0x8f6   : > { %v5544_v43 = vpop.f32.mrf.mxu2  ;;  %v7226_v44 = vadd.f32 %v7225_v55, %v7224_v37  ;;  %v5699_v13 = vadd.f32 %v5539_v16, %v5221_v38  ;;  %v6253_v55 = vrot.slane %v748_v3, 2 }
 0x8f7   : > { %v6720_v8 = vadd.f32 %v6556_v19, %v6214_v61  ;;  %v6254_v61 = vrot.slane %v749_v58, 2 }
 0x8f8   : > { %7984 = vmatmul.msk.bf16.gmra.mxu2 %vm1523_vm2, %v12639_v47 }
 0x8f9   : > { %v6852_v42 = vadd.f32 %v12619_v52, %v6720_v8  ;;  %v14478_v8 = vld [vmem:[#allocation127_spill] sm:$0xff] }
 0x8fb   : > { %v6980_v45 = vmax.f32 %v6852_v42, 0.0  ;;  %v5064_v0 = vpop.f32.mrf.mxu1  ;;  %v5748_v42 = vrot.slane %v749_v58, 1 }
 0x8fc   : > { %v6561_v14 = vpop.f32.mrf.mxu0  ;;  %v6052_v7 = vpop.f32.mrf.mxu3  ;;  %v5222_v33 = vadd.f32 %v5064_v0, %v14472_v63  ;;  %8112 = vmatmul.msk.bf16.gmra.mxu0 %vm1523_vm2, %v14473_v51 }
 0x8fd   : > { %v7227_v6 = vsel %vm7004_vm4, %v6980_v45, 0.0  ;;  %v6215_v56 = vadd.f32 %v6052_v7, %v5697_v24  ;;  %v6255_v45 = vsel %vm2573_vm3, %v6253_v55, %v6254_v61 }
 0x8fe   : > { %v5547_v39 = vpop.f32.mrf.mxu2  ;;  %v7228_v49 = vadd.f32 %v7227_v6, %v7226_v44  ;;  %v5700_v4 = vadd.f32 %v5542_v36, %v5222_v33  ;;  %7918 = vmatmul.msk.bf16.gmra.mxu1 %vm1523_vm2, %v14473_v51 }
 0x8ff   : > { %v6721_v16 = vadd.f32 %v6558_v31, %v6215_v56 }
 0x901   : > { %v6853_v53 = vadd.f32 %v12619_v52, %v6721_v16  ;;  %8047 = vmatmul.msk.bf16.gmra.mxu3 %vm1523_vm2, %v14474_v35 }
 0x903   : > { %v6981_v12 = vmax.f32 %v6853_v53, 0.0  ;;  %v5066_v15 = vpop.f32.mrf.mxu1  ;;  %v14479_v53 = vld [vmem:[#allocation128_spill] sm:$0xff] }
 0x904   : > { %v6563_v48 = vpop.f32.mrf.mxu0  ;;  %v6055_v30 = vpop.f32.mrf.mxu3  ;;  %v5223_v54 = vadd.f32 %v5066_v15, %v14475_v28 }
 0x905   : > { %v7229_v21 = vsel %vm7004_vm4, %v6981_v12, 0.0  ;;  %v6216_v19 = vadd.f32 %v6055_v30, %v5698_v2  ;;  %v750_v2 = vunpack.c.l.bf16 %v534_v40 }
 0x906   : > { %v7230_v25 = vadd.f32 %v7229_v21, %v7228_v49  ;;  %v5701_v9 = vadd.f32 %v5544_v43, %v5223_v54  ;;  %v5549_v60 = vpop.f32.mrf.mxu2 }
 0x907   : > { %v6722_v32 = vadd.f32 %v6561_v14, %v6216_v19  ;;  %v6256_v18 = vrot.slane %v750_v2, 2  ;;  %v5750_v24 = vrot.slane %v750_v2, 1 }
 0x909   : > { %v6854_v46 = vadd.f32 %v12619_v52, %v6722_v32  ;;  %v6257_v7 = vsel %vm2573_vm3, %v6254_v61, %v6256_v18  ;;  %v5751_v51 = vsel %vm1008_vm1, %v5748_v42, %v5750_v24 }
 0x90a   : > { %v6269_v63 = vpack.c.bf16 %v6257_v7, %v6255_v45 }
 0x90b   : > { %v6982_v29 = vmax.f32 %v6854_v46, 0.0  ;;  %v5069_v26 = vpop.f32.mrf.mxu1 }
 0x90c   : > { %v6566_v50 = vpop.f32.mrf.mxu0  ;;  %v6057_v23 = vpop.f32.mrf.mxu3  ;;  %v5224_v22 = vadd.f32 %v5069_v26, %v14476_v57  ;;  %8113 = vmatmul.msk.bf16.gmra.mxu0 %vm1523_vm2, %v4767_v1 }
 0x90d   : > { %v7231_v36 = vsel %vm7004_vm4, %v6982_v29, 0.0  ;;  %v6217_v37 = vadd.f32 %v6057_v23, %v5699_v13 }
 0x90e   : > { %v7232_v17 = vadd.f32 %v7231_v36, %v7230_v25  ;;  %v5702_v62 = vadd.f32 %v5547_v39, %v5224_v22  ;;  %7919 = vmatmul.msk.bf16.gmra.mxu1 %vm1523_vm2, %v4767_v1  ;;  %v5552_v41 = vpop.f32.mrf.mxu2  ;;  %v5747_v1 = vrot.slane %v748_v3, 1 }
 0x90f   : > { %v6723_v59 = vadd.f32 %v6563_v48, %v6217_v37 }
 0x910   : > { %v5749_v33 = vsel %vm1008_vm1, %v5747_v1, %v5748_v42 }
 0x911   : > { %v6855_v31 = vadd.f32 %v12619_v52, %v6723_v59  ;;  %8048 = vmatmul.msk.bf16.gmra.mxu3 %vm1523_vm2, %v14477_v10  ;;  %v5763_v48 = vpack.c.bf16 %v5751_v51, %v5749_v33  ;;  %v14481_v59 = vld [vmem:[#allocation130_spill] sm:$0xff] }
 0x913   : > { %v6983_v38 = vmax.f32 %v6855_v31, 0.0  ;;  %v5071_v44 = vpop.f32.mrf.mxu1 }
 0x914   : > { %v6568_v11 = vpop.f32.mrf.mxu0  ;;  %v6060_v43 = vpop.f32.mrf.mxu3  ;;  %v5225_v13 = vadd.f32 %v5071_v44, %v14478_v8 }
 0x915   : > { %v7233_v27 = vsel %vm7004_vm4, %v6983_v38, 0.0  ;;  %v6218_v20 = vadd.f32 %v6060_v43, %v5700_v4 }
 0x916   : > { %v7234_v14 = vadd.f32 %v7233_v27, %v7232_v17  ;;  %v5703_v6 = vadd.f32 %v5549_v60, %v5225_v13  ;;  %v5554_v49 = vpop.f32.mrf.mxu2  ;;  %v14482_v27 = vld [vmem:[#allocation147_spill] sm:$0xff] }
 0x917   : > { %v6724_v0 = vadd.f32 %v6566_v50, %v6218_v20 }
 0x919   : > { %v6856_v56 = vadd.f32 %v12619_v52, %v6724_v0 }
 0x91b   : > { %v6984_v39 = vmax.f32 %v6856_v56, 0.0  ;;  %v5074_v58 = vpop.f32.mrf.mxu1 }
 0x91c   : > { %v6571_v3 = vpop.f32.mrf.mxu0  ;;  %v6062_v47 = vpop.f32.mrf.mxu3  ;;  %v5226_v35 = vadd.f32 %v5074_v58, %v14479_v53  ;;  %8114 = vmatmul.msk.bf16.gmra.mxu0 %vm1523_vm2, %v6269_v63 }
 0x91d   : > { %v7235_v16 = vsel %vm7004_vm4, %v6984_v39, 0.0  ;;  %v6219_v4 = vadd.f32 %v6062_v47, %v5701_v9  ;;  %v14480_v9 = vld [vmem:[#allocation121_spill] sm:$0xff] }
 0x91e   : > { %v7236_v12 = vadd.f32 %v7235_v16, %v7234_v14  ;;  %v5704_v15 = vadd.f32 %v5552_v41, %v5226_v35  ;;  %v5557_v50 = vpop.f32.mrf.mxu2 }
 0x91f   : > { %v6725_v30 = vadd.f32 %v6568_v11, %v6219_v4 }
 0x921   : > { %v6857_v21 = vadd.f32 %v12619_v52, %v6725_v30  ;;  %8049 = vmatmul.msk.bf16.gmra.mxu3 %vm1523_vm2, %v5763_v48 }
 0x923   : > { %v6985_v28 = vmax.f32 %v6857_v21, 0.0  ;;  %v5076_v25 = vpop.f32.mrf.mxu1 }
 0x924   : > { %v6573_v19 = vpop.f32.mrf.mxu0  ;;  %v6065_v54 = vpop.f32.mrf.mxu3  ;;  %v5227_v46 = vadd.f32 %v5076_v25, %v14480_v9 }
 0x925   : > { %v7237_v32 = vsel %vm7004_vm4, %v6985_v28, 0.0  ;;  %v6220_v60 = vadd.f32 %v6065_v54, %v5702_v62 }
 0x926   : > { %v7238_v29 = vadd.f32 %v7237_v32, %v7236_v12  ;;  %v5705_v23 = vadd.f32 %v5554_v49, %v5227_v46  ;;  %v5559_v11 = vpop.f32.mrf.mxu2 }
 0x927   : > { %v6726_v40 = vadd.f32 %v6571_v3, %v6220_v60  ;;  %v14483_v3 = vld [vmem:[#allocation140_spill] sm:$0xff] }
 0x929   : > { %v6858_v26 = vadd.f32 %v12619_v52, %v6726_v40 }
 0x92b   : > { %v6986_v37 = vmax.f32 %v6858_v26, 0.0  ;;  %v5079_v22 = vpop.f32.mrf.mxu1 }
 0x92c   : > { %v6576_v36 = vpop.f32.mrf.mxu0  ;;  %v6067_v57 = vpop.f32.mrf.mxu3  ;;  %v5228_v31 = vadd.f32 %v5079_v22, %v14481_v59 }
 0x92d   : > { %v7239_v17 = vsel %vm7004_vm4, %v6986_v37, 0.0  ;;  %v6221_v2 = vadd.f32 %v6067_v57, %v5703_v6 }
 0x92e   : > { %v7240_v10 = vadd.f32 %v7239_v17, %v7238_v29  ;;  %v5706_v62 = vadd.f32 %v5557_v50, %v5228_v31  ;;  %v5562_v24 = vpop.f32.mrf.mxu2 }
 0x92f   : > { %v6727_v41 = vadd.f32 %v6573_v19, %v6221_v2  ;;  %v14484_v2 = vld [vmem:[#allocation149_spill] sm:$0xff] }
 0x931   : > { %v6859_v55 = vadd.f32 %v12619_v52, %v6727_v41 }
 0x933   : > { %v6987_v18 = vmax.f32 %v6859_v55, 0.0  ;;  %v5081_v43 = vpop.f32.mrf.mxu1 }
 0x934   : > { %v6578_v61 = vpop.f32.mrf.mxu0  ;;  %v6070_v38 = vpop.f32.mrf.mxu3  ;;  %v5229_v20 = vadd.f32 %v5081_v43, %v14482_v27 }
 0x935   : > { %v7241_v44 = vsel %vm7004_vm4, %v6987_v18, 0.0  ;;  %v6222_v1 = vadd.f32 %v6070_v38, %v5704_v15  ;;  %v8161_v15 = vld [vmem:[%s12780_s5 + $0x8] sm:$0xff] }
 0x936   : > { %v7242_v8 = vadd.f32 %v7241_v44, %v7240_v10  ;;  %v5707_v42 = vadd.f32 %v5559_v11, %v5229_v20  ;;  %v5564_v4 = vpop.f32.mrf.mxu2  ;;  %7437 = vmatpush.bf16.msrb.mxu2 %v8161_v15 }
 0x937   : > { %v6728_v13 = vadd.f32 %v6576_v36, %v6222_v1  ;;  %v14485_v1 = vld [vmem:[#allocation166_spill] sm:$0xff] }
 0x939   : > { %v6860_v14 = vadd.f32 %v12619_v52, %v6728_v13 }
 0x93b   : > { %v6988_v7 = vmax.f32 %v6860_v14, 0.0  ;;  %v5084_v6 = vpop.f32.mrf.mxu1 }
 0x93c   : > { %v6581_v45 = vpop.f32.mrf.mxu0  ;;  %v6072_v0 = vpop.f32.mrf.mxu3  ;;  %v5230_v33 = vadd.f32 %v5084_v6, %v14483_v3 }
 0x93d   : > { %v7243_v56 = vsel %vm7004_vm4, %v6988_v7, 0.0  ;;  %v6223_v63 = vadd.f32 %v6072_v0, %v5705_v23 }
 0x93e   : > { %v7244_v51 = vadd.f32 %v7243_v56, %v7242_v8  ;;  %v5708_v49 = vadd.f32 %v5562_v24, %v5230_v33  ;;  %v5567_v50 = vpop.f32.mrf.mxu2  ;;  %v14486_v56 = vld [vmem:[#allocation167_spill] sm:$0xff] }
 0x93f   : > { %v6729_v39 = vadd.f32 %v6578_v61, %v6223_v63 }
 0x941   : > { %v6861_v47 = vadd.f32 %v12619_v52, %v6729_v39 }
 0x943   : > { %v6989_v16 = vmax.f32 %v6861_v47, 0.0  ;;  %v5086_v35 = vpop.f32.mrf.mxu1 }
 0x944   : > { %v6583_v58 = vpop.f32.mrf.mxu0  ;;  %v6075_v53 = vpop.f32.mrf.mxu3  ;;  %v5231_v59 = vadd.f32 %v5086_v35, %v14484_v2 }
 0x945   : > { %v7245_v48 = vsel %vm7004_vm4, %v6989_v16, 0.0  ;;  %v6224_v12 = vadd.f32 %v6075_v53, %v5706_v62 }
 0x946   : > { %v7246_v30 = vadd.f32 %v7245_v48, %v7244_v51  ;;  %v5569_v10 = vpop.f32.mrf.mxu2  ;;  %v5709_v11 = vadd.f32 %v5564_v4, %v5231_v59  ;;  %v14487_v48 = vld [vmem:[#allocation160_spill] sm:$0xff] }
 0x947   : > { %v6730_v21 = vadd.f32 %v6581_v45, %v6224_v12 }
 0x949   : > { %v6862_v19 = vadd.f32 %v12619_v52, %v6730_v21 }
 0x94b   : > { %v6990_v54 = vmax.f32 %v6862_v19, 0.0  ;;  %v5089_v32 = vpop.f32.mrf.mxu1 }
 0x94c   : > { %v6586_v28 = vpop.f32.mrf.mxu0  ;;  %v6077_v25 = vpop.f32.mrf.mxu3  ;;  %v5232_v27 = vadd.f32 %v5089_v32, %v14485_v1 }
 0x94d   : > { %v7247_v60 = vsel %vm7004_vm4, %v6990_v54, 0.0  ;;  %v6225_v9 = vadd.f32 %v6077_v25, %v5707_v42 }
 0x94e   : > { %v7248_v46 = vadd.f32 %v7247_v60, %v7246_v30  ;;  %v5572_v13 = vpop.f32.mrf.mxu2  ;;  %v5710_v14 = vadd.f32 %v5567_v50, %v5232_v27  ;;  %v14488_v50 = vld [vmem:[#allocation169_spill] sm:$0xff] }
 0x94f   : > { %v6731_v29 = vadd.f32 %v6583_v58, %v6225_v9 }
 0x951   : > { %v6863_v40 = vadd.f32 %v12619_v52, %v6731_v29 }
 0x953   : > { %v6991_v26 = vmax.f32 %v6863_v40, 0.0  ;;  %v5091_v37 = vpop.f32.mrf.mxu1 }
 0x954   : > { %v6588_v23 = vpop.f32.mrf.mxu0  ;;  %v6080_v36 = vpop.f32.mrf.mxu3  ;;  %v5233_v63 = vadd.f32 %v5091_v37, %v14486_v56 }
 0x955   : > { %v7249_v57 = vsel %vm7004_vm4, %v6991_v26, 0.0  ;;  %v6226_v22 = vadd.f32 %v6080_v36, %v5708_v49 }
 0x956   : > { %v7250_v17 = vadd.f32 %v7249_v57, %v7248_v46  ;;  %v5711_v49 = vadd.f32 %v5569_v10, %v5233_v63  ;;  %v5574_v58 = vpop.f32.mrf.mxu2  ;;  %v14491_v63 = vld [vmem:[#allocation189_spill] sm:$0xff] }
 0x957   : > { %v6732_v31 = vadd.f32 %v6586_v28, %v6226_v22 }
 0x959   : > { %v6864_v41 = vadd.f32 %v12619_v52, %v6732_v31  ;;  %v14489_v31 = vld [vmem:[#allocation187_spill] sm:$0xff] }
 0x95b   : > { %v6992_v55 = vmax.f32 %v6864_v41, 0.0  ;;  %v5094_v43 = vpop.f32.mrf.mxu1 }
 0x95c   : > { %v6591_v62 = vpop.f32.mrf.mxu0  ;;  %v6082_v61 = vpop.f32.mrf.mxu3  ;;  %v5234_v12 = vadd.f32 %v5094_v43, %v14487_v48 }
 0x95d   : > { %v7251_v18 = vsel %vm7004_vm4, %v6992_v55, 0.0  ;;  %v6227_v38 = vadd.f32 %v6082_v61, %v5709_v11 }
 0x95e   : > { %v7252_v44 = vadd.f32 %v7251_v18, %v7250_v17  ;;  %v5712_v28 = vadd.f32 %v5572_v13, %v5234_v12  ;;  %v5577_v46 = vpop.f32.mrf.mxu2  ;;  %v14492_v12 = vld [vmem:[#allocation202_spill] sm:$0xff] }
 0x95f   : > { %v6733_v20 = vadd.f32 %v6588_v23, %v6227_v38 }
 0x961   : > { %v6865_v8 = vadd.f32 %v12619_v52, %v6733_v20  ;;  %v14490_v20 = vld [vmem:[#allocation180_spill] sm:$0xff] }
 0x963   : > { %v6993_v24 = vmax.f32 %v6865_v8, 0.0  ;;  %v5096_v33 = vpop.f32.mrf.mxu1 }
 0x964   : > { %v6593_v42 = vpop.f32.mrf.mxu0  ;;  %v6085_v45 = vpop.f32.mrf.mxu3  ;;  %v5235_v29 = vadd.f32 %v5096_v33, %v14488_v50 }
 0x965   : > { %v7253_v7 = vsel %vm7004_vm4, %v6993_v24, 0.0  ;;  %v6228_v0 = vadd.f32 %v6085_v45, %v5710_v14 }
 0x966   : > { %v7254_v6 = vadd.f32 %v7253_v7, %v7252_v44  ;;  %v5713_v26 = vadd.f32 %v5574_v58, %v5235_v29  ;;  %v14493_v29 = vld [vmem:[#allocation203_spill] sm:$0xff] }
 0x967   : > { %v6734_v3 = vadd.f32 %v6591_v62, %v6228_v0  ;;  %v5579_v62 = vpop.f32.mrf.mxu2 }
 0x969   : > { %v6866_v51 = vadd.f32 %v12619_v52, %v6734_v3 }
 0x96b   : > { %v6994_v47 = vmax.f32 %v6866_v51, 0.0  ;;  %v5099_v21 = vpop.f32.mrf.mxu1 }
 0x96c   : > { %v6596_v39 = vpop.f32.mrf.mxu0  ;;  %v6087_v16 = vpop.f32.mrf.mxu3  ;;  %v5236_v10 = vadd.f32 %v5099_v21, %v14489_v31 }
 0x96d   : > { %v7255_v4 = vsel %vm7004_vm4, %v6994_v47, 0.0  ;;  %v6229_v53 = vadd.f32 %v6087_v16, %v5711_v49 }
 0x96e   : > { %v7256_v35 = vadd.f32 %v7255_v4, %v7254_v6  ;;  %v5714_v55 = vadd.f32 %v5577_v46, %v5236_v10  ;;  %v14494_v10 = vld [vmem:[#allocation196_spill] sm:$0xff] }
 0x96f   : > { %v6735_v30 = vadd.f32 %v6593_v42, %v6229_v53  ;;  %v5582_v14 = vpop.f32.mrf.mxu2 }
 0x971   : > { %v6867_v15 = vadd.f32 %v12619_v52, %v6735_v30 }
 0x973   : > { %v6995_v54 = vmax.f32 %v6867_v15, 0.0  ;;  %v5101_v37 = vpop.f32.mrf.mxu1 }
 0x974   : > { %v6598_v19 = vpop.f32.mrf.mxu0  ;;  %v6090_v25 = vpop.f32.mrf.mxu3  ;;  %v5237_v8 = vadd.f32 %v5101_v37, %v14490_v20 }
 0x975   : > { %v7257_v32 = vsel %vm7004_vm4, %v6995_v54, 0.0  ;;  %v6230_v60 = vadd.f32 %v6090_v25, %v5712_v28 }
 0x976   : > { %v7258_v9 = vadd.f32 %v7257_v32, %v7256_v35  ;;  %v5715_v24 = vadd.f32 %v5579_v62, %v5237_v8 }
 0x977   : > { %v6736_v40 = vadd.f32 %v6596_v39, %v6230_v60  ;;  %v5584_v16 = vpop.f32.mrf.mxu2 }
 0x979   : > { %v6868_v23 = vadd.f32 %v12619_v52, %v6736_v40 }
 0x97b   : > { %v6996_v36 = vmax.f32 %v6868_v23, 0.0  ;;  %v5104_v43 = vpop.f32.mrf.mxu1 }
 0x97c   : > { %v6092_v57 = vpop.f32.mrf.mxu3  ;;  %v6601_v22 = vpop.f32.mrf.mxu0  ;;  %v5238_v3 = vadd.f32 %v5104_v43, %v14491_v63 }
 0x97d   : > { %v7259_v17 = vsel %vm7004_vm4, %v6996_v36, 0.0  ;;  %v6231_v2 = vadd.f32 %v6092_v57, %v5713_v26 }
 0x97e   : > { %v7260_v59 = vadd.f32 %v7259_v17, %v7258_v9  ;;  %v5716_v47 = vadd.f32 %v5582_v14, %v5238_v3 }
 0x97f   : > { %v6737_v41 = vadd.f32 %v6598_v19, %v6231_v2  ;;  %v5587_v46 = vpop.f32.mrf.mxu2 }
 0x981   : > { %v6869_v11 = vadd.f32 %v12619_v52, %v6737_v41 }
 0x983   : > { %v6997_v61 = vmax.f32 %v6869_v11, 0.0  ;;  %v5106_v33 = vpop.f32.mrf.mxu1 }
 0x984   : > { %v6095_v18 = vpop.f32.mrf.mxu3  ;;  %v6603_v27 = vpop.f32.mrf.mxu0  ;;  %v5239_v30 = vadd.f32 %v5106_v33, %v14492_v12 }
 0x985   : > { %v7261_v38 = vsel %vm7004_vm4, %v6997_v61, 0.0  ;;  %v6232_v44 = vadd.f32 %v6095_v18, %v5714_v55 }
 0x986   : > { %v7262_v1 = vadd.f32 %v7261_v38, %v7260_v59  ;;  %v5717_v54 = vadd.f32 %v5584_v16, %v5239_v30 }
 0x987   : > { %v6738_v13 = vadd.f32 %v6601_v22, %v6232_v44  ;;  %v5589_v11 = vpop.f32.mrf.mxu2 }
 0x989   : > { %v6870_v42 = vadd.f32 %v12619_v52, %v6738_v13 }
 0x98b   : > { %v6998_v45 = vmax.f32 %v6870_v42, 0.0  ;;  %v5109_v21 = vpop.f32.mrf.mxu1 }
 0x98c   : > { %v6097_v7 = vpop.f32.mrf.mxu3  ;;  %v6606_v39 = vpop.f32.mrf.mxu0  ;;  %v5240_v40 = vadd.f32 %v5109_v21, %v14493_v29 }
 0x98d   : > { %v7263_v0 = vsel %vm7004_vm4, %v6998_v45, 0.0  ;;  %v6233_v6 = vadd.f32 %v6097_v7, %v5715_v24 }
 0x98e   : > { %v7264_v56 = vadd.f32 %v7263_v0, %v7262_v1  ;;  %v5718_v36 = vadd.f32 %v5587_v46, %v5240_v40  ;;  %v8160_v1 = vld [vmem:[%s12780_s5] sm:$0xff] }
 0x98f   : > { %v6739_v51 = vadd.f32 %v6603_v27, %v6233_v6  ;;  %7438 = vmatpush.bf16.msrb.mxu2 %v8160_v1  ;;  %v7382_v46 = vld [vmem:[%s12781_s6] sm:$0x1] }
 0x991   : > { %v6871_v49 = vadd.f32 %v12619_v52, %v6739_v51 }
 0x993   : > { %v6999_v58 = vmax.f32 %v6871_v49, 0.0  ;;  %v5111_v37 = vpop.f32.mrf.mxu1  ;;  %v8441_v49 = vmov 4.0  }
 0x994   : > { %v6100_v4 = vpop.f32.mrf.mxu3  ;;  %v6608_v28 = vpop.f32.mrf.mxu0  ;;  %v5241_v41 = vadd.f32 %v5111_v37, %v14494_v10  ;;  %8365 = vrcp.f32 %v8441_v49 }
 0x995   : > { %v7265_v53 = vsel %vm7004_vm4, %v6999_v58, 0.0  ;;  %v6234_v35 = vadd.f32 %v6100_v4, %v5716_v47  ;;  %v8362_v58 = vld [vmem:[%s12779_s4] ss:$0 sm:$0xff] }
 0x996   : > { %v7266_v48 = vadd.f32 %v7265_v53, %v7264_v56  ;;  %v5719_v61 = vadd.f32 %v5589_v11, %v5241_v41 }
 0x997   : > { %v6740_v15 = vadd.f32 %v6606_v39, %v6234_v35 }
 0x999   : > { %v6872_v19 = vadd.f32 %v12619_v52, %v6740_v15 }
 0x99a   : > { %v8366_v47 = vpop.eup %8365 }
 0x99b   : > { %v7000_v25 = vmax.f32 %v6872_v19, 0.0  ;;  %vm7362_vm10 = vweird.f32 %v8366_v47 }
 0x99c   : > { %v6102_v32 = vpop.f32.mrf.mxu3  ;;  %v6611_v22 = vpop.f32.mrf.mxu0 }
 0x99d   : > { %v7267_v60 = vsel %vm7004_vm4, %v7000_v25, 0.0  ;;  %v6235_v9 = vadd.f32 %v6102_v32, %v5717_v54 }
 0x99e   : > { %v7268_v50 = vadd.f32 %v7267_v60, %v7266_v48 }
 0x99f   : > { %v6741_v23 = vadd.f32 %v6608_v28, %v6235_v9 }
 0x9a1   : > { %v6873_v26 = vadd.f32 %v12619_v52, %v6741_v23 }
 0x9a3   : > { %v7001_v57 = vmax.f32 %v6873_v26, 0.0 }
 0x9a4   : > { %v6105_v17 = vpop.f32.mrf.mxu3  ;;  %v6613_v20 = vpop.f32.mrf.mxu0 }
 0x9a5   : > { %v7269_v2 = vsel %vm7004_vm4, %v7001_v57, 0.0  ;;  %v6236_v59 = vadd.f32 %v6105_v17, %v5718_v36 }
 0x9a6   : > { %v7270_v31 = vadd.f32 %v7269_v2, %v7268_v50 }
 0x9a7   : > { %v6742_v62 = vadd.f32 %v6611_v22, %v6236_v59 }
 0x9a9   : > { %v6874_v55 = vadd.f32 %v12619_v52, %v6742_v62 }
 0x9ab   : > { %v7002_v18 = vmax.f32 %v6874_v55, 0.0 }
 0x9ac   : > { %v6107_v38 = vpop.f32.mrf.mxu3 }
 0x9ad   : > { %v7271_v43 = vsel %vm7004_vm4, %v7002_v18, 0.0  ;;  %v6237_v44 = vadd.f32 %v6107_v38, %v5719_v61 }
 0x9ae   : > { %v7272_v27 = vadd.f32 %v7271_v43, %v7270_v31 }
 0x9af   : > { %v6743_v8 = vadd.f32 %v6613_v20, %v6237_v44 }
 0x9b1   : > { %v6875_v13 = vadd.f32 %v12619_v52, %v6743_v8 }
 0x9b3   : > { %v7003_v42 = vmax.f32 %v6875_v13, 0.0 }
 0x9b5   : > { %v7273_v14 = vsel %vm7004_vm4, %v7003_v42, 0.0 }
 0x9b6   : > { %v7274_v24 = vadd.f32 %v7273_v14, %v7272_v27 }
 0x9b8   : > { %v7275_v45 = vrot.slane %v7274_v24, 4 }
 0x9ba   : > { %v7276_v7 = vadd.f32 %v7275_v45, %v7274_v24 }
 0x9bc   : > { %v7277_v0 = vrot.slane %v7276_v7, 2 }
 0x9be   : > { %v7278_v6 = vadd.f32 %v7277_v0, %v7276_v7 }
 0x9c0   : > { %v7279_v56 = vrot.slane %v7278_v6, 1 }
 0x9c2   : > { %v7280_v63 = vadd.f32 %v7279_v56, %v7278_v6 }
 0x9c4   : > { %v7291_v3 = vmul.f32 %v12305_v5, %v7280_v63  ;;  %v7358_v5 = vmul.f32 4.0, %v8366_v47 }
 0x9c6   : > { %v7295_v33 = vpack.c.bf16 %v7291_v3, %v7291_v3  ;;  %v7359_v53 = vsub.f32 1.0, %v7358_v5 }
 0x9c8   : > { %v7311_v51 = vunpack.c.l.b16 %v7295_v33  ;;  %v7360_v12 = vmul.f32 %v8366_v47, %v7359_v53 }
 0x9ca   : > { %v7317_v39 = vsel %vm7316_vm8, %v7311_v51, %v12588_v34  ;;  %v7361_v19 = vadd.f32 %v8366_v47, %v7360_v12 }
 0x9cb   : > { %v7318_v52 = vpack.c.b16 %v7317_v39, %v7317_v39 }
 0x9cc   : > { %v7363_v25 = vsel %vm7362_vm10, %v8366_v47, %v7361_v19 }
 0x9cd   : > { %8123 = vmatmul.msk.bf16.vlgmr.msrb.gmra.mxu1 %vm7004_vm4, %v7318_v52 }
 0xa4a   : > { %v7343_v16 = vpop.f32.mrf.mxu1 }
 0xa4b   : > { %v7344_v4 = vadd.f32 %v8362_v58, %v7343_v16 }
 0xa4d   : > { %v7347_v34 = vmax.f32 %v7344_v4, 0.0 }
 0xa4f   : > { %7348 = vst [vmem:[%s314_s24] sm:$0xf] %v7347_v34  ;;  %v7350_v35 = vsel %vm7349_vm9, %v7347_v34, 0.0 }
 0xa50   : > { %v7351_v48 = vrot.slane %v7350_v35, 4 }
 0xa52   : > { %v7352_v30 = vadd.f32 %v7351_v48, %v7350_v35  ;;  %v7345_v15 = vpop.f32.mrf.mxu1 }
 0xa54   : > { %v7353_v21 = vrot.slane %v7352_v30, 2 }
 0xa56   : > { %v7354_v28 = vadd.f32 %v7353_v21, %v7352_v30 }
 0xa58   : > { %v7355_v54 = vrot.slane %v7354_v28, 1 }
 0xa5a   : > { %v7356_v32 = vadd.f32 %v7355_v54, %v7354_v28 }
 0xa5c   : > { %v7364_v60 = vmul.f32 %v7363_v25, %v7356_v32 }
 0xa5e   : > { %v7365_v9 = vpack.c.bf16 %v7364_v60, %v7364_v60 }
 0xa60   : > { %7439 = vmatmul.bf16.vlgmr.msrb.gmra.mxu2 %v7365_v9 }
 0xae3   : > { %v7440_v50 = vpop.f32.mrf.mxu2 }
 0xae4   : > { %v7441_v29 = vadd.f32 %v7440_v50, %v7382_v46 }
 0xae6   : > { %7444 = vst [vmem:[%s317_s9] sm:$0x1] %v7441_v29 }
 0xaeb   : > { %v7442_v40 = vpop.f32.mrf.mxu2 }
 0xaec PF: > { %s19_s27 = sadd.s32 1, %s8438_s27  }
 0xaed   : > { %p16_p5 = scmp.ge.s32.totalorder %s19_s27, 4  }
 0xaef   :  { %18 = sbr.rel (!%p16_p5) target bundleno = 1 (0x1), region = 98 }

</bundles_post_ra>
